<compile_context>
chip_gen: v7x
topology: tpu7x:2x2x1
jax: 0.10.0
libtpu: 0.0.40
codegen_flags: <defaults>
</compile_context>

<pallas_src>
import functools

import jax
import jax.numpy as jnp
from jax import lax
from jax.experimental import pallas as pl
from jax.experimental.pallas import tpu as pltpu

KERNEL_SIZES = (3, 7, 11)
DILATIONS = (1, 3, 5)
NEG_SLOPE = 0.1
KMAX = max(KERNEL_SIZES)            # 11 (folded effective kernel size)
HALF = (KMAX - 1) // 2              # 5
E2 = 8                              # sublane-aligned halo of the dilation-1 stage
LANE = 128


def _leaky(x):
    return jnp.where(x >= 0, x, NEG_SLOPE * x)


def _round_up(x, m):
    return (x + m - 1) // m * m


# ---------------------------------------------------------------------------
# Capability probe: single-buffered (grid-invariant) inputs via pl.Buffered(1)
# ---------------------------------------------------------------------------
def _probe_single_buffer():
    if not hasattr(pl, "Buffered"):
        return False

    def _copy(x_ref, o_ref):
        o_ref[...] = x_ref[...]

    try:
        spec = pl.BlockSpec((8, 128), lambda i: (0, 0),
                            pipeline_mode=pl.Buffered(1))
        fn = pl.pallas_call(
            _copy,
            out_shape=jax.ShapeDtypeStruct((8, 128), jnp.float32),
            grid=(1,),
            in_specs=[spec],
            out_specs=pl.BlockSpec((8, 128), lambda i: (0, 0)),
        )
        jax.jit(fn).lower(jax.ShapeDtypeStruct((8, 128), jnp.float32)).compile()
        return True
    except Exception:
        return False


_SINGLE_BUFFER_OK = _probe_single_buffer()


def _resident_spec(block_shape, index_map):
    """BlockSpec for a grid-invariant input (weights/bias): one pipeline buffer."""
    if _SINGLE_BUFFER_OK:
        return pl.BlockSpec(block_shape, index_map, pipeline_mode=pl.Buffered(1))
    return pl.BlockSpec(block_shape, index_map)


# ---------------------------------------------------------------------------
# Pallas kernel: fused  LeakyReLU -> RepConv(dilation) -> LeakyReLU -> RepConv(1)
# over one (batch row, time tile) grid point.
# ---------------------------------------------------------------------------
def _fused_pair_kernel(x_ref, x_hbm, w1_ref, b1_ref, w2_ref, b2_ref, o_ref,
                       pad1, pad2, acc1, acc2, halo, sem,
                       *, TT, Cp, dilation, ext_in, lp1, T_true, Tp):
    # x_ref : (1, TT, Cp)   auto-pipelined core tile of x
    # x_hbm : (B, Tp, Cp)   same array in HBM, for the tiny halo DMAs
    # wK    : (KMAX, Cp, Cp) folded branch weights (compute dtype), resident
    # bK    : (1, Cp) f32    summed branch biases, resident
    # pad1  : (lp1 + TT + rp, Cp) staged activated input incl. halos
    # pad2  : (TT + 2*E2, Cp)     staged activated stage-1 output
    # acc1/2: f32 VMEM accumulators
    b = pl.program_id(0)
    ti = pl.program_id(1)
    nt = pl.num_programs(1)
    t0 = ti * TT
    cdt = pad1.dtype
    TTE = TT + 2 * E2

    # ---- start the (tiny) halo DMAs early so they overlap the core staging --
    @pl.when(ti > 0)
    def _():
        pltpu.make_async_copy(
            x_hbm.at[b, pl.ds(t0 - ext_in, ext_in), :], halo.at[0], sem.at[0]
        ).start()

    @pl.when(ti < nt - 1)
    def _():
        pltpu.make_async_copy(
            x_hbm.at[b, pl.ds(t0 + TT, ext_in), :], halo.at[1], sem.at[1]
        ).start()

    # ---- stage the activated core tile (LeakyReLU before zero padding is
    #      equivalent to padding first, since LeakyReLU(0) == 0) --------------
    pad1[lp1:lp1 + TT, :] = _leaky(x_ref[0]).astype(cdt)

    # ---- halos: real neighbour rows inside the sequence, zeros at the edges -
    @pl.when(ti == 0)
    def _():
        pad1[0:lp1, :] = jnp.zeros((lp1, Cp), cdt)

    @pl.when(ti > 0)
    def _():
        pltpu.make_async_copy(
            x_hbm.at[b, pl.ds(t0 - ext_in, ext_in), :], halo.at[0], sem.at[0]
        ).wait()
        pad1[lp1 - ext_in:lp1, :] = _leaky(halo[0]).astype(cdt)

    @pl.when(ti == nt - 1)
    def _():
        pad1[lp1 + TT:, :] = jnp.zeros((pad1.shape[0] - lp1 - TT, Cp), cdt)

    @pl.when(ti < nt - 1)
    def _():
        pltpu.make_async_copy(
            x_hbm.at[b, pl.ds(t0 + TT, ext_in), :], halo.at[1], sem.at[1]
        ).wait()
        pad1[lp1 + TT:lp1 + TT + ext_in, :] = _leaky(halo[1]).astype(cdt)

    # ---- stage 1: RepConv(dilation) over the E2-extended range ---------------
    # Seed the f32 VMEM accumulator with (identity + summed bias) in ONE store,
    # then chain the 11 folded-tap MXU dots into it with `+=`.
    base0 = lp1 - E2
    acc1[...] = pad1[base0:base0 + TTE, :].astype(jnp.float32) + b1_ref[...]
    base1 = lp1 - ext_in
    for j in range(KMAX):
        off = base1 + j * dilation
        acc1[...] += jnp.dot(pad1[off:off + TTE, :], w1_ref[j],
                             preferred_element_type=jnp.float32)

    # ---- stage 2: LeakyReLU + RepConv(dilation=1) ----------------------------
    h = _leaky(acc1[...])                                   # (TTE, Cp) f32
    # conv2 zero-pads its input outside the true sequence [0, T): mask rows of
    # the extended range that fall outside before they feed any tap.
    rows = t0 - E2 + lax.broadcasted_iota(jnp.int32, (TTE, 1), 0)
    h = jnp.where((rows >= 0) & (rows < T_true), h, 0.0)
    pad2[...] = h.astype(cdt)

    acc2[...] = h[E2:E2 + TT, :] + b2_ref[...]              # identity + bias
    base2 = E2 - HALF
    for j in range(KMAX):
        off = base2 + j
        acc2[...] += jnp.dot(pad2[off:off + TT, :], w2_ref[j],
                             preferred_element_type=jnp.float32)

    out = acc2[...]
    if Tp != T_true:   # keep padded tail rows exactly zero so chaining is valid
        out_rows = t0 + lax.broadcasted_iota(jnp.int32, (TT, 1), 0)
        out = jnp.where(out_rows < T_true, out, 0.0)
    o_ref[0] = out.astype(o_ref.dtype)


def fused_repconv_pair(x_btc, w1, b1, w2, b2, *, dilation, compute_dtype,
                       out_dtype, T_true, time_tile):
    """One fused (act+convs1, act+convs2) pair.

    x_btc: (B, Tp, Cp) with Cp % 128 == 0 and Tp % time_tile == 0; rows in
    [T_true, Tp) must be zero (they are kept zero on output).
    """
    B, Tp, Cp = x_btc.shape
    TT = time_tile
    assert Tp % TT == 0 and Cp % LANE == 0
    nT = Tp // TT
    ext_in = E2 + HALF * dilation              # input halo of the fused pair
    lp1 = _round_up(ext_in, 8)
    W1 = lp1 + TT + _round_up(ext_in, 8)       # staged, halo-extended input
    TTE = TT + 2 * E2

    in_b = jnp.dtype(x_btc.dtype).itemsize
    cd_b = jnp.dtype(compute_dtype).itemsize
    out_b = jnp.dtype(out_dtype).itemsize
    vmem_est = (2 * TT * Cp * in_b             # input block (double-buffered)
                + 2 * TT * Cp * out_b          # output block (double-buffered)
                + 2 * KMAX * Cp * Cp * cd_b    # folded weight banks (resident)
                + (W1 + TTE) * Cp * cd_b       # conv staging scratch
                + (TTE + TT) * Cp * 4          # f32 accumulators
                + 2 * ext_in * Cp * in_b       # halo DMA landing buffers
                + 4 * Cp * 4)                  # biases
    try:
        vmem_cap = int(pltpu.get_tpu_info().vmem_capacity_bytes)
    except Exception:
        vmem_cap = 128 * 2 ** 20
    vmem_limit = int(min(max(int(vmem_est * 1.3), 32 * 2 ** 20),
                         int(vmem_cap * 0.85)))

    kernel = functools.partial(
        _fused_pair_kernel, TT=TT, Cp=Cp, dilation=dilation,
        ext_in=ext_in, lp1=lp1, T_true=T_true, Tp=Tp)

    return pl.pallas_call(
        kernel,
        out_shape=jax.ShapeDtypeStruct((B, Tp, Cp), out_dtype),
        grid=(B, nT),
        in_specs=[
            pl.BlockSpec((1, TT, Cp), lambda b, t: (b, t, 0)),   # core tile
            pl.BlockSpec(memory_space=pl.ANY),                   # x in HBM (halos)
            _resident_spec((KMAX, Cp, Cp), lambda b, t: (0, 0, 0)),
            _resident_spec((1, Cp), lambda b, t: (0, 0)),
            _resident_spec((KMAX, Cp, Cp), lambda b, t: (0, 0, 0)),
            _resident_spec((1, Cp), lambda b, t: (0, 0)),
        ],
        out_specs=pl.BlockSpec((1, TT, Cp), lambda b, t: (b, t, 0)),
        scratch_shapes=[
            pltpu.VMEM((W1, Cp), compute_dtype),      # pad1: halo-extended input
            pltpu.VMEM((TTE, Cp), compute_dtype),     # pad2: stage-1 activations
            pltpu.VMEM((TTE, Cp), jnp.float32),       # acc1
            pltpu.VMEM((TT, Cp), jnp.float32),        # acc2
            pltpu.VMEM((2, ext_in, Cp), x_btc.dtype),  # halo DMA buffers
            pltpu.SemaphoreType.DMA((2,)),
        ],
        compiler_params=pltpu.CompilerParams(
            dimension_semantics=("parallel", "parallel"),
            vmem_limit_bytes=vmem_limit),
    )(x_btc, x_btc, w1, b1, w2, b2)


# ---------------------------------------------------------------------------
# Weight folding ("re-param" trick) — call ONCE, outside the generation loop.
# ---------------------------------------------------------------------------
def fold_params(params, channels, compute_dtype=jnp.bfloat16):
    """Fold each RepConv's (3, 7, 11) branch bank into one 11-tap kernel + bias.

    Returns a list (one entry per dilation) of (w1, b1, w2, b2), channel-padded
    to a multiple of 128 and cast to the compute dtype (biases stay f32).
    """
    C = channels
    Cp = _round_up(C, LANE)

    def fold(branches):
        w_eff = jnp.zeros((KMAX, Cp, Cp), jnp.float32)
        b_eff = jnp.zeros((Cp,), jnp.float32)
        for (w, b), ks in zip(branches, KERNEL_SIZES):   # w: (ks, Cin, Cout)
            half = (ks - 1) // 2
            w_eff = w_eff.at[HALF - half:HALF + half + 1, :C, :C].add(w)
            b_eff = b_eff.at[:C].add(b)
        return w_eff.astype(compute_dtype), b_eff.reshape(1, Cp)

    return [fold(params["convs1"][i]) + fold(params["convs2"][i])
            for i in range(len(DILATIONS))]


def residual_block_pallas(x_nct, folded, compute_dtype=jnp.bfloat16,
                          time_tile=512):
    """ResidualBlock forward. x_nct: (B, C, T) like PyTorch; returns (B, C, T).

    `folded` comes from fold_params(). Intermediates between the three fused
    pairs are carried in compute_dtype (bf16 fast path) to halve inter-call
    HBM traffic; only the last pair casts back to the input dtype.
    # TODO(synk): keep the surrounding model in BTC layout so the NCT<->BTC
    #             transposes below disappear entirely.
    """
    B, C, T = x_nct.shape
    Cp = folded[0][0].shape[-1]

    tt = _round_up(max(16, min(time_tile, _round_up(T, 16))), 16)
    if _round_up(T, tt) > tt:          # more than one tile -> halo must fit
        tt = max(tt, 48)
    Tp = _round_up(T, tt)

    x = jnp.transpose(x_nct, (0, 2, 1))                    # NCT -> BTC
    x = jnp.pad(x, ((0, 0), (0, Tp - T), (0, Cp - C)))     # lane-dense C, tiled T
    for idx, dil in enumerate(DILATIONS):
        w1, b1, w2, b2 = folded[idx]
        last = idx == len(DILATIONS) - 1
        x = fused_repconv_pair(
            x, w1, b1, w2, b2, dilation=dil, compute_dtype=compute_dtype,
            out_dtype=(x_nct.dtype if last else compute_dtype),
            T_true=T, time_tile=tt)
    return jnp.transpose(x[:, :T, :C], (0, 2, 1))          # BTC -> NCT


# ---------------------------------------------------------------------------
# Deterministic parameter init (PyTorch Conv1d default uniform bounds)
# ---------------------------------------------------------------------------
def init_params(key, channels):
    def init_repconv(k):
        branches = []
        for ks in KERNEL_SIZES:
            k, kw, kb = jax.random.split(k, 3)
            bound = 1.0 / jnp.sqrt(channels * ks)
            # stored pre-transposed for the kernel: (ks, Cin, Cout)
            w = jax.random.uniform(kw, (ks, channels, channels),
                                   jnp.float32, -bound, bound)
            b = jax.random.uniform(kb, (channels,), jnp.float32, -bound, bound)
            branches.append((w, b))
        return branches, k

    params = {"convs1": [], "convs2": []}
    for _ in DILATIONS:
        p1, key = init_repconv(key)
        p2, key = init_repconv(key)
        params["convs1"].append(p1)
        params["convs2"].append(p2)
    return params


# ---------------------------------------------------------------------------
# Pure-JAX reference (lax.conv_general_dilated) for correctness checking
# ---------------------------------------------------------------------------
def _repconv_ref(x_nct, branch_params, dilation):
    out = x_nct                                          # identity branch
    for w, bias in branch_params:                        # w: (ks, Cin, Cout)
        ks = w.shape[0]
        pad = (ks - 1) // 2 * dilation
        w_oih = jnp.transpose(w, (2, 1, 0))              # -> (Cout, Cin, ks)
        out = out + lax.conv_general_dilated(
            x_nct, w_oih, window_strides=(1,), padding=[(pad, pad)],
            rhs_dilation=(dilation,),
            dimension_numbers=("NCH", "OIH", "NCH")) + bias[None, :, None]
    return out


def residual_block_ref(x_nct, params):
    x = x_nct
    for idx, dil in enumerate(DILATIONS):
        x = _leaky(x)
        x = _repconv_ref(x, params["convs1"][idx], dil)
        x = _leaky(x)
        x = _repconv_ref(x, params["convs2"][idx], 1)
    return x


if __name__ == "__main__":
    B, C = 2, 64
    key = jax.random.PRNGKey(0)
    key, kx1, kx2 = jax.random.split(key, 3)
    params = init_params(key, C)

    fwd = jax.jit(residual_block_pallas,
                  static_argnames=("compute_dtype", "time_tile"))

    # --- exact-precision path, single time tile (tight check) ----------------
    T = 64
    x = jax.random.normal(kx1, (B, C, T), jnp.float32)
    ref = residual_block_ref(x, params)
    folded32 = fold_params(params, C, jnp.float32)
    out = jax.block_until_ready(fwd(x, folded32, compute_dtype=jnp.float32))
    assert out.shape == (B, C, T) and out.dtype == jnp.float32
    assert jnp.allclose(out, ref, rtol=2e-3, atol=2e-3), (
        float(jnp.max(jnp.abs(out - ref))))

    # --- exact path, multiple time tiles + ragged tail (halo DMAs + masking) -
    T2 = 200
    x2 = jax.random.normal(kx2, (B, C, T2), jnp.float32)
    ref2 = residual_block_ref(x2, params)
    out2 = jax.block_until_ready(
        fwd(x2, folded32, compute_dtype=jnp.float32, time_tile=64))
    assert out2.shape == (B, C, T2)
    assert jnp.allclose(out2, ref2, rtol=2e-3, atol=2e-3), (
        float(jnp.max(jnp.abs(out2 - ref2))))

    # --- bf16 fast path (f32 accumulation, bf16 inter-pair intermediates) ----
    foldedbf = fold_params(params, C, jnp.bfloat16)
    outbf = jax.block_until_ready(fwd(x, foldedbf, compute_dtype=jnp.bfloat16))
    assert outbf.dtype == jnp.float32
    assert jnp.allclose(outbf, ref, rtol=1e-1, atol=1e-1), (
        float(jnp.max(jnp.abs(outbf - ref))))

    print("KERNEL_OK")
</pallas_src>

<mosaic_0001>
module attributes {stable_mosaic.version = 11 : i64} {
  func.func @_fused_pair_kernel(%arg0: i32, %arg1: i32, %arg2: memref<1x64x128xf32, #tpu.memory_space<vmem>>, %arg3: memref<2x64x128xf32, #tpu.memory_space<any>>, %arg4: memref<11x128x128xf32, #tpu.memory_space<vmem>>, %arg5: memref<1x128xf32, #tpu.memory_space<vmem>>, %arg6: memref<11x128x128xf32, #tpu.memory_space<vmem>>, %arg7: memref<1x128xf32, #tpu.memory_space<vmem>>, %arg8: memref<1x64x128xf32, #tpu.memory_space<vmem>>, %arg9: memref<96x128xf32, #tpu.memory_space<vmem>>, %arg10: memref<80x128xf32, #tpu.memory_space<vmem>>, %arg11: memref<80x128xf32, #tpu.memory_space<vmem>>, %arg12: memref<64x128xf32, #tpu.memory_space<vmem>>, %arg13: memref<2x13x128xf32, #tpu.memory_space<vmem>>, %arg14: memref<2x!tpu.dma_semaphore, #tpu.memory_space<semaphore_mem>>) attributes {dimension_semantics = [#tpu.dimension_semantics<parallel>, #tpu.dimension_semantics<parallel>], iteration_bounds = array<i64: 2, 1>, scalar_prefetch = 0 : i64, scratch_operands = 6 : i64, tpu.core_type = #tpu.core_type<tc>, window_params = [{transform_indices = @transform_0, window_bounds = array<i64: 1, 64, 128>}, {}, {pipeline_mode = #tpu.pipeline_mode<synchronous>, transform_indices = @transform_2, window_bounds = array<i64: 11, 128, 128>}, {pipeline_mode = #tpu.pipeline_mode<synchronous>, transform_indices = @transform_3, window_bounds = array<i64: 1, 128>}, {pipeline_mode = #tpu.pipeline_mode<synchronous>, transform_indices = @transform_4, window_bounds = array<i64: 11, 128, 128>}, {pipeline_mode = #tpu.pipeline_mode<synchronous>, transform_indices = @transform_5, window_bounds = array<i64: 1, 128>}, {transform_indices = @transform_6, window_bounds = array<i64: 1, 64, 128>}]} {
    %c64_i32 = arith.constant 64 : i32
    %0 = arith.muli %arg1, %c64_i32 : i32
    %c0_i32 = arith.constant 0 : i32
    %1 = arith.cmpi sgt, %arg1, %c0_i32 : i32
    %2 = arith.extui %1 : i1 to i32
    %c0_i32_0 = arith.constant 0 : i32
    %3 = arith.cmpi ne, %2, %c0_i32_0 : i32
    scf.if %3 {
      %c13_i32 = arith.constant 13 : i32
      %215 = arith.subi %0, %c13_i32 : i32
      %c0_i32_246 = arith.constant 0 : i32
      %c0_i32_247 = arith.constant 0 : i32
      %c0_i32_248 = arith.constant 0 : i32
      %216 = tpu.memref_slice %arg3[%arg0, %215, %c0_i32_248] : memref<2x64x128xf32, #tpu.memory_space<any>> -> memref<1x13x128xf32, #tpu.memory_space<any>>
      %217 = tpu.memref_squeeze %216 : memref<1x13x128xf32, #tpu.memory_space<any>> -> memref<13x128xf32, #tpu.memory_space<any>>
      %c0_i32_249 = arith.constant 0 : i32
      %c0_i32_250 = arith.constant 0 : i32
      %218 = tpu.memref_slice %arg13[%c0_i32_246, %c0_i32_249, %c0_i32_250] : memref<2x13x128xf32, #tpu.memory_space<vmem>> -> memref<1x13x128xf32, #tpu.memory_space<vmem>>
      %219 = tpu.memref_squeeze %218 : memref<1x13x128xf32, #tpu.memory_space<vmem>> -> memref<13x128xf32, #tpu.memory_space<vmem>>
      %220 = tpu.memref_slice %arg14[%c0_i32_247] : memref<2x!tpu.dma_semaphore, #tpu.memory_space<semaphore_mem>> -> memref<1x!tpu.dma_semaphore, #tpu.memory_space<semaphore_mem>>
      %221 = tpu.memref_squeeze %220 : memref<1x!tpu.dma_semaphore, #tpu.memory_space<semaphore_mem>> -> memref<!tpu.dma_semaphore, #tpu.memory_space<semaphore_mem>>
      tpu.enqueue_dma source(%217 : memref<13x128xf32, #tpu.memory_space<any>>) target(%219 : memref<13x128xf32, #tpu.memory_space<vmem>>) target_semaphore(%221 : memref<!tpu.dma_semaphore, #tpu.memory_space<semaphore_mem>>)
    } else {
    }
    %c0_i32_1 = arith.constant 0 : i32
    %4 = arith.cmpi slt, %arg1, %c0_i32_1 : i32
    %5 = arith.extui %4 : i1 to i32
    %c0_i32_2 = arith.constant 0 : i32
    %6 = arith.cmpi ne, %5, %c0_i32_2 : i32
    scf.if %6 {
      %c64_i32_246 = arith.constant 64 : i32
      %215 = arith.addi %0, %c64_i32_246 : i32
      %c1_i32 = arith.constant 1 : i32
      %c1_i32_247 = arith.constant 1 : i32
      %c0_i32_248 = arith.constant 0 : i32
      %216 = tpu.memref_slice %arg3[%arg0, %215, %c0_i32_248] : memref<2x64x128xf32, #tpu.memory_space<any>> -> memref<1x13x128xf32, #tpu.memory_space<any>>
      %217 = tpu.memref_squeeze %216 : memref<1x13x128xf32, #tpu.memory_space<any>> -> memref<13x128xf32, #tpu.memory_space<any>>
      %c0_i32_249 = arith.constant 0 : i32
      %c0_i32_250 = arith.constant 0 : i32
      %218 = tpu.memref_slice %arg13[%c1_i32, %c0_i32_249, %c0_i32_250] : memref<2x13x128xf32, #tpu.memory_space<vmem>> -> memref<1x13x128xf32, #tpu.memory_space<vmem>>
      %219 = tpu.memref_squeeze %218 : memref<1x13x128xf32, #tpu.memory_space<vmem>> -> memref<13x128xf32, #tpu.memory_space<vmem>>
      %220 = tpu.memref_slice %arg14[%c1_i32_247] : memref<2x!tpu.dma_semaphore, #tpu.memory_space<semaphore_mem>> -> memref<1x!tpu.dma_semaphore, #tpu.memory_space<semaphore_mem>>
      %221 = tpu.memref_squeeze %220 : memref<1x!tpu.dma_semaphore, #tpu.memory_space<semaphore_mem>> -> memref<!tpu.dma_semaphore, #tpu.memory_space<semaphore_mem>>
      tpu.enqueue_dma source(%217 : memref<13x128xf32, #tpu.memory_space<any>>) target(%219 : memref<13x128xf32, #tpu.memory_space<vmem>>) target_semaphore(%221 : memref<!tpu.dma_semaphore, #tpu.memory_space<semaphore_mem>>)
    } else {
    }
    %c0 = arith.constant 0 : index
    %c0_3 = arith.constant 0 : index
    %c0_4 = arith.constant 0 : index
    %7 = vector.load %arg2[%c0, %c0_3, %c0_4] : memref<1x64x128xf32, #tpu.memory_space<vmem>>, vector<1x64x128xf32>
    %8 = vector.shape_cast %7 : vector<1x64x128xf32> to vector<64x128xf32>
    %cst = arith.constant 0.000000e+00 : f32
    %9 = vector.broadcast %cst : f32 to vector<64x128xf32>
    %10 = arith.cmpf oge, %8, %9 : vector<64x128xf32>
    %cst_5 = arith.constant 1.000000e-01 : f32
    %11 = vector.broadcast %cst_5 : f32 to vector<64x128xf32>
    %12 = arith.mulf %11, %8 : vector<64x128xf32>
    %13 = arith.select %10, %8, %12 : vector<64x128xi1>, vector<64x128xf32>
    %c16 = arith.constant 16 : index
    %c0_6 = arith.constant 0 : index
    %14 = vector.load %arg9[%c16, %c0_6] : memref<96x128xf32, #tpu.memory_space<vmem>>, vector<64x128xf32>
    tpu.vector_store %arg9[%c16, %c0_6], %13 {strides = array<i32>} : memref<96x128xf32, #tpu.memory_space<vmem>>, vector<64x128xf32>,
    %c0_i32_7 = arith.constant 0 : i32
    %15 = arith.cmpi eq, %arg1, %c0_i32_7 : i32
    %16 = arith.extui %15 : i1 to i32
    %c0_i32_8 = arith.constant 0 : i32
    %17 = arith.cmpi ne, %16, %c0_i32_8 : i32
    scf.if %17 {
      %cst_246 = arith.constant 0.000000e+00 : f32
      %215 = vector.broadcast %cst_246 : f32 to vector<16x128xf32>
      %c0_247 = arith.constant 0 : index
      %c0_248 = arith.constant 0 : index
      %216 = vector.load %arg9[%c0_247, %c0_248] : memref<96x128xf32, #tpu.memory_space<vmem>>, vector<16x128xf32>
      tpu.vector_store %arg9[%c0_247, %c0_248], %215 {strides = array<i32>} : memref<96x128xf32, #tpu.memory_space<vmem>>, vector<16x128xf32>,
    } else {
    }
    %c0_i32_9 = arith.constant 0 : i32
    %18 = arith.cmpi sgt, %arg1, %c0_i32_9 : i32
    %19 = arith.extui %18 : i1 to i32
    %c0_i32_10 = arith.constant 0 : i32
    %20 = arith.cmpi ne, %19, %c0_i32_10 : i32
    scf.if %20 {
      %c13_i32 = arith.constant 13 : i32
      %215 = arith.subi %0, %c13_i32 : i32
      %c0_i32_246 = arith.constant 0 : i32
      %c0_i32_247 = arith.constant 0 : i32
      %c0_i32_248 = arith.constant 0 : i32
      %216 = tpu.memref_slice %arg3[%arg0, %215, %c0_i32_248] : memref<2x64x128xf32, #tpu.memory_space<any>> -> memref<1x13x128xf32, #tpu.memory_space<any>>
      %217 = tpu.memref_squeeze %216 : memref<1x13x128xf32, #tpu.memory_space<any>> -> memref<13x128xf32, #tpu.memory_space<any>>
      %c0_i32_249 = arith.constant 0 : i32
      %c0_i32_250 = arith.constant 0 : i32
      %218 = tpu.memref_slice %arg13[%c0_i32_246, %c0_i32_249, %c0_i32_250] : memref<2x13x128xf32, #tpu.memory_space<vmem>> -> memref<1x13x128xf32, #tpu.memory_space<vmem>>
      %219 = tpu.memref_squeeze %218 : memref<1x13x128xf32, #tpu.memory_space<vmem>> -> memref<13x128xf32, #tpu.memory_space<vmem>>
      %220 = tpu.memref_slice %arg14[%c0_i32_247] : memref<2x!tpu.dma_semaphore, #tpu.memory_space<semaphore_mem>> -> memref<1x!tpu.dma_semaphore, #tpu.memory_space<semaphore_mem>>
      %221 = tpu.memref_squeeze %220 : memref<1x!tpu.dma_semaphore, #tpu.memory_space<semaphore_mem>> -> memref<!tpu.dma_semaphore, #tpu.memory_space<semaphore_mem>>
      tpu.wait_dma2 semaphore(%221 : memref<!tpu.dma_semaphore, #tpu.memory_space<semaphore_mem>>) src(%217 : memref<13x128xf32, #tpu.memory_space<any>>) dst(%219 : memref<13x128xf32, #tpu.memory_space<vmem>>)
      %c0_251 = arith.constant 0 : index
      %c0_252 = arith.constant 0 : index
      %c0_253 = arith.constant 0 : index
      %222 = vector.load %arg13[%c0_251, %c0_252, %c0_253] : memref<2x13x128xf32, #tpu.memory_space<vmem>>, vector<1x13x128xf32>
      %223 = vector.shape_cast %222 : vector<1x13x128xf32> to vector<13x128xf32>
      %cst_254 = arith.constant 0.000000e+00 : f32
      %224 = vector.broadcast %cst_254 : f32 to vector<13x128xf32>
      %225 = arith.cmpf oge, %223, %224 : vector<13x128xf32>
      %cst_255 = arith.constant 1.000000e-01 : f32
      %226 = vector.broadcast %cst_255 : f32 to vector<13x128xf32>
      %227 = arith.mulf %226, %223 : vector<13x128xf32>
      %228 = arith.select %225, %223, %227 : vector<13x128xi1>, vector<13x128xf32>
      %c3_256 = arith.constant 3 : index
      %c0_257 = arith.constant 0 : index
      %229 = vector.load %arg9[%c3_256, %c0_257] : memref<96x128xf32, #tpu.memory_space<vmem>>, vector<13x128xf32>
      tpu.vector_store %arg9[%c3_256, %c0_257], %228 {strides = array<i32>} : memref<96x128xf32, #tpu.memory_space<vmem>>, vector<13x128xf32>,
    } else {
    }
    %c0_i32_11 = arith.constant 0 : i32
    %21 = arith.cmpi eq, %arg1, %c0_i32_11 : i32
    %22 = arith.extui %21 : i1 to i32
    %c0_i32_12 = arith.constant 0 : i32
    %23 = arith.cmpi ne, %22, %c0_i32_12 : i32
    scf.if %23 {
      %cst_246 = arith.constant 0.000000e+00 : f32
      %215 = vector.broadcast %cst_246 : f32 to vector<16x128xf32>
      %c80 = arith.constant 80 : index
      %c0_247 = arith.constant 0 : index
      %216 = vector.load %arg9[%c80, %c0_247] : memref<96x128xf32, #tpu.memory_space<vmem>>, vector<16x128xf32>
      tpu.vector_store %arg9[%c80, %c0_247], %215 {strides = array<i32>} : memref<96x128xf32, #tpu.memory_space<vmem>>, vector<16x128xf32>,
    } else {
    }
    %c0_i32_13 = arith.constant 0 : i32
    %24 = arith.cmpi slt, %arg1, %c0_i32_13 : i32
    %25 = arith.extui %24 : i1 to i32
    %c0_i32_14 = arith.constant 0 : i32
    %26 = arith.cmpi ne, %25, %c0_i32_14 : i32
    scf.if %26 {
      %c64_i32_246 = arith.constant 64 : i32
      %215 = arith.addi %0, %c64_i32_246 : i32
      %c1_i32 = arith.constant 1 : i32
      %c1_i32_247 = arith.constant 1 : i32
      %c0_i32_248 = arith.constant 0 : i32
      %216 = tpu.memref_slice %arg3[%arg0, %215, %c0_i32_248] : memref<2x64x128xf32, #tpu.memory_space<any>> -> memref<1x13x128xf32, #tpu.memory_space<any>>
      %217 = tpu.memref_squeeze %216 : memref<1x13x128xf32, #tpu.memory_space<any>> -> memref<13x128xf32, #tpu.memory_space<any>>
      %c0_i32_249 = arith.constant 0 : i32
      %c0_i32_250 = arith.constant 0 : i32
      %218 = tpu.memref_slice %arg13[%c1_i32, %c0_i32_249, %c0_i32_250] : memref<2x13x128xf32, #tpu.memory_space<vmem>> -> memref<1x13x128xf32, #tpu.memory_space<vmem>>
      %219 = tpu.memref_squeeze %218 : memref<1x13x128xf32, #tpu.memory_space<vmem>> -> memref<13x128xf32, #tpu.memory_space<vmem>>
      %220 = tpu.memref_slice %arg14[%c1_i32_247] : memref<2x!tpu.dma_semaphore, #tpu.memory_space<semaphore_mem>> -> memref<1x!tpu.dma_semaphore, #tpu.memory_space<semaphore_mem>>
      %221 = tpu.memref_squeeze %220 : memref<1x!tpu.dma_semaphore, #tpu.memory_space<semaphore_mem>> -> memref<!tpu.dma_semaphore, #tpu.memory_space<semaphore_mem>>
      tpu.wait_dma2 semaphore(%221 : memref<!tpu.dma_semaphore, #tpu.memory_space<semaphore_mem>>) src(%217 : memref<13x128xf32, #tpu.memory_space<any>>) dst(%219 : memref<13x128xf32, #tpu.memory_space<vmem>>)
      %c1_251 = arith.constant 1 : index
      %c0_252 = arith.constant 0 : index
      %c0_253 = arith.constant 0 : index
      %222 = vector.load %arg13[%c1_251, %c0_252, %c0_253] : memref<2x13x128xf32, #tpu.memory_space<vmem>>, vector<1x13x128xf32>
      %223 = vector.shape_cast %222 : vector<1x13x128xf32> to vector<13x128xf32>
      %cst_254 = arith.constant 0.000000e+00 : f32
      %224 = vector.broadcast %cst_254 : f32 to vector<13x128xf32>
      %225 = arith.cmpf oge, %223, %224 : vector<13x128xf32>
      %cst_255 = arith.constant 1.000000e-01 : f32
      %226 = vector.broadcast %cst_255 : f32 to vector<13x128xf32>
      %227 = arith.mulf %226, %223 : vector<13x128xf32>
      %228 = arith.select %225, %223, %227 : vector<13x128xi1>, vector<13x128xf32>
      %c80 = arith.constant 80 : index
      %c0_256 = arith.constant 0 : index
      %229 = vector.load %arg9[%c80, %c0_256] : memref<96x128xf32, #tpu.memory_space<vmem>>, vector<13x128xf32>
      tpu.vector_store %arg9[%c80, %c0_256], %228 {strides = array<i32>} : memref<96x128xf32, #tpu.memory_space<vmem>>, vector<13x128xf32>,
    } else {
    }
    %c8 = arith.constant 8 : index
    %c0_15 = arith.constant 0 : index
    %27 = vector.load %arg9[%c8, %c0_15] : memref<96x128xf32, #tpu.memory_space<vmem>>, vector<80x128xf32>
    %c0_16 = arith.constant 0 : index
    %c0_17 = arith.constant 0 : index
    %28 = vector.load %arg5[%c0_16, %c0_17] : memref<1x128xf32, #tpu.memory_space<vmem>>, vector<1x128xf32>
    %29 = vector.broadcast %28 : vector<1x128xf32> to vector<80x128xf32>
    %30 = arith.addf %27, %29 : vector<80x128xf32>
    %c0_18 = arith.constant 0 : index
    %c0_19 = arith.constant 0 : index
    %31 = vector.load %arg11[%c0_18, %c0_19] : memref<80x128xf32, #tpu.memory_space<vmem>>, vector<80x128xf32>
    tpu.vector_store %arg11[%c0_18, %c0_19], %30 {strides = array<i32>} : memref<80x128xf32, #tpu.memory_space<vmem>>, vector<80x128xf32>,
    %c0_20 = arith.constant 0 : index
    %c0_21 = arith.constant 0 : index
    %32 = vector.load %arg11[%c0_20, %c0_21] : memref<80x128xf32, #tpu.memory_space<vmem>>, vector<80x128xf32>
    %c3 = arith.constant 3 : index
    %c0_22 = arith.constant 0 : index
    %33 = vector.load %arg9[%c3, %c0_22] : memref<96x128xf32, #tpu.memory_space<vmem>>, vector<80x128xf32>
    %c0_23 = arith.constant 0 : index
    %c0_24 = arith.constant 0 : index
    %c0_25 = arith.constant 0 : index
    %34 = vector.load %arg4[%c0_23, %c0_24, %c0_25] : memref<11x128x128xf32, #tpu.memory_space<vmem>>, vector<1x128x128xf32>
    %35 = vector.shape_cast %34 : vector<1x128x128xf32> to vector<128x128xf32>
    %cst_26 = arith.constant dense<0.000000e+00> : vector<80x128xf32>
    %36 = tpu.matmul %33, %35, %cst_26 {dimension_numbers = #tpu.dot_dimension_numbers<[1], [0], [0], [1], [0, 0, 1, 1], [], []>} : vector<80x128xf32>, vector<128x128xf32>, vector<80x128xf32> -> vector<80x128xf32>
    %37 = arith.addf %32, %36 : vector<80x128xf32>
    %c0_27 = arith.constant 0 : index
    %c0_28 = arith.constant 0 : index
    %38 = vector.load %arg11[%c0_27, %c0_28] : memref<80x128xf32, #tpu.memory_space<vmem>>, vector<80x128xf32>
    tpu.vector_store %arg11[%c0_27, %c0_28], %37 {strides = array<i32>} : memref<80x128xf32, #tpu.memory_space<vmem>>, vector<80x128xf32>,
    %c0_29 = arith.constant 0 : index
    %c0_30 = arith.constant 0 : index
    %39 = vector.load %arg11[%c0_29, %c0_30] : memref<80x128xf32, #tpu.memory_space<vmem>>, vector<80x128xf32>
    %c4 = arith.constant 4 : index
    %c0_31 = arith.constant 0 : index
    %40 = vector.load %arg9[%c4, %c0_31] : memref<96x128xf32, #tpu.memory_space<vmem>>, vector<80x128xf32>
    %c1 = arith.constant 1 : index
    %c0_32 = arith.constant 0 : index
    %c0_33 = arith.constant 0 : index
    %41 = vector.load %arg4[%c1, %c0_32, %c0_33] : memref<11x128x128xf32, #tpu.memory_space<vmem>>, vector<1x128x128xf32>
    %42 = vector.shape_cast %41 : vector<1x128x128xf32> to vector<128x128xf32>
    %cst_34 = arith.constant dense<0.000000e+00> : vector<80x128xf32>
    %43 = tpu.matmul %40, %42, %cst_34 {dimension_numbers = #tpu.dot_dimension_numbers<[1], [0], [0], [1], [0, 0, 1, 1], [], []>} : vector<80x128xf32>, vector<128x128xf32>, vector<80x128xf32> -> vector<80x128xf32>
    %44 = arith.addf %39, %43 : vector<80x128xf32>
    %c0_35 = arith.constant 0 : index
    %c0_36 = arith.constant 0 : index
    %45 = vector.load %arg11[%c0_35, %c0_36] : memref<80x128xf32, #tpu.memory_space<vmem>>, vector<80x128xf32>
    tpu.vector_store %arg11[%c0_35, %c0_36], %44 {strides = array<i32>} : memref<80x128xf32, #tpu.memory_space<vmem>>, vector<80x128xf32>,
    %c0_37 = arith.constant 0 : index
    %c0_38 = arith.constant 0 : index
    %46 = vector.load %arg11[%c0_37, %c0_38] : memref<80x128xf32, #tpu.memory_space<vmem>>, vector<80x128xf32>
    %c5 = arith.constant 5 : index
    %c0_39 = arith.constant 0 : index
    %47 = vector.load %arg9[%c5, %c0_39] : memref<96x128xf32, #tpu.memory_space<vmem>>, vector<80x128xf32>
    %c2 = arith.constant 2 : index
    %c0_40 = arith.constant 0 : index
    %c0_41 = arith.constant 0 : index
    %48 = vector.load %arg4[%c2, %c0_40, %c0_41] : memref<11x128x128xf32, #tpu.memory_space<vmem>>, vector<1x128x128xf32>
    %49 = vector.shape_cast %48 : vector<1x128x128xf32> to vector<128x128xf32>
    %cst_42 = arith.constant dense<0.000000e+00> : vector<80x128xf32>
    %50 = tpu.matmul %47, %49, %cst_42 {dimension_numbers = #tpu.dot_dimension_numbers<[1], [0], [0], [1], [0, 0, 1, 1], [], []>} : vector<80x128xf32>, vector<128x128xf32>, vector<80x128xf32> -> vector<80x128xf32>
    %51 = arith.addf %46, %50 : vector<80x128xf32>
    %c0_43 = arith.constant 0 : index
    %c0_44 = arith.constant 0 : index
    %52 = vector.load %arg11[%c0_43, %c0_44] : memref<80x128xf32, #tpu.memory_space<vmem>>, vector<80x128xf32>
    tpu.vector_store %arg11[%c0_43, %c0_44], %51 {strides = array<i32>} : memref<80x128xf32, #tpu.memory_space<vmem>>, vector<80x128xf32>,
    %c0_45 = arith.constant 0 : index
    %c0_46 = arith.constant 0 : index
    %53 = vector.load %arg11[%c0_45, %c0_46] : memref<80x128xf32, #tpu.memory_space<vmem>>, vector<80x128xf32>
    %c6 = arith.constant 6 : index
    %c0_47 = arith.constant 0 : index
    %54 = vector.load %arg9[%c6, %c0_47] : memref<96x128xf32, #tpu.memory_space<vmem>>, vector<80x128xf32>
    %c3_48 = arith.constant 3 : index
    %c0_49 = arith.constant 0 : index
    %c0_50 = arith.constant 0 : index
    %55 = vector.load %arg4[%c3_48, %c0_49, %c0_50] : memref<11x128x128xf32, #tpu.memory_space<vmem>>, vector<1x128x128xf32>
    %56 = vector.shape_cast %55 : vector<1x128x128xf32> to vector<128x128xf32>
    %cst_51 = arith.constant dense<0.000000e+00> : vector<80x128xf32>
    %57 = tpu.matmul %54, %56, %cst_51 {dimension_numbers = #tpu.dot_dimension_numbers<[1], [0], [0], [1], [0, 0, 1, 1], [], []>} : vector<80x128xf32>, vector<128x128xf32>, vector<80x128xf32> -> vector<80x128xf32>
    %58 = arith.addf %53, %57 : vector<80x128xf32>
    %c0_52 = arith.constant 0 : index
    %c0_53 = arith.constant 0 : index
    %59 = vector.load %arg11[%c0_52, %c0_53] : memref<80x128xf32, #tpu.memory_space<vmem>>, vector<80x128xf32>
    tpu.vector_store %arg11[%c0_52, %c0_53], %58 {strides = array<i32>} : memref<80x128xf32, #tpu.memory_space<vmem>>, vector<80x128xf32>,
    %c0_54 = arith.constant 0 : index
    %c0_55 = arith.constant 0 : index
    %60 = vector.load %arg11[%c0_54, %c0_55] : memref<80x128xf32, #tpu.memory_space<vmem>>, vector<80x128xf32>
    %c7 = arith.constant 7 : index
    %c0_56 = arith.constant 0 : index
    %61 = vector.load %arg9[%c7, %c0_56] : memref<96x128xf32, #tpu.memory_space<vmem>>, vector<80x128xf32>
    %c4_57 = arith.constant 4 : index
    %c0_58 = arith.constant 0 : index
    %c0_59 = arith.constant 0 : index
    %62 = vector.load %arg4[%c4_57, %c0_58, %c0_59] : memref<11x128x128xf32, #tpu.memory_space<vmem>>, vector<1x128x128xf32>
    %63 = vector.shape_cast %62 : vector<1x128x128xf32> to vector<128x128xf32>
    %cst_60 = arith.constant dense<0.000000e+00> : vector<80x128xf32>
    %64 = tpu.matmul %61, %63, %cst_60 {dimension_numbers = #tpu.dot_dimension_numbers<[1], [0], [0], [1], [0, 0, 1, 1], [], []>} : vector<80x128xf32>, vector<128x128xf32>, vector<80x128xf32> -> vector<80x128xf32>
    %65 = arith.addf %60, %64 : vector<80x128xf32>
    %c0_61 = arith.constant 0 : index
    %c0_62 = arith.constant 0 : index
    %66 = vector.load %arg11[%c0_61, %c0_62] : memref<80x128xf32, #tpu.memory_space<vmem>>, vector<80x128xf32>
    tpu.vector_store %arg11[%c0_61, %c0_62], %65 {strides = array<i32>} : memref<80x128xf32, #tpu.memory_space<vmem>>, vector<80x128xf32>,
    %c0_63 = arith.constant 0 : index
    %c0_64 = arith.constant 0 : index
    %67 = vector.load %arg11[%c0_63, %c0_64] : memref<80x128xf32, #tpu.memory_space<vmem>>, vector<80x128xf32>
    %c8_65 = arith.constant 8 : index
    %c0_66 = arith.constant 0 : index
    %68 = vector.load %arg9[%c8_65, %c0_66] : memref<96x128xf32, #tpu.memory_space<vmem>>, vector<80x128xf32>
    %c5_67 = arith.constant 5 : index
    %c0_68 = arith.constant 0 : index
    %c0_69 = arith.constant 0 : index
    %69 = vector.load %arg4[%c5_67, %c0_68, %c0_69] : memref<11x128x128xf32, #tpu.memory_space<vmem>>, vector<1x128x128xf32>
    %70 = vector.shape_cast %69 : vector<1x128x128xf32> to vector<128x128xf32>
    %cst_70 = arith.constant dense<0.000000e+00> : vector<80x128xf32>
    %71 = tpu.matmul %68, %70, %cst_70 {dimension_numbers = #tpu.dot_dimension_numbers<[1], [0], [0], [1], [0, 0, 1, 1], [], []>} : vector<80x128xf32>, vector<128x128xf32>, vector<80x128xf32> -> vector<80x128xf32>
    %72 = arith.addf %67, %71 : vector<80x128xf32>
    %c0_71 = arith.constant 0 : index
    %c0_72 = arith.constant 0 : index
    %73 = vector.load %arg11[%c0_71, %c0_72] : memref<80x128xf32, #tpu.memory_space<vmem>>, vector<80x128xf32>
    tpu.vector_store %arg11[%c0_71, %c0_72], %72 {strides = array<i32>} : memref<80x128xf32, #tpu.memory_space<vmem>>, vector<80x128xf32>,
    %c0_73 = arith.constant 0 : index
    %c0_74 = arith.constant 0 : index
    %74 = vector.load %arg11[%c0_73, %c0_74] : memref<80x128xf32, #tpu.memory_space<vmem>>, vector<80x128xf32>
    %c9 = arith.constant 9 : index
    %c0_75 = arith.constant 0 : index
    %75 = vector.load %arg9[%c9, %c0_75] : memref<96x128xf32, #tpu.memory_space<vmem>>, vector<80x128xf32>
    %c6_76 = arith.constant 6 : index
    %c0_77 = arith.constant 0 : index
    %c0_78 = arith.constant 0 : index
    %76 = vector.load %arg4[%c6_76, %c0_77, %c0_78] : memref<11x128x128xf32, #tpu.memory_space<vmem>>, vector<1x128x128xf32>
    %77 = vector.shape_cast %76 : vector<1x128x128xf32> to vector<128x128xf32>
    %cst_79 = arith.constant dense<0.000000e+00> : vector<80x128xf32>
    %78 = tpu.matmul %75, %77, %cst_79 {dimension_numbers = #tpu.dot_dimension_numbers<[1], [0], [0], [1], [0, 0, 1, 1], [], []>} : vector<80x128xf32>, vector<128x128xf32>, vector<80x128xf32> -> vector<80x128xf32>
    %79 = arith.addf %74, %78 : vector<80x128xf32>
    %c0_80 = arith.constant 0 : index
    %c0_81 = arith.constant 0 : index
    %80 = vector.load %arg11[%c0_80, %c0_81] : memref<80x128xf32, #tpu.memory_space<vmem>>, vector<80x128xf32>
    tpu.vector_store %arg11[%c0_80, %c0_81], %79 {strides = array<i32>} : memref<80x128xf32, #tpu.memory_space<vmem>>, vector<80x128xf32>,
    %c0_82 = arith.constant 0 : index
    %c0_83 = arith.constant 0 : index
    %81 = vector.load %arg11[%c0_82, %c0_83] : memref<80x128xf32, #tpu.memory_space<vmem>>, vector<80x128xf32>
    %c10 = arith.constant 10 : index
    %c0_84 = arith.constant 0 : index
    %82 = vector.load %arg9[%c10, %c0_84] : memref<96x128xf32, #tpu.memory_space<vmem>>, vector<80x128xf32>
    %c7_85 = arith.constant 7 : index
    %c0_86 = arith.constant 0 : index
    %c0_87 = arith.constant 0 : index
    %83 = vector.load %arg4[%c7_85, %c0_86, %c0_87] : memref<11x128x128xf32, #tpu.memory_space<vmem>>, vector<1x128x128xf32>
    %84 = vector.shape_cast %83 : vector<1x128x128xf32> to vector<128x128xf32>
    %cst_88 = arith.constant dense<0.000000e+00> : vector<80x128xf32>
    %85 = tpu.matmul %82, %84, %cst_88 {dimension_numbers = #tpu.dot_dimension_numbers<[1], [0], [0], [1], [0, 0, 1, 1], [], []>} : vector<80x128xf32>, vector<128x128xf32>, vector<80x128xf32> -> vector<80x128xf32>
    %86 = arith.addf %81, %85 : vector<80x128xf32>
    %c0_89 = arith.constant 0 : index
    %c0_90 = arith.constant 0 : index
    %87 = vector.load %arg11[%c0_89, %c0_90] : memref<80x128xf32, #tpu.memory_space<vmem>>, vector<80x128xf32>
    tpu.vector_store %arg11[%c0_89, %c0_90], %86 {strides = array<i32>} : memref<80x128xf32, #tpu.memory_space<vmem>>, vector<80x128xf32>,
    %c0_91 = arith.constant 0 : index
    %c0_92 = arith.constant 0 : index
    %88 = vector.load %arg11[%c0_91, %c0_92] : memref<80x128xf32, #tpu.memory_space<vmem>>, vector<80x128xf32>
    %c11 = arith.constant 11 : index
    %c0_93 = arith.constant 0 : index
    %89 = vector.load %arg9[%c11, %c0_93] : memref<96x128xf32, #tpu.memory_space<vmem>>, vector<80x128xf32>
    %c8_94 = arith.constant 8 : index
    %c0_95 = arith.constant 0 : index
    %c0_96 = arith.constant 0 : index
    %90 = vector.load %arg4[%c8_94, %c0_95, %c0_96] : memref<11x128x128xf32, #tpu.memory_space<vmem>>, vector<1x128x128xf32>
    %91 = vector.shape_cast %90 : vector<1x128x128xf32> to vector<128x128xf32>
    %cst_97 = arith.constant dense<0.000000e+00> : vector<80x128xf32>
    %92 = tpu.matmul %89, %91, %cst_97 {dimension_numbers = #tpu.dot_dimension_numbers<[1], [0], [0], [1], [0, 0, 1, 1], [], []>} : vector<80x128xf32>, vector<128x128xf32>, vector<80x128xf32> -> vector<80x128xf32>
    %93 = arith.addf %88, %92 : vector<80x128xf32>
    %c0_98 = arith.constant 0 : index
    %c0_99 = arith.constant 0 : index
    %94 = vector.load %arg11[%c0_98, %c0_99] : memref<80x128xf32, #tpu.memory_space<vmem>>, vector<80x128xf32>
    tpu.vector_store %arg11[%c0_98, %c0_99], %93 {strides = array<i32>} : memref<80x128xf32, #tpu.memory_space<vmem>>, vector<80x128xf32>,
    %c0_100 = arith.constant 0 : index
    %c0_101 = arith.constant 0 : index
    %95 = vector.load %arg11[%c0_100, %c0_101] : memref<80x128xf32, #tpu.memory_space<vmem>>, vector<80x128xf32>
    %c12 = arith.constant 12 : index
    %c0_102 = arith.constant 0 : index
    %96 = vector.load %arg9[%c12, %c0_102] : memref<96x128xf32, #tpu.memory_space<vmem>>, vector<80x128xf32>
    %c9_103 = arith.constant 9 : index
    %c0_104 = arith.constant 0 : index
    %c0_105 = arith.constant 0 : index
    %97 = vector.load %arg4[%c9_103, %c0_104, %c0_105] : memref<11x128x128xf32, #tpu.memory_space<vmem>>, vector<1x128x128xf32>
    %98 = vector.shape_cast %97 : vector<1x128x128xf32> to vector<128x128xf32>
    %cst_106 = arith.constant dense<0.000000e+00> : vector<80x128xf32>
    %99 = tpu.matmul %96, %98, %cst_106 {dimension_numbers = #tpu.dot_dimension_numbers<[1], [0], [0], [1], [0, 0, 1, 1], [], []>} : vector<80x128xf32>, vector<128x128xf32>, vector<80x128xf32> -> vector<80x128xf32>
    %100 = arith.addf %95, %99 : vector<80x128xf32>
    %c0_107 = arith.constant 0 : index
    %c0_108 = arith.constant 0 : index
    %101 = vector.load %arg11[%c0_107, %c0_108] : memref<80x128xf32, #tpu.memory_space<vmem>>, vector<80x128xf32>
    tpu.vector_store %arg11[%c0_107, %c0_108], %100 {strides = array<i32>} : memref<80x128xf32, #tpu.memory_space<vmem>>, vector<80x128xf32>,
    %c0_109 = arith.constant 0 : index
    %c0_110 = arith.constant 0 : index
    %102 = vector.load %arg11[%c0_109, %c0_110] : memref<80x128xf32, #tpu.memory_space<vmem>>, vector<80x128xf32>
    %c13 = arith.constant 13 : index
    %c0_111 = arith.constant 0 : index
    %103 = vector.load %arg9[%c13, %c0_111] : memref<96x128xf32, #tpu.memory_space<vmem>>, vector<80x128xf32>
    %c10_112 = arith.constant 10 : index
    %c0_113 = arith.constant 0 : index
    %c0_114 = arith.constant 0 : index
    %104 = vector.load %arg4[%c10_112, %c0_113, %c0_114] : memref<11x128x128xf32, #tpu.memory_space<vmem>>, vector<1x128x128xf32>
    %105 = vector.shape_cast %104 : vector<1x128x128xf32> to vector<128x128xf32>
    %cst_115 = arith.constant dense<0.000000e+00> : vector<80x128xf32>
    %106 = tpu.matmul %103, %105, %cst_115 {dimension_numbers = #tpu.dot_dimension_numbers<[1], [0], [0], [1], [0, 0, 1, 1], [], []>} : vector<80x128xf32>, vector<128x128xf32>, vector<80x128xf32> -> vector<80x128xf32>
    %107 = arith.addf %102, %106 : vector<80x128xf32>
    %c0_116 = arith.constant 0 : index
    %c0_117 = arith.constant 0 : index
    %108 = vector.load %arg11[%c0_116, %c0_117] : memref<80x128xf32, #tpu.memory_space<vmem>>, vector<80x128xf32>
    tpu.vector_store %arg11[%c0_116, %c0_117], %107 {strides = array<i32>} : memref<80x128xf32, #tpu.memory_space<vmem>>, vector<80x128xf32>,
    %c0_118 = arith.constant 0 : index
    %c0_119 = arith.constant 0 : index
    %109 = vector.load %arg11[%c0_118, %c0_119] : memref<80x128xf32, #tpu.memory_space<vmem>>, vector<80x128xf32>
    %cst_120 = arith.constant 0.000000e+00 : f32
    %110 = vector.broadcast %cst_120 : f32 to vector<80x128xf32>
    %111 = arith.cmpf oge, %109, %110 : vector<80x128xf32>
    %cst_121 = arith.constant 1.000000e-01 : f32
    %112 = vector.broadcast %cst_121 : f32 to vector<80x128xf32>
    %113 = arith.mulf %112, %109 : vector<80x128xf32>
    %114 = arith.select %111, %109, %113 : vector<80x128xi1>, vector<80x128xf32>
    %c8_i32 = arith.constant 8 : i32
    %115 = arith.subi %0, %c8_i32 : i32
    %116 = tpu.iota {dimensions = array<i32: 0>} : vector<80x1xi32>
    %117 = vector.broadcast %115 : i32 to vector<80x1xi32>
    %118 = arith.addi %117, %116 : vector<80x1xi32>
    %c0_i32_122 = arith.constant 0 : i32
    %119 = vector.broadcast %c0_i32_122 : i32 to vector<80x1xi32>
    %120 = arith.cmpi sge, %118, %119 : vector<80x1xi32>
    %c64_i32_123 = arith.constant 64 : i32
    %121 = vector.broadcast %c64_i32_123 : i32 to vector<80x1xi32>
    %122 = arith.cmpi slt, %118, %121 : vector<80x1xi32>
    %123 = arith.andi %120, %122 : vector<80x1xi1>
    %cst_124 = arith.constant 0.000000e+00 : f32
    %124 = vector.shape_cast %123 : vector<80x1xi1> to vector<80x1xi1>
    %125 = vector.broadcast %124 : vector<80x1xi1> to vector<80x128xi1>
    %126 = vector.broadcast %cst_124 : f32 to vector<80x128xf32>
    %127 = arith.select %125, %114, %126 : vector<80x128xi1>, vector<80x128xf32>
    %c0_125 = arith.constant 0 : index
    %c0_126 = arith.constant 0 : index
    %128 = vector.load %arg10[%c0_125, %c0_126] : memref<80x128xf32, #tpu.memory_space<vmem>>, vector<80x128xf32>
    tpu.vector_store %arg10[%c0_125, %c0_126], %127 {strides = array<i32>} : memref<80x128xf32, #tpu.memory_space<vmem>>, vector<80x128xf32>,
    %129 = vector.extract_strided_slice %127 {offsets = [8, 0], sizes = [64, 128], strides = [1, 1]} : vector<80x128xf32> to vector<64x128xf32>
    %c0_127 = arith.constant 0 : index
    %c0_128 = arith.constant 0 : index
    %130 = vector.load %arg7[%c0_127, %c0_128] : memref<1x128xf32, #tpu.memory_space<vmem>>, vector<1x128xf32>
    %131 = vector.broadcast %130 : vector<1x128xf32> to vector<64x128xf32>
    %132 = arith.addf %129, %131 : vector<64x128xf32>
    %c0_129 = arith.constant 0 : index
    %c0_130 = arith.constant 0 : index
    %133 = vector.load %arg12[%c0_129, %c0_130] : memref<64x128xf32, #tpu.memory_space<vmem>>, vector<64x128xf32>
    tpu.vector_store %arg12[%c0_129, %c0_130], %132 {strides = array<i32>} : memref<64x128xf32, #tpu.memory_space<vmem>>, vector<64x128xf32>,
    %c0_131 = arith.constant 0 : index
    %c0_132 = arith.constant 0 : index
    %134 = vector.load %arg12[%c0_131, %c0_132] : memref<64x128xf32, #tpu.memory_space<vmem>>, vector<64x128xf32>
    %c3_133 = arith.constant 3 : index
    %c0_134 = arith.constant 0 : index
    %135 = vector.load %arg10[%c3_133, %c0_134] : memref<80x128xf32, #tpu.memory_space<vmem>>, vector<64x128xf32>
    %c0_135 = arith.constant 0 : index
    %c0_136 = arith.constant 0 : index
    %c0_137 = arith.constant 0 : index
    %136 = vector.load %arg6[%c0_135, %c0_136, %c0_137] : memref<11x128x128xf32, #tpu.memory_space<vmem>>, vector<1x128x128xf32>
    %137 = vector.shape_cast %136 : vector<1x128x128xf32> to vector<128x128xf32>
    %cst_138 = arith.constant dense<0.000000e+00> : vector<64x128xf32>
    %138 = tpu.matmul %135, %137, %cst_138 {dimension_numbers = #tpu.dot_dimension_numbers<[1], [0], [0], [1], [0, 0, 1, 1], [], []>} : vector<64x128xf32>, vector<128x128xf32>, vector<64x128xf32> -> vector<64x128xf32>
    %139 = arith.addf %134, %138 : vector<64x128xf32>
    %c0_139 = arith.constant 0 : index
    %c0_140 = arith.constant 0 : index
    %140 = vector.load %arg12[%c0_139, %c0_140] : memref<64x128xf32, #tpu.memory_space<vmem>>, vector<64x128xf32>
    tpu.vector_store %arg12[%c0_139, %c0_140], %139 {strides = array<i32>} : memref<64x128xf32, #tpu.memory_space<vmem>>, vector<64x128xf32>,
    %c0_141 = arith.constant 0 : index
    %c0_142 = arith.constant 0 : index
    %141 = vector.load %arg12[%c0_141, %c0_142] : memref<64x128xf32, #tpu.memory_space<vmem>>, vector<64x128xf32>
    %c4_143 = arith.constant 4 : index
    %c0_144 = arith.constant 0 : index
    %142 = vector.load %arg10[%c4_143, %c0_144] : memref<80x128xf32, #tpu.memory_space<vmem>>, vector<64x128xf32>
    %c1_145 = arith.constant 1 : index
    %c0_146 = arith.constant 0 : index
    %c0_147 = arith.constant 0 : index
    %143 = vector.load %arg6[%c1_145, %c0_146, %c0_147] : memref<11x128x128xf32, #tpu.memory_space<vmem>>, vector<1x128x128xf32>
    %144 = vector.shape_cast %143 : vector<1x128x128xf32> to vector<128x128xf32>
    %cst_148 = arith.constant dense<0.000000e+00> : vector<64x128xf32>
    %145 = tpu.matmul %142, %144, %cst_148 {dimension_numbers = #tpu.dot_dimension_numbers<[1], [0], [0], [1], [0, 0, 1, 1], [], []>} : vector<64x128xf32>, vector<128x128xf32>, vector<64x128xf32> -> vector<64x128xf32>
    %146 = arith.addf %141, %145 : vector<64x128xf32>
    %c0_149 = arith.constant 0 : index
    %c0_150 = arith.constant 0 : index
    %147 = vector.load %arg12[%c0_149, %c0_150] : memref<64x128xf32, #tpu.memory_space<vmem>>, vector<64x128xf32>
    tpu.vector_store %arg12[%c0_149, %c0_150], %146 {strides = array<i32>} : memref<64x128xf32, #tpu.memory_space<vmem>>, vector<64x128xf32>,
    %c0_151 = arith.constant 0 : index
    %c0_152 = arith.constant 0 : index
    %148 = vector.load %arg12[%c0_151, %c0_152] : memref<64x128xf32, #tpu.memory_space<vmem>>, vector<64x128xf32>
    %c5_153 = arith.constant 5 : index
    %c0_154 = arith.constant 0 : index
    %149 = vector.load %arg10[%c5_153, %c0_154] : memref<80x128xf32, #tpu.memory_space<vmem>>, vector<64x128xf32>
    %c2_155 = arith.constant 2 : index
    %c0_156 = arith.constant 0 : index
    %c0_157 = arith.constant 0 : index
    %150 = vector.load %arg6[%c2_155, %c0_156, %c0_157] : memref<11x128x128xf32, #tpu.memory_space<vmem>>, vector<1x128x128xf32>
    %151 = vector.shape_cast %150 : vector<1x128x128xf32> to vector<128x128xf32>
    %cst_158 = arith.constant dense<0.000000e+00> : vector<64x128xf32>
    %152 = tpu.matmul %149, %151, %cst_158 {dimension_numbers = #tpu.dot_dimension_numbers<[1], [0], [0], [1], [0, 0, 1, 1], [], []>} : vector<64x128xf32>, vector<128x128xf32>, vector<64x128xf32> -> vector<64x128xf32>
    %153 = arith.addf %148, %152 : vector<64x128xf32>
    %c0_159 = arith.constant 0 : index
    %c0_160 = arith.constant 0 : index
    %154 = vector.load %arg12[%c0_159, %c0_160] : memref<64x128xf32, #tpu.memory_space<vmem>>, vector<64x128xf32>
    tpu.vector_store %arg12[%c0_159, %c0_160], %153 {strides = array<i32>} : memref<64x128xf32, #tpu.memory_space<vmem>>, vector<64x128xf32>,
    %c0_161 = arith.constant 0 : index
    %c0_162 = arith.constant 0 : index
    %155 = vector.load %arg12[%c0_161, %c0_162] : memref<64x128xf32, #tpu.memory_space<vmem>>, vector<64x128xf32>
    %c6_163 = arith.constant 6 : index
    %c0_164 = arith.constant 0 : index
    %156 = vector.load %arg10[%c6_163, %c0_164] : memref<80x128xf32, #tpu.memory_space<vmem>>, vector<64x128xf32>
    %c3_165 = arith.constant 3 : index
    %c0_166 = arith.constant 0 : index
    %c0_167 = arith.constant 0 : index
    %157 = vector.load %arg6[%c3_165, %c0_166, %c0_167] : memref<11x128x128xf32, #tpu.memory_space<vmem>>, vector<1x128x128xf32>
    %158 = vector.shape_cast %157 : vector<1x128x128xf32> to vector<128x128xf32>
    %cst_168 = arith.constant dense<0.000000e+00> : vector<64x128xf32>
    %159 = tpu.matmul %156, %158, %cst_168 {dimension_numbers = #tpu.dot_dimension_numbers<[1], [0], [0], [1], [0, 0, 1, 1], [], []>} : vector<64x128xf32>, vector<128x128xf32>, vector<64x128xf32> -> vector<64x128xf32>
    %160 = arith.addf %155, %159 : vector<64x128xf32>
    %c0_169 = arith.constant 0 : index
    %c0_170 = arith.constant 0 : index
    %161 = vector.load %arg12[%c0_169, %c0_170] : memref<64x128xf32, #tpu.memory_space<vmem>>, vector<64x128xf32>
    tpu.vector_store %arg12[%c0_169, %c0_170], %160 {strides = array<i32>} : memref<64x128xf32, #tpu.memory_space<vmem>>, vector<64x128xf32>,
    %c0_171 = arith.constant 0 : index
    %c0_172 = arith.constant 0 : index
    %162 = vector.load %arg12[%c0_171, %c0_172] : memref<64x128xf32, #tpu.memory_space<vmem>>, vector<64x128xf32>
    %c7_173 = arith.constant 7 : index
    %c0_174 = arith.constant 0 : index
    %163 = vector.load %arg10[%c7_173, %c0_174] : memref<80x128xf32, #tpu.memory_space<vmem>>, vector<64x128xf32>
    %c4_175 = arith.constant 4 : index
    %c0_176 = arith.constant 0 : index
    %c0_177 = arith.constant 0 : index
    %164 = vector.load %arg6[%c4_175, %c0_176, %c0_177] : memref<11x128x128xf32, #tpu.memory_space<vmem>>, vector<1x128x128xf32>
    %165 = vector.shape_cast %164 : vector<1x128x128xf32> to vector<128x128xf32>
    %cst_178 = arith.constant dense<0.000000e+00> : vector<64x128xf32>
    %166 = tpu.matmul %163, %165, %cst_178 {dimension_numbers = #tpu.dot_dimension_numbers<[1], [0], [0], [1], [0, 0, 1, 1], [], []>} : vector<64x128xf32>, vector<128x128xf32>, vector<64x128xf32> -> vector<64x128xf32>
    %167 = arith.addf %162, %166 : vector<64x128xf32>
    %c0_179 = arith.constant 0 : index
    %c0_180 = arith.constant 0 : index
    %168 = vector.load %arg12[%c0_179, %c0_180] : memref<64x128xf32, #tpu.memory_space<vmem>>, vector<64x128xf32>
    tpu.vector_store %arg12[%c0_179, %c0_180], %167 {strides = array<i32>} : memref<64x128xf32, #tpu.memory_space<vmem>>, vector<64x128xf32>,
    %c0_181 = arith.constant 0 : index
    %c0_182 = arith.constant 0 : index
    %169 = vector.load %arg12[%c0_181, %c0_182] : memref<64x128xf32, #tpu.memory_space<vmem>>, vector<64x128xf32>
    %c8_183 = arith.constant 8 : index
    %c0_184 = arith.constant 0 : index
    %170 = vector.load %arg10[%c8_183, %c0_184] : memref<80x128xf32, #tpu.memory_space<vmem>>, vector<64x128xf32>
    %c5_185 = arith.constant 5 : index
    %c0_186 = arith.constant 0 : index
    %c0_187 = arith.constant 0 : index
    %171 = vector.load %arg6[%c5_185, %c0_186, %c0_187] : memref<11x128x128xf32, #tpu.memory_space<vmem>>, vector<1x128x128xf32>
    %172 = vector.shape_cast %171 : vector<1x128x128xf32> to vector<128x128xf32>
    %cst_188 = arith.constant dense<0.000000e+00> : vector<64x128xf32>
    %173 = tpu.matmul %170, %172, %cst_188 {dimension_numbers = #tpu.dot_dimension_numbers<[1], [0], [0], [1], [0, 0, 1, 1], [], []>} : vector<64x128xf32>, vector<128x128xf32>, vector<64x128xf32> -> vector<64x128xf32>
    %174 = arith.addf %169, %173 : vector<64x128xf32>
    %c0_189 = arith.constant 0 : index
    %c0_190 = arith.constant 0 : index
    %175 = vector.load %arg12[%c0_189, %c0_190] : memref<64x128xf32, #tpu.memory_space<vmem>>, vector<64x128xf32>
    tpu.vector_store %arg12[%c0_189, %c0_190], %174 {strides = array<i32>} : memref<64x128xf32, #tpu.memory_space<vmem>>, vector<64x128xf32>,
    %c0_191 = arith.constant 0 : index
    %c0_192 = arith.constant 0 : index
    %176 = vector.load %arg12[%c0_191, %c0_192] : memref<64x128xf32, #tpu.memory_space<vmem>>, vector<64x128xf32>
    %c9_193 = arith.constant 9 : index
    %c0_194 = arith.constant 0 : index
    %177 = vector.load %arg10[%c9_193, %c0_194] : memref<80x128xf32, #tpu.memory_space<vmem>>, vector<64x128xf32>
    %c6_195 = arith.constant 6 : index
    %c0_196 = arith.constant 0 : index
    %c0_197 = arith.constant 0 : index
    %178 = vector.load %arg6[%c6_195, %c0_196, %c0_197] : memref<11x128x128xf32, #tpu.memory_space<vmem>>, vector<1x128x128xf32>
    %179 = vector.shape_cast %178 : vector<1x128x128xf32> to vector<128x128xf32>
    %cst_198 = arith.constant dense<0.000000e+00> : vector<64x128xf32>
    %180 = tpu.matmul %177, %179, %cst_198 {dimension_numbers = #tpu.dot_dimension_numbers<[1], [0], [0], [1], [0, 0, 1, 1], [], []>} : vector<64x128xf32>, vector<128x128xf32>, vector<64x128xf32> -> vector<64x128xf32>
    %181 = arith.addf %176, %180 : vector<64x128xf32>
    %c0_199 = arith.constant 0 : index
    %c0_200 = arith.constant 0 : index
    %182 = vector.load %arg12[%c0_199, %c0_200] : memref<64x128xf32, #tpu.memory_space<vmem>>, vector<64x128xf32>
    tpu.vector_store %arg12[%c0_199, %c0_200], %181 {strides = array<i32>} : memref<64x128xf32, #tpu.memory_space<vmem>>, vector<64x128xf32>,
    %c0_201 = arith.constant 0 : index
    %c0_202 = arith.constant 0 : index
    %183 = vector.load %arg12[%c0_201, %c0_202] : memref<64x128xf32, #tpu.memory_space<vmem>>, vector<64x128xf32>
    %c10_203 = arith.constant 10 : index
    %c0_204 = arith.constant 0 : index
    %184 = vector.load %arg10[%c10_203, %c0_204] : memref<80x128xf32, #tpu.memory_space<vmem>>, vector<64x128xf32>
    %c7_205 = arith.constant 7 : index
    %c0_206 = arith.constant 0 : index
    %c0_207 = arith.constant 0 : index
    %185 = vector.load %arg6[%c7_205, %c0_206, %c0_207] : memref<11x128x128xf32, #tpu.memory_space<vmem>>, vector<1x128x128xf32>
    %186 = vector.shape_cast %185 : vector<1x128x128xf32> to vector<128x128xf32>
    %cst_208 = arith.constant dense<0.000000e+00> : vector<64x128xf32>
    %187 = tpu.matmul %184, %186, %cst_208 {dimension_numbers = #tpu.dot_dimension_numbers<[1], [0], [0], [1], [0, 0, 1, 1], [], []>} : vector<64x128xf32>, vector<128x128xf32>, vector<64x128xf32> -> vector<64x128xf32>
    %188 = arith.addf %183, %187 : vector<64x128xf32>
    %c0_209 = arith.constant 0 : index
    %c0_210 = arith.constant 0 : index
    %189 = vector.load %arg12[%c0_209, %c0_210] : memref<64x128xf32, #tpu.memory_space<vmem>>, vector<64x128xf32>
    tpu.vector_store %arg12[%c0_209, %c0_210], %188 {strides = array<i32>} : memref<64x128xf32, #tpu.memory_space<vmem>>, vector<64x128xf32>,
    %c0_211 = arith.constant 0 : index
    %c0_212 = arith.constant 0 : index
    %190 = vector.load %arg12[%c0_211, %c0_212] : memref<64x128xf32, #tpu.memory_space<vmem>>, vector<64x128xf32>
    %c11_213 = arith.constant 11 : index
    %c0_214 = arith.constant 0 : index
    %191 = vector.load %arg10[%c11_213, %c0_214] : memref<80x128xf32, #tpu.memory_space<vmem>>, vector<64x128xf32>
    %c8_215 = arith.constant 8 : index
    %c0_216 = arith.constant 0 : index
    %c0_217 = arith.constant 0 : index
    %192 = vector.load %arg6[%c8_215, %c0_216, %c0_217] : memref<11x128x128xf32, #tpu.memory_space<vmem>>, vector<1x128x128xf32>
    %193 = vector.shape_cast %192 : vector<1x128x128xf32> to vector<128x128xf32>
    %cst_218 = arith.constant dense<0.000000e+00> : vector<64x128xf32>
    %194 = tpu.matmul %191, %193, %cst_218 {dimension_numbers = #tpu.dot_dimension_numbers<[1], [0], [0], [1], [0, 0, 1, 1], [], []>} : vector<64x128xf32>, vector<128x128xf32>, vector<64x128xf32> -> vector<64x128xf32>
    %195 = arith.addf %190, %194 : vector<64x128xf32>
    %c0_219 = arith.constant 0 : index
    %c0_220 = arith.constant 0 : index
    %196 = vector.load %arg12[%c0_219, %c0_220] : memref<64x128xf32, #tpu.memory_space<vmem>>, vector<64x128xf32>
    tpu.vector_store %arg12[%c0_219, %c0_220], %195 {strides = array<i32>} : memref<64x128xf32, #tpu.memory_space<vmem>>, vector<64x128xf32>,
    %c0_221 = arith.constant 0 : index
    %c0_222 = arith.constant 0 : index
    %197 = vector.load %arg12[%c0_221, %c0_222] : memref<64x128xf32, #tpu.memory_space<vmem>>, vector<64x128xf32>
    %c12_223 = arith.constant 12 : index
    %c0_224 = arith.constant 0 : index
    %198 = vector.load %arg10[%c12_223, %c0_224] : memref<80x128xf32, #tpu.memory_space<vmem>>, vector<64x128xf32>
    %c9_225 = arith.constant 9 : index
    %c0_226 = arith.constant 0 : index
    %c0_227 = arith.constant 0 : index
    %199 = vector.load %arg6[%c9_225, %c0_226, %c0_227] : memref<11x128x128xf32, #tpu.memory_space<vmem>>, vector<1x128x128xf32>
    %200 = vector.shape_cast %199 : vector<1x128x128xf32> to vector<128x128xf32>
    %cst_228 = arith.constant dense<0.000000e+00> : vector<64x128xf32>
    %201 = tpu.matmul %198, %200, %cst_228 {dimension_numbers = #tpu.dot_dimension_numbers<[1], [0], [0], [1], [0, 0, 1, 1], [], []>} : vector<64x128xf32>, vector<128x128xf32>, vector<64x128xf32> -> vector<64x128xf32>
    %202 = arith.addf %197, %201 : vector<64x128xf32>
    %c0_229 = arith.constant 0 : index
    %c0_230 = arith.constant 0 : index
    %203 = vector.load %arg12[%c0_229, %c0_230] : memref<64x128xf32, #tpu.memory_space<vmem>>, vector<64x128xf32>
    tpu.vector_store %arg12[%c0_229, %c0_230], %202 {strides = array<i32>} : memref<64x128xf32, #tpu.memory_space<vmem>>, vector<64x128xf32>,
    %c0_231 = arith.constant 0 : index
    %c0_232 = arith.constant 0 : index
    %204 = vector.load %arg12[%c0_231, %c0_232] : memref<64x128xf32, #tpu.memory_space<vmem>>, vector<64x128xf32>
    %c13_233 = arith.constant 13 : index
    %c0_234 = arith.constant 0 : index
    %205 = vector.load %arg10[%c13_233, %c0_234] : memref<80x128xf32, #tpu.memory_space<vmem>>, vector<64x128xf32>
    %c10_235 = arith.constant 10 : index
    %c0_236 = arith.constant 0 : index
    %c0_237 = arith.constant 0 : index
    %206 = vector.load %arg6[%c10_235, %c0_236, %c0_237] : memref<11x128x128xf32, #tpu.memory_space<vmem>>, vector<1x128x128xf32>
    %207 = vector.shape_cast %206 : vector<1x128x128xf32> to vector<128x128xf32>
    %cst_238 = arith.constant dense<0.000000e+00> : vector<64x128xf32>
    %208 = tpu.matmul %205, %207, %cst_238 {dimension_numbers = #tpu.dot_dimension_numbers<[1], [0], [0], [1], [0, 0, 1, 1], [], []>} : vector<64x128xf32>, vector<128x128xf32>, vector<64x128xf32> -> vector<64x128xf32>
    %209 = arith.addf %204, %208 : vector<64x128xf32>
    %c0_239 = arith.constant 0 : index
    %c0_240 = arith.constant 0 : index
    %210 = vector.load %arg12[%c0_239, %c0_240] : memref<64x128xf32, #tpu.memory_space<vmem>>, vector<64x128xf32>
    tpu.vector_store %arg12[%c0_239, %c0_240], %209 {strides = array<i32>} : memref<64x128xf32, #tpu.memory_space<vmem>>, vector<64x128xf32>,
    %c0_241 = arith.constant 0 : index
    %c0_242 = arith.constant 0 : index
    %211 = vector.load %arg12[%c0_241, %c0_242] : memref<64x128xf32, #tpu.memory_space<vmem>>, vector<64x128xf32>
    %c0_243 = arith.constant 0 : index
    %c0_244 = arith.constant 0 : index
    %c0_245 = arith.constant 0 : index
    %212 = vector.load %arg8[%c0_243, %c0_244, %c0_245] : memref<1x64x128xf32, #tpu.memory_space<vmem>>, vector<1x64x128xf32>
    %213 = vector.shape_cast %212 : vector<1x64x128xf32> to vector<64x128xf32>
    %214 = vector.shape_cast %211 : vector<64x128xf32> to vector<1x64x128xf32>
    tpu.vector_store %arg8[%c0_243, %c0_244, %c0_245], %214 {strides = array<i32>} : memref<1x64x128xf32, #tpu.memory_space<vmem>>, vector<1x64x128xf32>,
    return
  }
  func.func @transform_0(%arg0: i32, %arg1: i32) -> (i32, i32, i32) {
    %c0_i32 = arith.constant 0 : i32
    %c0_i32_0 = arith.constant 0 : i32
    return %arg0, %arg1, %c0_i32 : i32, i32, i32
  }
  func.func @transform_2(%arg0: i32, %arg1: i32) -> (i32, i32, i32) {
    %c0_i32 = arith.constant 0 : i32
    %c0_i32_0 = arith.constant 0 : i32
    %c0_i32_1 = arith.constant 0 : i32
    %c0_i32_2 = arith.constant 0 : i32
    return %c0_i32, %c0_i32_0, %c0_i32_1 : i32, i32, i32
  }
  func.func @transform_3(%arg0: i32, %arg1: i32) -> (i32, i32) {
    %c0_i32 = arith.constant 0 : i32
    %c0_i32_0 = arith.constant 0 : i32
    %c0_i32_1 = arith.constant 0 : i32
    return %c0_i32, %c0_i32_0 : i32, i32
  }
  func.func @transform_4(%arg0: i32, %arg1: i32) -> (i32, i32, i32) {
    %c0_i32 = arith.constant 0 : i32
    %c0_i32_0 = arith.constant 0 : i32
    %c0_i32_1 = arith.constant 0 : i32
    %c0_i32_2 = arith.constant 0 : i32
    return %c0_i32, %c0_i32_0, %c0_i32_1 : i32, i32, i32
  }
  func.func @transform_5(%arg0: i32, %arg1: i32) -> (i32, i32) {
    %c0_i32 = arith.constant 0 : i32
    %c0_i32_0 = arith.constant 0 : i32
    %c0_i32_1 = arith.constant 0 : i32
    return %c0_i32, %c0_i32_0 : i32, i32
  }
  func.func @transform_6(%arg0: i32, %arg1: i32) -> (i32, i32, i32) {
    %c0_i32 = arith.constant 0 : i32
    %c0_i32_0 = arith.constant 0 : i32
    return %arg0, %arg1, %c0_i32 : i32, i32, i32
  }
}

module attributes {stable_mosaic.version = 11 : i64} {
  func.func @_fused_pair_kernel(%arg0: i32, %arg1: i32, %arg2: memref<1x64x128xf32, #tpu.memory_space<vmem>>, %arg3: memref<2x64x128xf32, #tpu.memory_space<any>>, %arg4: memref<11x128x128xf32, #tpu.memory_space<vmem>>, %arg5: memref<1x128xf32, #tpu.memory_space<vmem>>, %arg6: memref<11x128x128xf32, #tpu.memory_space<vmem>>, %arg7: memref<1x128xf32, #tpu.memory_space<vmem>>, %arg8: memref<1x64x128xf32, #tpu.memory_space<vmem>>, %arg9: memref<112x128xf32, #tpu.memory_space<vmem>>, %arg10: memref<80x128xf32, #tpu.memory_space<vmem>>, %arg11: memref<80x128xf32, #tpu.memory_space<vmem>>, %arg12: memref<64x128xf32, #tpu.memory_space<vmem>>, %arg13: memref<2x23x128xf32, #tpu.memory_space<vmem>>, %arg14: memref<2x!tpu.dma_semaphore, #tpu.memory_space<semaphore_mem>>) attributes {dimension_semantics = [#tpu.dimension_semantics<parallel>, #tpu.dimension_semantics<parallel>], iteration_bounds = array<i64: 2, 1>, scalar_prefetch = 0 : i64, scratch_operands = 6 : i64, tpu.core_type = #tpu.core_type<tc>, window_params = [{transform_indices = @transform_0, window_bounds = array<i64: 1, 64, 128>}, {}, {pipeline_mode = #tpu.pipeline_mode<synchronous>, transform_indices = @transform_2, window_bounds = array<i64: 11, 128, 128>}, {pipeline_mode = #tpu.pipeline_mode<synchronous>, transform_indices = @transform_3, window_bounds = array<i64: 1, 128>}, {pipeline_mode = #tpu.pipeline_mode<synchronous>, transform_indices = @transform_4, window_bounds = array<i64: 11, 128, 128>}, {pipeline_mode = #tpu.pipeline_mode<synchronous>, transform_indices = @transform_5, window_bounds = array<i64: 1, 128>}, {transform_indices = @transform_6, window_bounds = array<i64: 1, 64, 128>}]} {
    %c64_i32 = arith.constant 64 : i32
    %0 = arith.muli %arg1, %c64_i32 : i32
    %c0_i32 = arith.constant 0 : i32
    %1 = arith.cmpi sgt, %arg1, %c0_i32 : i32
    %2 = arith.extui %1 : i1 to i32
    %c0_i32_0 = arith.constant 0 : i32
    %3 = arith.cmpi ne, %2, %c0_i32_0 : i32
    scf.if %3 {
      %c23_i32 = arith.constant 23 : i32
      %215 = arith.subi %0, %c23_i32 : i32
      %c0_i32_240 = arith.constant 0 : i32
      %c0_i32_241 = arith.constant 0 : i32
      %c0_i32_242 = arith.constant 0 : i32
      %216 = tpu.memref_slice %arg3[%arg0, %215, %c0_i32_242] : memref<2x64x128xf32, #tpu.memory_space<any>> -> memref<1x23x128xf32, #tpu.memory_space<any>>
      %217 = tpu.memref_squeeze %216 : memref<1x23x128xf32, #tpu.memory_space<any>> -> memref<23x128xf32, #tpu.memory_space<any>>
      %c0_i32_243 = arith.constant 0 : i32
      %c0_i32_244 = arith.constant 0 : i32
      %218 = tpu.memref_slice %arg13[%c0_i32_240, %c0_i32_243, %c0_i32_244] : memref<2x23x128xf32, #tpu.memory_space<vmem>> -> memref<1x23x128xf32, #tpu.memory_space<vmem>>
      %219 = tpu.memref_squeeze %218 : memref<1x23x128xf32, #tpu.memory_space<vmem>> -> memref<23x128xf32, #tpu.memory_space<vmem>>
      %220 = tpu.memref_slice %arg14[%c0_i32_241] : memref<2x!tpu.dma_semaphore, #tpu.memory_space<semaphore_mem>> -> memref<1x!tpu.dma_semaphore, #tpu.memory_space<semaphore_mem>>
      %221 = tpu.memref_squeeze %220 : memref<1x!tpu.dma_semaphore, #tpu.memory_space<semaphore_mem>> -> memref<!tpu.dma_semaphore, #tpu.memory_space<semaphore_mem>>
      tpu.enqueue_dma source(%217 : memref<23x128xf32, #tpu.memory_space<any>>) target(%219 : memref<23x128xf32, #tpu.memory_space<vmem>>) target_semaphore(%221 : memref<!tpu.dma_semaphore, #tpu.memory_space<semaphore_mem>>)
    } else {
    }
    %c0_i32_1 = arith.constant 0 : i32
    %4 = arith.cmpi slt, %arg1, %c0_i32_1 : i32
    %5 = arith.extui %4 : i1 to i32
    %c0_i32_2 = arith.constant 0 : i32
    %6 = arith.cmpi ne, %5, %c0_i32_2 : i32
    scf.if %6 {
      %c64_i32_240 = arith.constant 64 : i32
      %215 = arith.addi %0, %c64_i32_240 : i32
      %c1_i32 = arith.constant 1 : i32
      %c1_i32_241 = arith.constant 1 : i32
      %c0_i32_242 = arith.constant 0 : i32
      %216 = tpu.memref_slice %arg3[%arg0, %215, %c0_i32_242] : memref<2x64x128xf32, #tpu.memory_space<any>> -> memref<1x23x128xf32, #tpu.memory_space<any>>
      %217 = tpu.memref_squeeze %216 : memref<1x23x128xf32, #tpu.memory_space<any>> -> memref<23x128xf32, #tpu.memory_space<any>>
      %c0_i32_243 = arith.constant 0 : i32
      %c0_i32_244 = arith.constant 0 : i32
      %218 = tpu.memref_slice %arg13[%c1_i32, %c0_i32_243, %c0_i32_244] : memref<2x23x128xf32, #tpu.memory_space<vmem>> -> memref<1x23x128xf32, #tpu.memory_space<vmem>>
      %219 = tpu.memref_squeeze %218 : memref<1x23x128xf32, #tpu.memory_space<vmem>> -> memref<23x128xf32, #tpu.memory_space<vmem>>
      %220 = tpu.memref_slice %arg14[%c1_i32_241] : memref<2x!tpu.dma_semaphore, #tpu.memory_space<semaphore_mem>> -> memref<1x!tpu.dma_semaphore, #tpu.memory_space<semaphore_mem>>
      %221 = tpu.memref_squeeze %220 : memref<1x!tpu.dma_semaphore, #tpu.memory_space<semaphore_mem>> -> memref<!tpu.dma_semaphore, #tpu.memory_space<semaphore_mem>>
      tpu.enqueue_dma source(%217 : memref<23x128xf32, #tpu.memory_space<any>>) target(%219 : memref<23x128xf32, #tpu.memory_space<vmem>>) target_semaphore(%221 : memref<!tpu.dma_semaphore, #tpu.memory_space<semaphore_mem>>)
    } else {
    }
    %c0 = arith.constant 0 : index
    %c0_3 = arith.constant 0 : index
    %c0_4 = arith.constant 0 : index
    %7 = vector.load %arg2[%c0, %c0_3, %c0_4] : memref<1x64x128xf32, #tpu.memory_space<vmem>>, vector<1x64x128xf32>
    %8 = vector.shape_cast %7 : vector<1x64x128xf32> to vector<64x128xf32>
    %cst = arith.constant 0.000000e+00 : f32
    %9 = vector.broadcast %cst : f32 to vector<64x128xf32>
    %10 = arith.cmpf oge, %8, %9 : vector<64x128xf32>
    %cst_5 = arith.constant 1.000000e-01 : f32
    %11 = vector.broadcast %cst_5 : f32 to vector<64x128xf32>
    %12 = arith.mulf %11, %8 : vector<64x128xf32>
    %13 = arith.select %10, %8, %12 : vector<64x128xi1>, vector<64x128xf32>
    %c24 = arith.constant 24 : index
    %c0_6 = arith.constant 0 : index
    %14 = vector.load %arg9[%c24, %c0_6] : memref<112x128xf32, #tpu.memory_space<vmem>>, vector<64x128xf32>
    tpu.vector_store %arg9[%c24, %c0_6], %13 {strides = array<i32>} : memref<112x128xf32, #tpu.memory_space<vmem>>, vector<64x128xf32>,
    %c0_i32_7 = arith.constant 0 : i32
    %15 = arith.cmpi eq, %arg1, %c0_i32_7 : i32
    %16 = arith.extui %15 : i1 to i32
    %c0_i32_8 = arith.constant 0 : i32
    %17 = arith.cmpi ne, %16, %c0_i32_8 : i32
    scf.if %17 {
      %cst_240 = arith.constant 0.000000e+00 : f32
      %215 = vector.broadcast %cst_240 : f32 to vector<24x128xf32>
      %c0_241 = arith.constant 0 : index
      %c0_242 = arith.constant 0 : index
      %216 = vector.load %arg9[%c0_241, %c0_242] : memref<112x128xf32, #tpu.memory_space<vmem>>, vector<24x128xf32>
      tpu.vector_store %arg9[%c0_241, %c0_242], %215 {strides = array<i32>} : memref<112x128xf32, #tpu.memory_space<vmem>>, vector<24x128xf32>,
    } else {
    }
    %c0_i32_9 = arith.constant 0 : i32
    %18 = arith.cmpi sgt, %arg1, %c0_i32_9 : i32
    %19 = arith.extui %18 : i1 to i32
    %c0_i32_10 = arith.constant 0 : i32
    %20 = arith.cmpi ne, %19, %c0_i32_10 : i32
    scf.if %20 {
      %c23_i32 = arith.constant 23 : i32
      %215 = arith.subi %0, %c23_i32 : i32
      %c0_i32_240 = arith.constant 0 : i32
      %c0_i32_241 = arith.constant 0 : i32
      %c0_i32_242 = arith.constant 0 : i32
      %216 = tpu.memref_slice %arg3[%arg0, %215, %c0_i32_242] : memref<2x64x128xf32, #tpu.memory_space<any>> -> memref<1x23x128xf32, #tpu.memory_space<any>>
      %217 = tpu.memref_squeeze %216 : memref<1x23x128xf32, #tpu.memory_space<any>> -> memref<23x128xf32, #tpu.memory_space<any>>
      %c0_i32_243 = arith.constant 0 : i32
      %c0_i32_244 = arith.constant 0 : i32
      %218 = tpu.memref_slice %arg13[%c0_i32_240, %c0_i32_243, %c0_i32_244] : memref<2x23x128xf32, #tpu.memory_space<vmem>> -> memref<1x23x128xf32, #tpu.memory_space<vmem>>
      %219 = tpu.memref_squeeze %218 : memref<1x23x128xf32, #tpu.memory_space<vmem>> -> memref<23x128xf32, #tpu.memory_space<vmem>>
      %220 = tpu.memref_slice %arg14[%c0_i32_241] : memref<2x!tpu.dma_semaphore, #tpu.memory_space<semaphore_mem>> -> memref<1x!tpu.dma_semaphore, #tpu.memory_space<semaphore_mem>>
      %221 = tpu.memref_squeeze %220 : memref<1x!tpu.dma_semaphore, #tpu.memory_space<semaphore_mem>> -> memref<!tpu.dma_semaphore, #tpu.memory_space<semaphore_mem>>
      tpu.wait_dma2 semaphore(%221 : memref<!tpu.dma_semaphore, #tpu.memory_space<semaphore_mem>>) src(%217 : memref<23x128xf32, #tpu.memory_space<any>>) dst(%219 : memref<23x128xf32, #tpu.memory_space<vmem>>)
      %c0_245 = arith.constant 0 : index
      %c0_246 = arith.constant 0 : index
      %c0_247 = arith.constant 0 : index
      %222 = vector.load %arg13[%c0_245, %c0_246, %c0_247] : memref<2x23x128xf32, #tpu.memory_space<vmem>>, vector<1x23x128xf32>
      %223 = vector.shape_cast %222 : vector<1x23x128xf32> to vector<23x128xf32>
      %cst_248 = arith.constant 0.000000e+00 : f32
      %224 = vector.broadcast %cst_248 : f32 to vector<23x128xf32>
      %225 = arith.cmpf oge, %223, %224 : vector<23x128xf32>
      %cst_249 = arith.constant 1.000000e-01 : f32
      %226 = vector.broadcast %cst_249 : f32 to vector<23x128xf32>
      %227 = arith.mulf %226, %223 : vector<23x128xf32>
      %228 = arith.select %225, %223, %227 : vector<23x128xi1>, vector<23x128xf32>
      %c1_250 = arith.constant 1 : index
      %c0_251 = arith.constant 0 : index
      %229 = vector.load %arg9[%c1_250, %c0_251] : memref<112x128xf32, #tpu.memory_space<vmem>>, vector<23x128xf32>
      tpu.vector_store %arg9[%c1_250, %c0_251], %228 {strides = array<i32>} : memref<112x128xf32, #tpu.memory_space<vmem>>, vector<23x128xf32>,
    } else {
    }
    %c0_i32_11 = arith.constant 0 : i32
    %21 = arith.cmpi eq, %arg1, %c0_i32_11 : i32
    %22 = arith.extui %21 : i1 to i32
    %c0_i32_12 = arith.constant 0 : i32
    %23 = arith.cmpi ne, %22, %c0_i32_12 : i32
    scf.if %23 {
      %cst_240 = arith.constant 0.000000e+00 : f32
      %215 = vector.broadcast %cst_240 : f32 to vector<24x128xf32>
      %c88 = arith.constant 88 : index
      %c0_241 = arith.constant 0 : index
      %216 = vector.load %arg9[%c88, %c0_241] : memref<112x128xf32, #tpu.memory_space<vmem>>, vector<24x128xf32>
      tpu.vector_store %arg9[%c88, %c0_241], %215 {strides = array<i32>} : memref<112x128xf32, #tpu.memory_space<vmem>>, vector<24x128xf32>,
    } else {
    }
    %c0_i32_13 = arith.constant 0 : i32
    %24 = arith.cmpi slt, %arg1, %c0_i32_13 : i32
    %25 = arith.extui %24 : i1 to i32
    %c0_i32_14 = arith.constant 0 : i32
    %26 = arith.cmpi ne, %25, %c0_i32_14 : i32
    scf.if %26 {
      %c64_i32_240 = arith.constant 64 : i32
      %215 = arith.addi %0, %c64_i32_240 : i32
      %c1_i32 = arith.constant 1 : i32
      %c1_i32_241 = arith.constant 1 : i32
      %c0_i32_242 = arith.constant 0 : i32
      %216 = tpu.memref_slice %arg3[%arg0, %215, %c0_i32_242] : memref<2x64x128xf32, #tpu.memory_space<any>> -> memref<1x23x128xf32, #tpu.memory_space<any>>
      %217 = tpu.memref_squeeze %216 : memref<1x23x128xf32, #tpu.memory_space<any>> -> memref<23x128xf32, #tpu.memory_space<any>>
      %c0_i32_243 = arith.constant 0 : i32
      %c0_i32_244 = arith.constant 0 : i32
      %218 = tpu.memref_slice %arg13[%c1_i32, %c0_i32_243, %c0_i32_244] : memref<2x23x128xf32, #tpu.memory_space<vmem>> -> memref<1x23x128xf32, #tpu.memory_space<vmem>>
      %219 = tpu.memref_squeeze %218 : memref<1x23x128xf32, #tpu.memory_space<vmem>> -> memref<23x128xf32, #tpu.memory_space<vmem>>
      %220 = tpu.memref_slice %arg14[%c1_i32_241] : memref<2x!tpu.dma_semaphore, #tpu.memory_space<semaphore_mem>> -> memref<1x!tpu.dma_semaphore, #tpu.memory_space<semaphore_mem>>
      %221 = tpu.memref_squeeze %220 : memref<1x!tpu.dma_semaphore, #tpu.memory_space<semaphore_mem>> -> memref<!tpu.dma_semaphore, #tpu.memory_space<semaphore_mem>>
      tpu.wait_dma2 semaphore(%221 : memref<!tpu.dma_semaphore, #tpu.memory_space<semaphore_mem>>) src(%217 : memref<23x128xf32, #tpu.memory_space<any>>) dst(%219 : memref<23x128xf32, #tpu.memory_space<vmem>>)
      %c1_245 = arith.constant 1 : index
      %c0_246 = arith.constant 0 : index
      %c0_247 = arith.constant 0 : index
      %222 = vector.load %arg13[%c1_245, %c0_246, %c0_247] : memref<2x23x128xf32, #tpu.memory_space<vmem>>, vector<1x23x128xf32>
      %223 = vector.shape_cast %222 : vector<1x23x128xf32> to vector<23x128xf32>
      %cst_248 = arith.constant 0.000000e+00 : f32
      %224 = vector.broadcast %cst_248 : f32 to vector<23x128xf32>
      %225 = arith.cmpf oge, %223, %224 : vector<23x128xf32>
      %cst_249 = arith.constant 1.000000e-01 : f32
      %226 = vector.broadcast %cst_249 : f32 to vector<23x128xf32>
      %227 = arith.mulf %226, %223 : vector<23x128xf32>
      %228 = arith.select %225, %223, %227 : vector<23x128xi1>, vector<23x128xf32>
      %c88 = arith.constant 88 : index
      %c0_250 = arith.constant 0 : index
      %229 = vector.load %arg9[%c88, %c0_250] : memref<112x128xf32, #tpu.memory_space<vmem>>, vector<23x128xf32>
      tpu.vector_store %arg9[%c88, %c0_250], %228 {strides = array<i32>} : memref<112x128xf32, #tpu.memory_space<vmem>>, vector<23x128xf32>,
    } else {
    }
    %c16 = arith.constant 16 : index
    %c0_15 = arith.constant 0 : index
    %27 = vector.load %arg9[%c16, %c0_15] : memref<112x128xf32, #tpu.memory_space<vmem>>, vector<80x128xf32>
    %c0_16 = arith.constant 0 : index
    %c0_17 = arith.constant 0 : index
    %28 = vector.load %arg5[%c0_16, %c0_17] : memref<1x128xf32, #tpu.memory_space<vmem>>, vector<1x128xf32>
    %29 = vector.broadcast %28 : vector<1x128xf32> to vector<80x128xf32>
    %30 = arith.addf %27, %29 : vector<80x128xf32>
    %c0_18 = arith.constant 0 : index
    %c0_19 = arith.constant 0 : index
    %31 = vector.load %arg11[%c0_18, %c0_19] : memref<80x128xf32, #tpu.memory_space<vmem>>, vector<80x128xf32>
    tpu.vector_store %arg11[%c0_18, %c0_19], %30 {strides = array<i32>} : memref<80x128xf32, #tpu.memory_space<vmem>>, vector<80x128xf32>,
    %c0_20 = arith.constant 0 : index
    %c0_21 = arith.constant 0 : index
    %32 = vector.load %arg11[%c0_20, %c0_21] : memref<80x128xf32, #tpu.memory_space<vmem>>, vector<80x128xf32>
    %c1 = arith.constant 1 : index
    %c0_22 = arith.constant 0 : index
    %33 = vector.load %arg9[%c1, %c0_22] : memref<112x128xf32, #tpu.memory_space<vmem>>, vector<80x128xf32>
    %c0_23 = arith.constant 0 : index
    %c0_24 = arith.constant 0 : index
    %c0_25 = arith.constant 0 : index
    %34 = vector.load %arg4[%c0_23, %c0_24, %c0_25] : memref<11x128x128xf32, #tpu.memory_space<vmem>>, vector<1x128x128xf32>
    %35 = vector.shape_cast %34 : vector<1x128x128xf32> to vector<128x128xf32>
    %cst_26 = arith.constant dense<0.000000e+00> : vector<80x128xf32>
    %36 = tpu.matmul %33, %35, %cst_26 {dimension_numbers = #tpu.dot_dimension_numbers<[1], [0], [0], [1], [0, 0, 1, 1], [], []>} : vector<80x128xf32>, vector<128x128xf32>, vector<80x128xf32> -> vector<80x128xf32>
    %37 = arith.addf %32, %36 : vector<80x128xf32>
    %c0_27 = arith.constant 0 : index
    %c0_28 = arith.constant 0 : index
    %38 = vector.load %arg11[%c0_27, %c0_28] : memref<80x128xf32, #tpu.memory_space<vmem>>, vector<80x128xf32>
    tpu.vector_store %arg11[%c0_27, %c0_28], %37 {strides = array<i32>} : memref<80x128xf32, #tpu.memory_space<vmem>>, vector<80x128xf32>,
    %c0_29 = arith.constant 0 : index
    %c0_30 = arith.constant 0 : index
    %39 = vector.load %arg11[%c0_29, %c0_30] : memref<80x128xf32, #tpu.memory_space<vmem>>, vector<80x128xf32>
    %c4 = arith.constant 4 : index
    %c0_31 = arith.constant 0 : index
    %40 = vector.load %arg9[%c4, %c0_31] : memref<112x128xf32, #tpu.memory_space<vmem>>, vector<80x128xf32>
    %c1_32 = arith.constant 1 : index
    %c0_33 = arith.constant 0 : index
    %c0_34 = arith.constant 0 : index
    %41 = vector.load %arg4[%c1_32, %c0_33, %c0_34] : memref<11x128x128xf32, #tpu.memory_space<vmem>>, vector<1x128x128xf32>
    %42 = vector.shape_cast %41 : vector<1x128x128xf32> to vector<128x128xf32>
    %cst_35 = arith.constant dense<0.000000e+00> : vector<80x128xf32>
    %43 = tpu.matmul %40, %42, %cst_35 {dimension_numbers = #tpu.dot_dimension_numbers<[1], [0], [0], [1], [0, 0, 1, 1], [], []>} : vector<80x128xf32>, vector<128x128xf32>, vector<80x128xf32> -> vector<80x128xf32>
    %44 = arith.addf %39, %43 : vector<80x128xf32>
    %c0_36 = arith.constant 0 : index
    %c0_37 = arith.constant 0 : index
    %45 = vector.load %arg11[%c0_36, %c0_37] : memref<80x128xf32, #tpu.memory_space<vmem>>, vector<80x128xf32>
    tpu.vector_store %arg11[%c0_36, %c0_37], %44 {strides = array<i32>} : memref<80x128xf32, #tpu.memory_space<vmem>>, vector<80x128xf32>,
    %c0_38 = arith.constant 0 : index
    %c0_39 = arith.constant 0 : index
    %46 = vector.load %arg11[%c0_38, %c0_39] : memref<80x128xf32, #tpu.memory_space<vmem>>, vector<80x128xf32>
    %c7 = arith.constant 7 : index
    %c0_40 = arith.constant 0 : index
    %47 = vector.load %arg9[%c7, %c0_40] : memref<112x128xf32, #tpu.memory_space<vmem>>, vector<80x128xf32>
    %c2 = arith.constant 2 : index
    %c0_41 = arith.constant 0 : index
    %c0_42 = arith.constant 0 : index
    %48 = vector.load %arg4[%c2, %c0_41, %c0_42] : memref<11x128x128xf32, #tpu.memory_space<vmem>>, vector<1x128x128xf32>
    %49 = vector.shape_cast %48 : vector<1x128x128xf32> to vector<128x128xf32>
    %cst_43 = arith.constant dense<0.000000e+00> : vector<80x128xf32>
    %50 = tpu.matmul %47, %49, %cst_43 {dimension_numbers = #tpu.dot_dimension_numbers<[1], [0], [0], [1], [0, 0, 1, 1], [], []>} : vector<80x128xf32>, vector<128x128xf32>, vector<80x128xf32> -> vector<80x128xf32>
    %51 = arith.addf %46, %50 : vector<80x128xf32>
    %c0_44 = arith.constant 0 : index
    %c0_45 = arith.constant 0 : index
    %52 = vector.load %arg11[%c0_44, %c0_45] : memref<80x128xf32, #tpu.memory_space<vmem>>, vector<80x128xf32>
    tpu.vector_store %arg11[%c0_44, %c0_45], %51 {strides = array<i32>} : memref<80x128xf32, #tpu.memory_space<vmem>>, vector<80x128xf32>,
    %c0_46 = arith.constant 0 : index
    %c0_47 = arith.constant 0 : index
    %53 = vector.load %arg11[%c0_46, %c0_47] : memref<80x128xf32, #tpu.memory_space<vmem>>, vector<80x128xf32>
    %c10 = arith.constant 10 : index
    %c0_48 = arith.constant 0 : index
    %54 = vector.load %arg9[%c10, %c0_48] : memref<112x128xf32, #tpu.memory_space<vmem>>, vector<80x128xf32>
    %c3 = arith.constant 3 : index
    %c0_49 = arith.constant 0 : index
    %c0_50 = arith.constant 0 : index
    %55 = vector.load %arg4[%c3, %c0_49, %c0_50] : memref<11x128x128xf32, #tpu.memory_space<vmem>>, vector<1x128x128xf32>
    %56 = vector.shape_cast %55 : vector<1x128x128xf32> to vector<128x128xf32>
    %cst_51 = arith.constant dense<0.000000e+00> : vector<80x128xf32>
    %57 = tpu.matmul %54, %56, %cst_51 {dimension_numbers = #tpu.dot_dimension_numbers<[1], [0], [0], [1], [0, 0, 1, 1], [], []>} : vector<80x128xf32>, vector<128x128xf32>, vector<80x128xf32> -> vector<80x128xf32>
    %58 = arith.addf %53, %57 : vector<80x128xf32>
    %c0_52 = arith.constant 0 : index
    %c0_53 = arith.constant 0 : index
    %59 = vector.load %arg11[%c0_52, %c0_53] : memref<80x128xf32, #tpu.memory_space<vmem>>, vector<80x128xf32>
    tpu.vector_store %arg11[%c0_52, %c0_53], %58 {strides = array<i32>} : memref<80x128xf32, #tpu.memory_space<vmem>>, vector<80x128xf32>,
    %c0_54 = arith.constant 0 : index
    %c0_55 = arith.constant 0 : index
    %60 = vector.load %arg11[%c0_54, %c0_55] : memref<80x128xf32, #tpu.memory_space<vmem>>, vector<80x128xf32>
    %c13 = arith.constant 13 : index
    %c0_56 = arith.constant 0 : index
    %61 = vector.load %arg9[%c13, %c0_56] : memref<112x128xf32, #tpu.memory_space<vmem>>, vector<80x128xf32>
    %c4_57 = arith.constant 4 : index
    %c0_58 = arith.constant 0 : index
    %c0_59 = arith.constant 0 : index
    %62 = vector.load %arg4[%c4_57, %c0_58, %c0_59] : memref<11x128x128xf32, #tpu.memory_space<vmem>>, vector<1x128x128xf32>
    %63 = vector.shape_cast %62 : vector<1x128x128xf32> to vector<128x128xf32>
    %cst_60 = arith.constant dense<0.000000e+00> : vector<80x128xf32>
    %64 = tpu.matmul %61, %63, %cst_60 {dimension_numbers = #tpu.dot_dimension_numbers<[1], [0], [0], [1], [0, 0, 1, 1], [], []>} : vector<80x128xf32>, vector<128x128xf32>, vector<80x128xf32> -> vector<80x128xf32>
    %65 = arith.addf %60, %64 : vector<80x128xf32>
    %c0_61 = arith.constant 0 : index
    %c0_62 = arith.constant 0 : index
    %66 = vector.load %arg11[%c0_61, %c0_62] : memref<80x128xf32, #tpu.memory_space<vmem>>, vector<80x128xf32>
    tpu.vector_store %arg11[%c0_61, %c0_62], %65 {strides = array<i32>} : memref<80x128xf32, #tpu.memory_space<vmem>>, vector<80x128xf32>,
    %c0_63 = arith.constant 0 : index
    %c0_64 = arith.constant 0 : index
    %67 = vector.load %arg11[%c0_63, %c0_64] : memref<80x128xf32, #tpu.memory_space<vmem>>, vector<80x128xf32>
    %c16_65 = arith.constant 16 : index
    %c0_66 = arith.constant 0 : index
    %68 = vector.load %arg9[%c16_65, %c0_66] : memref<112x128xf32, #tpu.memory_space<vmem>>, vector<80x128xf32>
    %c5 = arith.constant 5 : index
    %c0_67 = arith.constant 0 : index
    %c0_68 = arith.constant 0 : index
    %69 = vector.load %arg4[%c5, %c0_67, %c0_68] : memref<11x128x128xf32, #tpu.memory_space<vmem>>, vector<1x128x128xf32>
    %70 = vector.shape_cast %69 : vector<1x128x128xf32> to vector<128x128xf32>
    %cst_69 = arith.constant dense<0.000000e+00> : vector<80x128xf32>
    %71 = tpu.matmul %68, %70, %cst_69 {dimension_numbers = #tpu.dot_dimension_numbers<[1], [0], [0], [1], [0, 0, 1, 1], [], []>} : vector<80x128xf32>, vector<128x128xf32>, vector<80x128xf32> -> vector<80x128xf32>
    %72 = arith.addf %67, %71 : vector<80x128xf32>
    %c0_70 = arith.constant 0 : index
    %c0_71 = arith.constant 0 : index
    %73 = vector.load %arg11[%c0_70, %c0_71] : memref<80x128xf32, #tpu.memory_space<vmem>>, vector<80x128xf32>
    tpu.vector_store %arg11[%c0_70, %c0_71], %72 {strides = array<i32>} : memref<80x128xf32, #tpu.memory_space<vmem>>, vector<80x128xf32>,
    %c0_72 = arith.constant 0 : index
    %c0_73 = arith.constant 0 : index
    %74 = vector.load %arg11[%c0_72, %c0_73] : memref<80x128xf32, #tpu.memory_space<vmem>>, vector<80x128xf32>
    %c19 = arith.constant 19 : index
    %c0_74 = arith.constant 0 : index
    %75 = vector.load %arg9[%c19, %c0_74] : memref<112x128xf32, #tpu.memory_space<vmem>>, vector<80x128xf32>
    %c6 = arith.constant 6 : index
    %c0_75 = arith.constant 0 : index
    %c0_76 = arith.constant 0 : index
    %76 = vector.load %arg4[%c6, %c0_75, %c0_76] : memref<11x128x128xf32, #tpu.memory_space<vmem>>, vector<1x128x128xf32>
    %77 = vector.shape_cast %76 : vector<1x128x128xf32> to vector<128x128xf32>
    %cst_77 = arith.constant dense<0.000000e+00> : vector<80x128xf32>
    %78 = tpu.matmul %75, %77, %cst_77 {dimension_numbers = #tpu.dot_dimension_numbers<[1], [0], [0], [1], [0, 0, 1, 1], [], []>} : vector<80x128xf32>, vector<128x128xf32>, vector<80x128xf32> -> vector<80x128xf32>
    %79 = arith.addf %74, %78 : vector<80x128xf32>
    %c0_78 = arith.constant 0 : index
    %c0_79 = arith.constant 0 : index
    %80 = vector.load %arg11[%c0_78, %c0_79] : memref<80x128xf32, #tpu.memory_space<vmem>>, vector<80x128xf32>
    tpu.vector_store %arg11[%c0_78, %c0_79], %79 {strides = array<i32>} : memref<80x128xf32, #tpu.memory_space<vmem>>, vector<80x128xf32>,
    %c0_80 = arith.constant 0 : index
    %c0_81 = arith.constant 0 : index
    %81 = vector.load %arg11[%c0_80, %c0_81] : memref<80x128xf32, #tpu.memory_space<vmem>>, vector<80x128xf32>
    %c22 = arith.constant 22 : index
    %c0_82 = arith.constant 0 : index
    %82 = vector.load %arg9[%c22, %c0_82] : memref<112x128xf32, #tpu.memory_space<vmem>>, vector<80x128xf32>
    %c7_83 = arith.constant 7 : index
    %c0_84 = arith.constant 0 : index
    %c0_85 = arith.constant 0 : index
    %83 = vector.load %arg4[%c7_83, %c0_84, %c0_85] : memref<11x128x128xf32, #tpu.memory_space<vmem>>, vector<1x128x128xf32>
    %84 = vector.shape_cast %83 : vector<1x128x128xf32> to vector<128x128xf32>
    %cst_86 = arith.constant dense<0.000000e+00> : vector<80x128xf32>
    %85 = tpu.matmul %82, %84, %cst_86 {dimension_numbers = #tpu.dot_dimension_numbers<[1], [0], [0], [1], [0, 0, 1, 1], [], []>} : vector<80x128xf32>, vector<128x128xf32>, vector<80x128xf32> -> vector<80x128xf32>
    %86 = arith.addf %81, %85 : vector<80x128xf32>
    %c0_87 = arith.constant 0 : index
    %c0_88 = arith.constant 0 : index
    %87 = vector.load %arg11[%c0_87, %c0_88] : memref<80x128xf32, #tpu.memory_space<vmem>>, vector<80x128xf32>
    tpu.vector_store %arg11[%c0_87, %c0_88], %86 {strides = array<i32>} : memref<80x128xf32, #tpu.memory_space<vmem>>, vector<80x128xf32>,
    %c0_89 = arith.constant 0 : index
    %c0_90 = arith.constant 0 : index
    %88 = vector.load %arg11[%c0_89, %c0_90] : memref<80x128xf32, #tpu.memory_space<vmem>>, vector<80x128xf32>
    %c25 = arith.constant 25 : index
    %c0_91 = arith.constant 0 : index
    %89 = vector.load %arg9[%c25, %c0_91] : memref<112x128xf32, #tpu.memory_space<vmem>>, vector<80x128xf32>
    %c8 = arith.constant 8 : index
    %c0_92 = arith.constant 0 : index
    %c0_93 = arith.constant 0 : index
    %90 = vector.load %arg4[%c8, %c0_92, %c0_93] : memref<11x128x128xf32, #tpu.memory_space<vmem>>, vector<1x128x128xf32>
    %91 = vector.shape_cast %90 : vector<1x128x128xf32> to vector<128x128xf32>
    %cst_94 = arith.constant dense<0.000000e+00> : vector<80x128xf32>
    %92 = tpu.matmul %89, %91, %cst_94 {dimension_numbers = #tpu.dot_dimension_numbers<[1], [0], [0], [1], [0, 0, 1, 1], [], []>} : vector<80x128xf32>, vector<128x128xf32>, vector<80x128xf32> -> vector<80x128xf32>
    %93 = arith.addf %88, %92 : vector<80x128xf32>
    %c0_95 = arith.constant 0 : index
    %c0_96 = arith.constant 0 : index
    %94 = vector.load %arg11[%c0_95, %c0_96] : memref<80x128xf32, #tpu.memory_space<vmem>>, vector<80x128xf32>
    tpu.vector_store %arg11[%c0_95, %c0_96], %93 {strides = array<i32>} : memref<80x128xf32, #tpu.memory_space<vmem>>, vector<80x128xf32>,
    %c0_97 = arith.constant 0 : index
    %c0_98 = arith.constant 0 : index
    %95 = vector.load %arg11[%c0_97, %c0_98] : memref<80x128xf32, #tpu.memory_space<vmem>>, vector<80x128xf32>
    %c28 = arith.constant 28 : index
    %c0_99 = arith.constant 0 : index
    %96 = vector.load %arg9[%c28, %c0_99] : memref<112x128xf32, #tpu.memory_space<vmem>>, vector<80x128xf32>
    %c9 = arith.constant 9 : index
    %c0_100 = arith.constant 0 : index
    %c0_101 = arith.constant 0 : index
    %97 = vector.load %arg4[%c9, %c0_100, %c0_101] : memref<11x128x128xf32, #tpu.memory_space<vmem>>, vector<1x128x128xf32>
    %98 = vector.shape_cast %97 : vector<1x128x128xf32> to vector<128x128xf32>
    %cst_102 = arith.constant dense<0.000000e+00> : vector<80x128xf32>
    %99 = tpu.matmul %96, %98, %cst_102 {dimension_numbers = #tpu.dot_dimension_numbers<[1], [0], [0], [1], [0, 0, 1, 1], [], []>} : vector<80x128xf32>, vector<128x128xf32>, vector<80x128xf32> -> vector<80x128xf32>
    %100 = arith.addf %95, %99 : vector<80x128xf32>
    %c0_103 = arith.constant 0 : index
    %c0_104 = arith.constant 0 : index
    %101 = vector.load %arg11[%c0_103, %c0_104] : memref<80x128xf32, #tpu.memory_space<vmem>>, vector<80x128xf32>
    tpu.vector_store %arg11[%c0_103, %c0_104], %100 {strides = array<i32>} : memref<80x128xf32, #tpu.memory_space<vmem>>, vector<80x128xf32>,
    %c0_105 = arith.constant 0 : index
    %c0_106 = arith.constant 0 : index
    %102 = vector.load %arg11[%c0_105, %c0_106] : memref<80x128xf32, #tpu.memory_space<vmem>>, vector<80x128xf32>
    %c31 = arith.constant 31 : index
    %c0_107 = arith.constant 0 : index
    %103 = vector.load %arg9[%c31, %c0_107] : memref<112x128xf32, #tpu.memory_space<vmem>>, vector<80x128xf32>
    %c10_108 = arith.constant 10 : index
    %c0_109 = arith.constant 0 : index
    %c0_110 = arith.constant 0 : index
    %104 = vector.load %arg4[%c10_108, %c0_109, %c0_110] : memref<11x128x128xf32, #tpu.memory_space<vmem>>, vector<1x128x128xf32>
    %105 = vector.shape_cast %104 : vector<1x128x128xf32> to vector<128x128xf32>
    %cst_111 = arith.constant dense<0.000000e+00> : vector<80x128xf32>
    %106 = tpu.matmul %103, %105, %cst_111 {dimension_numbers = #tpu.dot_dimension_numbers<[1], [0], [0], [1], [0, 0, 1, 1], [], []>} : vector<80x128xf32>, vector<128x128xf32>, vector<80x128xf32> -> vector<80x128xf32>
    %107 = arith.addf %102, %106 : vector<80x128xf32>
    %c0_112 = arith.constant 0 : index
    %c0_113 = arith.constant 0 : index
    %108 = vector.load %arg11[%c0_112, %c0_113] : memref<80x128xf32, #tpu.memory_space<vmem>>, vector<80x128xf32>
    tpu.vector_store %arg11[%c0_112, %c0_113], %107 {strides = array<i32>} : memref<80x128xf32, #tpu.memory_space<vmem>>, vector<80x128xf32>,
    %c0_114 = arith.constant 0 : index
    %c0_115 = arith.constant 0 : index
    %109 = vector.load %arg11[%c0_114, %c0_115] : memref<80x128xf32, #tpu.memory_space<vmem>>, vector<80x128xf32>
    %cst_116 = arith.constant 0.000000e+00 : f32
    %110 = vector.broadcast %cst_116 : f32 to vector<80x128xf32>
    %111 = arith.cmpf oge, %109, %110 : vector<80x128xf32>
    %cst_117 = arith.constant 1.000000e-01 : f32
    %112 = vector.broadcast %cst_117 : f32 to vector<80x128xf32>
    %113 = arith.mulf %112, %109 : vector<80x128xf32>
    %114 = arith.select %111, %109, %113 : vector<80x128xi1>, vector<80x128xf32>
    %c8_i32 = arith.constant 8 : i32
    %115 = arith.subi %0, %c8_i32 : i32
    %116 = tpu.iota {dimensions = array<i32: 0>} : vector<80x1xi32>
    %117 = vector.broadcast %115 : i32 to vector<80x1xi32>
    %118 = arith.addi %117, %116 : vector<80x1xi32>
    %c0_i32_118 = arith.constant 0 : i32
    %119 = vector.broadcast %c0_i32_118 : i32 to vector<80x1xi32>
    %120 = arith.cmpi sge, %118, %119 : vector<80x1xi32>
    %c64_i32_119 = arith.constant 64 : i32
    %121 = vector.broadcast %c64_i32_119 : i32 to vector<80x1xi32>
    %122 = arith.cmpi slt, %118, %121 : vector<80x1xi32>
    %123 = arith.andi %120, %122 : vector<80x1xi1>
    %cst_120 = arith.constant 0.000000e+00 : f32
    %124 = vector.shape_cast %123 : vector<80x1xi1> to vector<80x1xi1>
    %125 = vector.broadcast %124 : vector<80x1xi1> to vector<80x128xi1>
    %126 = vector.broadcast %cst_120 : f32 to vector<80x128xf32>
    %127 = arith.select %125, %114, %126 : vector<80x128xi1>, vector<80x128xf32>
    %c0_121 = arith.constant 0 : index
    %c0_122 = arith.constant 0 : index
    %128 = vector.load %arg10[%c0_121, %c0_122] : memref<80x128xf32, #tpu.memory_space<vmem>>, vector<80x128xf32>
    tpu.vector_store %arg10[%c0_121, %c0_122], %127 {strides = array<i32>} : memref<80x128xf32, #tpu.memory_space<vmem>>, vector<80x128xf32>,
    %129 = vector.extract_strided_slice %127 {offsets = [8, 0], sizes = [64, 128], strides = [1, 1]} : vector<80x128xf32> to vector<64x128xf32>
    %c0_123 = arith.constant 0 : index
    %c0_124 = arith.constant 0 : index
    %130 = vector.load %arg7[%c0_123, %c0_124] : memref<1x128xf32, #tpu.memory_space<vmem>>, vector<1x128xf32>
    %131 = vector.broadcast %130 : vector<1x128xf32> to vector<64x128xf32>
    %132 = arith.addf %129, %131 : vector<64x128xf32>
    %c0_125 = arith.constant 0 : index
    %c0_126 = arith.constant 0 : index
    %133 = vector.load %arg12[%c0_125, %c0_126] : memref<64x128xf32, #tpu.memory_space<vmem>>, vector<64x128xf32>
    tpu.vector_store %arg12[%c0_125, %c0_126], %132 {strides = array<i32>} : memref<64x128xf32, #tpu.memory_space<vmem>>, vector<64x128xf32>,
    %c0_127 = arith.constant 0 : index
    %c0_128 = arith.constant 0 : index
    %134 = vector.load %arg12[%c0_127, %c0_128] : memref<64x128xf32, #tpu.memory_space<vmem>>, vector<64x128xf32>
    %c3_129 = arith.constant 3 : index
    %c0_130 = arith.constant 0 : index
    %135 = vector.load %arg10[%c3_129, %c0_130] : memref<80x128xf32, #tpu.memory_space<vmem>>, vector<64x128xf32>
    %c0_131 = arith.constant 0 : index
    %c0_132 = arith.constant 0 : index
    %c0_133 = arith.constant 0 : index
    %136 = vector.load %arg6[%c0_131, %c0_132, %c0_133] : memref<11x128x128xf32, #tpu.memory_space<vmem>>, vector<1x128x128xf32>
    %137 = vector.shape_cast %136 : vector<1x128x128xf32> to vector<128x128xf32>
    %cst_134 = arith.constant dense<0.000000e+00> : vector<64x128xf32>
    %138 = tpu.matmul %135, %137, %cst_134 {dimension_numbers = #tpu.dot_dimension_numbers<[1], [0], [0], [1], [0, 0, 1, 1], [], []>} : vector<64x128xf32>, vector<128x128xf32>, vector<64x128xf32> -> vector<64x128xf32>
    %139 = arith.addf %134, %138 : vector<64x128xf32>
    %c0_135 = arith.constant 0 : index
    %c0_136 = arith.constant 0 : index
    %140 = vector.load %arg12[%c0_135, %c0_136] : memref<64x128xf32, #tpu.memory_space<vmem>>, vector<64x128xf32>
    tpu.vector_store %arg12[%c0_135, %c0_136], %139 {strides = array<i32>} : memref<64x128xf32, #tpu.memory_space<vmem>>, vector<64x128xf32>,
    %c0_137 = arith.constant 0 : index
    %c0_138 = arith.constant 0 : index
    %141 = vector.load %arg12[%c0_137, %c0_138] : memref<64x128xf32, #tpu.memory_space<vmem>>, vector<64x128xf32>
    %c4_139 = arith.constant 4 : index
    %c0_140 = arith.constant 0 : index
    %142 = vector.load %arg10[%c4_139, %c0_140] : memref<80x128xf32, #tpu.memory_space<vmem>>, vector<64x128xf32>
    %c1_141 = arith.constant 1 : index
    %c0_142 = arith.constant 0 : index
    %c0_143 = arith.constant 0 : index
    %143 = vector.load %arg6[%c1_141, %c0_142, %c0_143] : memref<11x128x128xf32, #tpu.memory_space<vmem>>, vector<1x128x128xf32>
    %144 = vector.shape_cast %143 : vector<1x128x128xf32> to vector<128x128xf32>
    %cst_144 = arith.constant dense<0.000000e+00> : vector<64x128xf32>
    %145 = tpu.matmul %142, %144, %cst_144 {dimension_numbers = #tpu.dot_dimension_numbers<[1], [0], [0], [1], [0, 0, 1, 1], [], []>} : vector<64x128xf32>, vector<128x128xf32>, vector<64x128xf32> -> vector<64x128xf32>
    %146 = arith.addf %141, %145 : vector<64x128xf32>
    %c0_145 = arith.constant 0 : index
    %c0_146 = arith.constant 0 : index
    %147 = vector.load %arg12[%c0_145, %c0_146] : memref<64x128xf32, #tpu.memory_space<vmem>>, vector<64x128xf32>
    tpu.vector_store %arg12[%c0_145, %c0_146], %146 {strides = array<i32>} : memref<64x128xf32, #tpu.memory_space<vmem>>, vector<64x128xf32>,
    %c0_147 = arith.constant 0 : index
    %c0_148 = arith.constant 0 : index
    %148 = vector.load %arg12[%c0_147, %c0_148] : memref<64x128xf32, #tpu.memory_space<vmem>>, vector<64x128xf32>
    %c5_149 = arith.constant 5 : index
    %c0_150 = arith.constant 0 : index
    %149 = vector.load %arg10[%c5_149, %c0_150] : memref<80x128xf32, #tpu.memory_space<vmem>>, vector<64x128xf32>
    %c2_151 = arith.constant 2 : index
    %c0_152 = arith.constant 0 : index
    %c0_153 = arith.constant 0 : index
    %150 = vector.load %arg6[%c2_151, %c0_152, %c0_153] : memref<11x128x128xf32, #tpu.memory_space<vmem>>, vector<1x128x128xf32>
    %151 = vector.shape_cast %150 : vector<1x128x128xf32> to vector<128x128xf32>
    %cst_154 = arith.constant dense<0.000000e+00> : vector<64x128xf32>
    %152 = tpu.matmul %149, %151, %cst_154 {dimension_numbers = #tpu.dot_dimension_numbers<[1], [0], [0], [1], [0, 0, 1, 1], [], []>} : vector<64x128xf32>, vector<128x128xf32>, vector<64x128xf32> -> vector<64x128xf32>
    %153 = arith.addf %148, %152 : vector<64x128xf32>
    %c0_155 = arith.constant 0 : index
    %c0_156 = arith.constant 0 : index
    %154 = vector.load %arg12[%c0_155, %c0_156] : memref<64x128xf32, #tpu.memory_space<vmem>>, vector<64x128xf32>
    tpu.vector_store %arg12[%c0_155, %c0_156], %153 {strides = array<i32>} : memref<64x128xf32, #tpu.memory_space<vmem>>, vector<64x128xf32>,
    %c0_157 = arith.constant 0 : index
    %c0_158 = arith.constant 0 : index
    %155 = vector.load %arg12[%c0_157, %c0_158] : memref<64x128xf32, #tpu.memory_space<vmem>>, vector<64x128xf32>
    %c6_159 = arith.constant 6 : index
    %c0_160 = arith.constant 0 : index
    %156 = vector.load %arg10[%c6_159, %c0_160] : memref<80x128xf32, #tpu.memory_space<vmem>>, vector<64x128xf32>
    %c3_161 = arith.constant 3 : index
    %c0_162 = arith.constant 0 : index
    %c0_163 = arith.constant 0 : index
    %157 = vector.load %arg6[%c3_161, %c0_162, %c0_163] : memref<11x128x128xf32, #tpu.memory_space<vmem>>, vector<1x128x128xf32>
    %158 = vector.shape_cast %157 : vector<1x128x128xf32> to vector<128x128xf32>
    %cst_164 = arith.constant dense<0.000000e+00> : vector<64x128xf32>
    %159 = tpu.matmul %156, %158, %cst_164 {dimension_numbers = #tpu.dot_dimension_numbers<[1], [0], [0], [1], [0, 0, 1, 1], [], []>} : vector<64x128xf32>, vector<128x128xf32>, vector<64x128xf32> -> vector<64x128xf32>
    %160 = arith.addf %155, %159 : vector<64x128xf32>
    %c0_165 = arith.constant 0 : index
    %c0_166 = arith.constant 0 : index
    %161 = vector.load %arg12[%c0_165, %c0_166] : memref<64x128xf32, #tpu.memory_space<vmem>>, vector<64x128xf32>
    tpu.vector_store %arg12[%c0_165, %c0_166], %160 {strides = array<i32>} : memref<64x128xf32, #tpu.memory_space<vmem>>, vector<64x128xf32>,
    %c0_167 = arith.constant 0 : index
    %c0_168 = arith.constant 0 : index
    %162 = vector.load %arg12[%c0_167, %c0_168] : memref<64x128xf32, #tpu.memory_space<vmem>>, vector<64x128xf32>
    %c7_169 = arith.constant 7 : index
    %c0_170 = arith.constant 0 : index
    %163 = vector.load %arg10[%c7_169, %c0_170] : memref<80x128xf32, #tpu.memory_space<vmem>>, vector<64x128xf32>
    %c4_171 = arith.constant 4 : index
    %c0_172 = arith.constant 0 : index
    %c0_173 = arith.constant 0 : index
    %164 = vector.load %arg6[%c4_171, %c0_172, %c0_173] : memref<11x128x128xf32, #tpu.memory_space<vmem>>, vector<1x128x128xf32>
    %165 = vector.shape_cast %164 : vector<1x128x128xf32> to vector<128x128xf32>
    %cst_174 = arith.constant dense<0.000000e+00> : vector<64x128xf32>
    %166 = tpu.matmul %163, %165, %cst_174 {dimension_numbers = #tpu.dot_dimension_numbers<[1], [0], [0], [1], [0, 0, 1, 1], [], []>} : vector<64x128xf32>, vector<128x128xf32>, vector<64x128xf32> -> vector<64x128xf32>
    %167 = arith.addf %162, %166 : vector<64x128xf32>
    %c0_175 = arith.constant 0 : index
    %c0_176 = arith.constant 0 : index
    %168 = vector.load %arg12[%c0_175, %c0_176] : memref<64x128xf32, #tpu.memory_space<vmem>>, vector<64x128xf32>
    tpu.vector_store %arg12[%c0_175, %c0_176], %167 {strides = array<i32>} : memref<64x128xf32, #tpu.memory_space<vmem>>, vector<64x128xf32>,
    %c0_177 = arith.constant 0 : index
    %c0_178 = arith.constant 0 : index
    %169 = vector.load %arg12[%c0_177, %c0_178] : memref<64x128xf32, #tpu.memory_space<vmem>>, vector<64x128xf32>
    %c8_179 = arith.constant 8 : index
    %c0_180 = arith.constant 0 : index
    %170 = vector.load %arg10[%c8_179, %c0_180] : memref<80x128xf32, #tpu.memory_space<vmem>>, vector<64x128xf32>
    %c5_181 = arith.constant 5 : index
    %c0_182 = arith.constant 0 : index
    %c0_183 = arith.constant 0 : index
    %171 = vector.load %arg6[%c5_181, %c0_182, %c0_183] : memref<11x128x128xf32, #tpu.memory_space<vmem>>, vector<1x128x128xf32>
    %172 = vector.shape_cast %171 : vector<1x128x128xf32> to vector<128x128xf32>
    %cst_184 = arith.constant dense<0.000000e+00> : vector<64x128xf32>
    %173 = tpu.matmul %170, %172, %cst_184 {dimension_numbers = #tpu.dot_dimension_numbers<[1], [0], [0], [1], [0, 0, 1, 1], [], []>} : vector<64x128xf32>, vector<128x128xf32>, vector<64x128xf32> -> vector<64x128xf32>
    %174 = arith.addf %169, %173 : vector<64x128xf32>
    %c0_185 = arith.constant 0 : index
    %c0_186 = arith.constant 0 : index
    %175 = vector.load %arg12[%c0_185, %c0_186] : memref<64x128xf32, #tpu.memory_space<vmem>>, vector<64x128xf32>
    tpu.vector_store %arg12[%c0_185, %c0_186], %174 {strides = array<i32>} : memref<64x128xf32, #tpu.memory_space<vmem>>, vector<64x128xf32>,
    %c0_187 = arith.constant 0 : index
    %c0_188 = arith.constant 0 : index
    %176 = vector.load %arg12[%c0_187, %c0_188] : memref<64x128xf32, #tpu.memory_space<vmem>>, vector<64x128xf32>
    %c9_189 = arith.constant 9 : index
    %c0_190 = arith.constant 0 : index
    %177 = vector.load %arg10[%c9_189, %c0_190] : memref<80x128xf32, #tpu.memory_space<vmem>>, vector<64x128xf32>
    %c6_191 = arith.constant 6 : index
    %c0_192 = arith.constant 0 : index
    %c0_193 = arith.constant 0 : index
    %178 = vector.load %arg6[%c6_191, %c0_192, %c0_193] : memref<11x128x128xf32, #tpu.memory_space<vmem>>, vector<1x128x128xf32>
    %179 = vector.shape_cast %178 : vector<1x128x128xf32> to vector<128x128xf32>
    %cst_194 = arith.constant dense<0.000000e+00> : vector<64x128xf32>
    %180 = tpu.matmul %177, %179, %cst_194 {dimension_numbers = #tpu.dot_dimension_numbers<[1], [0], [0], [1], [0, 0, 1, 1], [], []>} : vector<64x128xf32>, vector<128x128xf32>, vector<64x128xf32> -> vector<64x128xf32>
    %181 = arith.addf %176, %180 : vector<64x128xf32>
    %c0_195 = arith.constant 0 : index
    %c0_196 = arith.constant 0 : index
    %182 = vector.load %arg12[%c0_195, %c0_196] : memref<64x128xf32, #tpu.memory_space<vmem>>, vector<64x128xf32>
    tpu.vector_store %arg12[%c0_195, %c0_196], %181 {strides = array<i32>} : memref<64x128xf32, #tpu.memory_space<vmem>>, vector<64x128xf32>,
    %c0_197 = arith.constant 0 : index
    %c0_198 = arith.constant 0 : index
    %183 = vector.load %arg12[%c0_197, %c0_198] : memref<64x128xf32, #tpu.memory_space<vmem>>, vector<64x128xf32>
    %c10_199 = arith.constant 10 : index
    %c0_200 = arith.constant 0 : index
    %184 = vector.load %arg10[%c10_199, %c0_200] : memref<80x128xf32, #tpu.memory_space<vmem>>, vector<64x128xf32>
    %c7_201 = arith.constant 7 : index
    %c0_202 = arith.constant 0 : index
    %c0_203 = arith.constant 0 : index
    %185 = vector.load %arg6[%c7_201, %c0_202, %c0_203] : memref<11x128x128xf32, #tpu.memory_space<vmem>>, vector<1x128x128xf32>
    %186 = vector.shape_cast %185 : vector<1x128x128xf32> to vector<128x128xf32>
    %cst_204 = arith.constant dense<0.000000e+00> : vector<64x128xf32>
    %187 = tpu.matmul %184, %186, %cst_204 {dimension_numbers = #tpu.dot_dimension_numbers<[1], [0], [0], [1], [0, 0, 1, 1], [], []>} : vector<64x128xf32>, vector<128x128xf32>, vector<64x128xf32> -> vector<64x128xf32>
    %188 = arith.addf %183, %187 : vector<64x128xf32>
    %c0_205 = arith.constant 0 : index
    %c0_206 = arith.constant 0 : index
    %189 = vector.load %arg12[%c0_205, %c0_206] : memref<64x128xf32, #tpu.memory_space<vmem>>, vector<64x128xf32>
    tpu.vector_store %arg12[%c0_205, %c0_206], %188 {strides = array<i32>} : memref<64x128xf32, #tpu.memory_space<vmem>>, vector<64x128xf32>,
    %c0_207 = arith.constant 0 : index
    %c0_208 = arith.constant 0 : index
    %190 = vector.load %arg12[%c0_207, %c0_208] : memref<64x128xf32, #tpu.memory_space<vmem>>, vector<64x128xf32>
    %c11 = arith.constant 11 : index
    %c0_209 = arith.constant 0 : index
    %191 = vector.load %arg10[%c11, %c0_209] : memref<80x128xf32, #tpu.memory_space<vmem>>, vector<64x128xf32>
    %c8_210 = arith.constant 8 : index
    %c0_211 = arith.constant 0 : index
    %c0_212 = arith.constant 0 : index
    %192 = vector.load %arg6[%c8_210, %c0_211, %c0_212] : memref<11x128x128xf32, #tpu.memory_space<vmem>>, vector<1x128x128xf32>
    %193 = vector.shape_cast %192 : vector<1x128x128xf32> to vector<128x128xf32>
    %cst_213 = arith.constant dense<0.000000e+00> : vector<64x128xf32>
    %194 = tpu.matmul %191, %193, %cst_213 {dimension_numbers = #tpu.dot_dimension_numbers<[1], [0], [0], [1], [0, 0, 1, 1], [], []>} : vector<64x128xf32>, vector<128x128xf32>, vector<64x128xf32> -> vector<64x128xf32>
    %195 = arith.addf %190, %194 : vector<64x128xf32>
    %c0_214 = arith.constant 0 : index
    %c0_215 = arith.constant 0 : index
    %196 = vector.load %arg12[%c0_214, %c0_215] : memref<64x128xf32, #tpu.memory_space<vmem>>, vector<64x128xf32>
    tpu.vector_store %arg12[%c0_214, %c0_215], %195 {strides = array<i32>} : memref<64x128xf32, #tpu.memory_space<vmem>>, vector<64x128xf32>,
    %c0_216 = arith.constant 0 : index
    %c0_217 = arith.constant 0 : index
    %197 = vector.load %arg12[%c0_216, %c0_217] : memref<64x128xf32, #tpu.memory_space<vmem>>, vector<64x128xf32>
    %c12 = arith.constant 12 : index
    %c0_218 = arith.constant 0 : index
    %198 = vector.load %arg10[%c12, %c0_218] : memref<80x128xf32, #tpu.memory_space<vmem>>, vector<64x128xf32>
    %c9_219 = arith.constant 9 : index
    %c0_220 = arith.constant 0 : index
    %c0_221 = arith.constant 0 : index
    %199 = vector.load %arg6[%c9_219, %c0_220, %c0_221] : memref<11x128x128xf32, #tpu.memory_space<vmem>>, vector<1x128x128xf32>
    %200 = vector.shape_cast %199 : vector<1x128x128xf32> to vector<128x128xf32>
    %cst_222 = arith.constant dense<0.000000e+00> : vector<64x128xf32>
    %201 = tpu.matmul %198, %200, %cst_222 {dimension_numbers = #tpu.dot_dimension_numbers<[1], [0], [0], [1], [0, 0, 1, 1], [], []>} : vector<64x128xf32>, vector<128x128xf32>, vector<64x128xf32> -> vector<64x128xf32>
    %202 = arith.addf %197, %201 : vector<64x128xf32>
    %c0_223 = arith.constant 0 : index
    %c0_224 = arith.constant 0 : index
    %203 = vector.load %arg12[%c0_223, %c0_224] : memref<64x128xf32, #tpu.memory_space<vmem>>, vector<64x128xf32>
    tpu.vector_store %arg12[%c0_223, %c0_224], %202 {strides = array<i32>} : memref<64x128xf32, #tpu.memory_space<vmem>>, vector<64x128xf32>,
    %c0_225 = arith.constant 0 : index
    %c0_226 = arith.constant 0 : index
    %204 = vector.load %arg12[%c0_225, %c0_226] : memref<64x128xf32, #tpu.memory_space<vmem>>, vector<64x128xf32>
    %c13_227 = arith.constant 13 : index
    %c0_228 = arith.constant 0 : index
    %205 = vector.load %arg10[%c13_227, %c0_228] : memref<80x128xf32, #tpu.memory_space<vmem>>, vector<64x128xf32>
    %c10_229 = arith.constant 10 : index
    %c0_230 = arith.constant 0 : index
    %c0_231 = arith.constant 0 : index
    %206 = vector.load %arg6[%c10_229, %c0_230, %c0_231] : memref<11x128x128xf32, #tpu.memory_space<vmem>>, vector<1x128x128xf32>
    %207 = vector.shape_cast %206 : vector<1x128x128xf32> to vector<128x128xf32>
    %cst_232 = arith.constant dense<0.000000e+00> : vector<64x128xf32>
    %208 = tpu.matmul %205, %207, %cst_232 {dimension_numbers = #tpu.dot_dimension_numbers<[1], [0], [0], [1], [0, 0, 1, 1], [], []>} : vector<64x128xf32>, vector<128x128xf32>, vector<64x128xf32> -> vector<64x128xf32>
    %209 = arith.addf %204, %208 : vector<64x128xf32>
    %c0_233 = arith.constant 0 : index
    %c0_234 = arith.constant 0 : index
    %210 = vector.load %arg12[%c0_233, %c0_234] : memref<64x128xf32, #tpu.memory_space<vmem>>, vector<64x128xf32>
    tpu.vector_store %arg12[%c0_233, %c0_234], %209 {strides = array<i32>} : memref<64x128xf32, #tpu.memory_space<vmem>>, vector<64x128xf32>,
    %c0_235 = arith.constant 0 : index
    %c0_236 = arith.constant 0 : index
    %211 = vector.load %arg12[%c0_235, %c0_236] : memref<64x128xf32, #tpu.memory_space<vmem>>, vector<64x128xf32>
    %c0_237 = arith.constant 0 : index
    %c0_238 = arith.constant 0 : index
    %c0_239 = arith.constant 0 : index
    %212 = vector.load %arg8[%c0_237, %c0_238, %c0_239] : memref<1x64x128xf32, #tpu.memory_space<vmem>>, vector<1x64x128xf32>
    %213 = vector.shape_cast %212 : vector<1x64x128xf32> to vector<64x128xf32>
    %214 = vector.shape_cast %211 : vector<64x128xf32> to vector<1x64x128xf32>
    tpu.vector_store %arg8[%c0_237, %c0_238, %c0_239], %214 {strides = array<i32>} : memref<1x64x128xf32, #tpu.memory_space<vmem>>, vector<1x64x128xf32>,
    return
  }
  func.func @transform_0(%arg0: i32, %arg1: i32) -> (i32, i32, i32) {
    %c0_i32 = arith.constant 0 : i32
    %c0_i32_0 = arith.constant 0 : i32
    return %arg0, %arg1, %c0_i32 : i32, i32, i32
  }
  func.func @transform_2(%arg0: i32, %arg1: i32) -> (i32, i32, i32) {
    %c0_i32 = arith.constant 0 : i32
    %c0_i32_0 = arith.constant 0 : i32
    %c0_i32_1 = arith.constant 0 : i32
    %c0_i32_2 = arith.constant 0 : i32
    return %c0_i32, %c0_i32_0, %c0_i32_1 : i32, i32, i32
  }
  func.func @transform_3(%arg0: i32, %arg1: i32) -> (i32, i32) {
    %c0_i32 = arith.constant 0 : i32
    %c0_i32_0 = arith.constant 0 : i32
    %c0_i32_1 = arith.constant 0 : i32
    return %c0_i32, %c0_i32_0 : i32, i32
  }
  func.func @transform_4(%arg0: i32, %arg1: i32) -> (i32, i32, i32) {
    %c0_i32 = arith.constant 0 : i32
    %c0_i32_0 = arith.constant 0 : i32
    %c0_i32_1 = arith.constant 0 : i32
    %c0_i32_2 = arith.constant 0 : i32
    return %c0_i32, %c0_i32_0, %c0_i32_1 : i32, i32, i32
  }
  func.func @transform_5(%arg0: i32, %arg1: i32) -> (i32, i32) {
    %c0_i32 = arith.constant 0 : i32
    %c0_i32_0 = arith.constant 0 : i32
    %c0_i32_1 = arith.constant 0 : i32
    return %c0_i32, %c0_i32_0 : i32, i32
  }
  func.func @transform_6(%arg0: i32, %arg1: i32) -> (i32, i32, i32) {
    %c0_i32 = arith.constant 0 : i32
    %c0_i32_0 = arith.constant 0 : i32
    return %arg0, %arg1, %c0_i32 : i32, i32, i32
  }
}

module attributes {stable_mosaic.version = 11 : i64} {
  func.func @_fused_pair_kernel(%arg0: i32, %arg1: i32, %arg2: memref<1x64x128xf32, #tpu.memory_space<vmem>>, %arg3: memref<2x64x128xf32, #tpu.memory_space<any>>, %arg4: memref<11x128x128xf32, #tpu.memory_space<vmem>>, %arg5: memref<1x128xf32, #tpu.memory_space<vmem>>, %arg6: memref<11x128x128xf32, #tpu.memory_space<vmem>>, %arg7: memref<1x128xf32, #tpu.memory_space<vmem>>, %arg8: memref<1x64x128xf32, #tpu.memory_space<vmem>>, %arg9: memref<144x128xf32, #tpu.memory_space<vmem>>, %arg10: memref<80x128xf32, #tpu.memory_space<vmem>>, %arg11: memref<80x128xf32, #tpu.memory_space<vmem>>, %arg12: memref<64x128xf32, #tpu.memory_space<vmem>>, %arg13: memref<2x33x128xf32, #tpu.memory_space<vmem>>, %arg14: memref<2x!tpu.dma_semaphore, #tpu.memory_space<semaphore_mem>>) attributes {dimension_semantics = [#tpu.dimension_semantics<parallel>, #tpu.dimension_semantics<parallel>], iteration_bounds = array<i64: 2, 1>, scalar_prefetch = 0 : i64, scratch_operands = 6 : i64, tpu.core_type = #tpu.core_type<tc>, window_params = [{transform_indices = @transform_0, window_bounds = array<i64: 1, 64, 128>}, {}, {pipeline_mode = #tpu.pipeline_mode<synchronous>, transform_indices = @transform_2, window_bounds = array<i64: 11, 128, 128>}, {pipeline_mode = #tpu.pipeline_mode<synchronous>, transform_indices = @transform_3, window_bounds = array<i64: 1, 128>}, {pipeline_mode = #tpu.pipeline_mode<synchronous>, transform_indices = @transform_4, window_bounds = array<i64: 11, 128, 128>}, {pipeline_mode = #tpu.pipeline_mode<synchronous>, transform_indices = @transform_5, window_bounds = array<i64: 1, 128>}, {transform_indices = @transform_6, window_bounds = array<i64: 1, 64, 128>}]} {
    %c64_i32 = arith.constant 64 : i32
    %0 = arith.muli %arg1, %c64_i32 : i32
    %c0_i32 = arith.constant 0 : i32
    %1 = arith.cmpi sgt, %arg1, %c0_i32 : i32
    %2 = arith.extui %1 : i1 to i32
    %c0_i32_0 = arith.constant 0 : i32
    %3 = arith.cmpi ne, %2, %c0_i32_0 : i32
    scf.if %3 {
      %c33_i32 = arith.constant 33 : i32
      %215 = arith.subi %0, %c33_i32 : i32
      %c0_i32_237 = arith.constant 0 : i32
      %c0_i32_238 = arith.constant 0 : i32
      %c0_i32_239 = arith.constant 0 : i32
      %216 = tpu.memref_slice %arg3[%arg0, %215, %c0_i32_239] : memref<2x64x128xf32, #tpu.memory_space<any>> -> memref<1x33x128xf32, #tpu.memory_space<any>>
      %217 = tpu.memref_squeeze %216 : memref<1x33x128xf32, #tpu.memory_space<any>> -> memref<33x128xf32, #tpu.memory_space<any>>
      %c0_i32_240 = arith.constant 0 : i32
      %c0_i32_241 = arith.constant 0 : i32
      %218 = tpu.memref_slice %arg13[%c0_i32_237, %c0_i32_240, %c0_i32_241] : memref<2x33x128xf32, #tpu.memory_space<vmem>> -> memref<1x33x128xf32, #tpu.memory_space<vmem>>
      %219 = tpu.memref_squeeze %218 : memref<1x33x128xf32, #tpu.memory_space<vmem>> -> memref<33x128xf32, #tpu.memory_space<vmem>>
      %220 = tpu.memref_slice %arg14[%c0_i32_238] : memref<2x!tpu.dma_semaphore, #tpu.memory_space<semaphore_mem>> -> memref<1x!tpu.dma_semaphore, #tpu.memory_space<semaphore_mem>>
      %221 = tpu.memref_squeeze %220 : memref<1x!tpu.dma_semaphore, #tpu.memory_space<semaphore_mem>> -> memref<!tpu.dma_semaphore, #tpu.memory_space<semaphore_mem>>
      tpu.enqueue_dma source(%217 : memref<33x128xf32, #tpu.memory_space<any>>) target(%219 : memref<33x128xf32, #tpu.memory_space<vmem>>) target_semaphore(%221 : memref<!tpu.dma_semaphore, #tpu.memory_space<semaphore_mem>>)
    } else {
    }
    %c0_i32_1 = arith.constant 0 : i32
    %4 = arith.cmpi slt, %arg1, %c0_i32_1 : i32
    %5 = arith.extui %4 : i1 to i32
    %c0_i32_2 = arith.constant 0 : i32
    %6 = arith.cmpi ne, %5, %c0_i32_2 : i32
    scf.if %6 {
      %c64_i32_237 = arith.constant 64 : i32
      %215 = arith.addi %0, %c64_i32_237 : i32
      %c1_i32 = arith.constant 1 : i32
      %c1_i32_238 = arith.constant 1 : i32
      %c0_i32_239 = arith.constant 0 : i32
      %216 = tpu.memref_slice %arg3[%arg0, %215, %c0_i32_239] : memref<2x64x128xf32, #tpu.memory_space<any>> -> memref<1x33x128xf32, #tpu.memory_space<any>>
      %217 = tpu.memref_squeeze %216 : memref<1x33x128xf32, #tpu.memory_space<any>> -> memref<33x128xf32, #tpu.memory_space<any>>
      %c0_i32_240 = arith.constant 0 : i32
      %c0_i32_241 = arith.constant 0 : i32
      %218 = tpu.memref_slice %arg13[%c1_i32, %c0_i32_240, %c0_i32_241] : memref<2x33x128xf32, #tpu.memory_space<vmem>> -> memref<1x33x128xf32, #tpu.memory_space<vmem>>
      %219 = tpu.memref_squeeze %218 : memref<1x33x128xf32, #tpu.memory_space<vmem>> -> memref<33x128xf32, #tpu.memory_space<vmem>>
      %220 = tpu.memref_slice %arg14[%c1_i32_238] : memref<2x!tpu.dma_semaphore, #tpu.memory_space<semaphore_mem>> -> memref<1x!tpu.dma_semaphore, #tpu.memory_space<semaphore_mem>>
      %221 = tpu.memref_squeeze %220 : memref<1x!tpu.dma_semaphore, #tpu.memory_space<semaphore_mem>> -> memref<!tpu.dma_semaphore, #tpu.memory_space<semaphore_mem>>
      tpu.enqueue_dma source(%217 : memref<33x128xf32, #tpu.memory_space<any>>) target(%219 : memref<33x128xf32, #tpu.memory_space<vmem>>) target_semaphore(%221 : memref<!tpu.dma_semaphore, #tpu.memory_space<semaphore_mem>>)
    } else {
    }
    %c0 = arith.constant 0 : index
    %c0_3 = arith.constant 0 : index
    %c0_4 = arith.constant 0 : index
    %7 = vector.load %arg2[%c0, %c0_3, %c0_4] : memref<1x64x128xf32, #tpu.memory_space<vmem>>, vector<1x64x128xf32>
    %8 = vector.shape_cast %7 : vector<1x64x128xf32> to vector<64x128xf32>
    %cst = arith.constant 0.000000e+00 : f32
    %9 = vector.broadcast %cst : f32 to vector<64x128xf32>
    %10 = arith.cmpf oge, %8, %9 : vector<64x128xf32>
    %cst_5 = arith.constant 1.000000e-01 : f32
    %11 = vector.broadcast %cst_5 : f32 to vector<64x128xf32>
    %12 = arith.mulf %11, %8 : vector<64x128xf32>
    %13 = arith.select %10, %8, %12 : vector<64x128xi1>, vector<64x128xf32>
    %c40 = arith.constant 40 : index
    %c0_6 = arith.constant 0 : index
    %14 = vector.load %arg9[%c40, %c0_6] : memref<144x128xf32, #tpu.memory_space<vmem>>, vector<64x128xf32>
    tpu.vector_store %arg9[%c40, %c0_6], %13 {strides = array<i32>} : memref<144x128xf32, #tpu.memory_space<vmem>>, vector<64x128xf32>,
    %c0_i32_7 = arith.constant 0 : i32
    %15 = arith.cmpi eq, %arg1, %c0_i32_7 : i32
    %16 = arith.extui %15 : i1 to i32
    %c0_i32_8 = arith.constant 0 : i32
    %17 = arith.cmpi ne, %16, %c0_i32_8 : i32
    scf.if %17 {
      %cst_237 = arith.constant 0.000000e+00 : f32
      %215 = vector.broadcast %cst_237 : f32 to vector<40x128xf32>
      %c0_238 = arith.constant 0 : index
      %c0_239 = arith.constant 0 : index
      %216 = vector.load %arg9[%c0_238, %c0_239] : memref<144x128xf32, #tpu.memory_space<vmem>>, vector<40x128xf32>
      tpu.vector_store %arg9[%c0_238, %c0_239], %215 {strides = array<i32>} : memref<144x128xf32, #tpu.memory_space<vmem>>, vector<40x128xf32>,
    } else {
    }
    %c0_i32_9 = arith.constant 0 : i32
    %18 = arith.cmpi sgt, %arg1, %c0_i32_9 : i32
    %19 = arith.extui %18 : i1 to i32
    %c0_i32_10 = arith.constant 0 : i32
    %20 = arith.cmpi ne, %19, %c0_i32_10 : i32
    scf.if %20 {
      %c33_i32 = arith.constant 33 : i32
      %215 = arith.subi %0, %c33_i32 : i32
      %c0_i32_237 = arith.constant 0 : i32
      %c0_i32_238 = arith.constant 0 : i32
      %c0_i32_239 = arith.constant 0 : i32
      %216 = tpu.memref_slice %arg3[%arg0, %215, %c0_i32_239] : memref<2x64x128xf32, #tpu.memory_space<any>> -> memref<1x33x128xf32, #tpu.memory_space<any>>
      %217 = tpu.memref_squeeze %216 : memref<1x33x128xf32, #tpu.memory_space<any>> -> memref<33x128xf32, #tpu.memory_space<any>>
      %c0_i32_240 = arith.constant 0 : i32
      %c0_i32_241 = arith.constant 0 : i32
      %218 = tpu.memref_slice %arg13[%c0_i32_237, %c0_i32_240, %c0_i32_241] : memref<2x33x128xf32, #tpu.memory_space<vmem>> -> memref<1x33x128xf32, #tpu.memory_space<vmem>>
      %219 = tpu.memref_squeeze %218 : memref<1x33x128xf32, #tpu.memory_space<vmem>> -> memref<33x128xf32, #tpu.memory_space<vmem>>
      %220 = tpu.memref_slice %arg14[%c0_i32_238] : memref<2x!tpu.dma_semaphore, #tpu.memory_space<semaphore_mem>> -> memref<1x!tpu.dma_semaphore, #tpu.memory_space<semaphore_mem>>
      %221 = tpu.memref_squeeze %220 : memref<1x!tpu.dma_semaphore, #tpu.memory_space<semaphore_mem>> -> memref<!tpu.dma_semaphore, #tpu.memory_space<semaphore_mem>>
      tpu.wait_dma2 semaphore(%221 : memref<!tpu.dma_semaphore, #tpu.memory_space<semaphore_mem>>) src(%217 : memref<33x128xf32, #tpu.memory_space<any>>) dst(%219 : memref<33x128xf32, #tpu.memory_space<vmem>>)
      %c0_242 = arith.constant 0 : index
      %c0_243 = arith.constant 0 : index
      %c0_244 = arith.constant 0 : index
      %222 = vector.load %arg13[%c0_242, %c0_243, %c0_244] : memref<2x33x128xf32, #tpu.memory_space<vmem>>, vector<1x33x128xf32>
      %223 = vector.shape_cast %222 : vector<1x33x128xf32> to vector<33x128xf32>
      %cst_245 = arith.constant 0.000000e+00 : f32
      %224 = vector.broadcast %cst_245 : f32 to vector<33x128xf32>
      %225 = arith.cmpf oge, %223, %224 : vector<33x128xf32>
      %cst_246 = arith.constant 1.000000e-01 : f32
      %226 = vector.broadcast %cst_246 : f32 to vector<33x128xf32>
      %227 = arith.mulf %226, %223 : vector<33x128xf32>
      %228 = arith.select %225, %223, %227 : vector<33x128xi1>, vector<33x128xf32>
      %c7_247 = arith.constant 7 : index
      %c0_248 = arith.constant 0 : index
      %229 = vector.load %arg9[%c7_247, %c0_248] : memref<144x128xf32, #tpu.memory_space<vmem>>, vector<33x128xf32>
      tpu.vector_store %arg9[%c7_247, %c0_248], %228 {strides = array<i32>} : memref<144x128xf32, #tpu.memory_space<vmem>>, vector<33x128xf32>,
    } else {
    }
    %c0_i32_11 = arith.constant 0 : i32
    %21 = arith.cmpi eq, %arg1, %c0_i32_11 : i32
    %22 = arith.extui %21 : i1 to i32
    %c0_i32_12 = arith.constant 0 : i32
    %23 = arith.cmpi ne, %22, %c0_i32_12 : i32
    scf.if %23 {
      %cst_237 = arith.constant 0.000000e+00 : f32
      %215 = vector.broadcast %cst_237 : f32 to vector<40x128xf32>
      %c104 = arith.constant 104 : index
      %c0_238 = arith.constant 0 : index
      %216 = vector.load %arg9[%c104, %c0_238] : memref<144x128xf32, #tpu.memory_space<vmem>>, vector<40x128xf32>
      tpu.vector_store %arg9[%c104, %c0_238], %215 {strides = array<i32>} : memref<144x128xf32, #tpu.memory_space<vmem>>, vector<40x128xf32>,
    } else {
    }
    %c0_i32_13 = arith.constant 0 : i32
    %24 = arith.cmpi slt, %arg1, %c0_i32_13 : i32
    %25 = arith.extui %24 : i1 to i32
    %c0_i32_14 = arith.constant 0 : i32
    %26 = arith.cmpi ne, %25, %c0_i32_14 : i32
    scf.if %26 {
      %c64_i32_237 = arith.constant 64 : i32
      %215 = arith.addi %0, %c64_i32_237 : i32
      %c1_i32 = arith.constant 1 : i32
      %c1_i32_238 = arith.constant 1 : i32
      %c0_i32_239 = arith.constant 0 : i32
      %216 = tpu.memref_slice %arg3[%arg0, %215, %c0_i32_239] : memref<2x64x128xf32, #tpu.memory_space<any>> -> memref<1x33x128xf32, #tpu.memory_space<any>>
      %217 = tpu.memref_squeeze %216 : memref<1x33x128xf32, #tpu.memory_space<any>> -> memref<33x128xf32, #tpu.memory_space<any>>
      %c0_i32_240 = arith.constant 0 : i32
      %c0_i32_241 = arith.constant 0 : i32
      %218 = tpu.memref_slice %arg13[%c1_i32, %c0_i32_240, %c0_i32_241] : memref<2x33x128xf32, #tpu.memory_space<vmem>> -> memref<1x33x128xf32, #tpu.memory_space<vmem>>
      %219 = tpu.memref_squeeze %218 : memref<1x33x128xf32, #tpu.memory_space<vmem>> -> memref<33x128xf32, #tpu.memory_space<vmem>>
      %220 = tpu.memref_slice %arg14[%c1_i32_238] : memref<2x!tpu.dma_semaphore, #tpu.memory_space<semaphore_mem>> -> memref<1x!tpu.dma_semaphore, #tpu.memory_space<semaphore_mem>>
      %221 = tpu.memref_squeeze %220 : memref<1x!tpu.dma_semaphore, #tpu.memory_space<semaphore_mem>> -> memref<!tpu.dma_semaphore, #tpu.memory_space<semaphore_mem>>
      tpu.wait_dma2 semaphore(%221 : memref<!tpu.dma_semaphore, #tpu.memory_space<semaphore_mem>>) src(%217 : memref<33x128xf32, #tpu.memory_space<any>>) dst(%219 : memref<33x128xf32, #tpu.memory_space<vmem>>)
      %c1_242 = arith.constant 1 : index
      %c0_243 = arith.constant 0 : index
      %c0_244 = arith.constant 0 : index
      %222 = vector.load %arg13[%c1_242, %c0_243, %c0_244] : memref<2x33x128xf32, #tpu.memory_space<vmem>>, vector<1x33x128xf32>
      %223 = vector.shape_cast %222 : vector<1x33x128xf32> to vector<33x128xf32>
      %cst_245 = arith.constant 0.000000e+00 : f32
      %224 = vector.broadcast %cst_245 : f32 to vector<33x128xf32>
      %225 = arith.cmpf oge, %223, %224 : vector<33x128xf32>
      %cst_246 = arith.constant 1.000000e-01 : f32
      %226 = vector.broadcast %cst_246 : f32 to vector<33x128xf32>
      %227 = arith.mulf %226, %223 : vector<33x128xf32>
      %228 = arith.select %225, %223, %227 : vector<33x128xi1>, vector<33x128xf32>
      %c104 = arith.constant 104 : index
      %c0_247 = arith.constant 0 : index
      %229 = vector.load %arg9[%c104, %c0_247] : memref<144x128xf32, #tpu.memory_space<vmem>>, vector<33x128xf32>
      tpu.vector_store %arg9[%c104, %c0_247], %228 {strides = array<i32>} : memref<144x128xf32, #tpu.memory_space<vmem>>, vector<33x128xf32>,
    } else {
    }
    %c32 = arith.constant 32 : index
    %c0_15 = arith.constant 0 : index
    %27 = vector.load %arg9[%c32, %c0_15] : memref<144x128xf32, #tpu.memory_space<vmem>>, vector<80x128xf32>
    %c0_16 = arith.constant 0 : index
    %c0_17 = arith.constant 0 : index
    %28 = vector.load %arg5[%c0_16, %c0_17] : memref<1x128xf32, #tpu.memory_space<vmem>>, vector<1x128xf32>
    %29 = vector.broadcast %28 : vector<1x128xf32> to vector<80x128xf32>
    %30 = arith.addf %27, %29 : vector<80x128xf32>
    %c0_18 = arith.constant 0 : index
    %c0_19 = arith.constant 0 : index
    %31 = vector.load %arg11[%c0_18, %c0_19] : memref<80x128xf32, #tpu.memory_space<vmem>>, vector<80x128xf32>
    tpu.vector_store %arg11[%c0_18, %c0_19], %30 {strides = array<i32>} : memref<80x128xf32, #tpu.memory_space<vmem>>, vector<80x128xf32>,
    %c0_20 = arith.constant 0 : index
    %c0_21 = arith.constant 0 : index
    %32 = vector.load %arg11[%c0_20, %c0_21] : memref<80x128xf32, #tpu.memory_space<vmem>>, vector<80x128xf32>
    %c7 = arith.constant 7 : index
    %c0_22 = arith.constant 0 : index
    %33 = vector.load %arg9[%c7, %c0_22] : memref<144x128xf32, #tpu.memory_space<vmem>>, vector<80x128xf32>
    %c0_23 = arith.constant 0 : index
    %c0_24 = arith.constant 0 : index
    %c0_25 = arith.constant 0 : index
    %34 = vector.load %arg4[%c0_23, %c0_24, %c0_25] : memref<11x128x128xf32, #tpu.memory_space<vmem>>, vector<1x128x128xf32>
    %35 = vector.shape_cast %34 : vector<1x128x128xf32> to vector<128x128xf32>
    %cst_26 = arith.constant dense<0.000000e+00> : vector<80x128xf32>
    %36 = tpu.matmul %33, %35, %cst_26 {dimension_numbers = #tpu.dot_dimension_numbers<[1], [0], [0], [1], [0, 0, 1, 1], [], []>} : vector<80x128xf32>, vector<128x128xf32>, vector<80x128xf32> -> vector<80x128xf32>
    %37 = arith.addf %32, %36 : vector<80x128xf32>
    %c0_27 = arith.constant 0 : index
    %c0_28 = arith.constant 0 : index
    %38 = vector.load %arg11[%c0_27, %c0_28] : memref<80x128xf32, #tpu.memory_space<vmem>>, vector<80x128xf32>
    tpu.vector_store %arg11[%c0_27, %c0_28], %37 {strides = array<i32>} : memref<80x128xf32, #tpu.memory_space<vmem>>, vector<80x128xf32>,
    %c0_29 = arith.constant 0 : index
    %c0_30 = arith.constant 0 : index
    %39 = vector.load %arg11[%c0_29, %c0_30] : memref<80x128xf32, #tpu.memory_space<vmem>>, vector<80x128xf32>
    %c12 = arith.constant 12 : index
    %c0_31 = arith.constant 0 : index
    %40 = vector.load %arg9[%c12, %c0_31] : memref<144x128xf32, #tpu.memory_space<vmem>>, vector<80x128xf32>
    %c1 = arith.constant 1 : index
    %c0_32 = arith.constant 0 : index
    %c0_33 = arith.constant 0 : index
    %41 = vector.load %arg4[%c1, %c0_32, %c0_33] : memref<11x128x128xf32, #tpu.memory_space<vmem>>, vector<1x128x128xf32>
    %42 = vector.shape_cast %41 : vector<1x128x128xf32> to vector<128x128xf32>
    %cst_34 = arith.constant dense<0.000000e+00> : vector<80x128xf32>
    %43 = tpu.matmul %40, %42, %cst_34 {dimension_numbers = #tpu.dot_dimension_numbers<[1], [0], [0], [1], [0, 0, 1, 1], [], []>} : vector<80x128xf32>, vector<128x128xf32>, vector<80x128xf32> -> vector<80x128xf32>
    %44 = arith.addf %39, %43 : vector<80x128xf32>
    %c0_35 = arith.constant 0 : index
    %c0_36 = arith.constant 0 : index
    %45 = vector.load %arg11[%c0_35, %c0_36] : memref<80x128xf32, #tpu.memory_space<vmem>>, vector<80x128xf32>
    tpu.vector_store %arg11[%c0_35, %c0_36], %44 {strides = array<i32>} : memref<80x128xf32, #tpu.memory_space<vmem>>, vector<80x128xf32>,
    %c0_37 = arith.constant 0 : index
    %c0_38 = arith.constant 0 : index
    %46 = vector.load %arg11[%c0_37, %c0_38] : memref<80x128xf32, #tpu.memory_space<vmem>>, vector<80x128xf32>
    %c17 = arith.constant 17 : index
    %c0_39 = arith.constant 0 : index
    %47 = vector.load %arg9[%c17, %c0_39] : memref<144x128xf32, #tpu.memory_space<vmem>>, vector<80x128xf32>
    %c2 = arith.constant 2 : index
    %c0_40 = arith.constant 0 : index
    %c0_41 = arith.constant 0 : index
    %48 = vector.load %arg4[%c2, %c0_40, %c0_41] : memref<11x128x128xf32, #tpu.memory_space<vmem>>, vector<1x128x128xf32>
    %49 = vector.shape_cast %48 : vector<1x128x128xf32> to vector<128x128xf32>
    %cst_42 = arith.constant dense<0.000000e+00> : vector<80x128xf32>
    %50 = tpu.matmul %47, %49, %cst_42 {dimension_numbers = #tpu.dot_dimension_numbers<[1], [0], [0], [1], [0, 0, 1, 1], [], []>} : vector<80x128xf32>, vector<128x128xf32>, vector<80x128xf32> -> vector<80x128xf32>
    %51 = arith.addf %46, %50 : vector<80x128xf32>
    %c0_43 = arith.constant 0 : index
    %c0_44 = arith.constant 0 : index
    %52 = vector.load %arg11[%c0_43, %c0_44] : memref<80x128xf32, #tpu.memory_space<vmem>>, vector<80x128xf32>
    tpu.vector_store %arg11[%c0_43, %c0_44], %51 {strides = array<i32>} : memref<80x128xf32, #tpu.memory_space<vmem>>, vector<80x128xf32>,
    %c0_45 = arith.constant 0 : index
    %c0_46 = arith.constant 0 : index
    %53 = vector.load %arg11[%c0_45, %c0_46] : memref<80x128xf32, #tpu.memory_space<vmem>>, vector<80x128xf32>
    %c22 = arith.constant 22 : index
    %c0_47 = arith.constant 0 : index
    %54 = vector.load %arg9[%c22, %c0_47] : memref<144x128xf32, #tpu.memory_space<vmem>>, vector<80x128xf32>
    %c3 = arith.constant 3 : index
    %c0_48 = arith.constant 0 : index
    %c0_49 = arith.constant 0 : index
    %55 = vector.load %arg4[%c3, %c0_48, %c0_49] : memref<11x128x128xf32, #tpu.memory_space<vmem>>, vector<1x128x128xf32>
    %56 = vector.shape_cast %55 : vector<1x128x128xf32> to vector<128x128xf32>
    %cst_50 = arith.constant dense<0.000000e+00> : vector<80x128xf32>
    %57 = tpu.matmul %54, %56, %cst_50 {dimension_numbers = #tpu.dot_dimension_numbers<[1], [0], [0], [1], [0, 0, 1, 1], [], []>} : vector<80x128xf32>, vector<128x128xf32>, vector<80x128xf32> -> vector<80x128xf32>
    %58 = arith.addf %53, %57 : vector<80x128xf32>
    %c0_51 = arith.constant 0 : index
    %c0_52 = arith.constant 0 : index
    %59 = vector.load %arg11[%c0_51, %c0_52] : memref<80x128xf32, #tpu.memory_space<vmem>>, vector<80x128xf32>
    tpu.vector_store %arg11[%c0_51, %c0_52], %58 {strides = array<i32>} : memref<80x128xf32, #tpu.memory_space<vmem>>, vector<80x128xf32>,
    %c0_53 = arith.constant 0 : index
    %c0_54 = arith.constant 0 : index
    %60 = vector.load %arg11[%c0_53, %c0_54] : memref<80x128xf32, #tpu.memory_space<vmem>>, vector<80x128xf32>
    %c27 = arith.constant 27 : index
    %c0_55 = arith.constant 0 : index
    %61 = vector.load %arg9[%c27, %c0_55] : memref<144x128xf32, #tpu.memory_space<vmem>>, vector<80x128xf32>
    %c4 = arith.constant 4 : index
    %c0_56 = arith.constant 0 : index
    %c0_57 = arith.constant 0 : index
    %62 = vector.load %arg4[%c4, %c0_56, %c0_57] : memref<11x128x128xf32, #tpu.memory_space<vmem>>, vector<1x128x128xf32>
    %63 = vector.shape_cast %62 : vector<1x128x128xf32> to vector<128x128xf32>
    %cst_58 = arith.constant dense<0.000000e+00> : vector<80x128xf32>
    %64 = tpu.matmul %61, %63, %cst_58 {dimension_numbers = #tpu.dot_dimension_numbers<[1], [0], [0], [1], [0, 0, 1, 1], [], []>} : vector<80x128xf32>, vector<128x128xf32>, vector<80x128xf32> -> vector<80x128xf32>
    %65 = arith.addf %60, %64 : vector<80x128xf32>
    %c0_59 = arith.constant 0 : index
    %c0_60 = arith.constant 0 : index
    %66 = vector.load %arg11[%c0_59, %c0_60] : memref<80x128xf32, #tpu.memory_space<vmem>>, vector<80x128xf32>
    tpu.vector_store %arg11[%c0_59, %c0_60], %65 {strides = array<i32>} : memref<80x128xf32, #tpu.memory_space<vmem>>, vector<80x128xf32>,
    %c0_61 = arith.constant 0 : index
    %c0_62 = arith.constant 0 : index
    %67 = vector.load %arg11[%c0_61, %c0_62] : memref<80x128xf32, #tpu.memory_space<vmem>>, vector<80x128xf32>
    %c32_63 = arith.constant 32 : index
    %c0_64 = arith.constant 0 : index
    %68 = vector.load %arg9[%c32_63, %c0_64] : memref<144x128xf32, #tpu.memory_space<vmem>>, vector<80x128xf32>
    %c5 = arith.constant 5 : index
    %c0_65 = arith.constant 0 : index
    %c0_66 = arith.constant 0 : index
    %69 = vector.load %arg4[%c5, %c0_65, %c0_66] : memref<11x128x128xf32, #tpu.memory_space<vmem>>, vector<1x128x128xf32>
    %70 = vector.shape_cast %69 : vector<1x128x128xf32> to vector<128x128xf32>
    %cst_67 = arith.constant dense<0.000000e+00> : vector<80x128xf32>
    %71 = tpu.matmul %68, %70, %cst_67 {dimension_numbers = #tpu.dot_dimension_numbers<[1], [0], [0], [1], [0, 0, 1, 1], [], []>} : vector<80x128xf32>, vector<128x128xf32>, vector<80x128xf32> -> vector<80x128xf32>
    %72 = arith.addf %67, %71 : vector<80x128xf32>
    %c0_68 = arith.constant 0 : index
    %c0_69 = arith.constant 0 : index
    %73 = vector.load %arg11[%c0_68, %c0_69] : memref<80x128xf32, #tpu.memory_space<vmem>>, vector<80x128xf32>
    tpu.vector_store %arg11[%c0_68, %c0_69], %72 {strides = array<i32>} : memref<80x128xf32, #tpu.memory_space<vmem>>, vector<80x128xf32>,
    %c0_70 = arith.constant 0 : index
    %c0_71 = arith.constant 0 : index
    %74 = vector.load %arg11[%c0_70, %c0_71] : memref<80x128xf32, #tpu.memory_space<vmem>>, vector<80x128xf32>
    %c37 = arith.constant 37 : index
    %c0_72 = arith.constant 0 : index
    %75 = vector.load %arg9[%c37, %c0_72] : memref<144x128xf32, #tpu.memory_space<vmem>>, vector<80x128xf32>
    %c6 = arith.constant 6 : index
    %c0_73 = arith.constant 0 : index
    %c0_74 = arith.constant 0 : index
    %76 = vector.load %arg4[%c6, %c0_73, %c0_74] : memref<11x128x128xf32, #tpu.memory_space<vmem>>, vector<1x128x128xf32>
    %77 = vector.shape_cast %76 : vector<1x128x128xf32> to vector<128x128xf32>
    %cst_75 = arith.constant dense<0.000000e+00> : vector<80x128xf32>
    %78 = tpu.matmul %75, %77, %cst_75 {dimension_numbers = #tpu.dot_dimension_numbers<[1], [0], [0], [1], [0, 0, 1, 1], [], []>} : vector<80x128xf32>, vector<128x128xf32>, vector<80x128xf32> -> vector<80x128xf32>
    %79 = arith.addf %74, %78 : vector<80x128xf32>
    %c0_76 = arith.constant 0 : index
    %c0_77 = arith.constant 0 : index
    %80 = vector.load %arg11[%c0_76, %c0_77] : memref<80x128xf32, #tpu.memory_space<vmem>>, vector<80x128xf32>
    tpu.vector_store %arg11[%c0_76, %c0_77], %79 {strides = array<i32>} : memref<80x128xf32, #tpu.memory_space<vmem>>, vector<80x128xf32>,
    %c0_78 = arith.constant 0 : index
    %c0_79 = arith.constant 0 : index
    %81 = vector.load %arg11[%c0_78, %c0_79] : memref<80x128xf32, #tpu.memory_space<vmem>>, vector<80x128xf32>
    %c42 = arith.constant 42 : index
    %c0_80 = arith.constant 0 : index
    %82 = vector.load %arg9[%c42, %c0_80] : memref<144x128xf32, #tpu.memory_space<vmem>>, vector<80x128xf32>
    %c7_81 = arith.constant 7 : index
    %c0_82 = arith.constant 0 : index
    %c0_83 = arith.constant 0 : index
    %83 = vector.load %arg4[%c7_81, %c0_82, %c0_83] : memref<11x128x128xf32, #tpu.memory_space<vmem>>, vector<1x128x128xf32>
    %84 = vector.shape_cast %83 : vector<1x128x128xf32> to vector<128x128xf32>
    %cst_84 = arith.constant dense<0.000000e+00> : vector<80x128xf32>
    %85 = tpu.matmul %82, %84, %cst_84 {dimension_numbers = #tpu.dot_dimension_numbers<[1], [0], [0], [1], [0, 0, 1, 1], [], []>} : vector<80x128xf32>, vector<128x128xf32>, vector<80x128xf32> -> vector<80x128xf32>
    %86 = arith.addf %81, %85 : vector<80x128xf32>
    %c0_85 = arith.constant 0 : index
    %c0_86 = arith.constant 0 : index
    %87 = vector.load %arg11[%c0_85, %c0_86] : memref<80x128xf32, #tpu.memory_space<vmem>>, vector<80x128xf32>
    tpu.vector_store %arg11[%c0_85, %c0_86], %86 {strides = array<i32>} : memref<80x128xf32, #tpu.memory_space<vmem>>, vector<80x128xf32>,
    %c0_87 = arith.constant 0 : index
    %c0_88 = arith.constant 0 : index
    %88 = vector.load %arg11[%c0_87, %c0_88] : memref<80x128xf32, #tpu.memory_space<vmem>>, vector<80x128xf32>
    %c47 = arith.constant 47 : index
    %c0_89 = arith.constant 0 : index
    %89 = vector.load %arg9[%c47, %c0_89] : memref<144x128xf32, #tpu.memory_space<vmem>>, vector<80x128xf32>
    %c8 = arith.constant 8 : index
    %c0_90 = arith.constant 0 : index
    %c0_91 = arith.constant 0 : index
    %90 = vector.load %arg4[%c8, %c0_90, %c0_91] : memref<11x128x128xf32, #tpu.memory_space<vmem>>, vector<1x128x128xf32>
    %91 = vector.shape_cast %90 : vector<1x128x128xf32> to vector<128x128xf32>
    %cst_92 = arith.constant dense<0.000000e+00> : vector<80x128xf32>
    %92 = tpu.matmul %89, %91, %cst_92 {dimension_numbers = #tpu.dot_dimension_numbers<[1], [0], [0], [1], [0, 0, 1, 1], [], []>} : vector<80x128xf32>, vector<128x128xf32>, vector<80x128xf32> -> vector<80x128xf32>
    %93 = arith.addf %88, %92 : vector<80x128xf32>
    %c0_93 = arith.constant 0 : index
    %c0_94 = arith.constant 0 : index
    %94 = vector.load %arg11[%c0_93, %c0_94] : memref<80x128xf32, #tpu.memory_space<vmem>>, vector<80x128xf32>
    tpu.vector_store %arg11[%c0_93, %c0_94], %93 {strides = array<i32>} : memref<80x128xf32, #tpu.memory_space<vmem>>, vector<80x128xf32>,
    %c0_95 = arith.constant 0 : index
    %c0_96 = arith.constant 0 : index
    %95 = vector.load %arg11[%c0_95, %c0_96] : memref<80x128xf32, #tpu.memory_space<vmem>>, vector<80x128xf32>
    %c52 = arith.constant 52 : index
    %c0_97 = arith.constant 0 : index
    %96 = vector.load %arg9[%c52, %c0_97] : memref<144x128xf32, #tpu.memory_space<vmem>>, vector<80x128xf32>
    %c9 = arith.constant 9 : index
    %c0_98 = arith.constant 0 : index
    %c0_99 = arith.constant 0 : index
    %97 = vector.load %arg4[%c9, %c0_98, %c0_99] : memref<11x128x128xf32, #tpu.memory_space<vmem>>, vector<1x128x128xf32>
    %98 = vector.shape_cast %97 : vector<1x128x128xf32> to vector<128x128xf32>
    %cst_100 = arith.constant dense<0.000000e+00> : vector<80x128xf32>
    %99 = tpu.matmul %96, %98, %cst_100 {dimension_numbers = #tpu.dot_dimension_numbers<[1], [0], [0], [1], [0, 0, 1, 1], [], []>} : vector<80x128xf32>, vector<128x128xf32>, vector<80x128xf32> -> vector<80x128xf32>
    %100 = arith.addf %95, %99 : vector<80x128xf32>
    %c0_101 = arith.constant 0 : index
    %c0_102 = arith.constant 0 : index
    %101 = vector.load %arg11[%c0_101, %c0_102] : memref<80x128xf32, #tpu.memory_space<vmem>>, vector<80x128xf32>
    tpu.vector_store %arg11[%c0_101, %c0_102], %100 {strides = array<i32>} : memref<80x128xf32, #tpu.memory_space<vmem>>, vector<80x128xf32>,
    %c0_103 = arith.constant 0 : index
    %c0_104 = arith.constant 0 : index
    %102 = vector.load %arg11[%c0_103, %c0_104] : memref<80x128xf32, #tpu.memory_space<vmem>>, vector<80x128xf32>
    %c57 = arith.constant 57 : index
    %c0_105 = arith.constant 0 : index
    %103 = vector.load %arg9[%c57, %c0_105] : memref<144x128xf32, #tpu.memory_space<vmem>>, vector<80x128xf32>
    %c10 = arith.constant 10 : index
    %c0_106 = arith.constant 0 : index
    %c0_107 = arith.constant 0 : index
    %104 = vector.load %arg4[%c10, %c0_106, %c0_107] : memref<11x128x128xf32, #tpu.memory_space<vmem>>, vector<1x128x128xf32>
    %105 = vector.shape_cast %104 : vector<1x128x128xf32> to vector<128x128xf32>
    %cst_108 = arith.constant dense<0.000000e+00> : vector<80x128xf32>
    %106 = tpu.matmul %103, %105, %cst_108 {dimension_numbers = #tpu.dot_dimension_numbers<[1], [0], [0], [1], [0, 0, 1, 1], [], []>} : vector<80x128xf32>, vector<128x128xf32>, vector<80x128xf32> -> vector<80x128xf32>
    %107 = arith.addf %102, %106 : vector<80x128xf32>
    %c0_109 = arith.constant 0 : index
    %c0_110 = arith.constant 0 : index
    %108 = vector.load %arg11[%c0_109, %c0_110] : memref<80x128xf32, #tpu.memory_space<vmem>>, vector<80x128xf32>
    tpu.vector_store %arg11[%c0_109, %c0_110], %107 {strides = array<i32>} : memref<80x128xf32, #tpu.memory_space<vmem>>, vector<80x128xf32>,
    %c0_111 = arith.constant 0 : index
    %c0_112 = arith.constant 0 : index
    %109 = vector.load %arg11[%c0_111, %c0_112] : memref<80x128xf32, #tpu.memory_space<vmem>>, vector<80x128xf32>
    %cst_113 = arith.constant 0.000000e+00 : f32
    %110 = vector.broadcast %cst_113 : f32 to vector<80x128xf32>
    %111 = arith.cmpf oge, %109, %110 : vector<80x128xf32>
    %cst_114 = arith.constant 1.000000e-01 : f32
    %112 = vector.broadcast %cst_114 : f32 to vector<80x128xf32>
    %113 = arith.mulf %112, %109 : vector<80x128xf32>
    %114 = arith.select %111, %109, %113 : vector<80x128xi1>, vector<80x128xf32>
    %c8_i32 = arith.constant 8 : i32
    %115 = arith.subi %0, %c8_i32 : i32
    %116 = tpu.iota {dimensions = array<i32: 0>} : vector<80x1xi32>
    %117 = vector.broadcast %115 : i32 to vector<80x1xi32>
    %118 = arith.addi %117, %116 : vector<80x1xi32>
    %c0_i32_115 = arith.constant 0 : i32
    %119 = vector.broadcast %c0_i32_115 : i32 to vector<80x1xi32>
    %120 = arith.cmpi sge, %118, %119 : vector<80x1xi32>
    %c64_i32_116 = arith.constant 64 : i32
    %121 = vector.broadcast %c64_i32_116 : i32 to vector<80x1xi32>
    %122 = arith.cmpi slt, %118, %121 : vector<80x1xi32>
    %123 = arith.andi %120, %122 : vector<80x1xi1>
    %cst_117 = arith.constant 0.000000e+00 : f32
    %124 = vector.shape_cast %123 : vector<80x1xi1> to vector<80x1xi1>
    %125 = vector.broadcast %124 : vector<80x1xi1> to vector<80x128xi1>
    %126 = vector.broadcast %cst_117 : f32 to vector<80x128xf32>
    %127 = arith.select %125, %114, %126 : vector<80x128xi1>, vector<80x128xf32>
    %c0_118 = arith.constant 0 : index
    %c0_119 = arith.constant 0 : index
    %128 = vector.load %arg10[%c0_118, %c0_119] : memref<80x128xf32, #tpu.memory_space<vmem>>, vector<80x128xf32>
    tpu.vector_store %arg10[%c0_118, %c0_119], %127 {strides = array<i32>} : memref<80x128xf32, #tpu.memory_space<vmem>>, vector<80x128xf32>,
    %129 = vector.extract_strided_slice %127 {offsets = [8, 0], sizes = [64, 128], strides = [1, 1]} : vector<80x128xf32> to vector<64x128xf32>
    %c0_120 = arith.constant 0 : index
    %c0_121 = arith.constant 0 : index
    %130 = vector.load %arg7[%c0_120, %c0_121] : memref<1x128xf32, #tpu.memory_space<vmem>>, vector<1x128xf32>
    %131 = vector.broadcast %130 : vector<1x128xf32> to vector<64x128xf32>
    %132 = arith.addf %129, %131 : vector<64x128xf32>
    %c0_122 = arith.constant 0 : index
    %c0_123 = arith.constant 0 : index
    %133 = vector.load %arg12[%c0_122, %c0_123] : memref<64x128xf32, #tpu.memory_space<vmem>>, vector<64x128xf32>
    tpu.vector_store %arg12[%c0_122, %c0_123], %132 {strides = array<i32>} : memref<64x128xf32, #tpu.memory_space<vmem>>, vector<64x128xf32>,
    %c0_124 = arith.constant 0 : index
    %c0_125 = arith.constant 0 : index
    %134 = vector.load %arg12[%c0_124, %c0_125] : memref<64x128xf32, #tpu.memory_space<vmem>>, vector<64x128xf32>
    %c3_126 = arith.constant 3 : index
    %c0_127 = arith.constant 0 : index
    %135 = vector.load %arg10[%c3_126, %c0_127] : memref<80x128xf32, #tpu.memory_space<vmem>>, vector<64x128xf32>
    %c0_128 = arith.constant 0 : index
    %c0_129 = arith.constant 0 : index
    %c0_130 = arith.constant 0 : index
    %136 = vector.load %arg6[%c0_128, %c0_129, %c0_130] : memref<11x128x128xf32, #tpu.memory_space<vmem>>, vector<1x128x128xf32>
    %137 = vector.shape_cast %136 : vector<1x128x128xf32> to vector<128x128xf32>
    %cst_131 = arith.constant dense<0.000000e+00> : vector<64x128xf32>
    %138 = tpu.matmul %135, %137, %cst_131 {dimension_numbers = #tpu.dot_dimension_numbers<[1], [0], [0], [1], [0, 0, 1, 1], [], []>} : vector<64x128xf32>, vector<128x128xf32>, vector<64x128xf32> -> vector<64x128xf32>
    %139 = arith.addf %134, %138 : vector<64x128xf32>
    %c0_132 = arith.constant 0 : index
    %c0_133 = arith.constant 0 : index
    %140 = vector.load %arg12[%c0_132, %c0_133] : memref<64x128xf32, #tpu.memory_space<vmem>>, vector<64x128xf32>
    tpu.vector_store %arg12[%c0_132, %c0_133], %139 {strides = array<i32>} : memref<64x128xf32, #tpu.memory_space<vmem>>, vector<64x128xf32>,
    %c0_134 = arith.constant 0 : index
    %c0_135 = arith.constant 0 : index
    %141 = vector.load %arg12[%c0_134, %c0_135] : memref<64x128xf32, #tpu.memory_space<vmem>>, vector<64x128xf32>
    %c4_136 = arith.constant 4 : index
    %c0_137 = arith.constant 0 : index
    %142 = vector.load %arg10[%c4_136, %c0_137] : memref<80x128xf32, #tpu.memory_space<vmem>>, vector<64x128xf32>
    %c1_138 = arith.constant 1 : index
    %c0_139 = arith.constant 0 : index
    %c0_140 = arith.constant 0 : index
    %143 = vector.load %arg6[%c1_138, %c0_139, %c0_140] : memref<11x128x128xf32, #tpu.memory_space<vmem>>, vector<1x128x128xf32>
    %144 = vector.shape_cast %143 : vector<1x128x128xf32> to vector<128x128xf32>
    %cst_141 = arith.constant dense<0.000000e+00> : vector<64x128xf32>
    %145 = tpu.matmul %142, %144, %cst_141 {dimension_numbers = #tpu.dot_dimension_numbers<[1], [0], [0], [1], [0, 0, 1, 1], [], []>} : vector<64x128xf32>, vector<128x128xf32>, vector<64x128xf32> -> vector<64x128xf32>
    %146 = arith.addf %141, %145 : vector<64x128xf32>
    %c0_142 = arith.constant 0 : index
    %c0_143 = arith.constant 0 : index
    %147 = vector.load %arg12[%c0_142, %c0_143] : memref<64x128xf32, #tpu.memory_space<vmem>>, vector<64x128xf32>
    tpu.vector_store %arg12[%c0_142, %c0_143], %146 {strides = array<i32>} : memref<64x128xf32, #tpu.memory_space<vmem>>, vector<64x128xf32>,
    %c0_144 = arith.constant 0 : index
    %c0_145 = arith.constant 0 : index
    %148 = vector.load %arg12[%c0_144, %c0_145] : memref<64x128xf32, #tpu.memory_space<vmem>>, vector<64x128xf32>
    %c5_146 = arith.constant 5 : index
    %c0_147 = arith.constant 0 : index
    %149 = vector.load %arg10[%c5_146, %c0_147] : memref<80x128xf32, #tpu.memory_space<vmem>>, vector<64x128xf32>
    %c2_148 = arith.constant 2 : index
    %c0_149 = arith.constant 0 : index
    %c0_150 = arith.constant 0 : index
    %150 = vector.load %arg6[%c2_148, %c0_149, %c0_150] : memref<11x128x128xf32, #tpu.memory_space<vmem>>, vector<1x128x128xf32>
    %151 = vector.shape_cast %150 : vector<1x128x128xf32> to vector<128x128xf32>
    %cst_151 = arith.constant dense<0.000000e+00> : vector<64x128xf32>
    %152 = tpu.matmul %149, %151, %cst_151 {dimension_numbers = #tpu.dot_dimension_numbers<[1], [0], [0], [1], [0, 0, 1, 1], [], []>} : vector<64x128xf32>, vector<128x128xf32>, vector<64x128xf32> -> vector<64x128xf32>
    %153 = arith.addf %148, %152 : vector<64x128xf32>
    %c0_152 = arith.constant 0 : index
    %c0_153 = arith.constant 0 : index
    %154 = vector.load %arg12[%c0_152, %c0_153] : memref<64x128xf32, #tpu.memory_space<vmem>>, vector<64x128xf32>
    tpu.vector_store %arg12[%c0_152, %c0_153], %153 {strides = array<i32>} : memref<64x128xf32, #tpu.memory_space<vmem>>, vector<64x128xf32>,
    %c0_154 = arith.constant 0 : index
    %c0_155 = arith.constant 0 : index
    %155 = vector.load %arg12[%c0_154, %c0_155] : memref<64x128xf32, #tpu.memory_space<vmem>>, vector<64x128xf32>
    %c6_156 = arith.constant 6 : index
    %c0_157 = arith.constant 0 : index
    %156 = vector.load %arg10[%c6_156, %c0_157] : memref<80x128xf32, #tpu.memory_space<vmem>>, vector<64x128xf32>
    %c3_158 = arith.constant 3 : index
    %c0_159 = arith.constant 0 : index
    %c0_160 = arith.constant 0 : index
    %157 = vector.load %arg6[%c3_158, %c0_159, %c0_160] : memref<11x128x128xf32, #tpu.memory_space<vmem>>, vector<1x128x128xf32>
    %158 = vector.shape_cast %157 : vector<1x128x128xf32> to vector<128x128xf32>
    %cst_161 = arith.constant dense<0.000000e+00> : vector<64x128xf32>
    %159 = tpu.matmul %156, %158, %cst_161 {dimension_numbers = #tpu.dot_dimension_numbers<[1], [0], [0], [1], [0, 0, 1, 1], [], []>} : vector<64x128xf32>, vector<128x128xf32>, vector<64x128xf32> -> vector<64x128xf32>
    %160 = arith.addf %155, %159 : vector<64x128xf32>
    %c0_162 = arith.constant 0 : index
    %c0_163 = arith.constant 0 : index
    %161 = vector.load %arg12[%c0_162, %c0_163] : memref<64x128xf32, #tpu.memory_space<vmem>>, vector<64x128xf32>
    tpu.vector_store %arg12[%c0_162, %c0_163], %160 {strides = array<i32>} : memref<64x128xf32, #tpu.memory_space<vmem>>, vector<64x128xf32>,
    %c0_164 = arith.constant 0 : index
    %c0_165 = arith.constant 0 : index
    %162 = vector.load %arg12[%c0_164, %c0_165] : memref<64x128xf32, #tpu.memory_space<vmem>>, vector<64x128xf32>
    %c7_166 = arith.constant 7 : index
    %c0_167 = arith.constant 0 : index
    %163 = vector.load %arg10[%c7_166, %c0_167] : memref<80x128xf32, #tpu.memory_space<vmem>>, vector<64x128xf32>
    %c4_168 = arith.constant 4 : index
    %c0_169 = arith.constant 0 : index
    %c0_170 = arith.constant 0 : index
    %164 = vector.load %arg6[%c4_168, %c0_169, %c0_170] : memref<11x128x128xf32, #tpu.memory_space<vmem>>, vector<1x128x128xf32>
    %165 = vector.shape_cast %164 : vector<1x128x128xf32> to vector<128x128xf32>
    %cst_171 = arith.constant dense<0.000000e+00> : vector<64x128xf32>
    %166 = tpu.matmul %163, %165, %cst_171 {dimension_numbers = #tpu.dot_dimension_numbers<[1], [0], [0], [1], [0, 0, 1, 1], [], []>} : vector<64x128xf32>, vector<128x128xf32>, vector<64x128xf32> -> vector<64x128xf32>
    %167 = arith.addf %162, %166 : vector<64x128xf32>
    %c0_172 = arith.constant 0 : index
    %c0_173 = arith.constant 0 : index
    %168 = vector.load %arg12[%c0_172, %c0_173] : memref<64x128xf32, #tpu.memory_space<vmem>>, vector<64x128xf32>
    tpu.vector_store %arg12[%c0_172, %c0_173], %167 {strides = array<i32>} : memref<64x128xf32, #tpu.memory_space<vmem>>, vector<64x128xf32>,
    %c0_174 = arith.constant 0 : index
    %c0_175 = arith.constant 0 : index
    %169 = vector.load %arg12[%c0_174, %c0_175] : memref<64x128xf32, #tpu.memory_space<vmem>>, vector<64x128xf32>
    %c8_176 = arith.constant 8 : index
    %c0_177 = arith.constant 0 : index
    %170 = vector.load %arg10[%c8_176, %c0_177] : memref<80x128xf32, #tpu.memory_space<vmem>>, vector<64x128xf32>
    %c5_178 = arith.constant 5 : index
    %c0_179 = arith.constant 0 : index
    %c0_180 = arith.constant 0 : index
    %171 = vector.load %arg6[%c5_178, %c0_179, %c0_180] : memref<11x128x128xf32, #tpu.memory_space<vmem>>, vector<1x128x128xf32>
    %172 = vector.shape_cast %171 : vector<1x128x128xf32> to vector<128x128xf32>
    %cst_181 = arith.constant dense<0.000000e+00> : vector<64x128xf32>
    %173 = tpu.matmul %170, %172, %cst_181 {dimension_numbers = #tpu.dot_dimension_numbers<[1], [0], [0], [1], [0, 0, 1, 1], [], []>} : vector<64x128xf32>, vector<128x128xf32>, vector<64x128xf32> -> vector<64x128xf32>
    %174 = arith.addf %169, %173 : vector<64x128xf32>
    %c0_182 = arith.constant 0 : index
    %c0_183 = arith.constant 0 : index
    %175 = vector.load %arg12[%c0_182, %c0_183] : memref<64x128xf32, #tpu.memory_space<vmem>>, vector<64x128xf32>
    tpu.vector_store %arg12[%c0_182, %c0_183], %174 {strides = array<i32>} : memref<64x128xf32, #tpu.memory_space<vmem>>, vector<64x128xf32>,
    %c0_184 = arith.constant 0 : index
    %c0_185 = arith.constant 0 : index
    %176 = vector.load %arg12[%c0_184, %c0_185] : memref<64x128xf32, #tpu.memory_space<vmem>>, vector<64x128xf32>
    %c9_186 = arith.constant 9 : index
    %c0_187 = arith.constant 0 : index
    %177 = vector.load %arg10[%c9_186, %c0_187] : memref<80x128xf32, #tpu.memory_space<vmem>>, vector<64x128xf32>
    %c6_188 = arith.constant 6 : index
    %c0_189 = arith.constant 0 : index
    %c0_190 = arith.constant 0 : index
    %178 = vector.load %arg6[%c6_188, %c0_189, %c0_190] : memref<11x128x128xf32, #tpu.memory_space<vmem>>, vector<1x128x128xf32>
    %179 = vector.shape_cast %178 : vector<1x128x128xf32> to vector<128x128xf32>
    %cst_191 = arith.constant dense<0.000000e+00> : vector<64x128xf32>
    %180 = tpu.matmul %177, %179, %cst_191 {dimension_numbers = #tpu.dot_dimension_numbers<[1], [0], [0], [1], [0, 0, 1, 1], [], []>} : vector<64x128xf32>, vector<128x128xf32>, vector<64x128xf32> -> vector<64x128xf32>
    %181 = arith.addf %176, %180 : vector<64x128xf32>
    %c0_192 = arith.constant 0 : index
    %c0_193 = arith.constant 0 : index
    %182 = vector.load %arg12[%c0_192, %c0_193] : memref<64x128xf32, #tpu.memory_space<vmem>>, vector<64x128xf32>
    tpu.vector_store %arg12[%c0_192, %c0_193], %181 {strides = array<i32>} : memref<64x128xf32, #tpu.memory_space<vmem>>, vector<64x128xf32>,
    %c0_194 = arith.constant 0 : index
    %c0_195 = arith.constant 0 : index
    %183 = vector.load %arg12[%c0_194, %c0_195] : memref<64x128xf32, #tpu.memory_space<vmem>>, vector<64x128xf32>
    %c10_196 = arith.constant 10 : index
    %c0_197 = arith.constant 0 : index
    %184 = vector.load %arg10[%c10_196, %c0_197] : memref<80x128xf32, #tpu.memory_space<vmem>>, vector<64x128xf32>
    %c7_198 = arith.constant 7 : index
    %c0_199 = arith.constant 0 : index
    %c0_200 = arith.constant 0 : index
    %185 = vector.load %arg6[%c7_198, %c0_199, %c0_200] : memref<11x128x128xf32, #tpu.memory_space<vmem>>, vector<1x128x128xf32>
    %186 = vector.shape_cast %185 : vector<1x128x128xf32> to vector<128x128xf32>
    %cst_201 = arith.constant dense<0.000000e+00> : vector<64x128xf32>
    %187 = tpu.matmul %184, %186, %cst_201 {dimension_numbers = #tpu.dot_dimension_numbers<[1], [0], [0], [1], [0, 0, 1, 1], [], []>} : vector<64x128xf32>, vector<128x128xf32>, vector<64x128xf32> -> vector<64x128xf32>
    %188 = arith.addf %183, %187 : vector<64x128xf32>
    %c0_202 = arith.constant 0 : index
    %c0_203 = arith.constant 0 : index
    %189 = vector.load %arg12[%c0_202, %c0_203] : memref<64x128xf32, #tpu.memory_space<vmem>>, vector<64x128xf32>
    tpu.vector_store %arg12[%c0_202, %c0_203], %188 {strides = array<i32>} : memref<64x128xf32, #tpu.memory_space<vmem>>, vector<64x128xf32>,
    %c0_204 = arith.constant 0 : index
    %c0_205 = arith.constant 0 : index
    %190 = vector.load %arg12[%c0_204, %c0_205] : memref<64x128xf32, #tpu.memory_space<vmem>>, vector<64x128xf32>
    %c11 = arith.constant 11 : index
    %c0_206 = arith.constant 0 : index
    %191 = vector.load %arg10[%c11, %c0_206] : memref<80x128xf32, #tpu.memory_space<vmem>>, vector<64x128xf32>
    %c8_207 = arith.constant 8 : index
    %c0_208 = arith.constant 0 : index
    %c0_209 = arith.constant 0 : index
    %192 = vector.load %arg6[%c8_207, %c0_208, %c0_209] : memref<11x128x128xf32, #tpu.memory_space<vmem>>, vector<1x128x128xf32>
    %193 = vector.shape_cast %192 : vector<1x128x128xf32> to vector<128x128xf32>
    %cst_210 = arith.constant dense<0.000000e+00> : vector<64x128xf32>
    %194 = tpu.matmul %191, %193, %cst_210 {dimension_numbers = #tpu.dot_dimension_numbers<[1], [0], [0], [1], [0, 0, 1, 1], [], []>} : vector<64x128xf32>, vector<128x128xf32>, vector<64x128xf32> -> vector<64x128xf32>
    %195 = arith.addf %190, %194 : vector<64x128xf32>
    %c0_211 = arith.constant 0 : index
    %c0_212 = arith.constant 0 : index
    %196 = vector.load %arg12[%c0_211, %c0_212] : memref<64x128xf32, #tpu.memory_space<vmem>>, vector<64x128xf32>
    tpu.vector_store %arg12[%c0_211, %c0_212], %195 {strides = array<i32>} : memref<64x128xf32, #tpu.memory_space<vmem>>, vector<64x128xf32>,
    %c0_213 = arith.constant 0 : index
    %c0_214 = arith.constant 0 : index
    %197 = vector.load %arg12[%c0_213, %c0_214] : memref<64x128xf32, #tpu.memory_space<vmem>>, vector<64x128xf32>
    %c12_215 = arith.constant 12 : index
    %c0_216 = arith.constant 0 : index
    %198 = vector.load %arg10[%c12_215, %c0_216] : memref<80x128xf32, #tpu.memory_space<vmem>>, vector<64x128xf32>
    %c9_217 = arith.constant 9 : index
    %c0_218 = arith.constant 0 : index
    %c0_219 = arith.constant 0 : index
    %199 = vector.load %arg6[%c9_217, %c0_218, %c0_219] : memref<11x128x128xf32, #tpu.memory_space<vmem>>, vector<1x128x128xf32>
    %200 = vector.shape_cast %199 : vector<1x128x128xf32> to vector<128x128xf32>
    %cst_220 = arith.constant dense<0.000000e+00> : vector<64x128xf32>
    %201 = tpu.matmul %198, %200, %cst_220 {dimension_numbers = #tpu.dot_dimension_numbers<[1], [0], [0], [1], [0, 0, 1, 1], [], []>} : vector<64x128xf32>, vector<128x128xf32>, vector<64x128xf32> -> vector<64x128xf32>
    %202 = arith.addf %197, %201 : vector<64x128xf32>
    %c0_221 = arith.constant 0 : index
    %c0_222 = arith.constant 0 : index
    %203 = vector.load %arg12[%c0_221, %c0_222] : memref<64x128xf32, #tpu.memory_space<vmem>>, vector<64x128xf32>
    tpu.vector_store %arg12[%c0_221, %c0_222], %202 {strides = array<i32>} : memref<64x128xf32, #tpu.memory_space<vmem>>, vector<64x128xf32>,
    %c0_223 = arith.constant 0 : index
    %c0_224 = arith.constant 0 : index
    %204 = vector.load %arg12[%c0_223, %c0_224] : memref<64x128xf32, #tpu.memory_space<vmem>>, vector<64x128xf32>
    %c13 = arith.constant 13 : index
    %c0_225 = arith.constant 0 : index
    %205 = vector.load %arg10[%c13, %c0_225] : memref<80x128xf32, #tpu.memory_space<vmem>>, vector<64x128xf32>
    %c10_226 = arith.constant 10 : index
    %c0_227 = arith.constant 0 : index
    %c0_228 = arith.constant 0 : index
    %206 = vector.load %arg6[%c10_226, %c0_227, %c0_228] : memref<11x128x128xf32, #tpu.memory_space<vmem>>, vector<1x128x128xf32>
    %207 = vector.shape_cast %206 : vector<1x128x128xf32> to vector<128x128xf32>
    %cst_229 = arith.constant dense<0.000000e+00> : vector<64x128xf32>
    %208 = tpu.matmul %205, %207, %cst_229 {dimension_numbers = #tpu.dot_dimension_numbers<[1], [0], [0], [1], [0, 0, 1, 1], [], []>} : vector<64x128xf32>, vector<128x128xf32>, vector<64x128xf32> -> vector<64x128xf32>
    %209 = arith.addf %204, %208 : vector<64x128xf32>
    %c0_230 = arith.constant 0 : index
    %c0_231 = arith.constant 0 : index
    %210 = vector.load %arg12[%c0_230, %c0_231] : memref<64x128xf32, #tpu.memory_space<vmem>>, vector<64x128xf32>
    tpu.vector_store %arg12[%c0_230, %c0_231], %209 {strides = array<i32>} : memref<64x128xf32, #tpu.memory_space<vmem>>, vector<64x128xf32>,
    %c0_232 = arith.constant 0 : index
    %c0_233 = arith.constant 0 : index
    %211 = vector.load %arg12[%c0_232, %c0_233] : memref<64x128xf32, #tpu.memory_space<vmem>>, vector<64x128xf32>
    %c0_234 = arith.constant 0 : index
    %c0_235 = arith.constant 0 : index
    %c0_236 = arith.constant 0 : index
    %212 = vector.load %arg8[%c0_234, %c0_235, %c0_236] : memref<1x64x128xf32, #tpu.memory_space<vmem>>, vector<1x64x128xf32>
    %213 = vector.shape_cast %212 : vector<1x64x128xf32> to vector<64x128xf32>
    %214 = vector.shape_cast %211 : vector<64x128xf32> to vector<1x64x128xf32>
    tpu.vector_store %arg8[%c0_234, %c0_235, %c0_236], %214 {strides = array<i32>} : memref<1x64x128xf32, #tpu.memory_space<vmem>>, vector<1x64x128xf32>,
    return
  }
  func.func @transform_0(%arg0: i32, %arg1: i32) -> (i32, i32, i32) {
    %c0_i32 = arith.constant 0 : i32
    %c0_i32_0 = arith.constant 0 : i32
    return %arg0, %arg1, %c0_i32 : i32, i32, i32
  }
  func.func @transform_2(%arg0: i32, %arg1: i32) -> (i32, i32, i32) {
    %c0_i32 = arith.constant 0 : i32
    %c0_i32_0 = arith.constant 0 : i32
    %c0_i32_1 = arith.constant 0 : i32
    %c0_i32_2 = arith.constant 0 : i32
    return %c0_i32, %c0_i32_0, %c0_i32_1 : i32, i32, i32
  }
  func.func @transform_3(%arg0: i32, %arg1: i32) -> (i32, i32) {
    %c0_i32 = arith.constant 0 : i32
    %c0_i32_0 = arith.constant 0 : i32
    %c0_i32_1 = arith.constant 0 : i32
    return %c0_i32, %c0_i32_0 : i32, i32
  }
  func.func @transform_4(%arg0: i32, %arg1: i32) -> (i32, i32, i32) {
    %c0_i32 = arith.constant 0 : i32
    %c0_i32_0 = arith.constant 0 : i32
    %c0_i32_1 = arith.constant 0 : i32
    %c0_i32_2 = arith.constant 0 : i32
    return %c0_i32, %c0_i32_0, %c0_i32_1 : i32, i32, i32
  }
  func.func @transform_5(%arg0: i32, %arg1: i32) -> (i32, i32) {
    %c0_i32 = arith.constant 0 : i32
    %c0_i32_0 = arith.constant 0 : i32
    %c0_i32_1 = arith.constant 0 : i32
    return %c0_i32, %c0_i32_0 : i32, i32
  }
  func.func @transform_6(%arg0: i32, %arg1: i32) -> (i32, i32, i32) {
    %c0_i32 = arith.constant 0 : i32
    %c0_i32_0 = arith.constant 0 : i32
    return %arg0, %arg1, %c0_i32 : i32, i32, i32
  }
}

</mosaic_0001>

<bundles_post_ra>
// kernel: residual_block_pallas.3
= control target key start
LH: loop header
LB: loop body
LE: loop exit
PB: predicated region body
PF: predicated region fallthrough
CT: control target
= control target key end

     0   :  { %11 = vsyncpa [#allocation9], 0  ;;  %s7538_s0 = inlined_call_operand.vmem [shape: f32[2,64,128], index: 0, kind: input, shape index: {}, may-alias: {0,1}]   ;;  %s7539_s1 = inlined_call_operand.vmem [shape: f32[2,64,128], index: 1, kind: input, shape index: {}, may-alias: {0,1}]   ;;  %s7540_s2 = inlined_call_operand.hbm [shape: f32[11,128,128], index: 2, kind: input, shape index: {}]   ;;  %s7541_s3 = inlined_call_operand.vmem [shape: f32[1,128], index: 3, kind: input, shape index: {}]   ;;  %s7542_s4 = inlined_call_operand.hbm [shape: f32[11,128,128], index: 4, kind: input, shape index: {}]   ;;  %s7543_s5 = inlined_call_operand.vmem [shape: f32[1,128], index: 5, kind: input, shape index: {}]   ;;  %s7544_s6 = inlined_call_operand.vmem [shape: f32[2,64,128], index: 6, kind: output, shape index: {}]  }
   0x1   :  { %12 = vsyncpa [#allocation11], 0  ;;  %s7123_s21 = smov 0   ;;  %s7125_s1 = smov 0  }
   0x2   :  { %s7127_s22 = smov 0  }
   0x3 LB: > { %s4460_s23 = sadd.s32 4294967295, %s7081_s22   ;;  %s30_s24 = sadd.s32 1, %s7077_s1  ;;  %s7081_s22 = sphi %s7127_s22, %s18_s22   ;;  %s7077_s1 = sphi %s7125_s1, %s7554_s1   ;;  %s7073_s21 = sphi %s7123_s21, %s7553_s21  }
   0x4   : > { %p32_p0 = scmp.ge.s32.totalorder %s30_s24, 2  ;;  %p4462_p1 = scmp.ge.s32.totalorder %s7081_s22, 1 }
   0x5   : > { %p175_p2 = scmp.lt.s32.totalorder %s7081_s22, 3  ;;  %p7148_p4 = scmp.eq.s32.totalorder %s4460_s23, 0 }
   0x6   : > { %s7556_s24 = smov (%p32_p0, %s30_s24), 0  ;;  %s7083_s27 = smov [#allocation8]  }
   0x7   : > { %p7144_p3 = pnand %p4462_p1, %p175_p2  ;;  %s187_s28 = sshll.u32 %s7083_s27, 4  ;;  %s188_s28 = int_to_ptr.vmem [resolvable:$true] %s187_s28 }
   0x8   : > { %s7549_s26 = scalar_select %p7148_p4, 1, 0 }
   0x9   : > { %s7548_s25 = scalar_select %p7144_p3, 1, 0 }
   0xa   : > { %p6947_p5 = pneg %p7144_p3  ;;  %s7084_s30 = smov [#allocation10]  }
   0xb   : > { %s203_s7 = sshll.u32 %s7084_s30, 4  ;;  %s6995_s10 = scalar_lea.hbm %s7540_s2, 22528  ;;  %s7160_s7 = int_to_ptr.vmem [resolvable:$true] %s203_s7 }
   0xc   : > { %p7156_p6 = pnand %p7148_p4, %p6947_p5  ;;  %p6996_p7 = scmp.ne.s32.totalorder %s7540_s2, %s6995_s10 }
   0xd   : > { %p7002_p11 = scmp.lt.u32.totalorder %s6995_s10, %s7540_s2 }
   0xe   : > { %p6997_p8 = pneg %p7156_p6 }
  0x10   : > { %p6998_p9 = pnand %p6997_p8, %p6996_p7 }
  0x12   : > { %p6999_p10 = pneg %p6998_p9 }
  0x14   : > { %p7004_p12 = pnand %p7002_p11, %p6999_p10 }
  0x16   : > { %7007 = shalt.err (!%p7004_p12)
}
  0x17   : > { %s7008_s15 = scalar_lea.vmem %s188_s28, 22528  ;;  %p7016_p2 = scmp.lt.s32.totalorder %s188_s28, %s188_s28 }
  0x18   : > { %p7009_p13 = scmp.ne.s32.totalorder %s188_s28, %s7008_s15  ;;  %p7017_p5 = scmp.lt.s32.totalorder %s7008_s15, %s7008_s15 }
  0x1a   : > { %p7011_p0 = pnand %p7009_p13, %p6997_p8  ;;  %p7018_p4 = por %p7017_p5, %p7016_p2 }
  0x1c   : > { %p7012_p1 = pneg %p7011_p0 }
  0x1e   : > { %p7019_p3 = pnand %p7018_p4, %p7012_p1 }
  0x20   : > { %7022 = shalt.err (!%p7019_p3)
}
  0x21   : > { %s7085_s16 = smov 128   ;;  %s7086_s17 = smov 8  }
  0x22   : > { %6950 = dma.hbm_to_vmem [thread:$0]  (!%p7156_p6), %s7540_s2, 22528, %s188_s28, [#allocation9], %s7085_s16, %s7085_s16, %s7086_s17  }
  0x23   : > { %s7023_s27 = scalar_lea.hbm %s7542_s4, 22528 }
  0x24   : > { %p7024_p7 = scmp.ne.s32.totalorder %s7542_s4, %s7023_s27  ;;  %p7030_p9 = scmp.lt.u32.totalorder %s7023_s27, %s7542_s4 }
  0x26   : > { %p7026_p3 = pnand %p7024_p7, %p6997_p8 }
  0x28   : > { %p7027_p4 = pneg %p7026_p3 }
  0x2a   : > { %p7032_p10 = pnand %p7030_p9, %p7027_p4 }
  0x2c   : > { %7035 = shalt.err (!%p7032_p10)
}
  0x2d   : > { %s7036_s28 = scalar_lea.vmem %s7160_s7, 22528  ;;  %p7044_p0 = scmp.lt.s32.totalorder %s7160_s7, %s7160_s7 }
  0x2e   : > { %p7037_p11 = scmp.ne.s32.totalorder %s7160_s7, %s7036_s28  ;;  %p7045_p1 = scmp.lt.s32.totalorder %s7036_s28, %s7036_s28 }
  0x30   : > { %p7039_p12 = pnand %p7037_p11, %p6997_p8  ;;  %p7046_p2 = por %p7045_p1, %p7044_p0 }
  0x32   : > { %p7040_p13 = pneg %p7039_p12 }
  0x34   : > { %p7047_p5 = pnand %p7046_p2, %p7040_p13 }
  0x36   : > { %7050 = shalt.err (!%p7047_p5)
}
  0x37   : > { %6953 = dma.hbm_to_vmem [thread:$0]  (!%p7156_p6), %s7542_s4, 22528, %s7160_s7, [#allocation11], %s7085_s16, %s7085_s16, %s7086_s17  }
  0x38   : > { %p7551_p7 = scmp.ne.s32.totalorder %s7548_s25, 0 }
  0x39   : > { %p7552_p3 = scmp.ne.s32.totalorder (!%p7551_p7), %s7549_s26, 0 }
  0x3a   : > { %235 = sbr.rel (%p7551_p7) target bundleno = 1201 (0x4b1), region = 40 }
  0x41   : > { %7064 = dma.done.wait (%p7552_p3), [#allocation9], 22528  }
  0x42   : > { %7066 = vsyncadd (%p7552_p3), [#allocation9], 4294944768 }
  0x43   : > { %7068 = dma.done.wait (%p7552_p3), [#allocation11], 22528  }
  0x44   : > { %7070 = vsyncadd (%p7552_p3), [#allocation11], 4294944768  ;;  %p276_p8 = scmp.lt.s32.totalorder %s7073_s21, 1  ;;  %v7087_v0 = vmov 0.0   ;;  %v564_v1 = vld [vmem:[#allocation8] sm:$0xff]  ;;  %v565_v2 = vld [vmem:[#allocation8 + $0x8] sm:$0xff] }
  0x45   : > { %466 = vst [vmem:[#allocation2] sm:$0xff] %v7087_v0  ;;  %467 = vst [vmem:[#allocation2 + $0x8] sm:$0xff] %v7087_v0  ;;  %v566_v3 = vld [vmem:[#allocation8 + $0x10] sm:$0xff]  ;;  %v6039_v4 = vpack.c.bf16 %v565_v2, %v564_v1  ;;  %v567_v5 = vld [vmem:[#allocation8 + $0x18] sm:$0xff] }
  0x46   : > { %487 = vst [vmem:[#allocation2 + $0x50] sm:$0xff] %v7087_v0  ;;  %488 = vst [vmem:[#allocation2 + $0x58] sm:$0xff] %v7087_v0  ;;  %s7558_s21 = smov (!%p276_p8, %s7073_s21), 1  ;;  %v6043_v6 = vpack.c.bf16 %v567_v5, %v566_v3  ;;  %v568_v7 = vld [vmem:[#allocation8 + $0x20] sm:$0xff]  ;;  %v569_v8 = vld [vmem:[#allocation8 + $0x28] sm:$0xff] }
  0x47   : > { %2558 = vst [vmem:[#allocation3] sm:$0xff] %v7087_v0  ;;  %2567 = vst [vmem:[#allocation3 + $0x48] sm:$0xff] %v7087_v0  ;;  %s4486_s25 = sshll.u32 %s7558_s21, 6  ;;  %6040 = vmatprep.subr.bf16.mxu0 %v6039_v4  ;;  %v6047_v9 = vpack.c.bf16 %v569_v8, %v568_v7  ;;  %v570_v11 = vld [vmem:[#allocation8 + $0x30] sm:$0xff]  ;;  %v571_v12 = vld [vmem:[#allocation8 + $0x38] sm:$0xff] }
  0x48   : > { %s7235_s7 = scalar_lea.vmem %s7538_s0, %s4486_s25  ;;  %6042 = vmatpush3.bf16.msra.mxu0 %v6039_v4  ;;  %v6051_v16 = vpack.c.bf16 %v571_v12, %v570_v11  ;;  %v572_v20 = vld [vmem:[#allocation8 + $0x40] sm:$0xff]  ;;  %v573_v21 = vld [vmem:[#allocation8 + $0x48] sm:$0xff]  ;;  %v574_v32 = vld [vmem:[#allocation8 + $0x50] sm:$0xff]  ;;  %s7519_s19 = scalar_lea.vmem %s7544_s6, %s4486_s25 }
  0x49   : > { %6044 = vmatprep.subr.bf16.mxu0 %v6043_v6  ;;  %v422_v13 = vld [vmem:[%s7235_s7] sm:$0xff]  ;;  %v423_v15 = vld [vmem:[%s7235_s7 + $0x8] sm:$0xff]  ;;  %v424_v19 = vld [vmem:[%s7235_s7 + $0x10] sm:$0xff]  ;;  %v6055_v31 = vpack.c.bf16 %v573_v21, %v572_v20 }
  0x4a   : > { %vm430_vm0 = vcmp.ge.f32.partialorder %v422_v13, 0.0  ;;  %v438_v14 = vmul.f32 0.1, %v422_v13  ;;  %vm431_vm1 = vcmp.ge.f32.partialorder %v423_v15, 0.0  ;;  %v439_v18 = vmul.f32 0.1, %v423_v15 }
  0x4b   : > { %vm432_vm2 = vcmp.ge.f32.partialorder %v424_v19, 0.0  ;;  %v440_v22 = vmul.f32 0.1, %v424_v19  ;;  %v425_v23 = vld [vmem:[%s7235_s7 + $0x18] sm:$0xff]  ;;  %v426_v26 = vld [vmem:[%s7235_s7 + $0x20] sm:$0xff]  ;;  %v427_v27 = vld [vmem:[%s7235_s7 + $0x28] sm:$0xff] }
  0x4c   : > { %v554_v10 = vld [vmem:[#allocation2 + $0x3] sm:$0xff]  ;;  %6046 = vmatpush3.bf16.msra.mxu0 %v6043_v6  ;;  %v7239_v17 = vsel %vm430_vm0, %v422_v13, %v438_v14  ;;  %v7244_v24 = vsel %vm431_vm1, %v423_v15, %v439_v18  ;;  %vm433_vm3 = vcmp.ge.f32.partialorder %v425_v23, 0.0  ;;  %v441_v25 = vmul.f32 0.1, %v425_v23  ;;  %v428_v30 = vld [vmem:[%s7235_s7 + $0x30] sm:$0xff]  ;;  %v429_v35 = vld [vmem:[%s7235_s7 + $0x38] sm:$0xff] }
  0x4d   : > { %5070 = vmatprep.mubr.f32.mxu0 %v554_v10  ;;  %6048 = vmatprep.subr.bf16.mxu0 %v6047_v9  ;;  %454 = vst [vmem:[#allocation2 + $0x10] sm:$0xff] %v7239_v17  ;;  %455 = vst [vmem:[#allocation2 + $0x18] sm:$0xff] %v7244_v24  ;;  %v7249_v28 = vsel %vm432_vm2, %v424_v19, %v440_v22  ;;  %vm434_vm4 = vcmp.ge.f32.partialorder %v426_v26, 0.0  ;;  %v442_v29 = vmul.f32 0.1, %v426_v26  ;;  %vm435_vm5 = vcmp.ge.f32.partialorder %v427_v27, 0.0 }
  0x4e   : > { %456 = vst [vmem:[#allocation2 + $0x20] sm:$0xff] %v7249_v28  ;;  %v7253_v33 = vsel %vm433_vm3, %v425_v23, %v441_v25  ;;  %v443_v34 = vmul.f32 0.1, %v427_v27  ;;  %vm436_vm6 = vcmp.ge.f32.partialorder %v428_v30, 0.0  ;;  %v575_v36 = vld [vmem:[#allocation8 + $0x58] sm:$0xff]  ;;  %vm437_vm7 = vcmp.ge.f32.partialorder %v429_v35, 0.0 }
  0x4f   : > { %457 = vst [vmem:[#allocation2 + $0x28] sm:$0xff] %v7253_v33  ;;  %v7257_v37 = vsel %vm434_vm4, %v426_v26, %v442_v29  ;;  %v444_v38 = vmul.f32 0.1, %v428_v30  ;;  %v445_v39 = vmul.f32 0.1, %v429_v35  ;;  %v6059_v43 = vpack.c.bf16 %v575_v36, %v574_v32  ;;  %v576_v44 = vld [vmem:[#allocation8 + $0x60] sm:$0xff] }
  0x50   : > { %6050 = vmatpush3.bf16.msra.mxu0 %v6047_v9  ;;  %458 = vst [vmem:[#allocation2 + $0x30] sm:$0xff] %v7257_v37  ;;  %v7261_v40 = vsel %vm435_vm5, %v427_v27, %v443_v34  ;;  %v577_v45 = vld [vmem:[#allocation8 + $0x68] sm:$0xff]  ;;  %v578_v47 = vld [vmem:[#allocation8 + $0x70] sm:$0xff]  ;;  %v579_v48 = vld [vmem:[#allocation8 + $0x78] sm:$0xff] }
  0x51   : > { %6052 = vmatprep.subr.bf16.mxu0 %v6051_v16  ;;  %459 = vst [vmem:[#allocation2 + $0x38] sm:$0xff] %v7261_v40  ;;  %v7264_v41 = vsel %vm436_vm6, %v428_v30, %v444_v38  ;;  %v7266_v42 = vsel %vm437_vm7, %v429_v35, %v445_v39  ;;  %v6063_v46 = vpack.c.bf16 %v577_v45, %v576_v44  ;;  %v736_v50 = vld [vmem:[#allocation8 + $0x80] sm:$0xff]  ;;  %v737_v51 = vld [vmem:[#allocation8 + $0x88] sm:$0xff]  ;;  %v738_v53 = vld [vmem:[#allocation8 + $0x90] sm:$0xff] }
  0x52   : > { %460 = vst [vmem:[#allocation2 + $0x40] sm:$0xff] %v7264_v41  ;;  %461 = vst [vmem:[#allocation2 + $0x48] sm:$0xff] %v7266_v42  ;;  %v6067_v49 = vpack.c.bf16 %v579_v48, %v578_v47  ;;  %v6071_v52 = vpack.c.bf16 %v737_v51, %v736_v50  ;;  %v739_v54 = vld [vmem:[#allocation8 + $0x98] sm:$0xff]  ;;  %v740_v58 = vld [vmem:[#allocation8 + $0xa0] sm:$0xff] }
  0x53   : > { %v6075_v56 = vpack.c.bf16 %v739_v54, %v738_v53  ;;  %v741_v59 = vld [vmem:[#allocation8 + $0xa8] sm:$0xff]  ;;  %v742_v63 = vld [vmem:[#allocation8 + $0xb0] sm:$0xff]  ;;  %v743_v1 = vld [vmem:[#allocation8 + $0xb8] sm:$0xff] }
  0x54   : > { %6054 = vmatpush3.bf16.msra.mxu0 %v6051_v16  ;;  %v7270_v55 = vld [vmem:[#allocation2 + $0xb] sm:$0xff]  ;;  %v7272_v57 = vld [vmem:[#allocation2 + $0x13] sm:$0xff]  ;;  %v6079_v61 = vpack.c.bf16 %v741_v59, %v740_v58  ;;  %v6083_v3 = vpack.c.bf16 %v743_v1, %v742_v63  ;;  %v746_v10 = vld [vmem:[#allocation8 + $0xd0] sm:$0xff] }
  0x55   : > { %6056 = vmatprep.subr.bf16.mxu0 %v6055_v31  ;;  %v7276_v60 = vld [vmem:[#allocation2 + $0x1b] sm:$0xff]  ;;  %v744_v5 = vld [vmem:[#allocation8 + $0xc0] sm:$0xff]  ;;  %v747_v11 = vld [vmem:[#allocation8 + $0xd8] sm:$0xff] }
  0x56   : > { %v7278_v62 = vld [vmem:[#allocation2 + $0x23] sm:$0xff]  ;;  %v745_v6 = vld [vmem:[#allocation8 + $0xc8] sm:$0xff]  ;;  %v6091_v13 = vpack.c.bf16 %v747_v11, %v746_v10  ;;  %v748_v15 = vld [vmem:[#allocation8 + $0xe0] sm:$0xff] }
  0x57   : > { %v7282_v2 = vld [vmem:[#allocation2 + $0x2b] sm:$0xff]  ;;  %v6087_v8 = vpack.c.bf16 %v745_v6, %v744_v5  ;;  %v749_v16 = vld [vmem:[#allocation8 + $0xe8] sm:$0xff]  ;;  %v750_v19 = vld [vmem:[#allocation8 + $0xf0] sm:$0xff] }
  0x58   : > { %6058 = vmatpush3.bf16.msra.mxu0 %v6055_v31  ;;  %v7284_v4 = vld [vmem:[#allocation2 + $0x33] sm:$0xff]  ;;  %v725_v14 = vld [vmem:[#allocation2 + $0x4] sm:$0xff]  ;;  %v6095_v18 = vpack.c.bf16 %v749_v16, %v748_v15  ;;  %v7303_v35 = vld [vmem:[#allocation2 + $0x1c] sm:$0xff] }
  0x59   : > { %6060 = vmatprep.subr.bf16.mxu0 %v6059_v43  ;;  %v7288_v7 = vld [vmem:[#allocation2 + $0x3b] sm:$0xff]  ;;  %v7290_v9 = vld [vmem:[#allocation2 + $0x43] sm:$0xff]  ;;  %v7294_v12 = vld [vmem:[#allocation2 + $0x4b] sm:$0xff] }
  0x5a   : > { %v751_v20 = vld [vmem:[#allocation8 + $0xf8] sm:$0xff]  ;;  %v908_v22 = vld [vmem:[#allocation8 + $0x100] sm:$0xff]  ;;  %v909_v23 = vld [vmem:[#allocation8 + $0x108] sm:$0xff] }
  0x5b   : > { %v6099_v21 = vpack.c.bf16 %v751_v20, %v750_v19  ;;  %v6103_v25 = vpack.c.bf16 %v909_v23, %v908_v22  ;;  %v910_v26 = vld [vmem:[#allocation8 + $0x110] sm:$0xff]  ;;  %v911_v27 = vld [vmem:[#allocation8 + $0x118] sm:$0xff]  ;;  %v7299_v31 = vld [vmem:[#allocation2 + $0x14] sm:$0xff] }
  0x5c   : > { %6062 = vmatpush3.bf16.msra.mxu0 %v6059_v43  ;;  %v7297_v29 = vld [vmem:[#allocation2 + $0xc] sm:$0xff]  ;;  %v6107_v30 = vpack.c.bf16 %v911_v27, %v910_v26  ;;  %v913_v34 = vld [vmem:[#allocation8 + $0x128] sm:$0xff]  ;;  %v7305_v38 = vld [vmem:[#allocation2 + $0x24] sm:$0xff] }
  0x5d   : > { %6064 = vmatprep.subr.bf16.mxu0 %v6063_v46  ;;  %v912_v32 = vld [vmem:[#allocation8 + $0x120] sm:$0xff]  ;;  %v914_v39 = vld [vmem:[#allocation8 + $0x130] sm:$0xff]  ;;  %v915_v43 = vld [vmem:[#allocation8 + $0x138] sm:$0xff] }
  0x5e   : > { %v6111_v36 = vpack.c.bf16 %v913_v34, %v912_v32  ;;  %v7309_v44 = vld [vmem:[#allocation2 + $0x2c] sm:$0xff]  ;;  %v6115_v45 = vpack.c.bf16 %v915_v43, %v914_v39  ;;  %v917_v48 = vld [vmem:[#allocation8 + $0x148] sm:$0xff]  ;;  %v7317_v51 = vld [vmem:[#allocation2 + $0x44] sm:$0xff] }
  0x5f   : > { %v916_v47 = vld [vmem:[#allocation8 + $0x140] sm:$0xff]  ;;  %v919_v53 = vld [vmem:[#allocation8 + $0x158] sm:$0xff]  ;;  %v922_v1 = vld [vmem:[#allocation8 + $0x170] sm:$0xff] }
  0x60   : > { %6066 = vmatpush3.bf16.msra.mxu0 %v6063_v46  ;;  %v7311_v46 = vld [vmem:[#allocation2 + $0x34] sm:$0xff]  ;;  %v6119_v50 = vpack.c.bf16 %v917_v48, %v916_v47  ;;  %v7321_v54 = vld [vmem:[#allocation2 + $0x4c] sm:$0xff]  ;;  %v1082_v11 = vld [vmem:[#allocation8 + $0x190] sm:$0xff] }
  0x61   : > { %6068 = vmatprep.subr.bf16.mxu0 %v6067_v49  ;;  %v897_v58 = vld [vmem:[#allocation2 + $0x5] sm:$0xff]  ;;  %v920_v59 = vld [vmem:[#allocation8 + $0x160] sm:$0xff]  ;;  %v1085_v19 = vld [vmem:[#allocation8 + $0x1a8] sm:$0xff] }
  0x62   : > { %v1080_v6 = vld [vmem:[#allocation8 + $0x180] sm:$0xff]  ;;  %v7330_v20 = vld [vmem:[#allocation2 + $0x1d] sm:$0xff]  ;;  %v7332_v22 = vld [vmem:[#allocation2 + $0x25] sm:$0xff] }
  0x63   : > { %v7326_v16 = vld [vmem:[#allocation2 + $0x15] sm:$0xff]  ;;  %v1086_v23 = vld [vmem:[#allocation8 + $0x1b0] sm:$0xff]  ;;  %v7336_v26 = vld [vmem:[#allocation2 + $0x2d] sm:$0xff] }
  0x64   : > { %6070 = vmatpush3.bf16.msra.mxu0 %v6067_v49  ;;  %v7315_v49 = vld [vmem:[#allocation2 + $0x3c] sm:$0xff]  ;;  %v1088_v32 = vld [vmem:[#allocation8 + $0x1c0] sm:$0xff]  ;;  %v7344_v43 = vld [vmem:[#allocation2 + $0x45] sm:$0xff] }
  0x65   : > { %6072 = vmatprep.subr.bf16.mxu0 %v6071_v52  ;;  %v1089_v34 = vld [vmem:[#allocation8 + $0x1c8] sm:$0xff]  ;;  %v1091_v47 = vld [vmem:[#allocation8 + $0x1d8] sm:$0xff] }
  0x66   : > { %v6151_v39 = vpack.c.bf16 %v1089_v34, %v1088_v32  ;;  %v7348_v48 = vld [vmem:[#allocation2 + $0x4d] sm:$0xff] }
  0x67   : > { %5071 = vmatmul.mubr.f32.vlgmr.msra.gmra.mrb[0].mxu0 %v7270_v55  ;;  %v1074_v32 = vld [vmem:[#allocation2 + $0x2e] sm:$0xff] }
  0x68   : > { %6074 = vmatpush3.bf16.msra.mxu0 %v6071_v52  ;;  %5073 = vmatprep.mubr.f32.mxu0 %v7272_v57  ;;  %v918_v52 = vld [vmem:[#allocation8 + $0x150] sm:$0xff] }
  0x69   : > { %6076 = vmatprep.subr.bf16.mxu0 %v6075_v56 }
  0x6b   : > { %5074 = vmatmul.mubr.f32.gmra.mrb[2].mxu0 %v7276_v60 }
  0x6c   : > { %6078 = vmatpush3.bf16.msra.mxu0 %v6075_v56  ;;  %5076 = vmatprep.mubr.f32.mxu0 %v7278_v62  ;;  %v6123_v56 = vpack.c.bf16 %v919_v53, %v918_v52  ;;  %v1069_v52 = vld [vmem:[#allocation2 + $0x6] sm:$0xff]  ;;  %v1092_v53 = vld [vmem:[#allocation8 + $0x1e0] sm:$0xff] }
  0x6d   : > { %6080 = vmatprep.subr.bf16.mxu0 %v6079_v61 }
  0x6f   : > { %5077 = vmatmul.mubr.f32.gmra.mrb[4].mxu0 %v7282_v2 }
  0x70   : > { %6082 = vmatpush3.bf16.msra.mxu0 %v6079_v61  ;;  %5079 = vmatprep.mubr.f32.mxu0 %v7284_v4  ;;  %v921_v61 = vld [vmem:[#allocation8 + $0x168] sm:$0xff] }
  0x71   : > { %6084 = vmatprep.subr.bf16.mxu0 %v6083_v3  ;;  %v6127_v63 = vpack.c.bf16 %v921_v61, %v920_v59  ;;  %v1094_v59 = vld [vmem:[#allocation8 + $0x1f0] sm:$0xff]  ;;  %v1095_v61 = vld [vmem:[#allocation8 + $0x1f8] sm:$0xff] }
  0x73   : > { %5080 = vmatmul.mubr.f32.gmra.mrb[6].mxu0 %v7288_v7 }
  0x74   : > { %6086 = vmatpush3.bf16.msra.mxu0 %v6083_v3  ;;  %5082 = vmatprep.mubr.f32.mxu0 %v7290_v9  ;;  %v923_v3 = vld [vmem:[#allocation8 + $0x178] sm:$0xff] }
  0x75   : > { %6088 = vmatprep.subr.bf16.mxu0 %v6087_v8  ;;  %v6131_v5 = vpack.c.bf16 %v923_v3, %v922_v1  ;;  %v1252_v1 = vld [vmem:[#allocation8 + $0x200] sm:$0xff]  ;;  %v1253_v3 = vld [vmem:[#allocation8 + $0x208] sm:$0xff] }
  0x77   : > { %5083 = vmatmul.mubr.f32.gmra.mrb[8].mxu0 %v7294_v12 }
  0x78   : > { %6090 = vmatpush3.bf16.msra.mxu0 %v6087_v8  ;;  %5117 = vmatprep.mubr.f32.mxu0 %v725_v14  ;;  %v1081_v8 = vld [vmem:[#allocation8 + $0x188] sm:$0xff]  ;;  %v7324_v14 = vld [vmem:[#allocation2 + $0xd] sm:$0xff] }
  0x79   : > { %6092 = vmatprep.subr.bf16.mxu0 %v6091_v13  ;;  %v6135_v10 = vpack.c.bf16 %v1081_v8, %v1080_v6  ;;  %v1254_v6 = vld [vmem:[#allocation8 + $0x210] sm:$0xff]  ;;  %v1255_v8 = vld [vmem:[#allocation8 + $0x218] sm:$0xff] }
  0x7c   : > { %6094 = vmatpush3.bf16.msra.mxu0 %v6091_v13  ;;  %v1083_v13 = vld [vmem:[#allocation8 + $0x198] sm:$0xff] }
  0x7d   : > { %6096 = vmatprep.subr.bf16.mxu0 %v6095_v18  ;;  %v6139_v15 = vpack.c.bf16 %v1083_v13, %v1082_v11  ;;  %v6171_v11 = vpack.c.bf16 %v1255_v8, %v1254_v6  ;;  %v1071_v13 = vld [vmem:[#allocation2 + $0x16] sm:$0xff]  ;;  %v1266_v6 = vld [vmem:[#allocation8 + $0x270] sm:$0xff]  ;;  %v1267_v8 = vld [vmem:[#allocation8 + $0x278] sm:$0xff] }
  0x80   : > { %6098 = vmatpush3.bf16.msra.mxu0 %v6095_v18  ;;  %v1084_v18 = vld [vmem:[#allocation8 + $0x1a0] sm:$0xff] }
  0x81   : > { %6100 = vmatprep.subr.bf16.mxu0 %v6099_v21 }
  0x84   : > { %6102 = vmatpush3.bf16.msra.mxu0 %v6099_v21  ;;  %v6143_v21 = vpack.c.bf16 %v1085_v19, %v1084_v18  ;;  %v1257_v18 = vld [vmem:[#allocation8 + $0x228] sm:$0xff] }
  0x85   : > { %6104 = vmatprep.subr.bf16.mxu0 %v6103_v25  ;;  %v1072_v19 = vld [vmem:[#allocation2 + $0x1e] sm:$0xff] }
  0x87   : > { %5118 = vmatmul.mubr.f32.vlgmr.msra.gmra.mrb[0].mxu0 %v7297_v29 }
  0x88   : > { %6106 = vmatpush3.bf16.msra.mxu0 %v6103_v25  ;;  %5120 = vmatprep.mubr.f32.mxu0 %v7299_v31  ;;  %v1087_v25 = vld [vmem:[#allocation8 + $0x1b8] sm:$0xff] }
  0x89   : > { %6108 = vmatprep.subr.bf16.mxu0 %v6107_v30  ;;  %v6147_v27 = vpack.c.bf16 %v1087_v25, %v1086_v23  ;;  %v1073_v23 = vld [vmem:[#allocation2 + $0x26] sm:$0xff] }
  0x8a   : > { %v1258_v25 = vld [vmem:[#allocation8 + $0x230] sm:$0xff] }
  0x8b   : > { %5121 = vmatmul.mubr.f32.gmra.mrb[2].mxu0 %v7303_v35 }
  0x8c   : > { %6110 = vmatpush3.bf16.msra.mxu0 %v6107_v30  ;;  %5123 = vmatprep.mubr.f32.mxu0 %v7305_v38  ;;  %v7338_v30 = vld [vmem:[#allocation2 + $0x35] sm:$0xff] }
  0x8d   : > { %6112 = vmatprep.subr.bf16.mxu0 %v6111_v36 }
  0x8f   : > { %5124 = vmatmul.mubr.f32.gmra.mrb[4].mxu0 %v7309_v44 }
  0x90   : > { %6114 = vmatpush3.bf16.msra.mxu0 %v6111_v36  ;;  %5126 = vmatprep.mubr.f32.mxu0 %v7311_v46  ;;  %v7342_v36 = vld [vmem:[#allocation2 + $0x3d] sm:$0xff] }
  0x91   : > { %6116 = vmatprep.subr.bf16.mxu0 %v6115_v45 }
  0x93   : > { %5127 = vmatmul.mubr.f32.gmra.mrb[6].mxu0 %v7315_v49 }
  0x94   : > { %6118 = vmatpush3.bf16.msra.mxu0 %v6115_v45  ;;  %5129 = vmatprep.mubr.f32.mxu0 %v7317_v51  ;;  %v1090_v45 = vld [vmem:[#allocation8 + $0x1d0] sm:$0xff] }
  0x95   : > { %6120 = vmatprep.subr.bf16.mxu0 %v6119_v50 }
  0x97   : > { %5130 = vmatmul.mubr.f32.gmra.mrb[8].mxu0 %v7321_v54 }
  0x98   : > { %6122 = vmatpush3.bf16.msra.mxu0 %v6119_v50  ;;  %5164 = vmatprep.mubr.f32.mxu0 %v897_v58  ;;  %v6155_v50 = vpack.c.bf16 %v1091_v47, %v1090_v45  ;;  %v1260_v45 = vld [vmem:[#allocation8 + $0x240] sm:$0xff]  ;;  %v1261_v47 = vld [vmem:[#allocation8 + $0x248] sm:$0xff] }
  0x99   : > { %6124 = vmatprep.subr.bf16.mxu0 %v6123_v56 }
  0x9c   : > { %6126 = vmatpush3.bf16.msra.mxu0 %v6123_v56  ;;  %v1093_v56 = vld [vmem:[#allocation8 + $0x1e8] sm:$0xff] }
  0x9d   : > { %6128 = vmatprep.subr.bf16.mxu0 %v6127_v63  ;;  %v6159_v58 = vpack.c.bf16 %v1093_v56, %v1092_v53  ;;  %v1077_v53 = vld [vmem:[#allocation2 + $0x46] sm:$0xff] }
  0x9e   : > { %v1262_v56 = vld [vmem:[#allocation8 + $0x250] sm:$0xff] }
  0xa0   : > { %6130 = vmatpush3.bf16.msra.mxu0 %v6127_v63  ;;  %v6163_v63 = vpack.c.bf16 %v1095_v61, %v1094_v59  ;;  %v1078_v59 = vld [vmem:[#allocation2 + $0x4e] sm:$0xff] }
  0xa1   : > { %6132 = vmatprep.subr.bf16.mxu0 %v6131_v5 }
  0xa4   : > { %6134 = vmatpush3.bf16.msra.mxu0 %v6131_v5  ;;  %v6167_v5 = vpack.c.bf16 %v1253_v3, %v1252_v1  ;;  %v1264_v1 = vld [vmem:[#allocation8 + $0x260] sm:$0xff]  ;;  %v1265_v3 = vld [vmem:[#allocation8 + $0x268] sm:$0xff] }
  0xa5   : > { %6136 = vmatprep.subr.bf16.mxu0 %v6135_v10 }
  0xa7   : > { %5165 = vmatmul.mubr.f32.vlgmr.msra.gmra.mrb[0].mxu0 %v7324_v14 }
  0xa8   : > { %6138 = vmatpush3.bf16.msra.mxu0 %v6135_v10  ;;  %5167 = vmatprep.mubr.f32.mxu0 %v7326_v16  ;;  %v1070_v10 = vld [vmem:[#allocation2 + $0xe] sm:$0xff] }
  0xa9   : > { %6140 = vmatprep.subr.bf16.mxu0 %v6139_v15 }
  0xab   : > { %5168 = vmatmul.mubr.f32.gmra.mrb[2].mxu0 %v7330_v20 }
  0xac   : > { %6142 = vmatpush3.bf16.msra.mxu0 %v6139_v15  ;;  %5170 = vmatprep.mubr.f32.mxu0 %v7332_v22  ;;  %v1256_v15 = vld [vmem:[#allocation8 + $0x220] sm:$0xff] }
  0xad   : > { %6144 = vmatprep.subr.bf16.mxu0 %v6143_v21 }
  0xaf   : > { %5171 = vmatmul.mubr.f32.gmra.mrb[4].mxu0 %v7336_v26 }
  0xb0   : > { %6146 = vmatpush3.bf16.msra.mxu0 %v6143_v21  ;;  %5173 = vmatprep.mubr.f32.mxu0 %v7338_v30  ;;  %v6175_v21 = vpack.c.bf16 %v1257_v18, %v1256_v15  ;;  %v1426_v18 = vld [vmem:[#allocation8 + $0x290] sm:$0xff] }
  0xb1   : > { %6148 = vmatprep.subr.bf16.mxu0 %v6147_v27 }
  0xb3   : > { %5174 = vmatmul.mubr.f32.gmra.mrb[6].mxu0 %v7342_v36 }
  0xb4   : > { %6150 = vmatpush3.bf16.msra.mxu0 %v6147_v27  ;;  %5176 = vmatprep.mubr.f32.mxu0 %v7344_v43  ;;  %v1259_v27 = vld [vmem:[#allocation8 + $0x238] sm:$0xff] }
  0xb5   : > { %6152 = vmatprep.subr.bf16.mxu0 %v6151_v39  ;;  %v6179_v34 = vpack.c.bf16 %v1259_v27, %v1258_v25  ;;  %v1243_v25 = vld [vmem:[#allocation2 + $0x17] sm:$0xff] }
  0xb6   : > { %v1428_v27 = vld [vmem:[#allocation8 + $0x2a0] sm:$0xff] }
  0xb7   : > { %5177 = vmatmul.mubr.f32.gmra.mrb[8].mxu0 %v7348_v48 }
  0xb8   : > { %6154 = vmatpush3.bf16.msra.mxu0 %v6151_v39  ;;  %5211 = vmatprep.mubr.f32.mxu0 %v1069_v52  ;;  %v1075_v39 = vld [vmem:[#allocation2 + $0x36] sm:$0xff]  ;;  %v6183_v52 = vpack.c.bf16 %v1261_v47, %v1260_v45  ;;  %v1245_v45 = vld [vmem:[#allocation2 + $0x27] sm:$0xff] }
  0xb9   : > { %6156 = vmatprep.subr.bf16.mxu0 %v6155_v50  ;;  %v1430_v47 = vld [vmem:[#allocation8 + $0x2b0] sm:$0xff] }
  0xbc   : > { %6158 = vmatpush3.bf16.msra.mxu0 %v6155_v50  ;;  %v1076_v50 = vld [vmem:[#allocation2 + $0x3e] sm:$0xff] }
  0xbd   : > { %6160 = vmatprep.subr.bf16.mxu0 %v6159_v58 }
  0xc0   : > { %6162 = vmatpush3.bf16.msra.mxu0 %v6159_v58  ;;  %v1263_v58 = vld [vmem:[#allocation8 + $0x258] sm:$0xff] }
  0xc1   : > { %6164 = vmatprep.subr.bf16.mxu0 %v6163_v63  ;;  %v6187_v61 = vpack.c.bf16 %v1263_v58, %v1262_v56  ;;  %v1247_v56 = vld [vmem:[#allocation2 + $0x37] sm:$0xff] }
  0xc2   : > { %v1432_v58 = vld [vmem:[#allocation8 + $0x2c0] sm:$0xff] }
  0xc4   : > { %6166 = vmatpush3.bf16.msra.mxu0 %v6163_v63  ;;  %v1241_v63 = vld [vmem:[#allocation2 + $0x7] sm:$0xff] }
  0xc5   : > { %6168 = vmatprep.subr.bf16.mxu0 %v6167_v5 }
  0xc7   : > { %5212 = vmatmul.mubr.f32.vlgmr.msra.gmra.mrb[0].mxu0 %v1070_v10  ;;  %v6195_v10 = vpack.c.bf16 %v1267_v8, %v1266_v6  ;;  %v1250_v6 = vld [vmem:[#allocation2 + $0x4f] sm:$0xff] }
  0xc8   : > { %6170 = vmatpush3.bf16.msra.mxu0 %v6167_v5  ;;  %5214 = vmatprep.mubr.f32.mxu0 %v1071_v13  ;;  %v6191_v5 = vpack.c.bf16 %v1265_v3, %v1264_v1  ;;  %v1425_v13 = vld [vmem:[#allocation8 + $0x288] sm:$0xff]  ;;  %v1249_v1 = vld [vmem:[#allocation2 + $0x47] sm:$0xff] }
  0xc9   : > { %6172 = vmatprep.subr.bf16.mxu0 %v6171_v11  ;;  %v1434_v3 = vld [vmem:[#allocation8 + $0x2d0] sm:$0xff] }
  0xcb   : > { %5215 = vmatmul.mubr.f32.gmra.mrb[2].mxu0 %v1072_v19  ;;  %v1427_v19 = vld [vmem:[#allocation8 + $0x298] sm:$0xff] }
  0xcc   : > { %6174 = vmatpush3.bf16.msra.mxu0 %v6171_v11  ;;  %5217 = vmatprep.mubr.f32.mxu0 %v1073_v23  ;;  %v1424_v11 = vld [vmem:[#allocation8 + $0x280] sm:$0xff]  ;;  %v6203_v23 = vpack.c.bf16 %v1427_v19, %v1426_v18  ;;  %v1439_v18 = vld [vmem:[#allocation8 + $0x2f8] sm:$0xff] }
  0xcd   : > { %6176 = vmatprep.subr.bf16.mxu0 %v6175_v21  ;;  %v6199_v15 = vpack.c.bf16 %v1425_v13, %v1424_v11  ;;  %v1437_v11 = vld [vmem:[#allocation8 + $0x2e8] sm:$0xff] }
  0xcf   : > { %5218 = vmatmul.mubr.f32.gmra.mrb[4].mxu0 %v1074_v32  ;;  %v1429_v32 = vld [vmem:[#allocation8 + $0x2a8] sm:$0xff] }
  0xd0   : > { %6178 = vmatpush3.bf16.msra.mxu0 %v6175_v21  ;;  %5220 = vmatprep.mubr.f32.mxu0 %v1075_v39  ;;  %v1242_v21 = vld [vmem:[#allocation2 + $0xf] sm:$0xff]  ;;  %v6207_v39 = vpack.c.bf16 %v1429_v32, %v1428_v27  ;;  %v1598_v27 = vld [vmem:[#allocation8 + $0x310] sm:$0xff] }
  0xd1   : > { %6180 = vmatprep.subr.bf16.mxu0 %v6179_v34  ;;  %v1599_v32 = vld [vmem:[#allocation8 + $0x318] sm:$0xff] }
  0xd3   : > { %5221 = vmatmul.mubr.f32.gmra.mrb[6].mxu0 %v1076_v50  ;;  %v1431_v50 = vld [vmem:[#allocation8 + $0x2b8] sm:$0xff] }
  0xd4   : > { %6182 = vmatpush3.bf16.msra.mxu0 %v6179_v34  ;;  %5223 = vmatprep.mubr.f32.mxu0 %v1077_v53  ;;  %v1244_v34 = vld [vmem:[#allocation2 + $0x1f] sm:$0xff]  ;;  %v6211_v53 = vpack.c.bf16 %v1431_v50, %v1430_v47 }
  0xd5   : > { %6184 = vmatprep.subr.bf16.mxu0 %v6183_v52  ;;  %v1602_v50 = vld [vmem:[#allocation8 + $0x330] sm:$0xff] }
  0xd7   : > { %5224 = vmatmul.mubr.f32.gmra.mrb[8].mxu0 %v1078_v59  ;;  %v1433_v59 = vld [vmem:[#allocation8 + $0x2c8] sm:$0xff] }
  0xd8   : > { %6186 = vmatpush3.bf16.msra.mxu0 %v6183_v52  ;;  %5258 = vmatprep.mubr.f32.mxu0 %v1241_v63  ;;  %v1246_v52 = vld [vmem:[#allocation2 + $0x2f] sm:$0xff]  ;;  %v6215_v63 = vpack.c.bf16 %v1433_v59, %v1432_v58  ;;  %v1605_v58 = vld [vmem:[#allocation8 + $0x348] sm:$0xff] }
  0xd9   : > { %6188 = vmatprep.subr.bf16.mxu0 %v6187_v61  ;;  %v1607_v59 = vld [vmem:[#allocation8 + $0x358] sm:$0xff] }
  0xdc   : > { %6190 = vmatpush3.bf16.msra.mxu0 %v6187_v61  ;;  %v1248_v61 = vld [vmem:[#allocation2 + $0x3f] sm:$0xff] }
  0xdd   : > { %6192 = vmatprep.subr.bf16.mxu0 %v6191_v5 }
  0xe0   : > { %6194 = vmatpush3.bf16.msra.mxu0 %v6191_v5  ;;  %v1435_v5 = vld [vmem:[#allocation8 + $0x2d8] sm:$0xff] }
  0xe1   : > { %6196 = vmatprep.subr.bf16.mxu0 %v6195_v10  ;;  %v6219_v8 = vpack.c.bf16 %v1435_v5, %v1434_v3  ;;  %v1769_v5 = vld [vmem:[#allocation8 + $0x388] sm:$0xff] }
  0xe4   : > { %6198 = vmatpush3.bf16.msra.mxu0 %v6195_v10  ;;  %v1436_v10 = vld [vmem:[#allocation8 + $0x2e0] sm:$0xff] }
  0xe5   : > { %6200 = vmatprep.subr.bf16.mxu0 %v6199_v15  ;;  %v6223_v13 = vpack.c.bf16 %v1437_v11, %v1436_v10  ;;  %v1586_v10 = vld [vmem:[#allocation2 + $0x11] sm:$0xff]  ;;  %v1587_v11 = vld [vmem:[#allocation2 + $0x19] sm:$0xff] }
  0xe7   : > { %5259 = vmatmul.mubr.f32.vlgmr.msra.gmra.mrb[0].mxu0 %v1242_v21  ;;  %v1596_v21 = vld [vmem:[#allocation8 + $0x300] sm:$0xff] }
  0xe8   : > { %6202 = vmatpush3.bf16.msra.mxu0 %v6199_v15  ;;  %5261 = vmatprep.mubr.f32.mxu0 %v1243_v25  ;;  %v1438_v15 = vld [vmem:[#allocation8 + $0x2f0] sm:$0xff] }
  0xe9   : > { %6204 = vmatprep.subr.bf16.mxu0 %v6203_v23  ;;  %v6227_v19 = vpack.c.bf16 %v1439_v18, %v1438_v15  ;;  %v1773_v15 = vld [vmem:[#allocation8 + $0x3a8] sm:$0xff]  ;;  %v1588_v18 = vld [vmem:[#allocation2 + $0x21] sm:$0xff] }
  0xeb   : > { %5262 = vmatmul.mubr.f32.gmra.mrb[2].mxu0 %v1244_v34  ;;  %v6235_v34 = vpack.c.bf16 %v1599_v32, %v1598_v27  ;;  %v1590_v27 = vld [vmem:[#allocation2 + $0x31] sm:$0xff] }
  0xec   : > { %6206 = vmatpush3.bf16.msra.mxu0 %v6203_v23  ;;  %5264 = vmatprep.mubr.f32.mxu0 %v1245_v45  ;;  %v1597_v23 = vld [vmem:[#allocation8 + $0x308] sm:$0xff] }
  0xed   : > { %6208 = vmatprep.subr.bf16.mxu0 %v6207_v39  ;;  %v6231_v25 = vpack.c.bf16 %v1597_v23, %v1596_v21  ;;  %v1601_v45 = vld [vmem:[#allocation8 + $0x328] sm:$0xff]  ;;  %v1589_v21 = vld [vmem:[#allocation2 + $0x29] sm:$0xff]  ;;  %v1774_v23 = vld [vmem:[#allocation8 + $0x3b0] sm:$0xff] }
  0xef   : > { %5265 = vmatmul.mubr.f32.gmra.mrb[4].mxu0 %v1246_v52  ;;  %v1603_v52 = vld [vmem:[#allocation8 + $0x338] sm:$0xff] }
  0xf0   : > { %6210 = vmatpush3.bf16.msra.mxu0 %v6207_v39  ;;  %5267 = vmatprep.mubr.f32.mxu0 %v1247_v56  ;;  %v1600_v39 = vld [vmem:[#allocation8 + $0x320] sm:$0xff] }
  0xf1   : > { %6212 = vmatprep.subr.bf16.mxu0 %v6211_v53  ;;  %v6239_v47 = vpack.c.bf16 %v1601_v45, %v1600_v39  ;;  %v1604_v56 = vld [vmem:[#allocation8 + $0x340] sm:$0xff]  ;;  %v1777_v45 = vld [vmem:[#allocation8 + $0x3c8] sm:$0xff] }
  0xf2   : > { %v1776_v39 = vld [vmem:[#allocation8 + $0x3c0] sm:$0xff] }
  0xf3   : > { %5268 = vmatmul.mubr.f32.gmra.mrb[6].mxu0 %v1248_v61  ;;  %v1608_v61 = vld [vmem:[#allocation8 + $0x360] sm:$0xff] }
  0xf4   : > { %6214 = vmatpush3.bf16.msra.mxu0 %v6211_v53  ;;  %5270 = vmatprep.mubr.f32.mxu0 %v1249_v1  ;;  %v6243_v53 = vpack.c.bf16 %v1603_v52, %v1602_v50  ;;  %v1611_v1 = vld [vmem:[#allocation8 + $0x378] sm:$0xff]  ;;  %v6279_v50 = vpack.c.bf16 %v1777_v45, %v1776_v39  ;;  %v1945_v39 = vld [vmem:[#allocation8 + $0x428] sm:$0xff] }
  0xf5   : > { %6216 = vmatprep.subr.bf16.mxu0 %v6215_v63  ;;  %v1593_v52 = vld [vmem:[#allocation2 + $0x49] sm:$0xff] }
  0xf6   : > { %v1760_v45 = vld [vmem:[#allocation2 + $0x22] sm:$0xff] }
  0xf7   : > { %5271 = vmatmul.mubr.f32.gmra.mrb[8].mxu0 %v1250_v6  ;;  %v1770_v6 = vld [vmem:[#allocation8 + $0x390] sm:$0xff] }
  0xf8   : > { %6218 = vmatpush3.bf16.msra.mxu0 %v6215_v63  ;;  %5305 = vmatprep.mubr.f32.mxu0 %v7087_v0  ;;  %v1609_v63 = vld [vmem:[#allocation8 + $0x368] sm:$0xff] }
  0xf9   : > { %6220 = vmatprep.subr.bf16.mxu0 %v6219_v8 }
  0xfc   : > { %6222 = vmatpush3.bf16.msra.mxu0 %v6219_v8  ;;  %v1771_v8 = vld [vmem:[#allocation8 + $0x398] sm:$0xff] }
  0xfd   : > { %6224 = vmatprep.subr.bf16.mxu0 %v6223_v13 }
 0x100   : > { %6226 = vmatpush3.bf16.msra.mxu0 %v6223_v13  ;;  %v1772_v13 = vld [vmem:[#allocation8 + $0x3a0] sm:$0xff] }
 0x101   : > { %6228 = vmatprep.subr.bf16.mxu0 %v6227_v19 }
 0x104   : > { %6230 = vmatpush3.bf16.msra.mxu0 %v6227_v19  ;;  %v6271_v19 = vpack.c.bf16 %v1773_v15, %v1772_v13  ;;  %v1940_v13 = vld [vmem:[#allocation8 + $0x400] sm:$0xff]  ;;  %v1941_v15 = vld [vmem:[#allocation8 + $0x408] sm:$0xff] }
 0x105   : > { %6232 = vmatprep.subr.bf16.mxu0 %v6231_v25 }
 0x107   : > { %5306 = vmatmul.mubr.f32.vlgmr.msra.gmra.mrb[0].mxu0 %v7239_v17  ;;  %v6247_v17 = vpack.c.bf16 %v1605_v58, %v1604_v56  ;;  %v1779_v56 = vld [vmem:[#allocation8 + $0x3d8] sm:$0xff]  ;;  %v1594_v58 = vld [vmem:[#allocation2 + $0x51] sm:$0xff] }
 0x108   : > { %6234 = vmatpush3.bf16.msra.mxu0 %v6231_v25  ;;  %5308 = vmatprep.mubr.f32.mxu0 %v7244_v24  ;;  %v1606_v24 = vld [vmem:[#allocation8 + $0x350] sm:$0xff]  ;;  %v1775_v25 = vld [vmem:[#allocation8 + $0x3b8] sm:$0xff] }
 0x109   : > { %6236 = vmatprep.subr.bf16.mxu0 %v6235_v34  ;;  %v6275_v32 = vpack.c.bf16 %v1775_v25, %v1774_v23  ;;  %v1943_v23 = vld [vmem:[#allocation8 + $0x418] sm:$0xff]  ;;  %v1758_v25 = vld [vmem:[#allocation2 + $0x12] sm:$0xff] }
 0x10b   : > { %5309 = vmatmul.mubr.f32.gmra.mrb[2].mxu0 %v7249_v28  ;;  %v6251_v28 = vpack.c.bf16 %v1607_v59, %v1606_v24  ;;  %v1757_v24 = vld [vmem:[#allocation2 + $0xa] sm:$0xff] }
 0x10c   : > { %6238 = vmatpush3.bf16.msra.mxu0 %v6235_v34  ;;  %5311 = vmatprep.mubr.f32.mxu0 %v7253_v33  ;;  %v1585_v33 = vld [vmem:[#allocation2 + $0x9] sm:$0xff]  ;;  %v1591_v34 = vld [vmem:[#allocation2 + $0x39] sm:$0xff] }
 0x10d   : > { %6240 = vmatprep.subr.bf16.mxu0 %v6239_v47  ;;  %v1780_v59 = vld [vmem:[#allocation8 + $0x3e0] sm:$0xff] }
 0x10f   : > { %5312 = vmatmul.mubr.f32.gmra.mrb[4].mxu0 %v7257_v37  ;;  %v6255_v37 = vpack.c.bf16 %v1609_v63, %v1608_v61  ;;  %v2608_v61 = vld [vmem:[#allocation10 + $0x8] sm:$0xff]  ;;  %v2609_v63 = vld [vmem:[#allocation10 + $0x10] sm:$0xff] }
 0x110   : > { %6242 = vmatpush3.bf16.msra.mxu0 %v6239_v47  ;;  %5314 = vmatprep.mubr.f32.mxu0 %v7261_v40  ;;  %v1610_v40 = vld [vmem:[#allocation8 + $0x370] sm:$0xff] }
 0x111   : > { %6244 = vmatprep.subr.bf16.mxu0 %v6243_v53  ;;  %v6259_v3 = vpack.c.bf16 %v1611_v1, %v1610_v40  ;;  %v1592_v47 = vld [vmem:[#allocation2 + $0x41] sm:$0xff] }
 0x112   : > { %v2610_v40 = vld [vmem:[#allocation10 + $0x18] sm:$0xff] }
 0x113   : > { %5315 = vmatmul.mubr.f32.gmra.mrb[6].mxu0 %v7264_v41  ;;  %v1768_v41 = vld [vmem:[#allocation8 + $0x380] sm:$0xff] }
 0x114   : > { %6246 = vmatpush3.bf16.msra.mxu0 %v6243_v53  ;;  %5317 = vmatprep.mubr.f32.mxu0 %v7266_v42  ;;  %v6263_v42 = vpack.c.bf16 %v1769_v5, %v1768_v41  ;;  %v1778_v53 = vld [vmem:[#allocation8 + $0x3d0] sm:$0xff]  ;;  %v2611_v41 = vld [vmem:[#allocation10 + $0x20] sm:$0xff]  ;;  %v2612_v5 = vld [vmem:[#allocation10 + $0x28] sm:$0xff] }
 0x115   : > { %6248 = vmatprep.subr.bf16.mxu0 %v6247_v17 }
 0x117   : > { %5318 = vmatmul.mubr.f32.gmra.mrb[8].mxu0 %v7087_v0  ;;  %v6267_v0 = vpack.c.bf16 %v1771_v8, %v1770_v6  ;;  %v1783_v6 = vld [vmem:[#allocation8 + $0x3f8] sm:$0xff]  ;;  %v6399_v8 = vpack.c.bf16 %v2612_v5, %v2611_v41  ;;  %v1953_v41 = vld [vmem:[#allocation8 + $0x468] sm:$0xff] }
 0x118   : > { %6250 = vmatpush3.bf16.msra.mxu0 %v6247_v17  ;;  %5352 = vmatprep.mubr.f32.mxu0 %v1585_v33  ;;  %v6283_v17 = vpack.c.bf16 %v1779_v56, %v1778_v53  ;;  %v2607_v33 = vld [vmem:[#allocation10] sm:$0xff]  ;;  %v1947_v53 = vld [vmem:[#allocation8 + $0x438] sm:$0xff] }
 0x119   : > { %6252 = vmatprep.subr.bf16.mxu0 %v6251_v28  ;;  %v1762_v56 = vld [vmem:[#allocation2 + $0x32] sm:$0xff] }
 0x11c   : > { %6254 = vmatpush3.bf16.msra.mxu0 %v6251_v28  ;;  %v1781_v28 = vld [vmem:[#allocation8 + $0x3e8] sm:$0xff] }
 0x11d   : > { %6256 = vmatprep.subr.bf16.mxu0 %v6255_v37  ;;  %v6287_v1 = vpack.c.bf16 %v1781_v28, %v1780_v59  ;;  %v1949_v59 = vld [vmem:[#allocation8 + $0x448] sm:$0xff]  ;;  %v1764_v28 = vld [vmem:[#allocation2 + $0x42] sm:$0xff] }
 0x120   : > { %6258 = vmatpush3.bf16.msra.mxu0 %v6255_v37  ;;  %v6391_v37 = vpack.c.bf16 %v2608_v61, %v2607_v33  ;;  %v1765_v61 = vld [vmem:[#allocation2 + $0x4a] sm:$0xff] }
 0x121   : > { %6260 = vmatprep.subr.bf16.mxu0 %v6259_v3 }
 0x122   : > { %6392 = vmatprep.subr.bf16.mxu1 %v6391_v37 }
 0x123   : > { %6394 = vmatpush3.bf16.msra.mxu1 %v6391_v37  ;;  %v1951_v37 = vld [vmem:[#allocation8 + $0x458] sm:$0xff] }
 0x124   : > { %6262 = vmatpush3.bf16.msra.mxu0 %v6259_v3  ;;  %v6395_v3 = vpack.c.bf16 %v2610_v40, %v2609_v63  ;;  %v1950_v63 = vld [vmem:[#allocation8 + $0x450] sm:$0xff]  ;;  %v1766_v40 = vld [vmem:[#allocation2 + $0x52] sm:$0xff] }
 0x125   : > { %6264 = vmatprep.subr.bf16.mxu0 %v6263_v42 }
 0x126   : > { %6396 = vmatprep.subr.bf16.mxu1 %v6395_v3 }
 0x127   : > { %5353 = vmatmul.mubr.f32.vlgmr.msra.gmra.mrb[0].mxu0 %v1586_v10  ;;  %6398 = vmatpush3.bf16.msra.mxu1 %v6395_v3  ;;  %v1952_v3 = vld [vmem:[#allocation8 + $0x460] sm:$0xff] }
 0x128   : > { %6266 = vmatpush3.bf16.msra.mxu0 %v6263_v42  ;;  %5355 = vmatprep.mubr.f32.mxu0 %v1587_v11  ;;  %v1782_v42 = vld [vmem:[#allocation8 + $0x3f0] sm:$0xff]  ;;  %v2614_v11 = vld [vmem:[#allocation10 + $0x38] sm:$0xff]  ;;  %v6319_v5 = vpack.c.bf16 %v1953_v41, %v1952_v3  ;;  %v2297_v3 = vld [vmem:[#allocation8 + $0x568] sm:$0xff] }
 0x129   : > { %6268 = vmatprep.subr.bf16.mxu0 %v6267_v0  ;;  %v6291_v10 = vpack.c.bf16 %v1783_v6, %v1782_v42  ;;  %6400 = vmatprep.subr.bf16.mxu1 %v6399_v8  ;;  %v1954_v42 = vld [vmem:[#allocation8 + $0x470] sm:$0xff]  ;;  %v1955_v6 = vld [vmem:[#allocation8 + $0x478] sm:$0xff] }
 0x12a   : > { %v2299_v41 = vld [vmem:[#allocation8 + $0x578] sm:$0xff] }
 0x12b   : > { %5356 = vmatmul.mubr.f32.gmra.mrb[2].mxu0 %v1588_v18  ;;  %6402 = vmatpush3.bf16.msra.mxu1 %v6399_v8  ;;  %v6323_v8 = vpack.c.bf16 %v1955_v6, %v1954_v42 }
 0x12c   : > { %6270 = vmatpush3.bf16.msra.mxu0 %v6267_v0  ;;  %5358 = vmatprep.mubr.f32.mxu0 %v1589_v21  ;;  %v2613_v0 = vld [vmem:[#allocation10 + $0x30] sm:$0xff] }
 0x12d   : > { %6272 = vmatprep.subr.bf16.mxu0 %v6271_v19  ;;  %v6403_v18 = vpack.c.bf16 %v2614_v11, %v2613_v0  ;;  %v1942_v21 = vld [vmem:[#allocation8 + $0x410] sm:$0xff]  ;;  %v2113_v0 = vld [vmem:[#allocation8 + $0x488] sm:$0xff] }
 0x12f   : > { %5359 = vmatmul.mubr.f32.gmra.mrb[4].mxu0 %v1590_v27  ;;  %6404 = vmatprep.subr.bf16.mxu1 %v6403_v18  ;;  %v6299_v27 = vpack.c.bf16 %v1943_v23, %v1942_v21  ;;  %v2117_v21 = vld [vmem:[#allocation8 + $0x4a8] sm:$0xff]  ;;  %v2118_v23 = vld [vmem:[#allocation8 + $0x4b0] sm:$0xff] }
 0x130   : > { %6274 = vmatpush3.bf16.msra.mxu0 %v6271_v19  ;;  %5361 = vmatprep.mubr.f32.mxu0 %v1591_v34  ;;  %v6295_v19 = vpack.c.bf16 %v1941_v15, %v1940_v13  ;;  %v1944_v34 = vld [vmem:[#allocation8 + $0x420] sm:$0xff]  ;;  %v2114_v13 = vld [vmem:[#allocation8 + $0x490] sm:$0xff]  ;;  %v2115_v15 = vld [vmem:[#allocation8 + $0x498] sm:$0xff] }
 0x131   : > { %6276 = vmatprep.subr.bf16.mxu0 %v6275_v32  ;;  %6406 = vmatpush3.bf16.msra.mxu1 %v6403_v18  ;;  %v6331_v18 = vpack.c.bf16 %v2115_v15, %v2114_v13  ;;  %v4480_v13 = vld [vmem:[%s7541_s3] ss:$0 sm:$0xff] }
 0x133   : > { %5362 = vmatmul.mubr.f32.gmra.mrb[6].mxu0 %v1592_v47  ;;  %v6303_v47 = vpack.c.bf16 %v1945_v39, %v1944_v34  ;;  %v2121_v34 = vld [vmem:[#allocation8 + $0x4c8] sm:$0xff]  ;;  %v2123_v39 = vld [vmem:[#allocation8 + $0x4d8] sm:$0xff] }
 0x134   : > { %6278 = vmatpush3.bf16.msra.mxu0 %v6275_v32  ;;  %5364 = vmatprep.mubr.f32.mxu0 %v1593_v52  ;;  %v1759_v32 = vld [vmem:[#allocation2 + $0x1a] sm:$0xff] }
 0x135   : > { %6280 = vmatprep.subr.bf16.mxu0 %v6279_v50  ;;  %v1946_v52 = vld [vmem:[#allocation8 + $0x430] sm:$0xff] }
 0x137   : > { %5365 = vmatmul.mubr.f32.gmra.mrb[8].mxu0 %v1594_v58  ;;  %v6307_v58 = vpack.c.bf16 %v1947_v53, %v1946_v52  ;;  %v2285_v53 = vld [vmem:[#allocation8 + $0x508] sm:$0xff] }
 0x138   : > { %6282 = vmatpush3.bf16.msra.mxu0 %v6279_v50  ;;  %5399 = vmatprep.mubr.f32.mxu0 %v1757_v24  ;;  %v1761_v50 = vld [vmem:[#allocation2 + $0x2a] sm:$0xff] }
 0x139   : > { %6284 = vmatprep.subr.bf16.mxu0 %v6283_v17  ;;  %v1948_v24 = vld [vmem:[#allocation8 + $0x440] sm:$0xff] }
 0x13a   : > { %v6311_v33 = vpack.c.bf16 %v1949_v59, %v1948_v24  ;;  %v2288_v24 = vld [vmem:[#allocation8 + $0x520] sm:$0xff]  ;;  %v2289_v59 = vld [vmem:[#allocation8 + $0x528] sm:$0xff] }
 0x13c   : > { %6286 = vmatpush3.bf16.msra.mxu0 %v6283_v17  ;;  %v1763_v17 = vld [vmem:[#allocation2 + $0x3a] sm:$0xff] }
 0x13d   : > { %6288 = vmatprep.subr.bf16.mxu0 %v6287_v1 }
 0x140   : > { %6290 = vmatpush3.bf16.msra.mxu0 %v6287_v1  ;;  %v6315_v1 = vpack.c.bf16 %v1951_v37, %v1950_v63  ;;  %v2292_v63 = vld [vmem:[#allocation8 + $0x540] sm:$0xff]  ;;  %v2293_v37 = vld [vmem:[#allocation8 + $0x548] sm:$0xff] }
 0x141   : > { %6292 = vmatprep.subr.bf16.mxu0 %v6291_v10 }
 0x144   : > { %6294 = vmatpush3.bf16.msra.mxu0 %v6291_v10  ;;  %v2112_v10 = vld [vmem:[#allocation8 + $0x480] sm:$0xff] }
 0x145   : > { %6296 = vmatprep.subr.bf16.mxu0 %v6295_v19  ;;  %v6327_v11 = vpack.c.bf16 %v2113_v0, %v2112_v10  ;;  %v2762_v10 = vld [vmem:[#allocation10 + $0x88] sm:$0xff] }
 0x147   : > { %5400 = vmatmul.mubr.f32.vlgmr.msra.gmra.mrb[0].mxu0 %v1758_v25  ;;  %v2119_v25 = vld [vmem:[#allocation8 + $0x4b8] sm:$0xff] }
 0x148   : > { %6298 = vmatpush3.bf16.msra.mxu0 %v6295_v19  ;;  %5402 = vmatprep.mubr.f32.mxu0 %v1759_v32  ;;  %v2116_v19 = vld [vmem:[#allocation8 + $0x4a0] sm:$0xff] }
 0x149   : > { %6300 = vmatprep.subr.bf16.mxu0 %v6299_v27  ;;  %v2120_v32 = vld [vmem:[#allocation8 + $0x4c0] sm:$0xff] }
 0x14b   : > { %5403 = vmatmul.mubr.f32.gmra.mrb[2].mxu0 %v1760_v45  ;;  %v2124_v45 = vld [vmem:[#allocation8 + $0x4e0] sm:$0xff] }
 0x14c   : > { %6302 = vmatpush3.bf16.msra.mxu0 %v6299_v27  ;;  %5405 = vmatprep.mubr.f32.mxu0 %v1761_v50  ;;  %v6339_v27 = vpack.c.bf16 %v2119_v25, %v2118_v23  ;;  %v2127_v50 = vld [vmem:[#allocation8 + $0x4f8] sm:$0xff] }
 0x14d   : > { %6304 = vmatprep.subr.bf16.mxu0 %v6303_v47 }
 0x14f   : > { %5406 = vmatmul.mubr.f32.gmra.mrb[4].mxu0 %v1762_v56  ;;  %v2286_v56 = vld [vmem:[#allocation8 + $0x510] sm:$0xff] }
 0x150   : > { %6306 = vmatpush3.bf16.msra.mxu0 %v6303_v47  ;;  %5408 = vmatprep.mubr.f32.mxu0 %v1763_v17  ;;  %v2125_v47 = vld [vmem:[#allocation8 + $0x4e8] sm:$0xff] }
 0x151   : > { %6308 = vmatprep.subr.bf16.mxu0 %v6307_v58 }
 0x153   : > { %5409 = vmatmul.mubr.f32.gmra.mrb[6].mxu0 %v1764_v28  ;;  %v2290_v28 = vld [vmem:[#allocation8 + $0x530] sm:$0xff] }
 0x154   : > { %6310 = vmatpush3.bf16.msra.mxu0 %v6307_v58  ;;  %5411 = vmatprep.mubr.f32.mxu0 %v1765_v61  ;;  %v2287_v58 = vld [vmem:[#allocation8 + $0x518] sm:$0xff] }
 0x155   : > { %6312 = vmatprep.subr.bf16.mxu0 %v6311_v33  ;;  %v6363_v17 = vpack.c.bf16 %v2287_v58, %v2286_v56 }
 0x157   : > { %5412 = vmatmul.mubr.f32.gmra.mrb[8].mxu0 %v1766_v40  ;;  %v2295_v40 = vld [vmem:[#allocation8 + $0x558] sm:$0xff] }
 0x158   : > { %6314 = vmatpush3.bf16.msra.mxu0 %v6311_v33  ;;  %5446 = vmatprep.mubr.f32.mxu0 %v7270_v55  ;;  %v6335_v55 = vpack.c.bf16 %v2117_v21, %v2116_v19  ;;  %v2291_v33 = vld [vmem:[#allocation8 + $0x538] sm:$0xff]  ;;  %v509_v19 = vld [vmem:[#allocation2 + $0x18] sm:$0xff] }
 0x159   : > { %6316 = vmatprep.subr.bf16.mxu0 %v6315_v1  ;;  %v6371_v61 = vpack.c.bf16 %v2291_v33, %v2290_v28  ;;  %v515_v33 = vld [vmem:[#allocation2 + $0x48] sm:$0xff] }
 0x15c   : > { %6318 = vmatpush3.bf16.msra.mxu0 %v6315_v1  ;;  %v2296_v1 = vld [vmem:[#allocation8 + $0x560] sm:$0xff] }
 0x15d   : > { %6320 = vmatprep.subr.bf16.mxu0 %v6319_v5 }
 0x160   : > { %6322 = vmatpush3.bf16.msra.mxu0 %v6319_v5 }
 0x161   : > { %6324 = vmatprep.subr.bf16.mxu0 %v6323_v8 }
 0x164   : > { %6326 = vmatpush3.bf16.msra.mxu0 %v6323_v8  ;;  %v2761_v8 = vld [vmem:[#allocation10 + $0x80] sm:$0xff] }
 0x165   : > { %6328 = vmatprep.subr.bf16.mxu0 %v6327_v11  ;;  %v7388_v0 = vpack.c.bf16 %v2762_v10, %v2761_v8 }
 0x167   : > { %5447 = vmatmul.mubr.f32.vlgmr.msra.gmra.mrb[0].mxu0 %v7272_v57  ;;  %v6343_v57 = vpack.c.bf16 %v2121_v34, %v2120_v32  ;;  %v512_v32 = vld [vmem:[#allocation2 + $0x30] sm:$0xff] }
 0x168   : > { %6330 = vmatpush3.bf16.msra.mxu0 %v6327_v11  ;;  %5449 = vmatprep.mubr.f32.mxu0 %v7276_v60  ;;  %v2122_v60 = vld [vmem:[#allocation8 + $0x4d0] sm:$0xff]  ;;  %v508_v11 = vld [vmem:[#allocation2 + $0x10] sm:$0xff] }
 0x169   : > { %6332 = vmatprep.subr.bf16.mxu0 %v6331_v18  ;;  %v525_v15 = vadd.f32 %v4480_v13, %v508_v11  ;;  %v2768_v11 = vld [vmem:[#allocation10 + $0xb8] sm:$0xff] }
 0x16b   : > { %5450 = vmatmul.mubr.f32.gmra.mrb[2].mxu0 %v7278_v62  ;;  %v1938_v62 = vld [vmem:[#allocation2 + $0x53] sm:$0xff] }
 0x16c   : > { %6334 = vmatpush3.bf16.msra.mxu0 %v6331_v18  ;;  %5452 = vmatprep.mubr.f32.mxu0 %v7282_v2  ;;  %v6347_v2 = vpack.c.bf16 %v2123_v39, %v2122_v60  ;;  %v510_v18 = vld [vmem:[#allocation2 + $0x20] sm:$0xff] }
 0x16d   : > { %6336 = vmatprep.subr.bf16.mxu0 %v6335_v55  ;;  %v527_v25 = vadd.f32 %v4480_v13, %v510_v18 }
 0x16f   : > { %5453 = vmatmul.mubr.f32.gmra.mrb[4].mxu0 %v7284_v4  ;;  %v6351_v4 = vpack.c.bf16 %v2125_v47, %v2124_v45  ;;  %v529_v45 = vadd.f32 %v4480_v13, %v512_v32 }
 0x170   : > { %6338 = vmatpush3.bf16.msra.mxu0 %v6335_v55  ;;  %5455 = vmatprep.mubr.f32.mxu0 %v7288_v7  ;;  %v2126_v7 = vld [vmem:[#allocation8 + $0x4f0] sm:$0xff] }
 0x171   : > { %6340 = vmatprep.subr.bf16.mxu0 %v6339_v27  ;;  %v6355_v52 = vpack.c.bf16 %v2127_v50, %v2126_v7  ;;  %v514_v7 = vld [vmem:[#allocation2 + $0x40] sm:$0xff] }
 0x173   : > { %5456 = vmatmul.mubr.f32.gmra.mrb[6].mxu0 %v7290_v9  ;;  %v2284_v9 = vld [vmem:[#allocation8 + $0x500] sm:$0xff] }
 0x174   : > { %6342 = vmatpush3.bf16.msra.mxu0 %v6339_v27  ;;  %5458 = vmatprep.mubr.f32.mxu0 %v7294_v12  ;;  %v6359_v12 = vpack.c.bf16 %v2285_v53, %v2284_v9  ;;  %v526_v27 = vadd.f32 %v4480_v13, %v509_v19  ;;  %v2770_v19 = vld [vmem:[#allocation10 + $0xc8] sm:$0xff] }
 0x175   : > { %6344 = vmatprep.subr.bf16.mxu0 %v6343_v57 }
 0x177   : > { %5459 = vmatmul.mubr.f32.gmra.mrb[8].mxu0 %v1938_v62 }
 0x178   : > { %6346 = vmatpush3.bf16.msra.mxu0 %v6343_v57  ;;  %5493 = vmatprep.mubr.f32.mxu0 %v7297_v29  ;;  %v6367_v29 = vpack.c.bf16 %v2289_v59, %v2288_v24  ;;  %v511_v57 = vld [vmem:[#allocation2 + $0x28] sm:$0xff] }
 0x179   : > { %6348 = vmatprep.subr.bf16.mxu0 %v6347_v2 }
 0x17c   : > { %6350 = vmatpush3.bf16.msra.mxu0 %v6347_v2 }
 0x17d   : > { %6352 = vmatprep.subr.bf16.mxu0 %v6351_v4 }
 0x180   : > { %6354 = vmatpush3.bf16.msra.mxu0 %v6351_v4  ;;  %v528_v4 = vadd.f32 %v4480_v13, %v511_v57  ;;  %v2774_v57 = vld [vmem:[#allocation10 + $0xe8] sm:$0xff] }
 0x181   : > { %6356 = vmatprep.subr.bf16.mxu0 %v6355_v52 }
 0x184   : > { %6358 = vmatpush3.bf16.msra.mxu0 %v6355_v52  ;;  %v513_v52 = vld [vmem:[#allocation2 + $0x38] sm:$0xff] }
 0x185   : > { %6360 = vmatprep.subr.bf16.mxu0 %v6359_v12 }
 0x187   : > { %5494 = vmatmul.mubr.f32.vlgmr.msra.gmra.mrb[0].mxu0 %v7299_v31  ;;  %v6375_v31 = vpack.c.bf16 %v2293_v37, %v2292_v63 }
 0x188   : > { %6362 = vmatpush3.bf16.msra.mxu0 %v6359_v12  ;;  %5496 = vmatprep.mubr.f32.mxu0 %v7303_v35  ;;  %v2294_v35 = vld [vmem:[#allocation8 + $0x550] sm:$0xff] }
 0x189   : > { %6364 = vmatprep.subr.bf16.mxu0 %v6363_v17 }
 0x18b   : > { %5497 = vmatmul.mubr.f32.gmra.mrb[2].mxu0 %v7305_v38  ;;  %v2110_v38 = vld [vmem:[#allocation2 + $0x54] sm:$0xff] }
 0x18c   : > { %6366 = vmatpush3.bf16.msra.mxu0 %v6363_v17  ;;  %5499 = vmatprep.mubr.f32.mxu0 %v7309_v44  ;;  %v6379_v44 = vpack.c.bf16 %v2295_v40, %v2294_v35  ;;  %v531_v17 = vadd.f32 %v4480_v13, %v514_v7 }
 0x18d   : > { %6368 = vmatprep.subr.bf16.mxu0 %v6367_v29 }
 0x18f   : > { %5500 = vmatmul.mubr.f32.gmra.mrb[4].mxu0 %v7311_v46  ;;  %v6383_v46 = vpack.c.bf16 %v2297_v3, %v2296_v1  ;;  %v532_v1 = vadd.f32 %v4480_v13, %v515_v33  ;;  %v2763_v3 = vld [vmem:[#allocation10 + $0x90] sm:$0xff]  ;;  %v2922_v33 = vld [vmem:[#allocation10 + $0x138] sm:$0xff] }
 0x190   : > { %6370 = vmatpush3.bf16.msra.mxu0 %v6367_v29  ;;  %5502 = vmatprep.mubr.f32.mxu0 %v7315_v49  ;;  %v2298_v49 = vld [vmem:[#allocation8 + $0x570] sm:$0xff]  ;;  %v530_v29 = vadd.f32 %v4480_v13, %v513_v52  ;;  %v2769_v13 = vld [vmem:[#allocation10 + $0xc0] sm:$0xff]  ;;  %v2918_v52 = vld [vmem:[#allocation10 + $0x118] sm:$0xff] }
 0x191   : > { %6372 = vmatprep.subr.bf16.mxu0 %v6371_v61  ;;  %v6387_v5 = vpack.c.bf16 %v2299_v41, %v2298_v49 }
 0x193   : > { %5503 = vmatmul.mubr.f32.gmra.mrb[6].mxu0 %v7317_v51  ;;  %v2282_v51 = vld [vmem:[#allocation2 + $0x55] sm:$0xff] }
 0x194   : > { %6374 = vmatpush3.bf16.msra.mxu0 %v6371_v61  ;;  %5505 = vmatprep.mubr.f32.mxu0 %v7321_v54  ;;  %v2615_v54 = vld [vmem:[#allocation10 + $0x40] sm:$0xff] }
 0x195   : > { %6376 = vmatprep.subr.bf16.mxu0 %v6375_v31 }
 0x197   : > { %5506 = vmatmul.mubr.f32.gmra.mrb[8].mxu0 %v2110_v38 }
 0x198   : > { %6378 = vmatpush3.bf16.msra.mxu0 %v6375_v31  ;;  %5540 = vmatprep.mubr.f32.mxu0 %v7324_v14  ;;  %v2616_v14 = vld [vmem:[#allocation10 + $0x48] sm:$0xff] }
 0x199   : > { %6380 = vmatprep.subr.bf16.mxu0 %v6379_v44  ;;  %v6407_v42 = vpack.c.bf16 %v2616_v14, %v2615_v54 }
 0x19b   : > { %6408 = vmatprep.subr.bf16.mxu1 %v6407_v42 }
 0x19c   : > { %6382 = vmatpush3.bf16.msra.mxu0 %v6379_v44  ;;  %6410 = vmatpush3.bf16.msra.mxu1 %v6407_v42  ;;  %v2765_v42 = vld [vmem:[#allocation10 + $0xa0] sm:$0xff] }
 0x19d   : > { %6384 = vmatprep.subr.bf16.mxu0 %v6383_v46 }
 0x1a0   : > { %6386 = vmatpush3.bf16.msra.mxu0 %v6383_v46  ;;  %v2764_v46 = vld [vmem:[#allocation10 + $0x98] sm:$0xff] }
 0x1a1   : > { %6388 = vmatprep.subr.bf16.mxu0 %v6387_v5  ;;  %v6427_v14 = vpack.c.bf16 %v2764_v46, %v2763_v3  ;;  %v2925_v46 = vld [vmem:[#allocation10 + $0x150] sm:$0xff] }
 0x1a4   : > { %6390 = vmatpush3.bf16.msra.mxu0 %v6387_v5 }
 0x1a7   : > { %5541 = vmatmul.mubr.f32.vlgmr.msra.gmra.mrb[0].mxu0 %v7326_v16  ;;  %v2617_v16 = vld [vmem:[#allocation10 + $0x50] sm:$0xff] }
 0x1a8   : > { %5543 = vmatprep.mubr.f32.mxu0 %v7330_v20  ;;  %v2618_v20 = vld [vmem:[#allocation10 + $0x58] sm:$0xff] }
 0x1ab   : > { %5544 = vmatmul.mubr.f32.gmra.mrb[2].mxu0 %v7332_v22  ;;  %v6411_v22 = vpack.c.bf16 %v2618_v20, %v2617_v16 }
 0x1ac   : > { %5546 = vmatprep.mubr.f32.mxu0 %v7336_v26  ;;  %v2619_v26 = vld [vmem:[#allocation10 + $0x60] sm:$0xff] }
 0x1ad   : > { %6412 = vmatprep.subr.bf16.mxu1 %v6411_v22 }
 0x1ae   : > { %6414 = vmatpush3.bf16.msra.mxu1 %v6411_v22 }
 0x1af   : > { %5547 = vmatmul.mubr.f32.gmra.mrb[4].mxu0 %v7338_v30  ;;  %v2620_v30 = vld [vmem:[#allocation10 + $0x68] sm:$0xff] }
 0x1b0   : > { %5549 = vmatprep.mubr.f32.mxu0 %v7342_v36  ;;  %v6415_v6 = vpack.c.bf16 %v2620_v30, %v2619_v26  ;;  %v2621_v36 = vld [vmem:[#allocation10 + $0x70] sm:$0xff]  ;;  %v2766_v30 = vld [vmem:[#allocation10 + $0xa8] sm:$0xff] }
 0x1b2   : > { %6416 = vmatprep.subr.bf16.mxu1 %v6415_v6 }
 0x1b3   : > { %5550 = vmatmul.mubr.f32.gmra.mrb[6].mxu0 %v7344_v43  ;;  %6418 = vmatpush3.bf16.msra.mxu1 %v6415_v6  ;;  %v2622_v43 = vld [vmem:[#allocation10 + $0x78] sm:$0xff] }
 0x1b4   : > { %5552 = vmatprep.mubr.f32.mxu0 %v7348_v48  ;;  %v6419_v48 = vpack.c.bf16 %v2622_v43, %v2621_v36  ;;  %v6431_v36 = vpack.c.bf16 %v2766_v30, %v2765_v42  ;;  %v2767_v43 = vld [vmem:[#allocation10 + $0xb0] sm:$0xff]  ;;  %v2930_v30 = vld [vmem:[#allocation10 + $0x178] sm:$0xff] }
 0x1b6   : > { %6420 = vmatprep.subr.bf16.mxu1 %v6419_v48 }
 0x1b7   : > { %5553 = vmatmul.mubr.f32.gmra.mrb[8].mxu0 %v2282_v51  ;;  %6422 = vmatpush3.bf16.msra.mxu1 %v6419_v48 }
 0x1b8   : > { %6424 = vmatprep.subr.bf16.mxu1 %v7388_v0 }
 0x27a   : > { %v5542_v21 = vpop.f32.mrb[0].mxu0 }
 0x27b   : > { %v6743_v55 = vadd.f32 %v5542_v21, %v525_v15  ;;  %v2366_v23 = vpop.f32.mrb[1].mxu0  ;;  %v6439_v21 = vpack.c.bf16 %v2770_v19, %v2769_v13  ;;  %v3072_v13 = vld [vmem:[#allocation10 + $0x198] sm:$0xff] }
 0x27c   : > { %v2771_v23 = vld [vmem:[#allocation10 + $0xd0] sm:$0xff] }
 0x27d   : > { %vm2446_vm8 = vcmp.ge.f32.partialorder %v6743_v55, 0.0  ;;  %v2456_v34 = vmul.f32 0.1, %v6743_v55 }
 0x27e   : > { %v5545_v60 = vpop.f32.mrb[2].mxu0 }
 0x27f   : > { %v7394_v39 = vsel %vm2446_vm8, %v6743_v55, %v2456_v34  ;;  %v6744_v62 = vadd.f32 %v5545_v60, %v527_v25  ;;  %v2376_v2 = vpop.f32.mrb[3].mxu0  ;;  %v2772_v25 = vld [vmem:[#allocation10 + $0xd8] sm:$0xff]  ;;  %v2773_v34 = vld [vmem:[#allocation10 + $0xe0] sm:$0xff] }
 0x280   : > { %2559 = vst [vmem:[#allocation3 + $0x8] sm:$0xff] %v7394_v39  ;;  %v6745_v47 = vadd.f32 %v2376_v2, %v526_v27  ;;  %v6443_v32 = vpack.c.bf16 %v2772_v25, %v2771_v23  ;;  %v6447_v60 = vpack.c.bf16 %v2774_v57, %v2773_v34  ;;  %v2776_v2 = vld [vmem:[#allocation10 + $0xf8] sm:$0xff]  ;;  %v3073_v23 = vld [vmem:[#allocation10 + $0x1a0] sm:$0xff]  ;;  %v3074_v25 = vld [vmem:[#allocation10 + $0x1a8] sm:$0xff] }
 0x281   : > { %vm2448_vm9 = vcmp.ge.f32.partialorder %v6744_v62, 0.0  ;;  %v2458_v50 = vmul.f32 0.1, %v6744_v62  ;;  %v3075_v57 = vld [vmem:[#allocation10 + $0x1b0] sm:$0xff] }
 0x282   : > { %vm2447_vm10 = vcmp.ge.f32.partialorder %v6745_v47, 0.0  ;;  %v2457_v9 = vmul.f32 0.1, %v6745_v47  ;;  %v5548_v53 = vpop.f32.mrb[4].mxu0 }
 0x283   : > { %v7397_v12 = vsel %vm2448_vm9, %v6744_v62, %v2458_v50  ;;  %v6746_v56 = vadd.f32 %v5548_v53, %v529_v45  ;;  %v2386_v58 = vpop.f32.mrb[5].mxu0  ;;  %v2775_v62 = vld [vmem:[#allocation10 + $0xf0] sm:$0xff] }
 0x284   : > { %2561 = vst [vmem:[#allocation3 + $0x18] sm:$0xff] %v7397_v12  ;;  %v7400_v24 = vsel %vm2447_vm10, %v6745_v47, %v2457_v9  ;;  %v6747_v59 = vadd.f32 %v2386_v58, %v528_v4  ;;  %v6451_v45 = vpack.c.bf16 %v2776_v2, %v2775_v62  ;;  %v2915_v47 = vld [vmem:[#allocation10 + $0x100] sm:$0xff]  ;;  %v2916_v4 = vld [vmem:[#allocation10 + $0x108] sm:$0xff]  ;;  %v2917_v50 = vld [vmem:[#allocation10 + $0x110] sm:$0xff] }
 0x285   : > { %2560 = vst [vmem:[#allocation3 + $0x10] sm:$0xff] %v7400_v24  ;;  %vm2450_vm11 = vcmp.ge.f32.partialorder %v6746_v56, 0.0  ;;  %v2460_v28 = vmul.f32 0.1, %v6746_v56  ;;  %v6455_v7 = vpack.c.bf16 %v2916_v4, %v2915_v47  ;;  %v6459_v9 = vpack.c.bf16 %v2918_v52, %v2917_v50  ;;  %v2920_v58 = vld [vmem:[#allocation10 + $0x128] sm:$0xff]  ;;  %v3077_v47 = vld [vmem:[#allocation10 + $0x1c0] sm:$0xff] }
 0x286   : > { %vm2449_vm12 = vcmp.ge.f32.partialorder %v6747_v59, 0.0  ;;  %v2459_v61 = vmul.f32 0.1, %v6747_v59  ;;  %v5551_v63 = vpop.f32.mrb[6].mxu0  ;;  %v3078_v4 = vld [vmem:[#allocation10 + $0x1c8] sm:$0xff] }
 0x287   : > { %v7403_v37 = vsel %vm2450_vm11, %v6746_v56, %v2460_v28  ;;  %v6748_v31 = vadd.f32 %v5551_v63, %v531_v17  ;;  %v2396_v35 = vpop.f32.mrb[7].mxu0  ;;  %v2599_v40 = vld [vmem:[#allocation3 + $0x3] sm:$0xff]  ;;  %v2919_v56 = vld [vmem:[#allocation10 + $0x120] sm:$0xff]  ;;  %v6503_v50 = vpack.c.bf16 %v3078_v4, %v3077_v47 }
 0x288   : > { %2563 = vst [vmem:[#allocation3 + $0x28] sm:$0xff] %v7403_v37  ;;  %v7406_v38 = vsel %vm2449_vm12, %v6747_v59, %v2459_v61  ;;  %v6749_v44 = vadd.f32 %v2396_v35, %v530_v29  ;;  %5587 = vmatprep.mubr.f32.mxu1 %v2599_v40  ;;  %v2752_v27 = vld [vmem:[#allocation3 + $0x4] sm:$0xff]  ;;  %v6463_v59 = vpack.c.bf16 %v2920_v58, %v2919_v56  ;;  %v2923_v35 = vld [vmem:[#allocation10 + $0x140] sm:$0xff]  ;;  %v2924_v40 = vld [vmem:[#allocation10 + $0x148] sm:$0xff] }
 0x289   : > { %2562 = vst [vmem:[#allocation3 + $0x20] sm:$0xff] %v7406_v38  ;;  %vm2452_vm13 = vcmp.ge.f32.partialorder %v6748_v31, 0.0  ;;  %v2462_v49 = vmul.f32 0.1, %v6748_v31  ;;  %v2921_v28 = vld [vmem:[#allocation10 + $0x130] sm:$0xff]  ;;  %v3080_v56 = vld [vmem:[#allocation10 + $0x1d8] sm:$0xff] }
 0x28a   : > { %vm2451_vm14 = vcmp.ge.f32.partialorder %v6749_v44, 0.0  ;;  %v2461_v41 = vmul.f32 0.1, %v6749_v44  ;;  %v5554_v5 = vpop.f32.mrb[8].mxu0  ;;  %v6467_v63 = vpack.c.bf16 %v2922_v33, %v2921_v28  ;;  %v3060_v58 = vld [vmem:[#allocation3 + $0x6] sm:$0xff]  ;;  %v3081_v28 = vld [vmem:[#allocation10 + $0x1e0] sm:$0xff] }
 0x28b   : > { %v7409_v51 = vsel %vm2452_vm13, %v6748_v31, %v2462_v49  ;;  %v2406_v54 = vpop.f32.mrb[9].mxu0  ;;  %v2926_v49 = vld [vmem:[#allocation10 + $0x158] sm:$0xff]  ;;  %v3082_v33 = vld [vmem:[#allocation10 + $0x1e8] sm:$0xff]  ;;  %v3233_v47 = vld [vmem:[#allocation10 + $0x250] sm:$0xff] }
 0x28c   : > { %2565 = vst [vmem:[#allocation3 + $0x38] sm:$0xff] %v7409_v51  ;;  %v7412_v16 = vsel %vm2451_vm14, %v6749_v44, %v2461_v41  ;;  %v6750_v20 = vadd.f32 %v2406_v54, %v532_v1  ;;  %v7414_v22 = vld [vmem:[#allocation3 + $0xb] sm:$0xff]  ;;  %v7416_v26 = vld [vmem:[#allocation3 + $0x13] sm:$0xff]  ;;  %v6471_v1 = vpack.c.bf16 %v2924_v40, %v2923_v35  ;;  %v6475_v5 = vpack.c.bf16 %v2926_v49, %v2925_v46  ;;  %v3083_v35 = vld [vmem:[#allocation10 + $0x1f0] sm:$0xff] }
 0x28d   : > { %2564 = vst [vmem:[#allocation3 + $0x30] sm:$0xff] %v7412_v16  ;;  %5588 = vmatmul.mubr.f32.vlgmr.msra.gmra.mrb[0].mxu1 %v7414_v22  ;;  %v7440_v53 = vld [vmem:[#allocation3 + $0xc] sm:$0xff]  ;;  %v7443_v17 = vld [vmem:[#allocation3 + $0x14] sm:$0xff] }
 0x28e   : > { %vm2453_vm15 = vcmp.ge.f32.partialorder %v6750_v20, 0.0  ;;  %v2463_v6 = vmul.f32 0.1, %v6750_v20  ;;  %6426 = vmatpush3.bf16.msra.mxu1 %v7388_v0  ;;  %5590 = vmatprep.mubr.f32.mxu1 %v7416_v26  ;;  %v6435_v0 = vpack.c.bf16 %v2768_v11, %v2767_v43  ;;  %v2906_v41 = vld [vmem:[#allocation3 + $0x5] sm:$0xff]  ;;  %v2927_v54 = vld [vmem:[#allocation10 + $0x160] sm:$0xff]  ;;  %v3070_v43 = vld [vmem:[#allocation10 + $0x188] sm:$0xff] }
 0x28f   : > { %6428 = vmatprep.subr.bf16.mxu1 %v6427_v14  ;;  %v3084_v40 = vld [vmem:[#allocation10 + $0x1f8] sm:$0xff]  ;;  %v3223_v46 = vld [vmem:[#allocation10 + $0x200] sm:$0xff]  ;;  %v3224_v49 = vld [vmem:[#allocation10 + $0x208] sm:$0xff] }
 0x290   : > { %v7422_v48 = vsel %vm2453_vm15, %v6750_v20, %v2463_v6  ;;  %v7424_v8 = vld [vmem:[#allocation3 + $0x1b] sm:$0xff]  ;;  %v7426_v10 = vld [vmem:[#allocation3 + $0x23] sm:$0xff] }
 0x291   : > { %2566 = vst [vmem:[#allocation3 + $0x40] sm:$0xff] %v7422_v48  ;;  %5591 = vmatmul.mubr.f32.gmra.mrb[2].mxu1 %v7424_v8  ;;  %v7446_v29 = vld [vmem:[#allocation3 + $0x1c] sm:$0xff]  ;;  %v7449_v61 = vld [vmem:[#allocation3 + $0x24] sm:$0xff] }
 0x292   : > { %6430 = vmatpush3.bf16.msra.mxu1 %v6427_v14  ;;  %5593 = vmatprep.mubr.f32.mxu1 %v7426_v10  ;;  %v2928_v14 = vld [vmem:[#allocation10 + $0x168] sm:$0xff]  ;;  %v2929_v20 = vld [vmem:[#allocation10 + $0x170] sm:$0xff]  ;;  %v3234_v4 = vld [vmem:[#allocation10 + $0x258] sm:$0xff] }
 0x293   : > { %6432 = vmatprep.subr.bf16.mxu1 %v6431_v36  ;;  %v6479_v42 = vpack.c.bf16 %v2928_v14, %v2927_v54  ;;  %v6483_v6 = vpack.c.bf16 %v2930_v30, %v2929_v20  ;;  %v7467_v34 = vld [vmem:[#allocation3 + $0x1d] sm:$0xff]  ;;  %v7470_v62 = vld [vmem:[#allocation3 + $0x25] sm:$0xff]  ;;  %v3227_v20 = vld [vmem:[#allocation10 + $0x220] sm:$0xff] }
 0x294   : > { %v7431_v15 = vld [vmem:[#allocation3 + $0x2b] sm:$0xff]  ;;  %v7433_v18 = vld [vmem:[#allocation3 + $0x33] sm:$0xff] }
 0x295   : > { %5594 = vmatmul.mubr.f32.gmra.mrb[4].mxu1 %v7431_v15  ;;  %v7452_v31 = vld [vmem:[#allocation3 + $0x2c] sm:$0xff]  ;;  %v7455_v44 = vld [vmem:[#allocation3 + $0x34] sm:$0xff] }
 0x296   : > { %6434 = vmatpush3.bf16.msra.mxu1 %v6431_v36  ;;  %5596 = vmatprep.mubr.f32.mxu1 %v7433_v18  ;;  %v3069_v36 = vld [vmem:[#allocation10 + $0x180] sm:$0xff]  ;;  %v3226_v54 = vld [vmem:[#allocation10 + $0x218] sm:$0xff]  ;;  %v3228_v30 = vld [vmem:[#allocation10 + $0x228] sm:$0xff] }
 0x297   : > { %6436 = vmatprep.subr.bf16.mxu1 %v6435_v0  ;;  %v6487_v11 = vpack.c.bf16 %v3070_v43, %v3069_v36  ;;  %v6527_v36 = vpack.c.bf16 %v3228_v30, %v3227_v20  ;;  %v3063_v43 = vld [vmem:[#allocation3 + $0x1e] sm:$0xff] }
 0x298   : > { %v7437_v55 = vld [vmem:[#allocation3 + $0x3b] sm:$0xff] }
 0x299   : > { %5597 = vmatmul.mubr.f32.gmra.mrb[6].mxu1 %v7437_v55  ;;  %v7458_v3 = vld [vmem:[#allocation3 + $0x3c] sm:$0xff] }
 0x29a   : > { %6438 = vmatpush3.bf16.msra.mxu1 %v6435_v0  ;;  %5631 = vmatprep.mubr.f32.mxu1 %v2752_v27  ;;  %v3071_v0 = vld [vmem:[#allocation10 + $0x190] sm:$0xff]  ;;  %v7464_v27 = vld [vmem:[#allocation3 + $0x15] sm:$0xff] }
 0x29b   : > { %6440 = vmatprep.subr.bf16.mxu1 %v6439_v21  ;;  %v6491_v19 = vpack.c.bf16 %v3072_v13, %v3071_v0  ;;  %v7479_v52 = vld [vmem:[#allocation3 + $0x3d] sm:$0xff]  ;;  %v3230_v0 = vld [vmem:[#allocation10 + $0x238] sm:$0xff] }
 0x29c   : > { %v3064_v13 = vld [vmem:[#allocation3 + $0x26] sm:$0xff] }
 0x29d   : > { %v3217_v30 = vld [vmem:[#allocation3 + $0x1f] sm:$0xff] }
 0x29e   : > { %6442 = vmatpush3.bf16.msra.mxu1 %v6439_v21  ;;  %v7461_v21 = vld [vmem:[#allocation3 + $0xd] sm:$0xff] }
 0x29f   : > { %6444 = vmatprep.subr.bf16.mxu1 %v6443_v32 }
 0x2a2   : > { %6446 = vmatpush3.bf16.msra.mxu1 %v6443_v32  ;;  %v6495_v32 = vpack.c.bf16 %v3074_v25, %v3073_v23  ;;  %v3065_v23 = vld [vmem:[#allocation3 + $0x2e] sm:$0xff] }
 0x2a3   : > { %6448 = vmatprep.subr.bf16.mxu1 %v6447_v60  ;;  %v3231_v25 = vld [vmem:[#allocation10 + $0x240] sm:$0xff] }
 0x2a6   : > { %6450 = vmatpush3.bf16.msra.mxu1 %v6447_v60  ;;  %v3076_v60 = vld [vmem:[#allocation10 + $0x1b8] sm:$0xff] }
 0x2a7   : > { %6452 = vmatprep.subr.bf16.mxu1 %v6451_v45  ;;  %v6499_v2 = vpack.c.bf16 %v3076_v60, %v3075_v57  ;;  %v3066_v57 = vld [vmem:[#allocation3 + $0x36] sm:$0xff] }
 0x2aa   : > { %6454 = vmatpush3.bf16.msra.mxu1 %v6451_v45  ;;  %v7473_v45 = vld [vmem:[#allocation3 + $0x2d] sm:$0xff] }
 0x2ab   : > { %6456 = vmatprep.subr.bf16.mxu1 %v6455_v7 }
 0x2ad   : > { %5632 = vmatmul.mubr.f32.vlgmr.msra.gmra.mrb[0].mxu1 %v7440_v53 }
 0x2ae   : > { %5634 = vmatprep.mubr.f32.mxu1 %v7443_v17  ;;  %6458 = vmatpush3.bf16.msra.mxu1 %v6455_v7  ;;  %v7476_v7 = vld [vmem:[#allocation3 + $0x35] sm:$0xff] }
 0x2af   : > { %6460 = vmatprep.subr.bf16.mxu1 %v6459_v9 }
 0x2b1   : > { %5635 = vmatmul.mubr.f32.gmra.mrb[2].mxu1 %v7446_v29 }
 0x2b2   : > { %5637 = vmatprep.mubr.f32.mxu1 %v7449_v61  ;;  %6462 = vmatpush3.bf16.msra.mxu1 %v6459_v9  ;;  %v3079_v9 = vld [vmem:[#allocation10 + $0x1d0] sm:$0xff] }
 0x2b3   : > { %6464 = vmatprep.subr.bf16.mxu1 %v6463_v59 }
 0x2b5   : > { %5638 = vmatmul.mubr.f32.gmra.mrb[4].mxu1 %v7452_v31 }
 0x2b6   : > { %5640 = vmatprep.mubr.f32.mxu1 %v7455_v44  ;;  %6466 = vmatpush3.bf16.msra.mxu1 %v6463_v59  ;;  %v6507_v59 = vpack.c.bf16 %v3080_v56, %v3079_v9  ;;  %v6539_v9 = vpack.c.bf16 %v3234_v4, %v3233_v47  ;;  %v3235_v56 = vld [vmem:[#allocation10 + $0x260] sm:$0xff]  ;;  %v3390_v4 = vld [vmem:[#allocation10 + $0x2e8] sm:$0xff] }
 0x2b7   : > { %6468 = vmatprep.subr.bf16.mxu1 %v6467_v63  ;;  %v3389_v47 = vld [vmem:[#allocation10 + $0x2e0] sm:$0xff] }
 0x2b9   : > { %5641 = vmatmul.mubr.f32.gmra.mrb[6].mxu1 %v7458_v3 }
 0x2ba   : > { %6470 = vmatpush3.bf16.msra.mxu1 %v6467_v63  ;;  %5675 = vmatprep.mubr.f32.mxu1 %v2906_v41  ;;  %v6511_v63 = vpack.c.bf16 %v3082_v33, %v3081_v28  ;;  %v6519_v41 = vpack.c.bf16 %v3224_v49, %v3223_v46  ;;  %v3237_v28 = vld [vmem:[#allocation10 + $0x270] sm:$0xff]  ;;  %v3238_v33 = vld [vmem:[#allocation10 + $0x278] sm:$0xff] }
 0x2bb   : > { %6472 = vmatprep.subr.bf16.mxu1 %v6471_v1  ;;  %v3379_v46 = vld [vmem:[#allocation10 + $0x290] sm:$0xff]  ;;  %v3380_v49 = vld [vmem:[#allocation10 + $0x298] sm:$0xff] }
 0x2be   : > { %6474 = vmatpush3.bf16.msra.mxu1 %v6471_v1  ;;  %v6515_v1 = vpack.c.bf16 %v3084_v40, %v3083_v35  ;;  %v3377_v35 = vld [vmem:[#allocation10 + $0x280] sm:$0xff]  ;;  %v3378_v40 = vld [vmem:[#allocation10 + $0x288] sm:$0xff] }
 0x2bf   : > { %6476 = vmatprep.subr.bf16.mxu1 %v6475_v5 }
 0x2c2   : > { %6478 = vmatpush3.bf16.msra.mxu1 %v6475_v5  ;;  %v3225_v5 = vld [vmem:[#allocation10 + $0x210] sm:$0xff] }
 0x2c3   : > { %6480 = vmatprep.subr.bf16.mxu1 %v6479_v42  ;;  %v6523_v14 = vpack.c.bf16 %v3226_v54, %v3225_v5  ;;  %v3215_v5 = vld [vmem:[#allocation3 + $0xf] sm:$0xff] }
 0x2c4   : > { %v3381_v54 = vld [vmem:[#allocation10 + $0x2a0] sm:$0xff] }
 0x2c6   : > { %6482 = vmatpush3.bf16.msra.mxu1 %v6479_v42  ;;  %v3061_v42 = vld [vmem:[#allocation3 + $0xe] sm:$0xff] }
 0x2c7   : > { %6484 = vmatprep.subr.bf16.mxu1 %v6483_v6 }
 0x2ca   : > { %6486 = vmatpush3.bf16.msra.mxu1 %v6483_v6  ;;  %v3062_v6 = vld [vmem:[#allocation3 + $0x16] sm:$0xff] }
 0x2cb   : > { %6488 = vmatprep.subr.bf16.mxu1 %v6487_v11 }
 0x2cd   : > { %5676 = vmatmul.mubr.f32.vlgmr.msra.gmra.mrb[0].mxu1 %v7461_v21 }
 0x2ce   : > { %5678 = vmatprep.mubr.f32.mxu1 %v7464_v27  ;;  %6490 = vmatpush3.bf16.msra.mxu1 %v6487_v11  ;;  %v3229_v11 = vld [vmem:[#allocation10 + $0x230] sm:$0xff] }
 0x2cf   : > { %6492 = vmatprep.subr.bf16.mxu1 %v6491_v19 }
 0x2d1   : > { %5679 = vmatmul.mubr.f32.gmra.mrb[2].mxu1 %v7467_v34 }
 0x2d2   : > { %5681 = vmatprep.mubr.f32.mxu1 %v7470_v62  ;;  %6494 = vmatpush3.bf16.msra.mxu1 %v6491_v19  ;;  %v6531_v19 = vpack.c.bf16 %v3230_v0, %v3229_v11  ;;  %v3219_v0 = vld [vmem:[#allocation3 + $0x2f] sm:$0xff] }
 0x2d3   : > { %6496 = vmatprep.subr.bf16.mxu1 %v6495_v32 }
 0x2d5   : > { %5682 = vmatmul.mubr.f32.gmra.mrb[4].mxu1 %v7473_v45 }
 0x2d6   : > { %5684 = vmatprep.mubr.f32.mxu1 %v7476_v7  ;;  %6498 = vmatpush3.bf16.msra.mxu1 %v6495_v32  ;;  %v3232_v32 = vld [vmem:[#allocation10 + $0x248] sm:$0xff] }
 0x2d7   : > { %6500 = vmatprep.subr.bf16.mxu1 %v6499_v2  ;;  %v6535_v60 = vpack.c.bf16 %v3232_v32, %v3231_v25  ;;  %v3221_v32 = vld [vmem:[#allocation3 + $0x3f] sm:$0xff] }
 0x2d9   : > { %5685 = vmatmul.mubr.f32.gmra.mrb[6].mxu1 %v7479_v52 }
 0x2da   : > { %6502 = vmatpush3.bf16.msra.mxu1 %v6499_v2  ;;  %5719 = vmatprep.mubr.f32.mxu1 %v3060_v58  ;;  %v3067_v2 = vld [vmem:[#allocation3 + $0x3e] sm:$0xff] }
 0x2db   : > { %6504 = vmatprep.subr.bf16.mxu1 %v6503_v50  ;;  %v3236_v58 = vld [vmem:[#allocation10 + $0x268] sm:$0xff] }
 0x2de   : > { %6506 = vmatpush3.bf16.msra.mxu1 %v6503_v50  ;;  %v3214_v50 = vld [vmem:[#allocation3 + $0x7] sm:$0xff] }
 0x2df   : > { %6508 = vmatprep.subr.bf16.mxu1 %v6507_v59 }
 0x2e2   : > { %6510 = vmatpush3.bf16.msra.mxu1 %v6507_v59  ;;  %v6543_v59 = vpack.c.bf16 %v3236_v58, %v3235_v56  ;;  %v3392_v56 = vld [vmem:[#allocation10 + $0x2f8] sm:$0xff] }
 0x2e3   : > { %6512 = vmatprep.subr.bf16.mxu1 %v6511_v63 }
 0x2e6   : > { %6514 = vmatpush3.bf16.msra.mxu1 %v6511_v63  ;;  %v6547_v63 = vpack.c.bf16 %v3238_v33, %v3237_v28  ;;  %v3532_v28 = vld [vmem:[#allocation10 + $0x308] sm:$0xff] }
 0x2e7   : > { %6516 = vmatprep.subr.bf16.mxu1 %v6515_v1 }
 0x2ea   : > { %6518 = vmatpush3.bf16.msra.mxu1 %v6515_v1  ;;  %v6551_v1 = vpack.c.bf16 %v3378_v40, %v3377_v35  ;;  %v3534_v35 = vld [vmem:[#allocation10 + $0x318] sm:$0xff]  ;;  %v3535_v40 = vld [vmem:[#allocation10 + $0x320] sm:$0xff] }
 0x2eb   : > { %6520 = vmatprep.subr.bf16.mxu1 %v6519_v41 }
 0x2ed   : > { %5720 = vmatmul.mubr.f32.vlgmr.msra.gmra.mrb[0].mxu1 %v3061_v42  ;;  %v3216_v42 = vld [vmem:[#allocation3 + $0x17] sm:$0xff] }
 0x2ee   : > { %5722 = vmatprep.mubr.f32.mxu1 %v3062_v6  ;;  %6522 = vmatpush3.bf16.msra.mxu1 %v6519_v41  ;;  %v6555_v41 = vpack.c.bf16 %v3380_v49, %v3379_v46  ;;  %v3383_v6 = vld [vmem:[#allocation10 + $0x2b0] sm:$0xff] }
 0x2ef   : > { %6524 = vmatprep.subr.bf16.mxu1 %v6523_v14  ;;  %v3537_v49 = vld [vmem:[#allocation10 + $0x330] sm:$0xff] }
 0x2f1   : > { %5723 = vmatmul.mubr.f32.gmra.mrb[2].mxu1 %v3063_v43  ;;  %v3218_v43 = vld [vmem:[#allocation3 + $0x27] sm:$0xff] }
 0x2f2   : > { %5725 = vmatprep.mubr.f32.mxu1 %v3064_v13  ;;  %6526 = vmatpush3.bf16.msra.mxu1 %v6523_v14  ;;  %v3382_v14 = vld [vmem:[#allocation10 + $0x2a8] sm:$0xff]  ;;  %v3385_v13 = vld [vmem:[#allocation10 + $0x2c0] sm:$0xff] }
 0x2f3   : > { %6528 = vmatprep.subr.bf16.mxu1 %v6527_v36  ;;  %v6559_v20 = vpack.c.bf16 %v3382_v14, %v3381_v54  ;;  %v3539_v54 = vld [vmem:[#allocation10 + $0x340] sm:$0xff]  ;;  %v3540_v14 = vld [vmem:[#allocation10 + $0x348] sm:$0xff] }
 0x2f5   : > { %5726 = vmatmul.mubr.f32.gmra.mrb[4].mxu1 %v3065_v23  ;;  %v3220_v23 = vld [vmem:[#allocation3 + $0x37] sm:$0xff] }
 0x2f6   : > { %5728 = vmatprep.mubr.f32.mxu1 %v3066_v57  ;;  %6530 = vmatpush3.bf16.msra.mxu1 %v6527_v36  ;;  %v3384_v36 = vld [vmem:[#allocation10 + $0x2b8] sm:$0xff]  ;;  %v3387_v57 = vld [vmem:[#allocation10 + $0x2d0] sm:$0xff] }
 0x2f7   : > { %6532 = vmatprep.subr.bf16.mxu1 %v6531_v19  ;;  %v6563_v11 = vpack.c.bf16 %v3384_v36, %v3383_v6  ;;  %v3546_v36 = vld [vmem:[#allocation10 + $0x378] sm:$0xff] }
 0x2f9   : > { %5729 = vmatmul.mubr.f32.gmra.mrb[6].mxu1 %v3067_v2 }
 0x2fa   : > { %6534 = vmatpush3.bf16.msra.mxu1 %v6531_v19  ;;  %5763 = vmatprep.mubr.f32.mxu1 %v3214_v50  ;;  %v3386_v19 = vld [vmem:[#allocation10 + $0x2c8] sm:$0xff]  ;;  %v6575_v50 = vpack.c.bf16 %v3390_v4, %v3389_v47  ;;  %v3691_v47 = vld [vmem:[#allocation10 + $0x3b0] sm:$0xff]  ;;  %v3692_v4 = vld [vmem:[#allocation10 + $0x3b8] sm:$0xff] }
 0x2fb   : > { %6536 = vmatprep.subr.bf16.mxu1 %v6535_v60  ;;  %v6567_v25 = vpack.c.bf16 %v3386_v19, %v3385_v13  ;;  %v3688_v13 = vld [vmem:[#allocation10 + $0x398] sm:$0xff] }
 0x2fe   : > { %6538 = vmatpush3.bf16.msra.mxu1 %v6535_v60  ;;  %v3388_v60 = vld [vmem:[#allocation10 + $0x2d8] sm:$0xff] }
 0x2ff   : > { %6540 = vmatprep.subr.bf16.mxu1 %v6539_v9  ;;  %v6571_v2 = vpack.c.bf16 %v3388_v60, %v3387_v57  ;;  %v3524_v57 = vld [vmem:[#allocation3 + $0x19] sm:$0xff] }
 0x302   : > { %6542 = vmatpush3.bf16.msra.mxu1 %v6539_v9  ;;  %v3391_v9 = vld [vmem:[#allocation10 + $0x2f0] sm:$0xff] }
 0x303   : > { %6544 = vmatprep.subr.bf16.mxu1 %v6543_v59  ;;  %v6579_v58 = vpack.c.bf16 %v3392_v56, %v3391_v9  ;;  %v6627_v9 = vpack.c.bf16 %v3692_v4, %v3691_v47  ;;  %v3527_v56 = vld [vmem:[#allocation3 + $0x31] sm:$0xff]  ;;  %v3850_v47 = vld [vmem:[#allocation10 + $0x458] sm:$0xff] }
 0x306   : > { %6546 = vmatpush3.bf16.msra.mxu1 %v6543_v59  ;;  %v3531_v59 = vld [vmem:[#allocation10 + $0x300] sm:$0xff] }
 0x307   : > { %6548 = vmatprep.subr.bf16.mxu1 %v6547_v63  ;;  %v6583_v33 = vpack.c.bf16 %v3532_v28, %v3531_v59  ;;  %v3694_v59 = vld [vmem:[#allocation10 + $0x3c8] sm:$0xff] }
 0x308   : > { %v3528_v28 = vld [vmem:[#allocation3 + $0x39] sm:$0xff] }
 0x30a   : > { %6550 = vmatpush3.bf16.msra.mxu1 %v6547_v63  ;;  %v3533_v63 = vld [vmem:[#allocation10 + $0x310] sm:$0xff] }
 0x30b   : > { %6552 = vmatprep.subr.bf16.mxu1 %v6551_v1 }
 0x30d   : > { %5764 = vmatmul.mubr.f32.vlgmr.msra.gmra.mrb[0].mxu1 %v3215_v5 }
 0x30e   : > { %5766 = vmatprep.mubr.f32.mxu1 %v3216_v42  ;;  %6554 = vmatpush3.bf16.msra.mxu1 %v6551_v1  ;;  %v3536_v1 = vld [vmem:[#allocation10 + $0x328] sm:$0xff]  ;;  %v3542_v42 = vld [vmem:[#allocation10 + $0x358] sm:$0xff] }
 0x30f   : > { %6556 = vmatprep.subr.bf16.mxu1 %v6555_v41  ;;  %v6591_v46 = vpack.c.bf16 %v3536_v1, %v3535_v40  ;;  %v3676_v40 = vld [vmem:[#allocation3 + $0xa] sm:$0xff] }
 0x311   : > { %5767 = vmatmul.mubr.f32.gmra.mrb[2].mxu1 %v3217_v30  ;;  %v3544_v30 = vld [vmem:[#allocation10 + $0x368] sm:$0xff] }
 0x312   : > { %5769 = vmatprep.mubr.f32.mxu1 %v3218_v43  ;;  %6558 = vmatpush3.bf16.msra.mxu1 %v6555_v41  ;;  %v3538_v41 = vld [vmem:[#allocation10 + $0x338] sm:$0xff]  ;;  %v3685_v43 = vld [vmem:[#allocation10 + $0x380] sm:$0xff] }
 0x313   : > { %6560 = vmatprep.subr.bf16.mxu1 %v6559_v20  ;;  %v6595_v5 = vpack.c.bf16 %v3538_v41, %v3537_v49  ;;  %v3698_v49 = vld [vmem:[#allocation10 + $0x3e8] sm:$0xff] }
 0x315   : > { %5770 = vmatmul.mubr.f32.gmra.mrb[4].mxu1 %v3219_v0  ;;  %v3687_v0 = vld [vmem:[#allocation10 + $0x390] sm:$0xff] }
 0x316   : > { %5772 = vmatprep.mubr.f32.mxu1 %v3220_v23  ;;  %6562 = vmatpush3.bf16.msra.mxu1 %v6559_v20  ;;  %v3522_v20 = vld [vmem:[#allocation3 + $0x9] sm:$0xff]  ;;  %v6619_v19 = vpack.c.bf16 %v3688_v13, %v3687_v0  ;;  %v3523_v23 = vld [vmem:[#allocation3 + $0x11] sm:$0xff] }
 0x317   : > { %6564 = vmatprep.subr.bf16.mxu1 %v6563_v11  ;;  %v3680_v0 = vld [vmem:[#allocation3 + $0x2a] sm:$0xff] }
 0x319   : > { %5773 = vmatmul.mubr.f32.gmra.mrb[6].mxu1 %v3221_v32  ;;  %v3690_v32 = vld [vmem:[#allocation10 + $0x3a8] sm:$0xff] }
 0x31a   : > { %6566 = vmatpush3.bf16.msra.mxu1 %v6563_v11  ;;  %5807 = vmatprep.mubr.f32.mxu1 %v7394_v39  ;;  %v6587_v39 = vpack.c.bf16 %v3534_v35, %v3533_v63  ;;  %v3686_v11 = vld [vmem:[#allocation10 + $0x388] sm:$0xff]  ;;  %v3529_v63 = vld [vmem:[#allocation3 + $0x41] sm:$0xff] }
 0x31b   : > { %6568 = vmatprep.subr.bf16.mxu1 %v6567_v25  ;;  %v3695_v35 = vld [vmem:[#allocation10 + $0x3d0] sm:$0xff] }
 0x31e   : > { %6570 = vmatpush3.bf16.msra.mxu1 %v6567_v25  ;;  %v3689_v25 = vld [vmem:[#allocation10 + $0x3a0] sm:$0xff] }
 0x31f   : > { %6572 = vmatprep.subr.bf16.mxu1 %v6571_v2  ;;  %v6623_v60 = vpack.c.bf16 %v3690_v32, %v3689_v25  ;;  %v3848_v25 = vld [vmem:[#allocation10 + $0x448] sm:$0xff] }
 0x320   : > { %v3682_v32 = vld [vmem:[#allocation3 + $0x3a] sm:$0xff] }
 0x322   : > { %6574 = vmatpush3.bf16.msra.mxu1 %v6571_v2  ;;  %v3525_v2 = vld [vmem:[#allocation3 + $0x21] sm:$0xff] }
 0x323   : > { %6576 = vmatprep.subr.bf16.mxu1 %v6575_v50 }
 0x326   : > { %6578 = vmatpush3.bf16.msra.mxu1 %v6575_v50  ;;  %v3526_v50 = vld [vmem:[#allocation3 + $0x29] sm:$0xff] }
 0x327   : > { %6580 = vmatprep.subr.bf16.mxu1 %v6579_v58 }
 0x32a   : > { %6582 = vmatpush3.bf16.msra.mxu1 %v6579_v58  ;;  %v3693_v58 = vld [vmem:[#allocation10 + $0x3c0] sm:$0xff] }
 0x32b   : > { %6584 = vmatprep.subr.bf16.mxu1 %v6583_v33 }
 0x32d   : > { %5808 = vmatmul.mubr.f32.vlgmr.msra.gmra.mrb[0].mxu1 %v7400_v24  ;;  %v3541_v24 = vld [vmem:[#allocation10 + $0x350] sm:$0xff] }
 0x32e   : > { %5810 = vmatprep.mubr.f32.mxu1 %v7397_v12  ;;  %6586 = vmatpush3.bf16.msra.mxu1 %v6583_v33  ;;  %v6599_v12 = vpack.c.bf16 %v3540_v14, %v3539_v54  ;;  %v6631_v33 = vpack.c.bf16 %v3694_v59, %v3693_v58  ;;  %v3700_v54 = vld [vmem:[#allocation10 + $0x3f8] sm:$0xff]  ;;  %v3853_v58 = vld [vmem:[#allocation10 + $0x470] sm:$0xff] }
 0x32f   : > { %6588 = vmatprep.subr.bf16.mxu1 %v6587_v39  ;;  %v3854_v59 = vld [vmem:[#allocation10 + $0x478] sm:$0xff] }
 0x331   : > { %5811 = vmatmul.mubr.f32.gmra.mrb[2].mxu1 %v7406_v38  ;;  %v3543_v38 = vld [vmem:[#allocation10 + $0x360] sm:$0xff] }
 0x332   : > { %5813 = vmatprep.mubr.f32.mxu1 %v7403_v37  ;;  %6590 = vmatpush3.bf16.msra.mxu1 %v6587_v39  ;;  %v6603_v37 = vpack.c.bf16 %v3542_v42, %v3541_v24  ;;  %v6607_v6 = vpack.c.bf16 %v3544_v30, %v3543_v38  ;;  %v3696_v39 = vld [vmem:[#allocation10 + $0x3d8] sm:$0xff]  ;;  %v3840_v24 = vld [vmem:[#allocation10 + $0x408] sm:$0xff] }
 0x333   : > { %6592 = vmatprep.subr.bf16.mxu1 %v6591_v46  ;;  %v6635_v1 = vpack.c.bf16 %v3696_v39, %v3695_v35  ;;  %v3677_v30 = vld [vmem:[#allocation3 + $0x12] sm:$0xff]  ;;  %v3995_v39 = vld [vmem:[#allocation10 + $0x490] sm:$0xff] }
 0x335   : > { %5814 = vmatmul.mubr.f32.gmra.mrb[4].mxu1 %v7412_v16  ;;  %v3545_v16 = vld [vmem:[#allocation10 + $0x370] sm:$0xff] }
 0x336   : > { %5816 = vmatprep.mubr.f32.mxu1 %v7409_v51  ;;  %6594 = vmatpush3.bf16.msra.mxu1 %v6591_v46  ;;  %v6611_v51 = vpack.c.bf16 %v3546_v36, %v3545_v16  ;;  %v3697_v46 = vld [vmem:[#allocation10 + $0x3e0] sm:$0xff]  ;;  %v3844_v16 = vld [vmem:[#allocation10 + $0x428] sm:$0xff] }
 0x337   : > { %6596 = vmatprep.subr.bf16.mxu1 %v6595_v5  ;;  %v6639_v41 = vpack.c.bf16 %v3698_v49, %v3697_v46  ;;  %v3678_v36 = vld [vmem:[#allocation3 + $0x1a] sm:$0xff] }
 0x338   : > { %v3998_v46 = vld [vmem:[#allocation10 + $0x4a8] sm:$0xff] }
 0x339   : > { %5817 = vmatmul.mubr.f32.gmra.mrb[6].mxu1 %v7422_v48  ;;  %v6615_v48 = vpack.c.bf16 %v3686_v11, %v3685_v43  ;;  %v3679_v43 = vld [vmem:[#allocation3 + $0x22] sm:$0xff] }
 0x33a   : > { %6598 = vmatpush3.bf16.msra.mxu1 %v6595_v5  ;;  %5851 = vmatprep.mubr.f32.mxu1 %v3522_v20  ;;  %v3699_v5 = vld [vmem:[#allocation10 + $0x3f0] sm:$0xff] }
 0x33b   : > { %6600 = vmatprep.subr.bf16.mxu1 %v6599_v12  ;;  %v6643_v14 = vpack.c.bf16 %v3700_v54, %v3699_v5  ;;  %v3841_v20 = vld [vmem:[#allocation10 + $0x410] sm:$0xff]  ;;  %v4000_v5 = vld [vmem:[#allocation10 + $0x4b8] sm:$0xff] }
 0x33c   : > { %v3845_v11 = vld [vmem:[#allocation10 + $0x430] sm:$0xff] }
 0x33e   : > { %6602 = vmatpush3.bf16.msra.mxu1 %v6599_v12  ;;  %v3839_v12 = vld [vmem:[#allocation10 + $0x400] sm:$0xff] }
 0x33f   : > { %6604 = vmatprep.subr.bf16.mxu1 %v6603_v37  ;;  %v6647_v42 = vpack.c.bf16 %v3840_v24, %v3839_v12  ;;  %v4002_v12 = vld [vmem:[#allocation10 + $0x4c8] sm:$0xff]  ;;  %v4003_v24 = vld [vmem:[#allocation10 + $0x4d0] sm:$0xff] }
 0x342   : > { %6606 = vmatpush3.bf16.msra.mxu1 %v6603_v37  ;;  %v3842_v37 = vld [vmem:[#allocation10 + $0x418] sm:$0xff] }
 0x343   : > { %6608 = vmatprep.subr.bf16.mxu1 %v6607_v6  ;;  %v6651_v38 = vpack.c.bf16 %v3842_v37, %v3841_v20  ;;  %v4006_v20 = vld [vmem:[#allocation10 + $0x4e8] sm:$0xff] }
 0x346   : > { %6610 = vmatpush3.bf16.msra.mxu1 %v6607_v6  ;;  %v3843_v6 = vld [vmem:[#allocation10 + $0x420] sm:$0xff] }
 0x347   : > { %6612 = vmatprep.subr.bf16.mxu1 %v6611_v51 }
 0x34a   : > { %6614 = vmatpush3.bf16.msra.mxu1 %v6611_v51  ;;  %v6655_v51 = vpack.c.bf16 %v3844_v16, %v3843_v6  ;;  %v4148_v6 = vld [vmem:[#allocation10 + $0x508] sm:$0xff] }
 0x34b   : > { %6616 = vmatprep.subr.bf16.mxu1 %v6615_v48 }
 0x34d   : > { %5852 = vmatmul.mubr.f32.vlgmr.msra.gmra.mrb[0].mxu1 %v3523_v23  ;;  %v3847_v23 = vld [vmem:[#allocation10 + $0x440] sm:$0xff] }
 0x34e   : > { %5854 = vmatprep.mubr.f32.mxu1 %v3524_v57  ;;  %6618 = vmatpush3.bf16.msra.mxu1 %v6615_v48  ;;  %v3846_v48 = vld [vmem:[#allocation10 + $0x438] sm:$0xff]  ;;  %v6663_v57 = vpack.c.bf16 %v3848_v25, %v3847_v23  ;;  %v4155_v23 = vld [vmem:[#allocation10 + $0x540] sm:$0xff]  ;;  %v4156_v25 = vld [vmem:[#allocation10 + $0x548] sm:$0xff] }
 0x34f   : > { %6620 = vmatprep.subr.bf16.mxu1 %v6619_v19  ;;  %v6659_v13 = vpack.c.bf16 %v3846_v48, %v3845_v11  ;;  %v4152_v11 = vld [vmem:[#allocation10 + $0x528] sm:$0xff] }
 0x351   : > { %5855 = vmatmul.mubr.f32.gmra.mrb[2].mxu1 %v3525_v2  ;;  %v3849_v2 = vld [vmem:[#allocation10 + $0x450] sm:$0xff] }
 0x352   : > { %5857 = vmatprep.mubr.f32.mxu1 %v3526_v50  ;;  %6622 = vmatpush3.bf16.msra.mxu1 %v6619_v19  ;;  %v3681_v19 = vld [vmem:[#allocation3 + $0x32] sm:$0xff]  ;;  %v6667_v4 = vpack.c.bf16 %v3850_v47, %v3849_v2  ;;  %v4162_v47 = vld [vmem:[#allocation10 + $0x578] sm:$0xff] }
 0x353   : > { %6624 = vmatprep.subr.bf16.mxu1 %v6623_v60  ;;  %v3851_v50 = vld [vmem:[#allocation10 + $0x460] sm:$0xff] }
 0x355   : > { %5858 = vmatmul.mubr.f32.gmra.mrb[4].mxu1 %v3527_v56 }
 0x356   : > { %5860 = vmatprep.mubr.f32.mxu1 %v3528_v28  ;;  %6626 = vmatpush3.bf16.msra.mxu1 %v6623_v60  ;;  %v3683_v60 = vld [vmem:[#allocation3 + $0x42] sm:$0xff]  ;;  %v6675_v28 = vpack.c.bf16 %v3854_v59, %v3853_v58 }
 0x357   : > { %6628 = vmatprep.subr.bf16.mxu1 %v6627_v9 }
 0x359   : > { %5861 = vmatmul.mubr.f32.gmra.mrb[6].mxu1 %v3529_v63  ;;  %v3994_v63 = vld [vmem:[#allocation10 + $0x488] sm:$0xff] }
 0x35a   : > { %6630 = vmatpush3.bf16.msra.mxu1 %v6627_v9  ;;  %5895 = vmatprep.mubr.f32.mxu1 %v3676_v40  ;;  %v3852_v9 = vld [vmem:[#allocation10 + $0x468] sm:$0xff]  ;;  %v3996_v40 = vld [vmem:[#allocation10 + $0x498] sm:$0xff] }
 0x35b   : > { %6632 = vmatprep.subr.bf16.mxu1 %v6631_v33  ;;  %v6671_v56 = vpack.c.bf16 %v3852_v9, %v3851_v50  ;;  %v6987_v50 = vld [vmem:[#allocation3 + $0x10] sm:$0xff] }
 0x35e   : > { %6634 = vmatpush3.bf16.msra.mxu1 %v6631_v33  ;;  %v3993_v33 = vld [vmem:[#allocation10 + $0x480] sm:$0xff] }
 0x35f   : > { %6636 = vmatprep.subr.bf16.mxu1 %v6635_v1  ;;  %v6679_v35 = vpack.c.bf16 %v3994_v63, %v3993_v33 }
 0x362   : > { %6638 = vmatpush3.bf16.msra.mxu1 %v6635_v1  ;;  %v3997_v1 = vld [vmem:[#allocation10 + $0x4a0] sm:$0xff] }
 0x363   : > { %6640 = vmatprep.subr.bf16.mxu1 %v6639_v41  ;;  %v6687_v49 = vpack.c.bf16 %v3998_v46, %v3997_v1  ;;  %v6992_v46 = vld [vmem:[#allocation3 + $0x28] sm:$0xff] }
 0x366   : > { %6642 = vmatpush3.bf16.msra.mxu1 %v6639_v41  ;;  %v3999_v41 = vld [vmem:[#allocation10 + $0x4b0] sm:$0xff] }
 0x367   : > { %6644 = vmatprep.subr.bf16.mxu1 %v6643_v14  ;;  %v6691_v54 = vpack.c.bf16 %v4000_v5, %v3999_v41 }
 0x36a   : > { %6646 = vmatpush3.bf16.msra.mxu1 %v6643_v14  ;;  %v4001_v14 = vld [vmem:[#allocation10 + $0x4c0] sm:$0xff] }
 0x36b   : > { %6648 = vmatprep.subr.bf16.mxu1 %v6647_v42 }
 0x36d   : > { %5896 = vmatmul.mubr.f32.vlgmr.msra.gmra.mrb[0].mxu1 %v3677_v30  ;;  %v4147_v30 = vld [vmem:[#allocation10 + $0x500] sm:$0xff] }
 0x36e   : > { %5898 = vmatprep.mubr.f32.mxu1 %v3678_v36  ;;  %6650 = vmatpush3.bf16.msra.mxu1 %v6647_v42  ;;  %v4004_v42 = vld [vmem:[#allocation10 + $0x4d8] sm:$0xff]  ;;  %v6711_v16 = vpack.c.bf16 %v4148_v6, %v4147_v30  ;;  %v4149_v36 = vld [vmem:[#allocation10 + $0x510] sm:$0xff] }
 0x36f   : > { %6652 = vmatprep.subr.bf16.mxu1 %v6651_v38 }
 0x371   : > { %5899 = vmatmul.mubr.f32.gmra.mrb[2].mxu1 %v3679_v43  ;;  %v4151_v43 = vld [vmem:[#allocation10 + $0x520] sm:$0xff] }
 0x372   : > { %5901 = vmatprep.mubr.f32.mxu1 %v3680_v0  ;;  %6654 = vmatpush3.bf16.msra.mxu1 %v6651_v38  ;;  %v4008_v38 = vld [vmem:[#allocation10 + $0x4f8] sm:$0xff]  ;;  %v6719_v48 = vpack.c.bf16 %v4152_v11, %v4151_v43  ;;  %v4153_v0 = vld [vmem:[#allocation10 + $0x530] sm:$0xff] }
 0x373   : > { %6656 = vmatprep.subr.bf16.mxu1 %v6655_v51 }
 0x375   : > { %5902 = vmatmul.mubr.f32.gmra.mrb[4].mxu1 %v3681_v19 }
 0x376   : > { %5904 = vmatprep.mubr.f32.mxu1 %v3682_v32  ;;  %6658 = vmatpush3.bf16.msra.mxu1 %v6655_v51  ;;  %v4150_v51 = vld [vmem:[#allocation10 + $0x518] sm:$0xff]  ;;  %v4157_v32 = vld [vmem:[#allocation10 + $0x550] sm:$0xff] }
 0x377   : > { %6660 = vmatprep.subr.bf16.mxu1 %v6659_v13 }
 0x379   : > { %5905 = vmatmul.mubr.f32.gmra.mrb[6].mxu1 %v3683_v60  ;;  %v4160_v60 = vld [vmem:[#allocation10 + $0x568] sm:$0xff] }
 0x37a   : > { %6662 = vmatpush3.bf16.msra.mxu1 %v6659_v13  ;;  %5939 = vmatprep.mubr.f32.mxu1 %v7414_v22  ;;  %v6683_v22 = vpack.c.bf16 %v3996_v40, %v3995_v39  ;;  %v4154_v13 = vld [vmem:[#allocation10 + $0x538] sm:$0xff]  ;;  %v6991_v40 = vld [vmem:[#allocation3 + $0x30] sm:$0xff] }
 0x37b   : > { %6664 = vmatprep.subr.bf16.mxu1 %v6663_v57  ;;  %v6723_v19 = vpack.c.bf16 %v4154_v13, %v4153_v0 }
 0x37e   : > { %6666 = vmatpush3.bf16.msra.mxu1 %v6663_v57  ;;  %v4158_v57 = vld [vmem:[#allocation10 + $0x558] sm:$0xff] }
 0x37f   : > { %6668 = vmatprep.subr.bf16.mxu1 %v6667_v4 }
 0x382   : > { %6670 = vmatpush3.bf16.msra.mxu1 %v6667_v4  ;;  %v4481_v4 = vld [vmem:[%s7543_s5] ss:$0 sm:$0xff] }
 0x383   : > { %6672 = vmatprep.subr.bf16.mxu1 %v6671_v56  ;;  %v2576_v9 = vadd.f32 %v6987_v50, %v4481_v4 }
 0x386   : > { %6674 = vmatpush3.bf16.msra.mxu1 %v6671_v56  ;;  %v6989_v56 = vld [vmem:[#allocation3 + $0x20] sm:$0xff] }
 0x387   : > { %6676 = vmatprep.subr.bf16.mxu1 %v6675_v28  ;;  %v2578_v58 = vadd.f32 %v6989_v56, %v4481_v4 }
 0x38a   : > { %6678 = vmatpush3.bf16.msra.mxu1 %v6675_v28  ;;  %v6990_v28 = vld [vmem:[#allocation3 + $0x18] sm:$0xff] }
 0x38b   : > { %6680 = vmatprep.subr.bf16.mxu1 %v6679_v35  ;;  %v2577_v33 = vadd.f32 %v6990_v28, %v4481_v4 }
 0x38d   : > { %5940 = vmatmul.mubr.f32.vlgmr.msra.gmra.mrb[0].mxu1 %v7416_v26  ;;  %v6695_v26 = vpack.c.bf16 %v4002_v12, %v4001_v14  ;;  %v6993_v14 = vld [vmem:[#allocation3 + $0x40] sm:$0xff] }
 0x38e   : > { %5942 = vmatprep.mubr.f32.mxu1 %v7424_v8  ;;  %6682 = vmatpush3.bf16.msra.mxu1 %v6679_v35  ;;  %v3837_v8 = vld [vmem:[#allocation3 + $0x43] sm:$0xff]  ;;  %v2582_v12 = vadd.f32 %v6993_v14, %v4481_v4 }
 0x38f   : > { %6684 = vmatprep.subr.bf16.mxu1 %v6683_v22 }
 0x391   : > { %5943 = vmatmul.mubr.f32.gmra.mrb[2].mxu1 %v7426_v10  ;;  %v6699_v10 = vpack.c.bf16 %v4004_v42, %v4003_v24 }
 0x392   : > { %5945 = vmatprep.mubr.f32.mxu1 %v7431_v15  ;;  %6686 = vmatpush3.bf16.msra.mxu1 %v6683_v22  ;;  %v4005_v15 = vld [vmem:[#allocation10 + $0x4e0] sm:$0xff]  ;;  %v2580_v22 = vadd.f32 %v6991_v40, %v4481_v4 }
 0x393   : > { %6688 = vmatprep.subr.bf16.mxu1 %v6687_v49  ;;  %v6703_v37 = vpack.c.bf16 %v4006_v20, %v4005_v15 }
 0x395   : > { %5946 = vmatmul.mubr.f32.gmra.mrb[4].mxu1 %v7433_v18  ;;  %v4007_v18 = vld [vmem:[#allocation10 + $0x4f0] sm:$0xff] }
 0x396   : > { %5948 = vmatprep.mubr.f32.mxu1 %v7437_v55  ;;  %6690 = vmatpush3.bf16.msra.mxu1 %v6687_v49  ;;  %v6707_v55 = vpack.c.bf16 %v4008_v38, %v4007_v18  ;;  %v2579_v49 = vadd.f32 %v6992_v46, %v4481_v4 }
 0x397   : > { %6692 = vmatprep.subr.bf16.mxu1 %v6691_v54 }
 0x399   : > { %5949 = vmatmul.mubr.f32.gmra.mrb[6].mxu1 %v3837_v8  ;;  %v6994_v8 = vld [vmem:[#allocation3 + $0x38] sm:$0xff] }
 0x39a   : > { %6694 = vmatpush3.bf16.msra.mxu1 %v6691_v54  ;;  %5983 = vmatprep.mubr.f32.mxu1 %v7440_v53  ;;  %v6715_v53 = vpack.c.bf16 %v4150_v51, %v4149_v36  ;;  %v2581_v24 = vadd.f32 %v6994_v8, %v4481_v4 }
 0x39b   : > { %6696 = vmatprep.subr.bf16.mxu1 %v6695_v26 }
 0x39e   : > { %6698 = vmatpush3.bf16.msra.mxu1 %v6695_v26 }
 0x39f   : > { %6700 = vmatprep.subr.bf16.mxu1 %v6699_v10 }
 0x3a2   : > { %6702 = vmatpush3.bf16.msra.mxu1 %v6699_v10 }
 0x3a3   : > { %6704 = vmatprep.subr.bf16.mxu1 %v6703_v37 }
 0x3a6   : > { %6706 = vmatpush3.bf16.msra.mxu1 %v6703_v37 }
 0x3a7   : > { %6708 = vmatprep.subr.bf16.mxu1 %v6707_v55 }
 0x3aa   : > { %6710 = vmatpush3.bf16.msra.mxu1 %v6707_v55 }
 0x3ab   : > { %6712 = vmatprep.subr.bf16.mxu1 %v6711_v16 }
 0x3ad   : > { %5984 = vmatmul.mubr.f32.vlgmr.msra.gmra.mrb[0].mxu1 %v7443_v17  ;;  %v6727_v17 = vpack.c.bf16 %v4156_v25, %v4155_v23 }
 0x3ae   : > { %5986 = vmatprep.mubr.f32.mxu1 %v7446_v29  ;;  %6714 = vmatpush3.bf16.msra.mxu1 %v6711_v16  ;;  %v3991_v29 = vld [vmem:[#allocation3 + $0x44] sm:$0xff] }
 0x3af   : > { %6716 = vmatprep.subr.bf16.mxu1 %v6715_v53 }
 0x3b1   : > { %5987 = vmatmul.mubr.f32.gmra.mrb[2].mxu1 %v7449_v61  ;;  %v6731_v61 = vpack.c.bf16 %v4158_v57, %v4157_v32 }
 0x3b2   : > { %5989 = vmatprep.mubr.f32.mxu1 %v7452_v31  ;;  %6718 = vmatpush3.bf16.msra.mxu1 %v6715_v53  ;;  %v4159_v31 = vld [vmem:[#allocation10 + $0x560] sm:$0xff] }
 0x3b3   : > { %6720 = vmatprep.subr.bf16.mxu1 %v6719_v48  ;;  %v6735_v2 = vpack.c.bf16 %v4160_v60, %v4159_v31 }
 0x3b5   : > { %5990 = vmatmul.mubr.f32.gmra.mrb[4].mxu1 %v7455_v44  ;;  %v4161_v44 = vld [vmem:[#allocation10 + $0x570] sm:$0xff] }
 0x3b6   : > { %5992 = vmatprep.mubr.f32.mxu1 %v7458_v3  ;;  %6722 = vmatpush3.bf16.msra.mxu1 %v6719_v48  ;;  %v6739_v3 = vpack.c.bf16 %v4162_v47, %v4161_v44 }
 0x3b7   : > { %6724 = vmatprep.subr.bf16.mxu1 %v6723_v19 }
 0x3b9   : > { %5993 = vmatmul.mubr.f32.gmra.mrb[6].mxu1 %v3991_v29 }
 0x3ba   : > { %6726 = vmatpush3.bf16.msra.mxu1 %v6723_v19  ;;  %6027 = vmatprep.mubr.f32.mxu1 %v7461_v21  ;;  %v4145_v21 = vld [vmem:[#allocation3 + $0x45] sm:$0xff] }
 0x3bb   : > { %6728 = vmatprep.subr.bf16.mxu1 %v6727_v17 }
 0x3be   : > { %6730 = vmatpush3.bf16.msra.mxu1 %v6727_v17 }
 0x3bf   : > { %6732 = vmatprep.subr.bf16.mxu1 %v6731_v61 }
 0x3c2   : > { %6734 = vmatpush3.bf16.msra.mxu1 %v6731_v61 }
 0x3c3   : > { %6736 = vmatprep.subr.bf16.mxu1 %v6735_v2 }
 0x3c6   : > { %6738 = vmatpush3.bf16.msra.mxu1 %v6735_v2 }
 0x3c7   : > { %6740 = vmatprep.subr.bf16.mxu1 %v6739_v3 }
 0x3ca   : > { %6742 = vmatpush3.bf16.msra.mxu1 %v6739_v3 }
 0x3cd   : > { %6028 = vmatmul.mubr.f32.vlgmr.msra.gmra.mrb[0].mxu1 %v7464_v27 }
 0x3ce   : > { %6030 = vmatprep.mubr.f32.mxu1 %v7467_v34  ;;  %v6988_v34 = vld [vmem:[#allocation3 + $0x8] sm:$0xff] }
 0x3d1   : > { %6031 = vmatmul.mubr.f32.gmra.mrb[2].mxu1 %v7470_v62  ;;  %v2575_v62 = vadd.f32 %v6988_v34, %v4481_v4 }
 0x3d2   : > { %6033 = vmatprep.mubr.f32.mxu1 %v7473_v45 }
 0x3d5   : > { %6034 = vmatmul.mubr.f32.gmra.mrb[4].mxu1 %v7476_v7 }
 0x3d6   : > { %6036 = vmatprep.mubr.f32.mxu1 %v7479_v52 }
 0x3d9   : > { %6037 = vmatmul.mubr.f32.gmra.mrb[6].mxu1 %v4145_v21 }
 0x4a0   : > { %v6029_v27 = vpop.f32.mrb[0].mxu1 }
 0x4a1   : > { %v6751_v45 = vadd.f32 %v6029_v27, %v2576_v9  ;;  %v4229_v7 = vpop.f32.mrb[1].mxu1 }
 0x4a2   : > { %v6752_v52 = vadd.f32 %v4229_v7, %v2575_v62 }
 0x4a3   : > { %4293 = vst [vmem:[%s7519_s19 + $0x8] sm:$0xff] %v6751_v45 }
 0x4a4   : > { %4292 = vst [vmem:[%s7519_s19] sm:$0xff] %v6752_v52  ;;  %v6032_v59 = vpop.f32.mrb[2].mxu1 }
 0x4a5   : > { %v6753_v63 = vadd.f32 %v6032_v59, %v2578_v58  ;;  %v4239_v35 = vpop.f32.mrb[3].mxu1 }
 0x4a6   : > { %v6754_v39 = vadd.f32 %v4239_v35, %v2577_v33 }
 0x4a7   : > { %4295 = vst [vmem:[%s7519_s19 + $0x18] sm:$0xff] %v6753_v63 }
 0x4a8   : > { %4294 = vst [vmem:[%s7519_s19 + $0x10] sm:$0xff] %v6754_v39  ;;  %v6035_v1 = vpop.f32.mrb[4].mxu1 }
 0x4a9   : > { %v6755_v41 = vadd.f32 %v6035_v1, %v2580_v22  ;;  %v4249_v5 = vpop.f32.mrb[5].mxu1 }
 0x4aa   : > { %v6756_v54 = vadd.f32 %v4249_v5, %v2579_v49 }
 0x4ab   : > { %4297 = vst [vmem:[%s7519_s19 + $0x28] sm:$0xff] %v6755_v41 }
 0x4ac   : > { %4296 = vst [vmem:[%s7519_s19 + $0x20] sm:$0xff] %v6756_v54  ;;  %v6038_v26 = vpop.f32.mrb[6].mxu1 }
 0x4ad   : > { %v6757_v42 = vadd.f32 %v6038_v26, %v2582_v12  ;;  %v4259_v10 = vpop.f32.mrb[7].mxu1 }
 0x4ae   : > { %v6758_v15 = vadd.f32 %v4259_v10, %v2581_v24 }
 0x4af   : > { %4299 = vst [vmem:[%s7519_s19 + $0x38] sm:$0xff] %v6757_v42 }
 0x4b0   : > { %4298 = vst [vmem:[%s7519_s19 + $0x30] sm:$0xff] %v6758_v15 }
 0x4b1 PF: > { %s18_s22 = sadd.s32 1, %s7081_s22   ;;  %s7553_s21 = smov %s7077_s1 }
 0x4b2   : > { %p15_p6 = scmp.ge.s32.totalorder %s18_s22, 4   ;;  %s7554_s1 = smov %s7556_s24 }
 0x4b4   :  { %17 = sbr.rel (!%p15_p6) target bundleno = 3 (0x3), region = 232 }
 0x4bb   :  { %4330 = vsyncpa [#allocation9], 1 }
 0x4bc   :  { %4332 = vsyncpa [#allocation9 + $0x1], 1 }
 0x4bd   :  { %4333 = vsyncpa [#allocation11], 1 }
 0x4be   :  { %4334 = vsyncmov [#allocation7] }
 0x4c1   :  { %s4335_s20 = vpop.sfrf %4334 }
 0x4c2   :  { %p4484_p4 = scmp.ne.s32.totalorder %s4335_s20, 0 }
 0x4c4   :  { %4339 = shalt.err (%p4484_p4)  }
 0x4c5   :  { %4341 = vsyncmov [#allocation7 + $0x1] }
 0x4c8   :  { %s4342_s23 = vpop.sfrf %4341 }
 0x4c9   :  { %p4485_p9 = scmp.ne.s32.totalorder %s4342_s23, 0 }
 0x4cb   :  { %4346 = shalt.err (%p4485_p9)  }

// kernel: residual_block_pallas.4
= control target key start
LH: loop header
LB: loop body
LE: loop exit
PB: predicated region body
PF: predicated region fallthrough
CT: control target
= control target key end

     0   :  { %s7313_s21 = smov 0   ;;  %s7315_s22 = smov 0   ;;  %s8684_s0 = inlined_call_operand.vmem [shape: f32[2,64,128], index: 0, kind: input, shape index: {}, may-alias: {0,1}]   ;;  %s8685_s1 = inlined_call_operand.vmem [shape: f32[2,64,128], index: 1, kind: input, shape index: {}, may-alias: {0,1}]   ;;  %s8686_s2 = inlined_call_operand.vmem [shape: f32[11,128,128], index: 2, kind: input, shape index: {}]   ;;  %s8687_s3 = inlined_call_operand.vmem [shape: f32[1,128], index: 3, kind: input, shape index: {}]   ;;  %s8688_s4 = inlined_call_operand.vmem [shape: f32[11,128,128], index: 4, kind: input, shape index: {}]   ;;  %s8689_s5 = inlined_call_operand.vmem [shape: f32[1,128], index: 5, kind: input, shape index: {}]   ;;  %s8690_s6 = inlined_call_operand.vmem [shape: f32[2,64,128], index: 6, kind: output, shape index: {}]  }
   0x1   :  { %s7317_s1 = smov 0  }
   0x2 LB: > { %s28_s23 = sadd.s32 1, %s7271_s22  ;;  %p4428_p0 = scmp.ge.s32.totalorder %s7275_s1, 1  ;;  %s7275_s1 = sphi %s7317_s1, %s16_s1   ;;  %s7271_s22 = sphi %s7315_s22, %s8692_s22   ;;  %s7267_s21 = sphi %s7313_s21, %s8691_s21  }
   0x3   : > { %p30_p1 = scmp.ge.s32.totalorder %s28_s23, 2  ;;  %p209_p2 = scmp.lt.s32.totalorder %s7275_s1, 3 }
   0x5   : > { %s8694_s23 = smov (%p30_p1, %s28_s23), 0  ;;  %p210_p3 = pnand %p4428_p0, %p209_p2 }
   0x6   : > { %v550_v0 = vld [vmem:[%s8686_s2] sm:$0xff] (!%p210_p3)  ;;  %v551_v1 = vld [vmem:[%s8686_s2 + $0x8] sm:$0xff] (!%p210_p3)  ;;  %v552_v2 = vld [vmem:[%s8686_s2 + $0x10] sm:$0xff] (!%p210_p3)  ;;  %p246_p4 = scmp.lt.s32.totalorder (!%p210_p3), %s7267_s21, 1  ;;  %v7277_v5 = vmov (!%p210_p3), 0.0  }
   0x7   : > { %213 = sbr.rel (%p210_p3) target bundleno = 1139 (0x473), region = 40  ;;  %v6320_v3 = vpack.c.bf16 (!%p210_p3), %v551_v1, %v550_v0  ;;  %v553_v4 = vld [vmem:[%s8686_s2 + $0x18] sm:$0xff] (!%p210_p3)  ;;  %440 = vst [vmem:[#allocation2] sm:$0xff] (!%p210_p3), %v7277_v5  ;;  %441 = vst [vmem:[#allocation2 + $0x8] sm:$0xff] (!%p210_p3), %v7277_v5  ;;  %v554_v7 = vld [vmem:[%s8686_s2 + $0x20] sm:$0xff] (!%p210_p3) }
   0x8   : > { %442 = vst [vmem:[#allocation2 + $0x10] sm:$0xff] (!%p210_p3), %v7277_v5  ;;  %467 = vst [vmem:[#allocation2 + $0x58] sm:$0xff] (!%p210_p3), %v7277_v5  ;;  %v6324_v6 = vpack.c.bf16 (!%p210_p3), %v553_v4, %v552_v2  ;;  %v555_v8 = vld [vmem:[%s8686_s2 + $0x28] sm:$0xff] (!%p210_p3)  ;;  %v556_v10 = vld [vmem:[%s8686_s2 + $0x30] sm:$0xff] (!%p210_p3) }
   0x9   : > { %468 = vst [vmem:[#allocation2 + $0x60] sm:$0xff] (!%p210_p3), %v7277_v5  ;;  %469 = vst [vmem:[#allocation2 + $0x68] sm:$0xff] (!%p210_p3), %v7277_v5  ;;  %6321 = vmatprep.subr.bf16.mxu0 (!%p210_p3), %v6320_v3  ;;  %v6328_v9 = vpack.c.bf16 (!%p210_p3), %v555_v8, %v554_v7  ;;  %v557_v11 = vld [vmem:[%s8686_s2 + $0x38] sm:$0xff] (!%p210_p3)  ;;  %v558_v17 = vld [vmem:[%s8686_s2 + $0x40] sm:$0xff] (!%p210_p3) }
   0xa   : > { %2544 = vst [vmem:[#allocation3] sm:$0xff] (!%p210_p3), %v7277_v5  ;;  %2553 = vst [vmem:[#allocation3 + $0x48] sm:$0xff] (!%p210_p3), %v7277_v5  ;;  %6323 = vmatpush3.bf16.msra.mxu0 (!%p210_p3), %v6320_v3  ;;  %v6332_v14 = vpack.c.bf16 (!%p210_p3), %v557_v11, %v556_v10  ;;  %v559_v18 = vld [vmem:[%s8686_s2 + $0x48] sm:$0xff] (!%p210_p3)  ;;  %v560_v29 = vld [vmem:[%s8686_s2 + $0x50] sm:$0xff] (!%p210_p3) }
   0xb   : > { %6325 = vmatprep.subr.bf16.mxu0 (!%p210_p3), %v6324_v6  ;;  %v6336_v28 = vpack.c.bf16 (!%p210_p3), %v559_v18, %v558_v17  ;;  %v561_v30 = vld [vmem:[%s8686_s2 + $0x58] sm:$0xff] (!%p210_p3)  ;;  %v562_v44 = vld [vmem:[%s8686_s2 + $0x60] sm:$0xff] (!%p210_p3)  ;;  %v563_v45 = vld [vmem:[%s8686_s2 + $0x68] sm:$0xff] (!%p210_p3) }
   0xc   : > { %v6340_v42 = vpack.c.bf16 (!%p210_p3), %v561_v30, %v560_v29  ;;  %v6344_v46 = vpack.c.bf16 (!%p210_p3), %v563_v45, %v562_v44  ;;  %v564_v47 = vld [vmem:[%s8686_s2 + $0x70] sm:$0xff] (!%p210_p3)  ;;  %v565_v48 = vld [vmem:[%s8686_s2 + $0x78] sm:$0xff] (!%p210_p3)  ;;  %v4442_v50 = vld [vmem:[%s8686_s2 + $0x80] sm:$0xff] (!%p210_p3) }
   0xd   : > { %v6348_v49 = vpack.c.bf16 (!%p210_p3), %v565_v48, %v564_v47  ;;  %v4443_v51 = vld [vmem:[%s8686_s2 + $0x88] sm:$0xff] (!%p210_p3)  ;;  %v4444_v53 = vld [vmem:[%s8686_s2 + $0x90] sm:$0xff] (!%p210_p3)  ;;  %v4445_v54 = vld [vmem:[%s8686_s2 + $0x98] sm:$0xff] (!%p210_p3) }
   0xe   : > { %s8696_s21 = smov (!%p246_p4, %s7267_s21), 1  ;;  %6327 = vmatpush3.bf16.msra.mxu0 %v6324_v6  ;;  %v540_v12 = vld [vmem:[#allocation2 + $0x1] sm:$0xff]  ;;  %v6352_v52 = vpack.c.bf16 %v4443_v51, %v4442_v50  ;;  %v6356_v56 = vpack.c.bf16 %v4445_v54, %v4444_v53  ;;  %v4448_v63 = vld [vmem:[%s8686_s2 + $0xb0] sm:$0xff]  ;;  %v4449_v0 = vld [vmem:[%s8686_s2 + $0xb8] sm:$0xff] }
   0xf   : > { %s4767_s12 = sshll.u32 %s8696_s21, 6  ;;  %6329 = vmatprep.subr.bf16.mxu0 %v6328_v9  ;;  %5351 = vmatprep.mubr.f32.mxu0 %v540_v12  ;;  %v541_v55 = vld [vmem:[#allocation2 + $0x9] sm:$0xff]  ;;  %v4446_v58 = vld [vmem:[%s8686_s2 + $0xa0] sm:$0xff]  ;;  %v6364_v2 = vpack.c.bf16 %v4449_v0, %v4448_v63  ;;  %v4453_v11 = vld [vmem:[%s8686_s2 + $0xd8] sm:$0xff] }
  0x10   : > { %s7366_s15 = scalar_lea.vmem %s8684_s0, %s4767_s12  ;;  %v4447_v59 = vld [vmem:[%s8686_s2 + $0xa8] sm:$0xff]  ;;  %v4450_v4 = vld [vmem:[%s8686_s2 + $0xc0] sm:$0xff]  ;;  %v4452_v10 = vld [vmem:[%s8686_s2 + $0xd0] sm:$0xff]  ;;  %s8665_s14 = scalar_lea.vmem %s8690_s6, %s4767_s12 }
  0x11   : > { %v396_v13 = vld [vmem:[%s7366_s15] sm:$0xff]  ;;  %v397_v16 = vld [vmem:[%s7366_s15 + $0x8] sm:$0xff]  ;;  %v398_v20 = vld [vmem:[%s7366_s15 + $0x10] sm:$0xff]  ;;  %v6360_v61 = vpack.c.bf16 %v4447_v59, %v4446_v58 }
  0x12   : > { %vm404_vm0 = vcmp.ge.f32.partialorder %v396_v13, 0.0  ;;  %v412_v15 = vmul.f32 0.1, %v396_v13  ;;  %vm405_vm1 = vcmp.ge.f32.partialorder %v397_v16, 0.0  ;;  %v413_v19 = vmul.f32 0.1, %v397_v16  ;;  %6331 = vmatpush3.bf16.msra.mxu0 %v6328_v9 }
  0x13   : > { %vm406_vm2 = vcmp.ge.f32.partialorder %v398_v20, 0.0  ;;  %v414_v22 = vmul.f32 0.1, %v398_v20  ;;  %v399_v23 = vld [vmem:[%s7366_s15 + $0x18] sm:$0xff]  ;;  %v400_v24 = vld [vmem:[%s7366_s15 + $0x20] sm:$0xff]  ;;  %v401_v27 = vld [vmem:[%s7366_s15 + $0x28] sm:$0xff]  ;;  %6333 = vmatprep.subr.bf16.mxu0 %v6332_v14 }
  0x14   : > { %v7383_v21 = vsel %vm404_vm0, %v396_v13, %v412_v15  ;;  %v7388_v25 = vsel %vm405_vm1, %v397_v16, %v413_v19  ;;  %vm407_vm3 = vcmp.ge.f32.partialorder %v399_v23, 0.0  ;;  %v415_v26 = vmul.f32 0.1, %v399_v23  ;;  %v402_v33 = vld [vmem:[%s7366_s15 + $0x30] sm:$0xff]  ;;  %v403_v37 = vld [vmem:[%s7366_s15 + $0x38] sm:$0xff]  ;;  %v4451_v6 = vld [vmem:[%s8686_s2 + $0xc8] sm:$0xff] }
  0x15   : > { %428 = vst [vmem:[#allocation2 + $0x18] sm:$0xff] %v7383_v21  ;;  %vm408_vm4 = vcmp.ge.f32.partialorder %v400_v24, 0.0  ;;  %429 = vst [vmem:[#allocation2 + $0x20] sm:$0xff] %v7388_v25  ;;  %v7399_v31 = vsel %vm406_vm2, %v398_v20, %v414_v22  ;;  %v416_v32 = vmul.f32 0.1, %v400_v24  ;;  %vm409_vm5 = vcmp.ge.f32.partialorder %v401_v27, 0.0 }
  0x16   : > { %430 = vst [vmem:[#allocation2 + $0x28] sm:$0xff] %v7399_v31  ;;  %v7403_v34 = vsel %vm407_vm3, %v399_v23, %v415_v26  ;;  %v417_v35 = vmul.f32 0.1, %v401_v27  ;;  %vm410_vm6 = vcmp.ge.f32.partialorder %v402_v33, 0.0  ;;  %v418_v36 = vmul.f32 0.1, %v402_v33  ;;  %6335 = vmatpush3.bf16.msra.mxu0 %v6332_v14 }
  0x17   : > { %431 = vst [vmem:[#allocation2 + $0x30] sm:$0xff] %v7403_v34  ;;  %v7408_v38 = vsel %vm408_vm4, %v400_v24, %v416_v32  ;;  %vm411_vm7 = vcmp.ge.f32.partialorder %v403_v37, 0.0  ;;  %v419_v39 = vmul.f32 0.1, %v403_v37  ;;  %6337 = vmatprep.subr.bf16.mxu0 %v6336_v28  ;;  %v6368_v8 = vpack.c.bf16 %v4451_v6, %v4450_v4  ;;  %v711_v14 = vld [vmem:[#allocation2 + $0x4] sm:$0xff]  ;;  %v4456_v18 = vld [vmem:[%s8686_s2 + $0xf0] sm:$0xff] }
  0x18   : > { %432 = vst [vmem:[#allocation2 + $0x38] sm:$0xff] %v7408_v38  ;;  %v7411_v40 = vsel %vm409_vm5, %v401_v27, %v417_v35  ;;  %v7413_v41 = vsel %vm410_vm6, %v402_v33, %v418_v36  ;;  %v6372_v13 = vpack.c.bf16 %v4453_v11, %v4452_v10  ;;  %v4454_v15 = vld [vmem:[%s8686_s2 + $0xe0] sm:$0xff]  ;;  %v4455_v16 = vld [vmem:[%s8686_s2 + $0xe8] sm:$0xff]  ;;  %v4457_v19 = vld [vmem:[%s8686_s2 + $0xf8] sm:$0xff] }
  0x19   : > { %433 = vst [vmem:[#allocation2 + $0x40] sm:$0xff] %v7411_v40  ;;  %434 = vst [vmem:[#allocation2 + $0x48] sm:$0xff] %v7413_v41  ;;  %v7417_v43 = vsel %vm411_vm7, %v403_v37, %v419_v39  ;;  %v6376_v17 = vpack.c.bf16 %v4455_v16, %v4454_v15  ;;  %v6380_v20 = vpack.c.bf16 %v4457_v19, %v4456_v18  ;;  %v4458_v22 = vld [vmem:[%s8686_s2 + $0x100] sm:$0xff]  ;;  %v4459_v23 = vld [vmem:[%s8686_s2 + $0x108] sm:$0xff] }
  0x1a   : > { %435 = vst [vmem:[#allocation2 + $0x50] sm:$0xff] %v7417_v43  ;;  %6339 = vmatpush3.bf16.msra.mxu0 %v6336_v28  ;;  %v6384_v24 = vpack.c.bf16 %v4459_v23, %v4458_v22  ;;  %v4460_v26 = vld [vmem:[%s8686_s2 + $0x110] sm:$0xff]  ;;  %v4461_v27 = vld [vmem:[%s8686_s2 + $0x118] sm:$0xff]  ;;  %v4462_v32 = vld [vmem:[%s8686_s2 + $0x120] sm:$0xff] }
  0x1b   : > { %6341 = vmatprep.subr.bf16.mxu0 %v6340_v42  ;;  %v712_v28 = vld [vmem:[#allocation2 + $0xc] sm:$0xff]  ;;  %v6388_v29 = vpack.c.bf16 %v4461_v27, %v4460_v26  ;;  %v4466_v47 = vld [vmem:[%s8686_s2 + $0x140] sm:$0xff]  ;;  %v4469_v53 = vld [vmem:[%s8686_s2 + $0x158] sm:$0xff] }
  0x1c   : > { %v542_v57 = vld [vmem:[#allocation2 + $0x11] sm:$0xff]  ;;  %v7450_v60 = vld [vmem:[#allocation2 + $0x19] sm:$0xff]  ;;  %v4463_v33 = vld [vmem:[%s8686_s2 + $0x128] sm:$0xff] }
  0x1d   : > { %v7452_v62 = vld [vmem:[#allocation2 + $0x21] sm:$0xff]  ;;  %v713_v30 = vld [vmem:[#allocation2 + $0x14] sm:$0xff]  ;;  %v6392_v36 = vpack.c.bf16 %v4463_v33, %v4462_v32 }
  0x1e   : > { %6343 = vmatpush3.bf16.msra.mxu0 %v6340_v42  ;;  %v7462_v1 = vld [vmem:[#allocation2 + $0x29] sm:$0xff]  ;;  %v7519_v35 = vld [vmem:[#allocation2 + $0x1c] sm:$0xff] }
  0x1f   : > { %6345 = vmatprep.subr.bf16.mxu0 %v6344_v46  ;;  %v7464_v3 = vld [vmem:[#allocation2 + $0x31] sm:$0xff]  ;;  %v7521_v37 = vld [vmem:[#allocation2 + $0x24] sm:$0xff] }
  0x20   : > { %v7474_v7 = vld [vmem:[#allocation2 + $0x39] sm:$0xff]  ;;  %v7476_v9 = vld [vmem:[#allocation2 + $0x41] sm:$0xff]  ;;  %v4464_v39 = vld [vmem:[%s8686_s2 + $0x130] sm:$0xff] }
  0x21   : > { %v7486_v12 = vld [vmem:[#allocation2 + $0x49] sm:$0xff]  ;;  %v4465_v42 = vld [vmem:[%s8686_s2 + $0x138] sm:$0xff]  ;;  %v4478_v15 = vld [vmem:[%s8686_s2 + $0x1a0] sm:$0xff] }
  0x22   : > { %6347 = vmatpush3.bf16.msra.mxu0 %v6344_v46  ;;  %v7531_v44 = vld [vmem:[#allocation2 + $0x2c] sm:$0xff]  ;;  %v6396_v45 = vpack.c.bf16 %v4465_v42, %v4464_v39  ;;  %v7533_v46 = vld [vmem:[#allocation2 + $0x34] sm:$0xff]  ;;  %v7545_v51 = vld [vmem:[#allocation2 + $0x44] sm:$0xff] }
  0x23   : > { %6349 = vmatprep.subr.bf16.mxu0 %v6348_v49  ;;  %v4467_v48 = vld [vmem:[%s8686_s2 + $0x148] sm:$0xff]  ;;  %v4473_v63 = vld [vmem:[%s8686_s2 + $0x178] sm:$0xff]  ;;  %v4482_v27 = vld [vmem:[%s8686_s2 + $0x1c0] sm:$0xff] }
  0x24   : > { %v6400_v50 = vpack.c.bf16 %v4467_v48, %v4466_v47  ;;  %v7555_v54 = vld [vmem:[#allocation2 + $0x4c] sm:$0xff]  ;;  %v4477_v10 = vld [vmem:[%s8686_s2 + $0x198] sm:$0xff]  ;;  %v4486_v47 = vld [vmem:[%s8686_s2 + $0x1e0] sm:$0xff] }
  0x25   : > { %v4471_v58 = vld [vmem:[%s8686_s2 + $0x168] sm:$0xff]  ;;  %v4481_v22 = vld [vmem:[%s8686_s2 + $0x1b8] sm:$0xff]  ;;  %v4484_v33 = vld [vmem:[%s8686_s2 + $0x1d0] sm:$0xff] }
  0x26   : > { %6351 = vmatpush3.bf16.msra.mxu0 %v6348_v49  ;;  %v7543_v49 = vld [vmem:[#allocation2 + $0x3c] sm:$0xff]  ;;  %v4475_v4 = vld [vmem:[%s8686_s2 + $0x188] sm:$0xff] }
  0x27   : > { %6353 = vmatprep.subr.bf16.mxu0 %v6352_v52  ;;  %v884_v11 = vld [vmem:[#allocation2 + $0xf] sm:$0xff]  ;;  %v7590_v19 = vld [vmem:[#allocation2 + $0x27] sm:$0xff]  ;;  %v7602_v26 = vld [vmem:[#allocation2 + $0x37] sm:$0xff] }
  0x28   : > { %v4479_v16 = vld [vmem:[%s8686_s2 + $0x1a8] sm:$0xff] }
  0x29   : > { %5352 = vmatmul.mubr.f32.vlgmr.msra.gmra.mrb[0].mxu0 %v541_v55  ;;  %v6424_v18 = vpack.c.bf16 %v4479_v16, %v4478_v15  ;;  %v7600_v23 = vld [vmem:[#allocation2 + $0x2f] sm:$0xff]  ;;  %v7614_v32 = vld [vmem:[#allocation2 + $0x47] sm:$0xff] }
  0x2a   : > { %6355 = vmatpush3.bf16.msra.mxu0 %v6352_v52  ;;  %5354 = vmatprep.mubr.f32.mxu0 %v542_v57  ;;  %v4468_v52 = vld [vmem:[%s8686_s2 + $0x150] sm:$0xff]  ;;  %v4470_v57 = vld [vmem:[%s8686_s2 + $0x160] sm:$0xff]  ;;  %v4487_v48 = vld [vmem:[%s8686_s2 + $0x1e8] sm:$0xff] }
  0x2b   : > { %6357 = vmatprep.subr.bf16.mxu0 %v6356_v56  ;;  %v6404_v55 = vpack.c.bf16 %v4469_v53, %v4468_v52  ;;  %v6408_v59 = vpack.c.bf16 %v4471_v58, %v4470_v57  ;;  %v7624_v39 = vld [vmem:[#allocation2 + $0x4f] sm:$0xff]  ;;  %v4489_v53 = vld [vmem:[%s8686_s2 + $0x1f8] sm:$0xff] }
  0x2c   : > { %v4488_v52 = vld [vmem:[%s8686_s2 + $0x1f0] sm:$0xff]  ;;  %v4491_v57 = vld [vmem:[%s8686_s2 + $0x208] sm:$0xff] }
  0x2d   : > { %5355 = vmatmul.mubr.f32.gmra.mrb[2].mxu0 %v7450_v60  ;;  %v1060_v15 = vld [vmem:[#allocation2 + $0x32] sm:$0xff] }
  0x2e   : > { %6359 = vmatpush3.bf16.msra.mxu0 %v6356_v56  ;;  %5357 = vmatprep.mubr.f32.mxu0 %v7452_v62  ;;  %v883_v56 = vld [vmem:[#allocation2 + $0x7] sm:$0xff] }
  0x2f   : > { %6361 = vmatprep.subr.bf16.mxu0 %v6360_v61 }
  0x31   : > { %5358 = vmatmul.mubr.f32.gmra.mrb[4].mxu0 %v7462_v1 }
  0x32   : > { %6363 = vmatpush3.bf16.msra.mxu0 %v6360_v61  ;;  %5360 = vmatprep.mubr.f32.mxu0 %v7464_v3  ;;  %v4472_v61 = vld [vmem:[%s8686_s2 + $0x170] sm:$0xff] }
  0x33   : > { %6365 = vmatprep.subr.bf16.mxu0 %v6364_v2  ;;  %v6412_v0 = vpack.c.bf16 %v4473_v63, %v4472_v61  ;;  %v4493_v61 = vld [vmem:[%s8686_s2 + $0x218] sm:$0xff] }
  0x34   : > { %v1056_v63 = vld [vmem:[#allocation2 + $0x12] sm:$0xff] }
  0x35   : > { %5361 = vmatmul.mubr.f32.gmra.mrb[6].mxu0 %v7474_v7 }
  0x36   : > { %6367 = vmatpush3.bf16.msra.mxu0 %v6364_v2  ;;  %5363 = vmatprep.mubr.f32.mxu0 %v7476_v9  ;;  %v4474_v2 = vld [vmem:[%s8686_s2 + $0x180] sm:$0xff] }
  0x37   : > { %6369 = vmatprep.subr.bf16.mxu0 %v6368_v8  ;;  %v6416_v6 = vpack.c.bf16 %v4475_v4, %v4474_v2  ;;  %v1057_v2 = vld [vmem:[#allocation2 + $0x1a] sm:$0xff] }
  0x38   : > { %v4494_v4 = vld [vmem:[%s8686_s2 + $0x220] sm:$0xff] }
  0x39   : > { %5364 = vmatmul.mubr.f32.gmra.mrb[8].mxu0 %v7486_v12 }
  0x3a   : > { %6371 = vmatpush3.bf16.msra.mxu0 %v6368_v8  ;;  %5398 = vmatprep.mubr.f32.mxu0 %v711_v14  ;;  %v4476_v8 = vld [vmem:[%s8686_s2 + $0x190] sm:$0xff] }
  0x3b   : > { %6373 = vmatprep.subr.bf16.mxu0 %v6372_v13  ;;  %v885_v14 = vld [vmem:[#allocation2 + $0x17] sm:$0xff] }
  0x3e   : > { %6375 = vmatpush3.bf16.msra.mxu0 %v6372_v13  ;;  %v6420_v13 = vpack.c.bf16 %v4477_v10, %v4476_v8  ;;  %v1058_v8 = vld [vmem:[#allocation2 + $0x22] sm:$0xff] }
  0x3f   : > { %6377 = vmatprep.subr.bf16.mxu0 %v6376_v17 }
  0x42   : > { %6379 = vmatpush3.bf16.msra.mxu0 %v6376_v17  ;;  %v7588_v17 = vld [vmem:[#allocation2 + $0x1f] sm:$0xff] }
  0x43   : > { %6381 = vmatprep.subr.bf16.mxu0 %v6380_v20 }
  0x46   : > { %6383 = vmatpush3.bf16.msra.mxu0 %v6380_v20  ;;  %v4480_v20 = vld [vmem:[%s8686_s2 + $0x1b0] sm:$0xff] }
  0x47   : > { %6385 = vmatprep.subr.bf16.mxu0 %v6384_v24 }
  0x49   : > { %5399 = vmatmul.mubr.f32.vlgmr.msra.gmra.mrb[0].mxu0 %v712_v28  ;;  %v4483_v28 = vld [vmem:[%s8686_s2 + $0x1c8] sm:$0xff] }
  0x4a   : > { %6387 = vmatpush3.bf16.msra.mxu0 %v6384_v24  ;;  %5401 = vmatprep.mubr.f32.mxu0 %v713_v30  ;;  %v6428_v24 = vpack.c.bf16 %v4481_v22, %v4480_v20  ;;  %v6432_v30 = vpack.c.bf16 %v4483_v28, %v4482_v27  ;;  %v4498_v20 = vld [vmem:[%s8686_s2 + $0x240] sm:$0xff]  ;;  %v4499_v22 = vld [vmem:[%s8686_s2 + $0x248] sm:$0xff] }
  0x4b   : > { %6389 = vmatprep.subr.bf16.mxu0 %v6388_v29  ;;  %v6464_v27 = vpack.c.bf16 %v4499_v22, %v4498_v20  ;;  %v1063_v28 = vld [vmem:[#allocation2 + $0x4a] sm:$0xff]  ;;  %v4514_v20 = vld [vmem:[%s8686_s2 + $0x2c0] sm:$0xff] }
  0x4c   : > { %v4515_v22 = vld [vmem:[%s8686_s2 + $0x2c8] sm:$0xff] }
  0x4d   : > { %5402 = vmatmul.mubr.f32.gmra.mrb[2].mxu0 %v7519_v35 }
  0x4e   : > { %6391 = vmatpush3.bf16.msra.mxu0 %v6388_v29  ;;  %5404 = vmatprep.mubr.f32.mxu0 %v7521_v37  ;;  %v7612_v29 = vld [vmem:[#allocation2 + $0x3f] sm:$0xff] }
  0x4f   : > { %6393 = vmatprep.subr.bf16.mxu0 %v6392_v36 }
  0x51   : > { %5405 = vmatmul.mubr.f32.gmra.mrb[4].mxu0 %v7531_v44 }
  0x52   : > { %6395 = vmatpush3.bf16.msra.mxu0 %v6392_v36  ;;  %5407 = vmatprep.mubr.f32.mxu0 %v7533_v46  ;;  %v4485_v36 = vld [vmem:[%s8686_s2 + $0x1d8] sm:$0xff] }
  0x53   : > { %6397 = vmatprep.subr.bf16.mxu0 %v6396_v45  ;;  %v6436_v42 = vpack.c.bf16 %v4485_v36, %v4484_v33  ;;  %v4501_v33 = vld [vmem:[%s8686_s2 + $0x258] sm:$0xff] }
  0x54   : > { %v1064_v36 = vld [vmem:[#allocation2 + $0x52] sm:$0xff] }
  0x55   : > { %5408 = vmatmul.mubr.f32.gmra.mrb[6].mxu0 %v7543_v49 }
  0x56   : > { %6399 = vmatpush3.bf16.msra.mxu0 %v6396_v45  ;;  %5410 = vmatprep.mubr.f32.mxu0 %v7545_v51  ;;  %v1055_v45 = vld [vmem:[#allocation2 + $0xa] sm:$0xff] }
  0x57   : > { %6401 = vmatprep.subr.bf16.mxu0 %v6400_v50 }
  0x59   : > { %5411 = vmatmul.mubr.f32.gmra.mrb[8].mxu0 %v7555_v54 }
  0x5a   : > { %6403 = vmatpush3.bf16.msra.mxu0 %v6400_v50  ;;  %5445 = vmatprep.mubr.f32.mxu0 %v883_v56  ;;  %v6440_v50 = vpack.c.bf16 %v4487_v48, %v4486_v47  ;;  %v4490_v56 = vld [vmem:[%s8686_s2 + $0x200] sm:$0xff]  ;;  %v4503_v48 = vld [vmem:[%s8686_s2 + $0x268] sm:$0xff] }
  0x5b   : > { %6405 = vmatprep.subr.bf16.mxu0 %v6404_v55  ;;  %v6448_v58 = vpack.c.bf16 %v4491_v57, %v4490_v56  ;;  %v4502_v47 = vld [vmem:[%s8686_s2 + $0x260] sm:$0xff]  ;;  %v4507_v57 = vld [vmem:[%s8686_s2 + $0x288] sm:$0xff] }
  0x5c   : > { %v4506_v56 = vld [vmem:[%s8686_s2 + $0x280] sm:$0xff] }
  0x5e   : > { %6407 = vmatpush3.bf16.msra.mxu0 %v6404_v55  ;;  %v6444_v55 = vpack.c.bf16 %v4489_v53, %v4488_v52  ;;  %v4504_v52 = vld [vmem:[%s8686_s2 + $0x270] sm:$0xff]  ;;  %v4505_v53 = vld [vmem:[%s8686_s2 + $0x278] sm:$0xff] }
  0x5f   : > { %6409 = vmatprep.subr.bf16.mxu0 %v6408_v59 }
  0x62   : > { %6411 = vmatpush3.bf16.msra.mxu0 %v6408_v59  ;;  %v4492_v59 = vld [vmem:[%s8686_s2 + $0x210] sm:$0xff] }
  0x63   : > { %6413 = vmatprep.subr.bf16.mxu0 %v6412_v0 }
  0x66   : > { %6415 = vmatpush3.bf16.msra.mxu0 %v6412_v0  ;;  %v6452_v0 = vpack.c.bf16 %v4493_v61, %v4492_v59  ;;  %v4508_v59 = vld [vmem:[%s8686_s2 + $0x290] sm:$0xff]  ;;  %v4509_v61 = vld [vmem:[%s8686_s2 + $0x298] sm:$0xff] }
  0x67   : > { %6417 = vmatprep.subr.bf16.mxu0 %v6416_v6 }
  0x69   : > { %5446 = vmatmul.mubr.f32.vlgmr.msra.gmra.mrb[0].mxu0 %v884_v11  ;;  %v1059_v11 = vld [vmem:[#allocation2 + $0x2a] sm:$0xff] }
  0x6a   : > { %6419 = vmatpush3.bf16.msra.mxu0 %v6416_v6  ;;  %5448 = vmatprep.mubr.f32.mxu0 %v885_v14  ;;  %v4495_v6 = vld [vmem:[%s8686_s2 + $0x228] sm:$0xff]  ;;  %v4497_v14 = vld [vmem:[%s8686_s2 + $0x238] sm:$0xff] }
  0x6b   : > { %6421 = vmatprep.subr.bf16.mxu0 %v6420_v13  ;;  %v6456_v10 = vpack.c.bf16 %v4495_v6, %v4494_v4  ;;  %v4510_v4 = vld [vmem:[%s8686_s2 + $0x2a0] sm:$0xff]  ;;  %v4511_v6 = vld [vmem:[%s8686_s2 + $0x2a8] sm:$0xff] }
  0x6d   : > { %5449 = vmatmul.mubr.f32.gmra.mrb[2].mxu0 %v7588_v17 }
  0x6e   : > { %6423 = vmatpush3.bf16.msra.mxu0 %v6420_v13  ;;  %5451 = vmatprep.mubr.f32.mxu0 %v7590_v19  ;;  %v4496_v13 = vld [vmem:[%s8686_s2 + $0x230] sm:$0xff] }
  0x6f   : > { %6425 = vmatprep.subr.bf16.mxu0 %v6424_v18  ;;  %v6460_v16 = vpack.c.bf16 %v4497_v14, %v4496_v13  ;;  %v4512_v13 = vld [vmem:[%s8686_s2 + $0x2b0] sm:$0xff]  ;;  %v4513_v14 = vld [vmem:[%s8686_s2 + $0x2b8] sm:$0xff] }
  0x71   : > { %5452 = vmatmul.mubr.f32.gmra.mrb[4].mxu0 %v7600_v23 }
  0x72   : > { %6427 = vmatpush3.bf16.msra.mxu0 %v6424_v18  ;;  %5454 = vmatprep.mubr.f32.mxu0 %v7602_v26  ;;  %v1061_v18 = vld [vmem:[#allocation2 + $0x3a] sm:$0xff] }
  0x73   : > { %6429 = vmatprep.subr.bf16.mxu0 %v6428_v24 }
  0x75   : > { %5455 = vmatmul.mubr.f32.gmra.mrb[6].mxu0 %v7612_v29 }
  0x76   : > { %6431 = vmatpush3.bf16.msra.mxu0 %v6428_v24  ;;  %5457 = vmatprep.mubr.f32.mxu0 %v7614_v32  ;;  %v1062_v24 = vld [vmem:[#allocation2 + $0x42] sm:$0xff] }
  0x77   : > { %6433 = vmatprep.subr.bf16.mxu0 %v6432_v30 }
  0x79   : > { %5458 = vmatmul.mubr.f32.gmra.mrb[8].mxu0 %v7624_v39 }
  0x7a   : > { %6435 = vmatpush3.bf16.msra.mxu0 %v6432_v30  ;;  %5492 = vmatprep.mubr.f32.mxu0 %v1055_v45  ;;  %v4500_v30 = vld [vmem:[%s8686_s2 + $0x250] sm:$0xff] }
  0x7b   : > { %6437 = vmatprep.subr.bf16.mxu0 %v6436_v42  ;;  %v1227_v45 = vld [vmem:[#allocation2 + $0xd] sm:$0xff] }
  0x7e   : > { %6439 = vmatpush3.bf16.msra.mxu0 %v6436_v42  ;;  %v6468_v42 = vpack.c.bf16 %v4501_v33, %v4500_v30  ;;  %v4516_v30 = vld [vmem:[%s8686_s2 + $0x2d0] sm:$0xff]  ;;  %v4517_v33 = vld [vmem:[%s8686_s2 + $0x2d8] sm:$0xff] }
  0x7f   : > { %6441 = vmatprep.subr.bf16.mxu0 %v6440_v50 }
  0x82   : > { %6443 = vmatpush3.bf16.msra.mxu0 %v6440_v50  ;;  %v6472_v50 = vpack.c.bf16 %v4503_v48, %v4502_v47  ;;  %v4519_v47 = vld [vmem:[%s8686_s2 + $0x2e8] sm:$0xff] }
  0x83   : > { %6445 = vmatprep.subr.bf16.mxu0 %v6444_v55 }
  0x86   : > { %6447 = vmatpush3.bf16.msra.mxu0 %v6444_v55  ;;  %v6476_v55 = vpack.c.bf16 %v4505_v53, %v4504_v52  ;;  %v4521_v52 = vld [vmem:[%s8686_s2 + $0x2f8] sm:$0xff] }
  0x87   : > { %6449 = vmatprep.subr.bf16.mxu0 %v6448_v58 }
  0x89   : > { %5493 = vmatmul.mubr.f32.vlgmr.msra.gmra.mrb[0].mxu0 %v1056_v63  ;;  %v1228_v63 = vld [vmem:[#allocation2 + $0x15] sm:$0xff] }
  0x8a   : > { %6451 = vmatpush3.bf16.msra.mxu0 %v6448_v58  ;;  %5495 = vmatprep.mubr.f32.mxu0 %v1057_v2  ;;  %v6480_v58 = vpack.c.bf16 %v4507_v57, %v4506_v56  ;;  %v1229_v2 = vld [vmem:[#allocation2 + $0x1d] sm:$0xff]  ;;  %v4523_v56 = vld [vmem:[%s8686_s2 + $0x308] sm:$0xff] }
  0x8b   : > { %6453 = vmatprep.subr.bf16.mxu0 %v6452_v0 }
  0x8d   : > { %5496 = vmatmul.mubr.f32.gmra.mrb[2].mxu0 %v1058_v8  ;;  %v1230_v8 = vld [vmem:[#allocation2 + $0x25] sm:$0xff] }
  0x8e   : > { %6455 = vmatpush3.bf16.msra.mxu0 %v6452_v0  ;;  %5498 = vmatprep.mubr.f32.mxu0 %v1059_v11  ;;  %v6484_v0 = vpack.c.bf16 %v4509_v61, %v4508_v59  ;;  %v1231_v11 = vld [vmem:[#allocation2 + $0x2d] sm:$0xff]  ;;  %v4525_v59 = vld [vmem:[%s8686_s2 + $0x318] sm:$0xff] }
  0x8f   : > { %6457 = vmatprep.subr.bf16.mxu0 %v6456_v10 }
  0x91   : > { %5499 = vmatmul.mubr.f32.gmra.mrb[4].mxu0 %v1060_v15  ;;  %v1232_v15 = vld [vmem:[#allocation2 + $0x35] sm:$0xff] }
  0x92   : > { %6459 = vmatpush3.bf16.msra.mxu0 %v6456_v10  ;;  %5501 = vmatprep.mubr.f32.mxu0 %v1061_v18  ;;  %v6488_v10 = vpack.c.bf16 %v4511_v6, %v4510_v4  ;;  %v1233_v18 = vld [vmem:[#allocation2 + $0x3d] sm:$0xff]  ;;  %v4528_v4 = vld [vmem:[%s8686_s2 + $0x330] sm:$0xff] }
  0x93   : > { %6461 = vmatprep.subr.bf16.mxu0 %v6460_v16  ;;  %v4529_v6 = vld [vmem:[%s8686_s2 + $0x338] sm:$0xff] }
  0x95   : > { %5502 = vmatmul.mubr.f32.gmra.mrb[6].mxu0 %v1062_v24  ;;  %v1234_v24 = vld [vmem:[#allocation2 + $0x45] sm:$0xff] }
  0x96   : > { %6463 = vmatpush3.bf16.msra.mxu0 %v6460_v16  ;;  %5504 = vmatprep.mubr.f32.mxu0 %v1063_v28  ;;  %v6492_v16 = vpack.c.bf16 %v4513_v14, %v4512_v13  ;;  %v1235_v28 = vld [vmem:[#allocation2 + $0x4d] sm:$0xff]  ;;  %v4537_v14 = vld [vmem:[%s8686_s2 + $0x378] sm:$0xff] }
  0x97   : > { %6465 = vmatprep.subr.bf16.mxu0 %v6464_v27  ;;  %v4535_v13 = vld [vmem:[%s8686_s2 + $0x368] sm:$0xff] }
  0x99   : > { %5505 = vmatmul.mubr.f32.gmra.mrb[8].mxu0 %v1064_v36  ;;  %v1236_v36 = vld [vmem:[#allocation2 + $0x55] sm:$0xff] }
  0x9a   : > { %6467 = vmatpush3.bf16.msra.mxu0 %v6464_v27  ;;  %5539 = vmatprep.mubr.f32.mxu0 %v1227_v45  ;;  %v6496_v27 = vpack.c.bf16 %v4515_v22, %v4514_v20  ;;  %v4518_v45 = vld [vmem:[%s8686_s2 + $0x2e0] sm:$0xff]  ;;  %v4540_v20 = vld [vmem:[%s8686_s2 + $0x390] sm:$0xff]  ;;  %v4541_v22 = vld [vmem:[%s8686_s2 + $0x398] sm:$0xff] }
  0x9b   : > { %6469 = vmatprep.subr.bf16.mxu0 %v6468_v42  ;;  %v6504_v48 = vpack.c.bf16 %v4519_v47, %v4518_v45  ;;  %v1575_v45 = vld [vmem:[#allocation2 + $0x33] sm:$0xff] }
  0x9c   : > { %v4544_v47 = vld [vmem:[%s8686_s2 + $0x3b0] sm:$0xff] }
  0x9e   : > { %6471 = vmatpush3.bf16.msra.mxu0 %v6468_v42  ;;  %v6500_v42 = vpack.c.bf16 %v4517_v33, %v4516_v30  ;;  %v4542_v30 = vld [vmem:[%s8686_s2 + $0x3a0] sm:$0xff]  ;;  %v4543_v33 = vld [vmem:[%s8686_s2 + $0x3a8] sm:$0xff] }
  0x9f   : > { %6473 = vmatprep.subr.bf16.mxu0 %v6472_v50 }
  0xa2   : > { %6475 = vmatpush3.bf16.msra.mxu0 %v6472_v50  ;;  %v4520_v50 = vld [vmem:[%s8686_s2 + $0x2f0] sm:$0xff] }
  0xa3   : > { %6477 = vmatprep.subr.bf16.mxu0 %v6476_v55  ;;  %v6508_v53 = vpack.c.bf16 %v4521_v52, %v4520_v50  ;;  %v1576_v50 = vld [vmem:[#allocation2 + $0x3b] sm:$0xff] }
  0xa6   : > { %6479 = vmatpush3.bf16.msra.mxu0 %v6476_v55  ;;  %v4522_v55 = vld [vmem:[%s8686_s2 + $0x300] sm:$0xff] }
  0xa7   : > { %6481 = vmatprep.subr.bf16.mxu0 %v6480_v58  ;;  %v6512_v57 = vpack.c.bf16 %v4523_v56, %v4522_v55  ;;  %v4546_v55 = vld [vmem:[%s8686_s2 + $0x3c0] sm:$0xff]  ;;  %v4547_v56 = vld [vmem:[%s8686_s2 + $0x3c8] sm:$0xff] }
  0xa9   : > { %5540 = vmatmul.mubr.f32.vlgmr.msra.gmra.mrb[0].mxu0 %v1228_v63  ;;  %v4526_v63 = vld [vmem:[%s8686_s2 + $0x320] sm:$0xff] }
  0xaa   : > { %6483 = vmatpush3.bf16.msra.mxu0 %v6480_v58  ;;  %5542 = vmatprep.mubr.f32.mxu0 %v1229_v2  ;;  %v4524_v58 = vld [vmem:[%s8686_s2 + $0x310] sm:$0xff] }
  0xab   : > { %6485 = vmatprep.subr.bf16.mxu0 %v6484_v0  ;;  %v6516_v61 = vpack.c.bf16 %v4525_v59, %v4524_v58  ;;  %v6560_v58 = vpack.c.bf16 %v4547_v56, %v4546_v55  ;;  %v1579_v59 = vld [vmem:[#allocation2 + $0x53] sm:$0xff]  ;;  %v1748_v55 = vld [vmem:[#allocation2 + $0x3e] sm:$0xff] }
  0xad   : > { %5543 = vmatmul.mubr.f32.gmra.mrb[2].mxu0 %v1230_v8  ;;  %v4531_v8 = vld [vmem:[%s8686_s2 + $0x348] sm:$0xff] }
  0xae   : > { %6487 = vmatpush3.bf16.msra.mxu0 %v6484_v0  ;;  %5545 = vmatprep.mubr.f32.mxu0 %v1231_v11  ;;  %v4527_v0 = vld [vmem:[%s8686_s2 + $0x328] sm:$0xff]  ;;  %v1571_v11 = vld [vmem:[#allocation2 + $0x13] sm:$0xff] }
  0xaf   : > { %6489 = vmatprep.subr.bf16.mxu0 %v6488_v10  ;;  %v6520_v2 = vpack.c.bf16 %v4527_v0, %v4526_v63  ;;  %v4549_v63 = vld [vmem:[%s8686_s2 + $0x3d8] sm:$0xff] }
  0xb0   : > { %v1580_v0 = vld [vmem:[#allocation2 + $0x5b] sm:$0xff] }
  0xb1   : > { %5546 = vmatmul.mubr.f32.gmra.mrb[4].mxu0 %v1232_v15 }
  0xb2   : > { %6491 = vmatpush3.bf16.msra.mxu0 %v6488_v10  ;;  %5548 = vmatprep.mubr.f32.mxu0 %v1233_v18  ;;  %v4533_v10 = vld [vmem:[%s8686_s2 + $0x358] sm:$0xff] }
  0xb3   : > { %6493 = vmatprep.subr.bf16.mxu0 %v6492_v16 }
  0xb5   : > { %5549 = vmatmul.mubr.f32.gmra.mrb[6].mxu0 %v1234_v24  ;;  %v1572_v24 = vld [vmem:[#allocation2 + $0x1b] sm:$0xff] }
  0xb6   : > { %6495 = vmatpush3.bf16.msra.mxu0 %v6492_v16  ;;  %5551 = vmatprep.mubr.f32.mxu0 %v1235_v28  ;;  %v4538_v16 = vld [vmem:[%s8686_s2 + $0x380] sm:$0xff] }
  0xb7   : > { %6497 = vmatprep.subr.bf16.mxu0 %v6496_v27  ;;  %v1573_v28 = vld [vmem:[#allocation2 + $0x23] sm:$0xff] }
  0xb9   : > { %5552 = vmatmul.mubr.f32.gmra.mrb[8].mxu0 %v1236_v36  ;;  %v1574_v36 = vld [vmem:[#allocation2 + $0x2b] sm:$0xff] }
  0xba   : > { %6499 = vmatpush3.bf16.msra.mxu0 %v6496_v27  ;;  %5586 = vmatprep.mubr.f32.mxu0 %v7277_v5  ;;  %v6548_v27 = vpack.c.bf16 %v4541_v22, %v4540_v20  ;;  %v4555_v20 = vld [vmem:[%s8686_s2 + $0x408] sm:$0xff] }
  0xbb   : > { %6501 = vmatprep.subr.bf16.mxu0 %v6500_v42 }
  0xbe   : > { %6503 = vmatpush3.bf16.msra.mxu0 %v6500_v42  ;;  %v6552_v42 = vpack.c.bf16 %v4543_v33, %v4542_v30  ;;  %v1744_v30 = vld [vmem:[#allocation2 + $0x1e] sm:$0xff] }
  0xbf   : > { %6505 = vmatprep.subr.bf16.mxu0 %v6504_v48 }
  0xc2   : > { %6507 = vmatpush3.bf16.msra.mxu0 %v6504_v48  ;;  %v4545_v48 = vld [vmem:[%s8686_s2 + $0x3b8] sm:$0xff] }
  0xc3   : > { %6509 = vmatprep.subr.bf16.mxu0 %v6508_v53  ;;  %v6556_v52 = vpack.c.bf16 %v4545_v48, %v4544_v47  ;;  %v1746_v47 = vld [vmem:[#allocation2 + $0x2e] sm:$0xff] }
  0xc6   : > { %6511 = vmatpush3.bf16.msra.mxu0 %v6508_v53  ;;  %v1577_v53 = vld [vmem:[#allocation2 + $0x43] sm:$0xff] }
  0xc7   : > { %6513 = vmatprep.subr.bf16.mxu0 %v6512_v57 }
  0xc9   : > { %5587 = vmatmul.mubr.f32.vlgmr.msra.gmra.mrb[0].mxu0 %v7383_v21  ;;  %v6524_v21 = vpack.c.bf16 %v4529_v6, %v4528_v4  ;;  %v1743_v4 = vld [vmem:[#allocation2 + $0x16] sm:$0xff]  ;;  %v4550_v6 = vld [vmem:[%s8686_s2 + $0x3e0] sm:$0xff] }
  0xca   : > { %6515 = vmatpush3.bf16.msra.mxu0 %v6512_v57  ;;  %5589 = vmatprep.mubr.f32.mxu0 %v7388_v25  ;;  %v4530_v25 = vld [vmem:[%s8686_s2 + $0x340] sm:$0xff]  ;;  %v1578_v57 = vld [vmem:[#allocation2 + $0x4b] sm:$0xff] }
  0xcb   : > { %6517 = vmatprep.subr.bf16.mxu0 %v6516_v61 }
  0xcd   : > { %5590 = vmatmul.mubr.f32.gmra.mrb[2].mxu0 %v7399_v31  ;;  %v6528_v31 = vpack.c.bf16 %v4531_v8, %v4530_v25  ;;  %v2593_v25 = vld [vmem:[%s8688_s4] sm:$0xff]  ;;  %v2594_v8 = vld [vmem:[%s8688_s4 + $0x8] sm:$0xff] }
  0xce   : > { %6519 = vmatpush3.bf16.msra.mxu0 %v6516_v61  ;;  %5592 = vmatprep.mubr.f32.mxu0 %v7403_v34  ;;  %v4532_v34 = vld [vmem:[%s8686_s2 + $0x350] sm:$0xff] }
  0xcf   : > { %6521 = vmatprep.subr.bf16.mxu0 %v6520_v2  ;;  %v4548_v61 = vld [vmem:[%s8686_s2 + $0x3d0] sm:$0xff] }
  0xd1   : > { %5593 = vmatmul.mubr.f32.gmra.mrb[4].mxu0 %v7408_v38  ;;  %v6532_v38 = vpack.c.bf16 %v4533_v10, %v4532_v34  ;;  %v6672_v34 = vpack.c.bf16 %v2594_v8, %v2593_v25  ;;  %v2596_v10 = vld [vmem:[%s8688_s4 + $0x18] sm:$0xff]  ;;  %v4566_v25 = vld [vmem:[%s8686_s2 + $0x460] sm:$0xff]  ;;  %v4567_v8 = vld [vmem:[%s8686_s2 + $0x468] sm:$0xff] }
  0xd2   : > { %6523 = vmatpush3.bf16.msra.mxu0 %v6520_v2  ;;  %5595 = vmatprep.mubr.f32.mxu0 %v7411_v40  ;;  %v4534_v40 = vld [vmem:[%s8686_s2 + $0x360] sm:$0xff]  ;;  %v6564_v2 = vpack.c.bf16 %v4549_v63, %v4548_v61  ;;  %v1750_v61 = vld [vmem:[#allocation2 + $0x4e] sm:$0xff] }
  0xd3   : > { %6525 = vmatprep.subr.bf16.mxu0 %v6524_v21  ;;  %6673 = vmatprep.subr.bf16.mxu1 %v6672_v34 }
  0xd4   : > { %6675 = vmatpush3.bf16.msra.mxu1 %v6672_v34  ;;  %v4568_v34 = vld [vmem:[%s8686_s2 + $0x470] sm:$0xff] }
  0xd5   : > { %5596 = vmatmul.mubr.f32.gmra.mrb[6].mxu0 %v7413_v41  ;;  %v6536_v41 = vpack.c.bf16 %v4535_v13, %v4534_v40  ;;  %v2597_v40 = vld [vmem:[%s8688_s4 + $0x20] sm:$0xff]  ;;  %v2598_v13 = vld [vmem:[%s8688_s4 + $0x28] sm:$0xff] }
  0xd6   : > { %6527 = vmatpush3.bf16.msra.mxu0 %v6524_v21  ;;  %5598 = vmatprep.mubr.f32.mxu0 %v7417_v43  ;;  %v4536_v43 = vld [vmem:[%s8686_s2 + $0x370] sm:$0xff]  ;;  %v4551_v21 = vld [vmem:[%s8686_s2 + $0x3e8] sm:$0xff] }
  0xd7   : > { %6529 = vmatprep.subr.bf16.mxu0 %v6528_v31  ;;  %v6540_v15 = vpack.c.bf16 %v4537_v14, %v4536_v43  ;;  %v4553_v43 = vld [vmem:[%s8686_s2 + $0x3f8] sm:$0xff]  ;;  %v6680_v14 = vpack.c.bf16 %v2598_v13, %v2597_v40  ;;  %v4572_v13 = vld [vmem:[%s8686_s2 + $0x490] sm:$0xff] }
  0xd9   : > { %5599 = vmatmul.mubr.f32.gmra.mrb[8].mxu0 %v7277_v5  ;;  %v4539_v5 = vld [vmem:[%s8686_s2 + $0x388] sm:$0xff] }
  0xda   : > { %6531 = vmatpush3.bf16.msra.mxu0 %v6528_v31  ;;  %5633 = vmatprep.mubr.f32.mxu0 %v1571_v11  ;;  %v6544_v18 = vpack.c.bf16 %v4539_v5, %v4538_v16  ;;  %v2595_v31 = vld [vmem:[%s8688_s4 + $0x10] sm:$0xff]  ;;  %v2600_v5 = vld [vmem:[%s8688_s4 + $0x38] sm:$0xff] }
  0xdb   : > { %6533 = vmatprep.subr.bf16.mxu0 %v6532_v38  ;;  %v6676_v11 = vpack.c.bf16 %v2596_v10, %v2595_v31  ;;  %v2599_v16 = vld [vmem:[%s8688_s4 + $0x30] sm:$0xff]  ;;  %v6600_v31 = vpack.c.bf16 %v4567_v8, %v4566_v25  ;;  %v4569_v10 = vld [vmem:[%s8686_s2 + $0x478] sm:$0xff] }
  0xdc   : > { %v6684_v22 = vpack.c.bf16 %v2600_v5, %v2599_v16  ;;  %v4576_v5 = vld [vmem:[%s8686_s2 + $0x4b0] sm:$0xff]  ;;  %v4601_v8 = vld [vmem:[%s8686_s2 + $0x578] sm:$0xff] }
  0xdd   : > { %6677 = vmatprep.subr.bf16.mxu1 %v6676_v11  ;;  %v4600_v25 = vld [vmem:[%s8686_s2 + $0x570] sm:$0xff] }
  0xde   : > { %6535 = vmatpush3.bf16.msra.mxu0 %v6532_v38  ;;  %v6568_v38 = vpack.c.bf16 %v4551_v21, %v4550_v6  ;;  %6679 = vmatpush3.bf16.msra.mxu1 %v6676_v11  ;;  %v1752_v6 = vld [vmem:[#allocation2 + $0x5e] sm:$0xff] }
  0xdf   : > { %6537 = vmatprep.subr.bf16.mxu0 %v6536_v41  ;;  %6681 = vmatprep.subr.bf16.mxu1 %v6680_v14  ;;  %v4570_v11 = vld [vmem:[%s8686_s2 + $0x480] sm:$0xff] }
  0xe2   : > { %6539 = vmatpush3.bf16.msra.mxu0 %v6536_v41  ;;  %v4552_v41 = vld [vmem:[%s8686_s2 + $0x3f0] sm:$0xff]  ;;  %6683 = vmatpush3.bf16.msra.mxu1 %v6680_v14  ;;  %v4574_v14 = vld [vmem:[%s8686_s2 + $0x4a0] sm:$0xff] }
  0xe3   : > { %6541 = vmatprep.subr.bf16.mxu0 %v6540_v15  ;;  %6685 = vmatprep.subr.bf16.mxu1 %v6684_v22 }
  0xe6   : > { %6543 = vmatpush3.bf16.msra.mxu0 %v6540_v15  ;;  %v6572_v15 = vpack.c.bf16 %v4553_v43, %v4552_v41  ;;  %6687 = vmatpush3.bf16.msra.mxu1 %v6684_v22  ;;  %v4573_v41 = vld [vmem:[%s8686_s2 + $0x498] sm:$0xff] }
  0xe7   : > { %6545 = vmatprep.subr.bf16.mxu0 %v6544_v18  ;;  %v6612_v43 = vpack.c.bf16 %v4573_v41, %v4572_v13  ;;  %v1922_v22 = vld [vmem:[#allocation2 + $0x51] sm:$0xff] }
  0xe8   : > { %v2608_v13 = vld [vmem:[%s8688_s4 + $0x78] sm:$0xff] }
  0xe9   : > { %5634 = vmatmul.mubr.f32.vlgmr.msra.gmra.mrb[0].mxu0 %v1572_v24 }
  0xea   : > { %6547 = vmatpush3.bf16.msra.mxu0 %v6544_v18  ;;  %5636 = vmatprep.mubr.f32.mxu0 %v1573_v28  ;;  %v4554_v18 = vld [vmem:[%s8686_s2 + $0x400] sm:$0xff]  ;;  %v4557_v28 = vld [vmem:[%s8686_s2 + $0x418] sm:$0xff] }
  0xeb   : > { %6549 = vmatprep.subr.bf16.mxu0 %v6548_v27  ;;  %v6576_v24 = vpack.c.bf16 %v4555_v20, %v4554_v18  ;;  %v4577_v18 = vld [vmem:[%s8686_s2 + $0x4b8] sm:$0xff]  ;;  %v4579_v20 = vld [vmem:[%s8686_s2 + $0x4c8] sm:$0xff] }
  0xed   : > { %5637 = vmatmul.mubr.f32.gmra.mrb[2].mxu0 %v1574_v36  ;;  %v1745_v36 = vld [vmem:[#allocation2 + $0x26] sm:$0xff] }
  0xee   : > { %6551 = vmatpush3.bf16.msra.mxu0 %v6548_v27  ;;  %5639 = vmatprep.mubr.f32.mxu0 %v1575_v45  ;;  %v4556_v27 = vld [vmem:[%s8686_s2 + $0x410] sm:$0xff]  ;;  %v4559_v45 = vld [vmem:[%s8686_s2 + $0x428] sm:$0xff] }
  0xef   : > { %6553 = vmatprep.subr.bf16.mxu0 %v6552_v42  ;;  %v6580_v33 = vpack.c.bf16 %v4557_v28, %v4556_v27  ;;  %v4581_v27 = vld [vmem:[%s8686_s2 + $0x4d8] sm:$0xff]  ;;  %v1924_v28 = vld [vmem:[#allocation2 + $0x61] sm:$0xff] }
  0xf1   : > { %5640 = vmatmul.mubr.f32.gmra.mrb[4].mxu0 %v1576_v50  ;;  %v1747_v50 = vld [vmem:[#allocation2 + $0x36] sm:$0xff] }
  0xf2   : > { %6555 = vmatpush3.bf16.msra.mxu0 %v6552_v42  ;;  %5642 = vmatprep.mubr.f32.mxu0 %v1577_v53  ;;  %v4558_v42 = vld [vmem:[%s8686_s2 + $0x420] sm:$0xff]  ;;  %v4561_v53 = vld [vmem:[%s8686_s2 + $0x438] sm:$0xff] }
  0xf3   : > { %6557 = vmatprep.subr.bf16.mxu0 %v6556_v52  ;;  %v6584_v48 = vpack.c.bf16 %v4559_v45, %v4558_v42  ;;  %v4585_v42 = vld [vmem:[%s8686_s2 + $0x4f8] sm:$0xff] }
  0xf5   : > { %5643 = vmatmul.mubr.f32.gmra.mrb[6].mxu0 %v1578_v57  ;;  %v1749_v57 = vld [vmem:[#allocation2 + $0x46] sm:$0xff] }
  0xf6   : > { %6559 = vmatpush3.bf16.msra.mxu0 %v6556_v52  ;;  %5645 = vmatprep.mubr.f32.mxu0 %v1579_v59  ;;  %v4560_v52 = vld [vmem:[%s8686_s2 + $0x430] sm:$0xff]  ;;  %v4563_v59 = vld [vmem:[%s8686_s2 + $0x448] sm:$0xff] }
  0xf7   : > { %6561 = vmatprep.subr.bf16.mxu0 %v6560_v58  ;;  %v6588_v56 = vpack.c.bf16 %v4561_v53, %v4560_v52  ;;  %v4589_v52 = vld [vmem:[%s8686_s2 + $0x518] sm:$0xff] }
  0xf9   : > { %5646 = vmatmul.mubr.f32.gmra.mrb[8].mxu0 %v1580_v0  ;;  %v1751_v0 = vld [vmem:[#allocation2 + $0x56] sm:$0xff] }
  0xfa   : > { %6563 = vmatpush3.bf16.msra.mxu0 %v6560_v58  ;;  %5680 = vmatprep.mubr.f32.mxu0 %v1743_v4  ;;  %v4562_v58 = vld [vmem:[%s8686_s2 + $0x440] sm:$0xff]  ;;  %v4565_v4 = vld [vmem:[%s8686_s2 + $0x458] sm:$0xff] }
  0xfb   : > { %6565 = vmatprep.subr.bf16.mxu0 %v6564_v2  ;;  %v6592_v63 = vpack.c.bf16 %v4563_v59, %v4562_v58  ;;  %v4592_v58 = vld [vmem:[%s8686_s2 + $0x530] sm:$0xff]  ;;  %v4593_v59 = vld [vmem:[%s8686_s2 + $0x538] sm:$0xff] }
  0xfe   : > { %6567 = vmatpush3.bf16.msra.mxu0 %v6564_v2  ;;  %v4564_v2 = vld [vmem:[%s8686_s2 + $0x450] sm:$0xff] }
  0xff   : > { %6569 = vmatprep.subr.bf16.mxu0 %v6568_v38  ;;  %v6596_v21 = vpack.c.bf16 %v4565_v4, %v4564_v2  ;;  %v4597_v2 = vld [vmem:[%s8686_s2 + $0x558] sm:$0xff]  ;;  %v2096_v4 = vld [vmem:[#allocation2 + $0x64] sm:$0xff] }
 0x102   : > { %6571 = vmatpush3.bf16.msra.mxu0 %v6568_v38  ;;  %v6604_v38 = vpack.c.bf16 %v4569_v10, %v4568_v34  ;;  %v2267_v34 = vld [vmem:[#allocation2 + $0x5f] sm:$0xff]  ;;  %v2268_v10 = vld [vmem:[#allocation2 + $0x67] sm:$0xff] }
 0x103   : > { %6573 = vmatprep.subr.bf16.mxu0 %v6572_v15 }
 0x106   : > { %6575 = vmatpush3.bf16.msra.mxu0 %v6572_v15  ;;  %v4575_v15 = vld [vmem:[%s8686_s2 + $0x4a8] sm:$0xff] }
 0x107   : > { %6577 = vmatprep.subr.bf16.mxu0 %v6576_v24  ;;  %v6616_v16 = vpack.c.bf16 %v4575_v15, %v4574_v14  ;;  %v4604_v14 = vld [vmem:[%s8688_s4 + $0x88] sm:$0xff] }
 0x109   : > { %5681 = vmatmul.mubr.f32.vlgmr.msra.gmra.mrb[0].mxu0 %v1744_v30  ;;  %v4583_v30 = vld [vmem:[%s8686_s2 + $0x4e8] sm:$0xff] }
 0x10a   : > { %6579 = vmatpush3.bf16.msra.mxu0 %v6576_v24  ;;  %5683 = vmatprep.mubr.f32.mxu0 %v1745_v36  ;;  %v1923_v24 = vld [vmem:[#allocation2 + $0x59] sm:$0xff]  ;;  %v4584_v36 = vld [vmem:[%s8686_s2 + $0x4f0] sm:$0xff] }
 0x10b   : > { %6581 = vmatprep.subr.bf16.mxu0 %v6580_v33  ;;  %v6636_v45 = vpack.c.bf16 %v4585_v42, %v4584_v36 }
 0x10d   : > { %5684 = vmatmul.mubr.f32.gmra.mrb[2].mxu0 %v1746_v47  ;;  %v4586_v47 = vld [vmem:[%s8686_s2 + $0x500] sm:$0xff] }
 0x10e   : > { %6583 = vmatpush3.bf16.msra.mxu0 %v6580_v33  ;;  %5686 = vmatprep.mubr.f32.mxu0 %v1747_v50  ;;  %v4588_v50 = vld [vmem:[%s8686_s2 + $0x510] sm:$0xff] }
 0x10f   : > { %6585 = vmatprep.subr.bf16.mxu0 %v6584_v48  ;;  %v6644_v53 = vpack.c.bf16 %v4589_v52, %v4588_v50  ;;  %v499_v50 = vld [vmem:[#allocation2 + $0x40] sm:$0xff] }
 0x111   : > { %5687 = vmatmul.mubr.f32.gmra.mrb[4].mxu0 %v1748_v55  ;;  %v4590_v55 = vld [vmem:[%s8686_s2 + $0x520] sm:$0xff] }
 0x112   : > { %6587 = vmatpush3.bf16.msra.mxu0 %v6584_v48  ;;  %5689 = vmatprep.mubr.f32.mxu0 %v1749_v57 }
 0x113   : > { %6589 = vmatprep.subr.bf16.mxu0 %v6588_v56 }
 0x115   : > { %5690 = vmatmul.mubr.f32.gmra.mrb[6].mxu0 %v1750_v61  ;;  %v4595_v61 = vld [vmem:[%s8686_s2 + $0x548] sm:$0xff] }
 0x116   : > { %6591 = vmatpush3.bf16.msra.mxu0 %v6588_v56  ;;  %5692 = vmatprep.mubr.f32.mxu0 %v1751_v0  ;;  %v4591_v56 = vld [vmem:[%s8686_s2 + $0x528] sm:$0xff]  ;;  %v2095_v0 = vld [vmem:[#allocation2 + $0x5c] sm:$0xff] }
 0x117   : > { %6593 = vmatprep.subr.bf16.mxu0 %v6592_v63  ;;  %v6648_v57 = vpack.c.bf16 %v4591_v56, %v4590_v55 }
 0x119   : > { %5693 = vmatmul.mubr.f32.gmra.mrb[8].mxu0 %v1752_v6  ;;  %v4599_v6 = vld [vmem:[%s8686_s2 + $0x568] sm:$0xff] }
 0x11a   : > { %6595 = vmatpush3.bf16.msra.mxu0 %v6592_v63  ;;  %5727 = vmatprep.mubr.f32.mxu0 %v7450_v60  ;;  %v4571_v60 = vld [vmem:[%s8686_s2 + $0x488] sm:$0xff]  ;;  %v2094_v63 = vld [vmem:[#allocation2 + $0x54] sm:$0xff] }
 0x11b   : > { %6597 = vmatprep.subr.bf16.mxu0 %v6596_v21  ;;  %v6608_v40 = vpack.c.bf16 %v4571_v60, %v4570_v11  ;;  %v2606_v11 = vld [vmem:[%s8688_s4 + $0x68] sm:$0xff] }
 0x11e   : > { %6599 = vmatpush3.bf16.msra.mxu0 %v6596_v21 }
 0x11f   : > { %6601 = vmatprep.subr.bf16.mxu0 %v6600_v31 }
 0x122   : > { %6603 = vmatpush3.bf16.msra.mxu0 %v6600_v31  ;;  %v6668_v31 = vpack.c.bf16 %v4601_v8, %v4600_v25  ;;  %v4605_v25 = vld [vmem:[%s8688_s4 + $0x90] sm:$0xff]  ;;  %v4606_v8 = vld [vmem:[%s8688_s4 + $0x98] sm:$0xff] }
 0x123   : > { %6605 = vmatprep.subr.bf16.mxu0 %v6604_v38 }
 0x126   : > { %6607 = vmatpush3.bf16.msra.mxu0 %v6604_v38  ;;  %v2605_v38 = vld [vmem:[%s8688_s4 + $0x60] sm:$0xff] }
 0x127   : > { %6609 = vmatprep.subr.bf16.mxu0 %v6608_v40  ;;  %v6696_v60 = vpack.c.bf16 %v2606_v11, %v2605_v38  ;;  %v4608_v11 = vld [vmem:[%s8688_s4 + $0xa8] sm:$0xff] }
 0x129   : > { %5728 = vmatmul.mubr.f32.vlgmr.msra.gmra.mrb[0].mxu0 %v7452_v62  ;;  %v6620_v62 = vpack.c.bf16 %v4577_v18, %v4576_v5  ;;  %v4441_v5 = vld [vmem:[%s8687_s3] ss:$0 sm:$0xff] }
 0x12a   : > { %6611 = vmatpush3.bf16.msra.mxu0 %v6608_v40  ;;  %5730 = vmatprep.mubr.f32.mxu0 %v7462_v1  ;;  %v4578_v1 = vld [vmem:[%s8686_s2 + $0x4c0] sm:$0xff]  ;;  %v2607_v40 = vld [vmem:[%s8688_s4 + $0x70] sm:$0xff] }
 0x12b   : > { %6613 = vmatprep.subr.bf16.mxu0 %v6612_v43  ;;  %v6700_v41 = vpack.c.bf16 %v2608_v13, %v2607_v40  ;;  %v4609_v13 = vld [vmem:[%s8688_s4 + $0xb0] sm:$0xff] }
 0x12d   : > { %5731 = vmatmul.mubr.f32.gmra.mrb[2].mxu0 %v7464_v3  ;;  %v6624_v3 = vpack.c.bf16 %v4579_v20, %v4578_v1  ;;  %v495_v1 = vld [vmem:[#allocation2 + $0x20] sm:$0xff] }
 0x12e   : > { %6615 = vmatpush3.bf16.msra.mxu0 %v6612_v43  ;;  %5733 = vmatprep.mubr.f32.mxu0 %v7474_v7  ;;  %v4580_v7 = vld [vmem:[%s8686_s2 + $0x4d0] sm:$0xff]  ;;  %v4603_v43 = vld [vmem:[%s8688_s4 + $0x80] sm:$0xff] }
 0x12f   : > { %6617 = vmatprep.subr.bf16.mxu0 %v6616_v16  ;;  %v8060_v15 = vpack.c.bf16 %v4604_v14, %v4603_v43 }
 0x131   : > { %5734 = vmatmul.mubr.f32.gmra.mrb[4].mxu0 %v7476_v9  ;;  %v6628_v9 = vpack.c.bf16 %v4581_v27, %v4580_v7  ;;  %v512_v7 = vadd.f32 %v4441_v5, %v495_v1  ;;  %v498_v27 = vld [vmem:[#allocation2 + $0x38] sm:$0xff]  ;;  %v4612_v1 = vld [vmem:[%s8688_s4 + $0xc8] sm:$0xff] }
 0x132   : > { %6619 = vmatpush3.bf16.msra.mxu0 %v6616_v16  ;;  %5736 = vmatprep.mubr.f32.mxu0 %v7486_v12  ;;  %v4582_v12 = vld [vmem:[%s8686_s2 + $0x4e0] sm:$0xff]  ;;  %v494_v16 = vld [vmem:[#allocation2 + $0x18] sm:$0xff]  ;;  %v515_v42 = vadd.f32 %v4441_v5, %v498_v27 }
 0x133   : > { %6621 = vmatprep.subr.bf16.mxu0 %v6620_v62  ;;  %v6632_v33 = vpack.c.bf16 %v4583_v30, %v4582_v12  ;;  %v511_v18 = vadd.f32 %v4441_v5, %v494_v16  ;;  %v4610_v16 = vld [vmem:[%s8688_s4 + $0xb8] sm:$0xff] }
 0x135   : > { %5737 = vmatmul.mubr.f32.gmra.mrb[6].mxu0 %v1922_v22 }
 0x136   : > { %6623 = vmatpush3.bf16.msra.mxu0 %v6620_v62  ;;  %5739 = vmatprep.mubr.f32.mxu0 %v1923_v24  ;;  %v496_v62 = vld [vmem:[#allocation2 + $0x28] sm:$0xff] }
 0x137   : > { %6625 = vmatprep.subr.bf16.mxu0 %v6624_v3  ;;  %v513_v24 = vadd.f32 %v4441_v5, %v496_v62 }
 0x139   : > { %5740 = vmatmul.mubr.f32.gmra.mrb[8].mxu0 %v1924_v28 }
 0x13a   : > { %6627 = vmatpush3.bf16.msra.mxu0 %v6624_v3  ;;  %5774 = vmatprep.mubr.f32.mxu0 %v7519_v35  ;;  %v4587_v35 = vld [vmem:[%s8686_s2 + $0x508] sm:$0xff] }
 0x13b   : > { %6629 = vmatprep.subr.bf16.mxu0 %v6628_v9  ;;  %v6640_v48 = vpack.c.bf16 %v4587_v35, %v4586_v47  ;;  %v500_v35 = vld [vmem:[#allocation2 + $0x48] sm:$0xff] }
 0x13e   : > { %6631 = vmatpush3.bf16.msra.mxu0 %v6628_v9  ;;  %v497_v9 = vld [vmem:[#allocation2 + $0x30] sm:$0xff] }
 0x13f   : > { %6633 = vmatprep.subr.bf16.mxu0 %v6632_v33  ;;  %v514_v47 = vadd.f32 %v4441_v5, %v497_v9  ;;  %v4616_v9 = vld [vmem:[%s8688_s4 + $0xe8] sm:$0xff] }
 0x142   : > { %6635 = vmatpush3.bf16.msra.mxu0 %v6632_v33 }
 0x143   : > { %6637 = vmatprep.subr.bf16.mxu0 %v6636_v45 }
 0x146   : > { %6639 = vmatpush3.bf16.msra.mxu0 %v6636_v45 }
 0x147   : > { %6641 = vmatprep.subr.bf16.mxu0 %v6640_v48 }
 0x149   : > { %5775 = vmatmul.mubr.f32.vlgmr.msra.gmra.mrb[0].mxu0 %v7521_v37  ;;  %v6652_v37 = vpack.c.bf16 %v4593_v59, %v4592_v58  ;;  %v517_v58 = vadd.f32 %v4441_v5, %v500_v35 }
 0x14a   : > { %6643 = vmatpush3.bf16.msra.mxu0 %v6640_v48  ;;  %5777 = vmatprep.mubr.f32.mxu0 %v7531_v44  ;;  %v4594_v44 = vld [vmem:[%s8686_s2 + $0x540] sm:$0xff] }
 0x14b   : > { %6645 = vmatprep.subr.bf16.mxu0 %v6644_v53 }
 0x14d   : > { %5778 = vmatmul.mubr.f32.gmra.mrb[2].mxu0 %v7533_v46  ;;  %v6656_v46 = vpack.c.bf16 %v4595_v61, %v4594_v44  ;;  %v516_v44 = vadd.f32 %v4441_v5, %v499_v50  ;;  %v4622_v50 = vld [vmem:[%s8688_s4 + $0x118] sm:$0xff] }
 0x14e   : > { %6647 = vmatpush3.bf16.msra.mxu0 %v6644_v53  ;;  %5780 = vmatprep.mubr.f32.mxu0 %v7543_v49  ;;  %v4596_v49 = vld [vmem:[%s8686_s2 + $0x550] sm:$0xff] }
 0x14f   : > { %6649 = vmatprep.subr.bf16.mxu0 %v6648_v57 }
 0x151   : > { %5781 = vmatmul.mubr.f32.gmra.mrb[4].mxu0 %v7545_v51  ;;  %v6660_v51 = vpack.c.bf16 %v4597_v2, %v4596_v49 }
 0x152   : > { %6651 = vmatpush3.bf16.msra.mxu0 %v6648_v57  ;;  %5783 = vmatprep.mubr.f32.mxu0 %v7555_v54  ;;  %v4598_v54 = vld [vmem:[%s8686_s2 + $0x560] sm:$0xff] }
 0x153   : > { %6653 = vmatprep.subr.bf16.mxu0 %v6652_v37  ;;  %v6664_v21 = vpack.c.bf16 %v4599_v6, %v4598_v54 }
 0x155   : > { %5784 = vmatmul.mubr.f32.gmra.mrb[6].mxu0 %v2094_v63  ;;  %v501_v63 = vld [vmem:[#allocation2 + $0x50] sm:$0xff] }
 0x156   : > { %6655 = vmatpush3.bf16.msra.mxu0 %v6652_v37  ;;  %5786 = vmatprep.mubr.f32.mxu0 %v2095_v0 }
 0x157   : > { %6657 = vmatprep.subr.bf16.mxu0 %v6656_v46 }
 0x159   : > { %5787 = vmatmul.mubr.f32.gmra.mrb[8].mxu0 %v2096_v4 }
 0x15a   : > { %6659 = vmatpush3.bf16.msra.mxu0 %v6656_v46  ;;  %5821 = vmatprep.mubr.f32.mxu0 %v7588_v17  ;;  %v2266_v17 = vld [vmem:[#allocation2 + $0x57] sm:$0xff] }
 0x15b   : > { %6661 = vmatprep.subr.bf16.mxu0 %v6660_v51 }
 0x15e   : > { %6663 = vmatpush3.bf16.msra.mxu0 %v6660_v51 }
 0x15f   : > { %6665 = vmatprep.subr.bf16.mxu0 %v6664_v21 }
 0x162   : > { %6667 = vmatpush3.bf16.msra.mxu0 %v6664_v21  ;;  %v518_v21 = vadd.f32 %v4441_v5, %v501_v63  ;;  %v4611_v5 = vld [vmem:[%s8688_s4 + $0xc0] sm:$0xff]  ;;  %v4626_v63 = vld [vmem:[%s8688_s4 + $0x138] sm:$0xff] }
 0x163   : > { %6669 = vmatprep.subr.bf16.mxu0 %v6668_v31 }
 0x166   : > { %6671 = vmatpush3.bf16.msra.mxu0 %v6668_v31 }
 0x169   : > { %5822 = vmatmul.mubr.f32.vlgmr.msra.gmra.mrb[0].mxu0 %v7590_v19  ;;  %v2601_v19 = vld [vmem:[%s8688_s4 + $0x40] sm:$0xff] }
 0x16a   : > { %5824 = vmatprep.mubr.f32.mxu0 %v7600_v23  ;;  %v2602_v23 = vld [vmem:[%s8688_s4 + $0x48] sm:$0xff] }
 0x16d   : > { %5825 = vmatmul.mubr.f32.gmra.mrb[2].mxu0 %v7602_v26  ;;  %v6688_v26 = vpack.c.bf16 %v2602_v23, %v2601_v19  ;;  %v6708_v23 = vpack.c.bf16 %v4606_v8, %v4605_v25  ;;  %v4629_v8 = vld [vmem:[%s8688_s4 + $0x150] sm:$0xff] }
 0x16e   : > { %5827 = vmatprep.mubr.f32.mxu0 %v7612_v29  ;;  %v2603_v29 = vld [vmem:[%s8688_s4 + $0x50] sm:$0xff] }
 0x16f   : > { %6689 = vmatprep.subr.bf16.mxu1 %v6688_v26 }
 0x170   : > { %6691 = vmatpush3.bf16.msra.mxu1 %v6688_v26  ;;  %v4607_v26 = vld [vmem:[%s8688_s4 + $0xa0] sm:$0xff] }
 0x171   : > { %5828 = vmatmul.mubr.f32.gmra.mrb[4].mxu0 %v7614_v32  ;;  %v2604_v32 = vld [vmem:[%s8688_s4 + $0x58] sm:$0xff]  ;;  %v6712_v40 = vpack.c.bf16 %v4608_v11, %v4607_v26 }
 0x172   : > { %5830 = vmatprep.mubr.f32.mxu0 %v7624_v39  ;;  %v6692_v39 = vpack.c.bf16 %v2604_v32, %v2603_v29  ;;  %v4634_v11 = vld [vmem:[%s8688_s4 + $0x178] sm:$0xff] }
 0x174   : > { %6693 = vmatprep.subr.bf16.mxu1 %v6692_v39 }
 0x175   : > { %5831 = vmatmul.mubr.f32.gmra.mrb[6].mxu0 %v2266_v17  ;;  %6695 = vmatpush3.bf16.msra.mxu1 %v6692_v39 }
 0x176   : > { %5833 = vmatprep.mubr.f32.mxu0 %v2267_v34  ;;  %6697 = vmatprep.subr.bf16.mxu1 %v6696_v60 }
 0x179   : > { %5834 = vmatmul.mubr.f32.gmra.mrb[8].mxu0 %v2268_v10  ;;  %6699 = vmatpush3.bf16.msra.mxu1 %v6696_v60 }
 0x17a   : > { %6701 = vmatprep.subr.bf16.mxu1 %v6700_v41 }
 0x17d   : > { %6703 = vmatpush3.bf16.msra.mxu1 %v6700_v41 }
 0x17e   : > { %6705 = vmatprep.subr.bf16.mxu1 %v8060_v15 }
 0x23c   : > { %v5823_v20 = vpop.f32.mrb[0].mxu0 }
 0x23d   : > { %v7024_v22 = vadd.f32 %v5823_v20, %v511_v18  ;;  %v2352_v3 = vpop.f32.mrb[1].mxu0  ;;  %v6720_v20 = vpack.c.bf16 %v4612_v1, %v4611_v5  ;;  %v4638_v5 = vld [vmem:[%s8688_s4 + $0x198] sm:$0xff] }
 0x23e   : > { %v4613_v3 = vld [vmem:[%s8688_s4 + $0xd0] sm:$0xff] }
 0x23f   : > { %vm2432_vm8 = vcmp.ge.f32.partialorder %v7024_v22, 0.0  ;;  %v2442_v28 = vmul.f32 0.1, %v7024_v22 }
 0x240   : > { %v5826_v12 = vpop.f32.mrb[2].mxu0 }
 0x241   : > { %v8066_v30 = vsel %vm2432_vm8, %v7024_v22, %v2442_v28  ;;  %v7025_v33 = vadd.f32 %v5826_v12, %v513_v24  ;;  %v2362_v36 = vpop.f32.mrb[3].mxu0  ;;  %v4614_v24 = vld [vmem:[%s8688_s4 + $0xd8] sm:$0xff]  ;;  %v4615_v28 = vld [vmem:[%s8688_s4 + $0xe0] sm:$0xff] }
 0x242   : > { %2545 = vst [vmem:[#allocation3 + $0x8] sm:$0xff] %v8066_v30  ;;  %v7026_v45 = vadd.f32 %v2362_v36, %v512_v7  ;;  %v6724_v27 = vpack.c.bf16 %v4614_v24, %v4613_v3  ;;  %v6728_v12 = vpack.c.bf16 %v4616_v9, %v4615_v28  ;;  %v4618_v36 = vld [vmem:[%s8688_s4 + $0xf8] sm:$0xff]  ;;  %v4639_v3 = vld [vmem:[%s8688_s4 + $0x1a0] sm:$0xff]  ;;  %v4640_v24 = vld [vmem:[%s8688_s4 + $0x1a8] sm:$0xff] }
 0x243   : > { %vm2434_vm9 = vcmp.ge.f32.partialorder %v7025_v33, 0.0  ;;  %v2444_v48 = vmul.f32 0.1, %v7025_v33  ;;  %v4641_v9 = vld [vmem:[%s8688_s4 + $0x1b0] sm:$0xff] }
 0x244   : > { %vm2433_vm10 = vcmp.ge.f32.partialorder %v7026_v45, 0.0  ;;  %v2443_v52 = vmul.f32 0.1, %v7026_v45  ;;  %v5829_v53 = vpop.f32.mrb[4].mxu0 }
 0x245   : > { %v8069_v55 = vsel %vm2434_vm9, %v7025_v33, %v2444_v48  ;;  %v7027_v56 = vadd.f32 %v5829_v53, %v515_v42  ;;  %v2372_v57 = vpop.f32.mrb[5].mxu0  ;;  %v4617_v33 = vld [vmem:[%s8688_s4 + $0xf0] sm:$0xff] }
 0x246   : > { %2547 = vst [vmem:[#allocation3 + $0x18] sm:$0xff] %v8069_v55  ;;  %v8072_v59 = vsel %vm2433_vm10, %v7026_v45, %v2443_v52  ;;  %v7028_v37 = vadd.f32 %v2372_v57, %v514_v47  ;;  %v6732_v42 = vpack.c.bf16 %v4618_v36, %v4617_v33  ;;  %v4619_v45 = vld [vmem:[%s8688_s4 + $0x100] sm:$0xff]  ;;  %v4620_v47 = vld [vmem:[%s8688_s4 + $0x108] sm:$0xff]  ;;  %v4621_v48 = vld [vmem:[%s8688_s4 + $0x110] sm:$0xff] }
 0x247   : > { %2546 = vst [vmem:[#allocation3 + $0x10] sm:$0xff] %v8072_v59  ;;  %vm2436_vm11 = vcmp.ge.f32.partialorder %v7027_v56, 0.0  ;;  %v2446_v61 = vmul.f32 0.1, %v7027_v56  ;;  %v6736_v35 = vpack.c.bf16 %v4620_v47, %v4619_v45  ;;  %v6740_v52 = vpack.c.bf16 %v4622_v50, %v4621_v48  ;;  %v4624_v57 = vld [vmem:[%s8688_s4 + $0x128] sm:$0xff]  ;;  %v4643_v45 = vld [vmem:[%s8688_s4 + $0x1c0] sm:$0xff] }
 0x248   : > { %vm2435_vm12 = vcmp.ge.f32.partialorder %v7028_v37, 0.0  ;;  %v2445_v46 = vmul.f32 0.1, %v7028_v37  ;;  %v5832_v0 = vpop.f32.mrb[6].mxu0  ;;  %v4644_v47 = vld [vmem:[%s8688_s4 + $0x1c8] sm:$0xff] }
 0x249   : > { %v8075_v49 = vsel %vm2436_vm11, %v7027_v56, %v2446_v61  ;;  %v7029_v2 = vadd.f32 %v5832_v0, %v517_v58  ;;  %v2382_v4 = vpop.f32.mrb[7].mxu0  ;;  %v2585_v51 = vld [vmem:[#allocation3 + $0x3] sm:$0xff]  ;;  %v4623_v56 = vld [vmem:[%s8688_s4 + $0x120] sm:$0xff]  ;;  %v6784_v48 = vpack.c.bf16 %v4644_v47, %v4643_v45 }
 0x24a   : > { %2549 = vst [vmem:[#allocation3 + $0x28] sm:$0xff] %v8075_v49  ;;  %v8078_v54 = vsel %vm2435_vm12, %v7028_v37, %v2445_v46  ;;  %v7030_v6 = vadd.f32 %v2382_v4, %v516_v44  ;;  %5868 = vmatprep.mubr.f32.mxu1 %v2585_v51  ;;  %v2738_v7 = vld [vmem:[#allocation3 + $0x4] sm:$0xff]  ;;  %v6744_v37 = vpack.c.bf16 %v4624_v57, %v4623_v56  ;;  %v4627_v4 = vld [vmem:[%s8688_s4 + $0x140] sm:$0xff]  ;;  %v4628_v51 = vld [vmem:[%s8688_s4 + $0x148] sm:$0xff] }
 0x24b   : > { %2548 = vst [vmem:[#allocation3 + $0x20] sm:$0xff] %v8078_v54  ;;  %vm2438_vm13 = vcmp.ge.f32.partialorder %v7029_v2, 0.0  ;;  %v2448_v31 = vmul.f32 0.1, %v7029_v2  ;;  %v4625_v61 = vld [vmem:[%s8688_s4 + $0x130] sm:$0xff]  ;;  %v4646_v56 = vld [vmem:[%s8688_s4 + $0x1d8] sm:$0xff] }
 0x24c   : > { %vm2437_vm14 = vcmp.ge.f32.partialorder %v7030_v6, 0.0  ;;  %v2447_v17 = vmul.f32 0.1, %v7030_v6  ;;  %v5835_v34 = vpop.f32.mrb[8].mxu0  ;;  %v6748_v0 = vpack.c.bf16 %v4626_v63, %v4625_v61  ;;  %v3046_v57 = vld [vmem:[#allocation3 + $0x6] sm:$0xff]  ;;  %v4647_v61 = vld [vmem:[%s8688_s4 + $0x1e0] sm:$0xff] }
 0x24d   : > { %v8087_v10 = vsel %vm2438_vm13, %v7029_v2, %v2448_v31  ;;  %v2392_v19 = vpop.f32.mrb[9].mxu0  ;;  %v4630_v31 = vld [vmem:[%s8688_s4 + $0x158] sm:$0xff]  ;;  %v4648_v63 = vld [vmem:[%s8688_s4 + $0x1e8] sm:$0xff]  ;;  %v4661_v45 = vld [vmem:[%s8688_s4 + $0x250] sm:$0xff] }
 0x24e   : > { %2551 = vst [vmem:[#allocation3 + $0x38] sm:$0xff] %v8087_v10  ;;  %v8093_v29 = vsel %vm2437_vm14, %v7030_v6, %v2447_v17  ;;  %v7031_v32 = vadd.f32 %v2392_v19, %v518_v21  ;;  %v8095_v39 = vld [vmem:[#allocation3 + $0xb] sm:$0xff]  ;;  %v8097_v38 = vld [vmem:[#allocation3 + $0x13] sm:$0xff]  ;;  %v6752_v21 = vpack.c.bf16 %v4628_v51, %v4627_v4  ;;  %v6756_v34 = vpack.c.bf16 %v4630_v31, %v4629_v8  ;;  %v4649_v4 = vld [vmem:[%s8688_s4 + $0x1f0] sm:$0xff] }
 0x24f   : > { %2550 = vst [vmem:[#allocation3 + $0x30] sm:$0xff] %v8093_v29  ;;  %5869 = vmatmul.mubr.f32.vlgmr.msra.gmra.mrb[0].mxu1 %v8095_v39  ;;  %v8166_v53 = vld [vmem:[#allocation3 + $0xc] sm:$0xff]  ;;  %v8175_v58 = vld [vmem:[#allocation3 + $0x14] sm:$0xff] }
 0x250   : > { %vm2439_vm15 = vcmp.ge.f32.partialorder %v7031_v32, 0.0  ;;  %v2449_v60 = vmul.f32 0.1, %v7031_v32  ;;  %6707 = vmatpush3.bf16.msra.mxu1 %v8060_v15  ;;  %5871 = vmatprep.mubr.f32.mxu1 %v8097_v38  ;;  %v6716_v15 = vpack.c.bf16 %v4610_v16, %v4609_v13  ;;  %v2892_v17 = vld [vmem:[#allocation3 + $0x5] sm:$0xff]  ;;  %v4631_v19 = vld [vmem:[%s8688_s4 + $0x160] sm:$0xff]  ;;  %v4636_v13 = vld [vmem:[%s8688_s4 + $0x188] sm:$0xff] }
 0x251   : > { %6709 = vmatprep.subr.bf16.mxu1 %v6708_v23  ;;  %v4650_v51 = vld [vmem:[%s8688_s4 + $0x1f8] sm:$0xff]  ;;  %v4651_v8 = vld [vmem:[%s8688_s4 + $0x200] sm:$0xff]  ;;  %v4652_v31 = vld [vmem:[%s8688_s4 + $0x208] sm:$0xff] }
 0x252   : > { %v8109_v41 = vsel %vm2439_vm15, %v7031_v32, %v2449_v60  ;;  %v8111_v43 = vld [vmem:[#allocation3 + $0x1b] sm:$0xff]  ;;  %v8113_v14 = vld [vmem:[#allocation3 + $0x23] sm:$0xff] }
 0x253   : > { %2552 = vst [vmem:[#allocation3 + $0x40] sm:$0xff] %v8109_v41  ;;  %5872 = vmatmul.mubr.f32.gmra.mrb[2].mxu1 %v8111_v43  ;;  %v8178_v44 = vld [vmem:[#allocation3 + $0x1c] sm:$0xff]  ;;  %v8187_v46 = vld [vmem:[#allocation3 + $0x24] sm:$0xff] }
 0x254   : > { %6711 = vmatpush3.bf16.msra.mxu1 %v6708_v23  ;;  %5874 = vmatprep.mubr.f32.mxu1 %v8113_v14  ;;  %v4632_v23 = vld [vmem:[%s8688_s4 + $0x168] sm:$0xff]  ;;  %v4633_v32 = vld [vmem:[%s8688_s4 + $0x170] sm:$0xff]  ;;  %v4662_v47 = vld [vmem:[%s8688_s4 + $0x258] sm:$0xff] }
 0x255   : > { %6713 = vmatprep.subr.bf16.mxu1 %v6712_v40  ;;  %v6760_v26 = vpack.c.bf16 %v4632_v23, %v4631_v19  ;;  %v6764_v60 = vpack.c.bf16 %v4634_v11, %v4633_v32  ;;  %v8247_v28 = vld [vmem:[#allocation3 + $0x1d] sm:$0xff]  ;;  %v8256_v33 = vld [vmem:[#allocation3 + $0x25] sm:$0xff]  ;;  %v4655_v32 = vld [vmem:[%s8688_s4 + $0x220] sm:$0xff] }
 0x256   : > { %v8124_v18 = vld [vmem:[#allocation3 + $0x2b] sm:$0xff]  ;;  %v8126_v62 = vld [vmem:[#allocation3 + $0x33] sm:$0xff] }
 0x257   : > { %5875 = vmatmul.mubr.f32.gmra.mrb[4].mxu1 %v8124_v18  ;;  %v8190_v2 = vld [vmem:[#allocation3 + $0x2c] sm:$0xff]  ;;  %v8199_v6 = vld [vmem:[#allocation3 + $0x34] sm:$0xff] }
 0x258   : > { %6715 = vmatpush3.bf16.msra.mxu1 %v6712_v40  ;;  %5877 = vmatprep.mubr.f32.mxu1 %v8126_v62  ;;  %v4635_v40 = vld [vmem:[%s8688_s4 + $0x180] sm:$0xff]  ;;  %v4654_v19 = vld [vmem:[%s8688_s4 + $0x218] sm:$0xff]  ;;  %v4656_v11 = vld [vmem:[%s8688_s4 + $0x228] sm:$0xff] }
 0x259   : > { %6717 = vmatprep.subr.bf16.mxu1 %v6716_v15  ;;  %v6768_v16 = vpack.c.bf16 %v4636_v13, %v4635_v40  ;;  %v6808_v40 = vpack.c.bf16 %v4656_v11, %v4655_v32  ;;  %v3049_v13 = vld [vmem:[#allocation3 + $0x1e] sm:$0xff] }
 0x25a   : > { %v8133_v22 = vld [vmem:[#allocation3 + $0x3b] sm:$0xff] }
 0x25b   : > { %5878 = vmatmul.mubr.f32.gmra.mrb[6].mxu1 %v8133_v22  ;;  %v8202_v25 = vld [vmem:[#allocation3 + $0x3c] sm:$0xff] }
 0x25c   : > { %6719 = vmatpush3.bf16.msra.mxu1 %v6716_v15  ;;  %5912 = vmatprep.mubr.f32.mxu1 %v2738_v7  ;;  %v4637_v15 = vld [vmem:[%s8688_s4 + $0x190] sm:$0xff]  ;;  %v8244_v7 = vld [vmem:[#allocation3 + $0x15] sm:$0xff] }
 0x25d   : > { %6721 = vmatprep.subr.bf16.mxu1 %v6720_v20  ;;  %v6772_v1 = vpack.c.bf16 %v4638_v5, %v4637_v15  ;;  %v8271_v50 = vld [vmem:[#allocation3 + $0x3d] sm:$0xff]  ;;  %v4658_v15 = vld [vmem:[%s8688_s4 + $0x238] sm:$0xff] }
 0x25e   : > { %v3050_v5 = vld [vmem:[#allocation3 + $0x26] sm:$0xff] }
 0x25f   : > { %v3203_v11 = vld [vmem:[#allocation3 + $0x1f] sm:$0xff] }
 0x260   : > { %6723 = vmatpush3.bf16.msra.mxu1 %v6720_v20  ;;  %v8235_v20 = vld [vmem:[#allocation3 + $0xd] sm:$0xff] }
 0x261   : > { %6725 = vmatprep.subr.bf16.mxu1 %v6724_v27 }
 0x264   : > { %6727 = vmatpush3.bf16.msra.mxu1 %v6724_v27  ;;  %v6776_v27 = vpack.c.bf16 %v4640_v24, %v4639_v3  ;;  %v3051_v3 = vld [vmem:[#allocation3 + $0x2e] sm:$0xff] }
 0x265   : > { %6729 = vmatprep.subr.bf16.mxu1 %v6728_v12  ;;  %v4659_v24 = vld [vmem:[%s8688_s4 + $0x240] sm:$0xff] }
 0x268   : > { %6731 = vmatpush3.bf16.msra.mxu1 %v6728_v12  ;;  %v4642_v12 = vld [vmem:[%s8688_s4 + $0x1b8] sm:$0xff] }
 0x269   : > { %6733 = vmatprep.subr.bf16.mxu1 %v6732_v42  ;;  %v6780_v36 = vpack.c.bf16 %v4642_v12, %v4641_v9  ;;  %v3052_v9 = vld [vmem:[#allocation3 + $0x36] sm:$0xff] }
 0x26c   : > { %6735 = vmatpush3.bf16.msra.mxu1 %v6732_v42  ;;  %v8259_v42 = vld [vmem:[#allocation3 + $0x2d] sm:$0xff] }
 0x26d   : > { %6737 = vmatprep.subr.bf16.mxu1 %v6736_v35 }
 0x26f   : > { %5913 = vmatmul.mubr.f32.vlgmr.msra.gmra.mrb[0].mxu1 %v8166_v53 }
 0x270   : > { %5915 = vmatprep.mubr.f32.mxu1 %v8175_v58  ;;  %6739 = vmatpush3.bf16.msra.mxu1 %v6736_v35  ;;  %v8268_v35 = vld [vmem:[#allocation3 + $0x35] sm:$0xff] }
 0x271   : > { %6741 = vmatprep.subr.bf16.mxu1 %v6740_v52 }
 0x273   : > { %5916 = vmatmul.mubr.f32.gmra.mrb[2].mxu1 %v8178_v44 }
 0x274   : > { %5918 = vmatprep.mubr.f32.mxu1 %v8187_v46  ;;  %6743 = vmatpush3.bf16.msra.mxu1 %v6740_v52  ;;  %v4645_v52 = vld [vmem:[%s8688_s4 + $0x1d0] sm:$0xff] }
 0x275   : > { %6745 = vmatprep.subr.bf16.mxu1 %v6744_v37 }
 0x277   : > { %5919 = vmatmul.mubr.f32.gmra.mrb[4].mxu1 %v8190_v2 }
 0x278   : > { %5921 = vmatprep.mubr.f32.mxu1 %v8199_v6  ;;  %6747 = vmatpush3.bf16.msra.mxu1 %v6744_v37  ;;  %v6788_v37 = vpack.c.bf16 %v4646_v56, %v4645_v52  ;;  %v6820_v52 = vpack.c.bf16 %v4662_v47, %v4661_v45  ;;  %v4663_v56 = vld [vmem:[%s8688_s4 + $0x260] sm:$0xff]  ;;  %v4680_v47 = vld [vmem:[%s8688_s4 + $0x2e8] sm:$0xff] }
 0x279   : > { %6749 = vmatprep.subr.bf16.mxu1 %v6748_v0  ;;  %v4679_v45 = vld [vmem:[%s8688_s4 + $0x2e0] sm:$0xff] }
 0x27b   : > { %5922 = vmatmul.mubr.f32.gmra.mrb[6].mxu1 %v8202_v25 }
 0x27c   : > { %6751 = vmatpush3.bf16.msra.mxu1 %v6748_v0  ;;  %5956 = vmatprep.mubr.f32.mxu1 %v2892_v17  ;;  %v6792_v0 = vpack.c.bf16 %v4648_v63, %v4647_v61  ;;  %v6800_v17 = vpack.c.bf16 %v4652_v31, %v4651_v8  ;;  %v4665_v61 = vld [vmem:[%s8688_s4 + $0x270] sm:$0xff]  ;;  %v4666_v63 = vld [vmem:[%s8688_s4 + $0x278] sm:$0xff] }
 0x27d   : > { %6753 = vmatprep.subr.bf16.mxu1 %v6752_v21  ;;  %v4669_v8 = vld [vmem:[%s8688_s4 + $0x290] sm:$0xff]  ;;  %v4670_v31 = vld [vmem:[%s8688_s4 + $0x298] sm:$0xff] }
 0x280   : > { %6755 = vmatpush3.bf16.msra.mxu1 %v6752_v21  ;;  %v6796_v21 = vpack.c.bf16 %v4650_v51, %v4649_v4  ;;  %v4667_v4 = vld [vmem:[%s8688_s4 + $0x280] sm:$0xff]  ;;  %v4668_v51 = vld [vmem:[%s8688_s4 + $0x288] sm:$0xff] }
 0x281   : > { %6757 = vmatprep.subr.bf16.mxu1 %v6756_v34 }
 0x284   : > { %6759 = vmatpush3.bf16.msra.mxu1 %v6756_v34  ;;  %v4653_v34 = vld [vmem:[%s8688_s4 + $0x210] sm:$0xff] }
 0x285   : > { %6761 = vmatprep.subr.bf16.mxu1 %v6760_v26  ;;  %v6804_v23 = vpack.c.bf16 %v4654_v19, %v4653_v34  ;;  %v3201_v34 = vld [vmem:[#allocation3 + $0xf] sm:$0xff] }
 0x286   : > { %v4671_v19 = vld [vmem:[%s8688_s4 + $0x2a0] sm:$0xff] }
 0x288   : > { %6763 = vmatpush3.bf16.msra.mxu1 %v6760_v26  ;;  %v3047_v26 = vld [vmem:[#allocation3 + $0xe] sm:$0xff] }
 0x289   : > { %6765 = vmatprep.subr.bf16.mxu1 %v6764_v60 }
 0x28c   : > { %6767 = vmatpush3.bf16.msra.mxu1 %v6764_v60  ;;  %v3048_v60 = vld [vmem:[#allocation3 + $0x16] sm:$0xff] }
 0x28d   : > { %6769 = vmatprep.subr.bf16.mxu1 %v6768_v16 }
 0x28f   : > { %5957 = vmatmul.mubr.f32.vlgmr.msra.gmra.mrb[0].mxu1 %v8235_v20 }
 0x290   : > { %5959 = vmatprep.mubr.f32.mxu1 %v8244_v7  ;;  %6771 = vmatpush3.bf16.msra.mxu1 %v6768_v16  ;;  %v4657_v16 = vld [vmem:[%s8688_s4 + $0x230] sm:$0xff] }
 0x291   : > { %6773 = vmatprep.subr.bf16.mxu1 %v6772_v1 }
 0x293   : > { %5960 = vmatmul.mubr.f32.gmra.mrb[2].mxu1 %v8247_v28 }
 0x294   : > { %5962 = vmatprep.mubr.f32.mxu1 %v8256_v33  ;;  %6775 = vmatpush3.bf16.msra.mxu1 %v6772_v1  ;;  %v6812_v1 = vpack.c.bf16 %v4658_v15, %v4657_v16  ;;  %v3205_v15 = vld [vmem:[#allocation3 + $0x2f] sm:$0xff] }
 0x295   : > { %6777 = vmatprep.subr.bf16.mxu1 %v6776_v27 }
 0x297   : > { %5963 = vmatmul.mubr.f32.gmra.mrb[4].mxu1 %v8259_v42 }
 0x298   : > { %5965 = vmatprep.mubr.f32.mxu1 %v8268_v35  ;;  %6779 = vmatpush3.bf16.msra.mxu1 %v6776_v27  ;;  %v4660_v27 = vld [vmem:[%s8688_s4 + $0x248] sm:$0xff] }
 0x299   : > { %6781 = vmatprep.subr.bf16.mxu1 %v6780_v36  ;;  %v6816_v12 = vpack.c.bf16 %v4660_v27, %v4659_v24  ;;  %v3207_v27 = vld [vmem:[#allocation3 + $0x3f] sm:$0xff] }
 0x29b   : > { %5966 = vmatmul.mubr.f32.gmra.mrb[6].mxu1 %v8271_v50 }
 0x29c   : > { %6783 = vmatpush3.bf16.msra.mxu1 %v6780_v36  ;;  %6000 = vmatprep.mubr.f32.mxu1 %v3046_v57  ;;  %v3053_v36 = vld [vmem:[#allocation3 + $0x3e] sm:$0xff] }
 0x29d   : > { %6785 = vmatprep.subr.bf16.mxu1 %v6784_v48  ;;  %v4664_v57 = vld [vmem:[%s8688_s4 + $0x268] sm:$0xff] }
 0x2a0   : > { %6787 = vmatpush3.bf16.msra.mxu1 %v6784_v48  ;;  %v3200_v48 = vld [vmem:[#allocation3 + $0x7] sm:$0xff] }
 0x2a1   : > { %6789 = vmatprep.subr.bf16.mxu1 %v6788_v37 }
 0x2a4   : > { %6791 = vmatpush3.bf16.msra.mxu1 %v6788_v37  ;;  %v6824_v37 = vpack.c.bf16 %v4664_v57, %v4663_v56  ;;  %v4683_v57 = vld [vmem:[%s8688_s4 + $0x300] sm:$0xff] }
 0x2a5   : > { %6793 = vmatprep.subr.bf16.mxu1 %v6792_v0 }
 0x2a8   : > { %6795 = vmatpush3.bf16.msra.mxu1 %v6792_v0  ;;  %v6828_v0 = vpack.c.bf16 %v4666_v63, %v4665_v61  ;;  %v4685_v63 = vld [vmem:[%s8688_s4 + $0x310] sm:$0xff] }
 0x2a9   : > { %6797 = vmatprep.subr.bf16.mxu1 %v6796_v21 }
 0x2ac   : > { %6799 = vmatpush3.bf16.msra.mxu1 %v6796_v21  ;;  %v6832_v21 = vpack.c.bf16 %v4668_v51, %v4667_v4  ;;  %v4687_v51 = vld [vmem:[%s8688_s4 + $0x320] sm:$0xff] }
 0x2ad   : > { %6801 = vmatprep.subr.bf16.mxu1 %v6800_v17 }
 0x2af   : > { %6001 = vmatmul.mubr.f32.vlgmr.msra.gmra.mrb[0].mxu1 %v3047_v26  ;;  %v3202_v26 = vld [vmem:[#allocation3 + $0x17] sm:$0xff] }
 0x2b0   : > { %6003 = vmatprep.mubr.f32.mxu1 %v3048_v60  ;;  %6803 = vmatpush3.bf16.msra.mxu1 %v6800_v17  ;;  %v6836_v17 = vpack.c.bf16 %v4670_v31, %v4669_v8  ;;  %v4673_v60 = vld [vmem:[%s8688_s4 + $0x2b0] sm:$0xff] }
 0x2b1   : > { %6805 = vmatprep.subr.bf16.mxu1 %v6804_v23  ;;  %v4689_v31 = vld [vmem:[%s8688_s4 + $0x330] sm:$0xff] }
 0x2b3   : > { %6004 = vmatmul.mubr.f32.gmra.mrb[2].mxu1 %v3049_v13  ;;  %v3204_v13 = vld [vmem:[#allocation3 + $0x27] sm:$0xff] }
 0x2b4   : > { %6006 = vmatprep.mubr.f32.mxu1 %v3050_v5  ;;  %6807 = vmatpush3.bf16.msra.mxu1 %v6804_v23  ;;  %v4672_v23 = vld [vmem:[%s8688_s4 + $0x2a8] sm:$0xff]  ;;  %v4675_v5 = vld [vmem:[%s8688_s4 + $0x2c0] sm:$0xff] }
 0x2b5   : > { %6809 = vmatprep.subr.bf16.mxu1 %v6808_v40  ;;  %v6840_v32 = vpack.c.bf16 %v4672_v23, %v4671_v19  ;;  %v4694_v19 = vld [vmem:[%s8688_s4 + $0x358] sm:$0xff] }
 0x2b6   : > { %v3508_v23 = vld [vmem:[#allocation3 + $0x9] sm:$0xff] }
 0x2b7   : > { %6007 = vmatmul.mubr.f32.gmra.mrb[4].mxu1 %v3051_v3  ;;  %v3206_v3 = vld [vmem:[#allocation3 + $0x37] sm:$0xff] }
 0x2b8   : > { %6009 = vmatprep.mubr.f32.mxu1 %v3052_v9  ;;  %6811 = vmatpush3.bf16.msra.mxu1 %v6808_v40  ;;  %v4674_v40 = vld [vmem:[%s8688_s4 + $0x2b8] sm:$0xff]  ;;  %v4677_v9 = vld [vmem:[%s8688_s4 + $0x2d0] sm:$0xff] }
 0x2b9   : > { %6813 = vmatprep.subr.bf16.mxu1 %v6812_v1  ;;  %v6844_v16 = vpack.c.bf16 %v4674_v40, %v4673_v60  ;;  %v4699_v40 = vld [vmem:[%s8688_s4 + $0x380] sm:$0xff] }
 0x2bb   : > { %6010 = vmatmul.mubr.f32.gmra.mrb[6].mxu1 %v3053_v36 }
 0x2bc   : > { %6815 = vmatpush3.bf16.msra.mxu1 %v6812_v1  ;;  %6044 = vmatprep.mubr.f32.mxu1 %v3200_v48  ;;  %v4676_v1 = vld [vmem:[%s8688_s4 + $0x2c8] sm:$0xff]  ;;  %v6856_v48 = vpack.c.bf16 %v4680_v47, %v4679_v45  ;;  %v4705_v45 = vld [vmem:[%s8688_s4 + $0x3b0] sm:$0xff]  ;;  %v4706_v47 = vld [vmem:[%s8688_s4 + $0x3b8] sm:$0xff] }
 0x2bd   : > { %6817 = vmatprep.subr.bf16.mxu1 %v6816_v12  ;;  %v6848_v24 = vpack.c.bf16 %v4676_v1, %v4675_v5  ;;  %v4702_v5 = vld [vmem:[%s8688_s4 + $0x398] sm:$0xff] }
 0x2c0   : > { %6819 = vmatpush3.bf16.msra.mxu1 %v6816_v12  ;;  %v4678_v12 = vld [vmem:[%s8688_s4 + $0x2d8] sm:$0xff] }
 0x2c1   : > { %6821 = vmatprep.subr.bf16.mxu1 %v6820_v52  ;;  %v6852_v36 = vpack.c.bf16 %v4678_v12, %v4677_v9  ;;  %v3510_v9 = vld [vmem:[#allocation3 + $0x19] sm:$0xff] }
 0x2c4   : > { %6823 = vmatpush3.bf16.msra.mxu1 %v6820_v52  ;;  %v4681_v52 = vld [vmem:[%s8688_s4 + $0x2f0] sm:$0xff] }
 0x2c5   : > { %6825 = vmatprep.subr.bf16.mxu1 %v6824_v37 }
 0x2c8   : > { %6827 = vmatpush3.bf16.msra.mxu1 %v6824_v37  ;;  %v4684_v37 = vld [vmem:[%s8688_s4 + $0x308] sm:$0xff] }
 0x2c9   : > { %6829 = vmatprep.subr.bf16.mxu1 %v6828_v0  ;;  %v6864_v61 = vpack.c.bf16 %v4684_v37, %v4683_v57  ;;  %v4708_v57 = vld [vmem:[%s8688_s4 + $0x3c8] sm:$0xff] }
 0x2ca   : > { %v3514_v37 = vld [vmem:[#allocation3 + $0x39] sm:$0xff] }
 0x2cc   : > { %6831 = vmatpush3.bf16.msra.mxu1 %v6828_v0  ;;  %v4686_v0 = vld [vmem:[%s8688_s4 + $0x318] sm:$0xff] }
 0x2cd   : > { %6833 = vmatprep.subr.bf16.mxu1 %v6832_v21  ;;  %v6868_v4 = vpack.c.bf16 %v4686_v0, %v4685_v63  ;;  %v3515_v63 = vld [vmem:[#allocation3 + $0x41] sm:$0xff] }
 0x2ce   : > { %v4709_v0 = vld [vmem:[%s8688_s4 + $0x3d0] sm:$0xff] }
 0x2cf   : > { %6045 = vmatmul.mubr.f32.vlgmr.msra.gmra.mrb[0].mxu1 %v3201_v34  ;;  %v4692_v34 = vld [vmem:[%s8688_s4 + $0x348] sm:$0xff] }
 0x2d0   : > { %6047 = vmatprep.mubr.f32.mxu1 %v3202_v26  ;;  %6835 = vmatpush3.bf16.msra.mxu1 %v6832_v21  ;;  %v4688_v21 = vld [vmem:[%s8688_s4 + $0x328] sm:$0xff] }
 0x2d1   : > { %6837 = vmatprep.subr.bf16.mxu1 %v6836_v17  ;;  %v6872_v8 = vpack.c.bf16 %v4688_v21, %v4687_v51  ;;  %v4696_v26 = vld [vmem:[%s8688_s4 + $0x368] sm:$0xff]  ;;  %v3662_v51 = vld [vmem:[#allocation3 + $0xa] sm:$0xff] }
 0x2d3   : > { %6048 = vmatmul.mubr.f32.gmra.mrb[2].mxu1 %v3203_v11  ;;  %v4698_v11 = vld [vmem:[%s8688_s4 + $0x378] sm:$0xff] }
 0x2d4   : > { %6050 = vmatprep.mubr.f32.mxu1 %v3204_v13  ;;  %6839 = vmatpush3.bf16.msra.mxu1 %v6836_v17  ;;  %v4690_v17 = vld [vmem:[%s8688_s4 + $0x338] sm:$0xff]  ;;  %v4700_v13 = vld [vmem:[%s8688_s4 + $0x388] sm:$0xff] }
 0x2d5   : > { %6841 = vmatprep.subr.bf16.mxu1 %v6840_v32 }
 0x2d7   : > { %6051 = vmatmul.mubr.f32.gmra.mrb[4].mxu1 %v3205_v15  ;;  %v4701_v15 = vld [vmem:[%s8688_s4 + $0x390] sm:$0xff] }
 0x2d8   : > { %6053 = vmatprep.mubr.f32.mxu1 %v3206_v3  ;;  %6843 = vmatpush3.bf16.msra.mxu1 %v6840_v32  ;;  %v6900_v1 = vpack.c.bf16 %v4702_v5, %v4701_v15  ;;  %v3509_v3 = vld [vmem:[#allocation3 + $0x11] sm:$0xff] }
 0x2d9   : > { %6845 = vmatprep.subr.bf16.mxu1 %v6844_v16  ;;  %v3666_v15 = vld [vmem:[#allocation3 + $0x2a] sm:$0xff] }
 0x2db   : > { %6054 = vmatmul.mubr.f32.gmra.mrb[6].mxu1 %v3207_v27  ;;  %v4704_v27 = vld [vmem:[%s8688_s4 + $0x3a8] sm:$0xff] }
 0x2dc   : > { %6847 = vmatpush3.bf16.msra.mxu1 %v6844_v16  ;;  %6088 = vmatprep.mubr.f32.mxu1 %v8066_v30  ;;  %v4682_v30 = vld [vmem:[%s8688_s4 + $0x2f8] sm:$0xff]  ;;  %v6896_v16 = vpack.c.bf16 %v4700_v13, %v4699_v40  ;;  %v4721_v13 = vld [vmem:[%s8688_s4 + $0x430] sm:$0xff] }
 0x2dd   : > { %6849 = vmatprep.subr.bf16.mxu1 %v6848_v24  ;;  %v6860_v56 = vpack.c.bf16 %v4682_v30, %v4681_v52  ;;  %v6908_v52 = vpack.c.bf16 %v4706_v47, %v4705_v45  ;;  %v3513_v30 = vld [vmem:[#allocation3 + $0x31] sm:$0xff]  ;;  %v3665_v40 = vld [vmem:[#allocation3 + $0x22] sm:$0xff] }
 0x2de   : > { %v4726_v45 = vld [vmem:[%s8688_s4 + $0x458] sm:$0xff] }
 0x2e0   : > { %6851 = vmatpush3.bf16.msra.mxu1 %v6848_v24  ;;  %v4703_v24 = vld [vmem:[%s8688_s4 + $0x3a0] sm:$0xff] }
 0x2e1   : > { %6853 = vmatprep.subr.bf16.mxu1 %v6852_v36  ;;  %v6904_v12 = vpack.c.bf16 %v4704_v27, %v4703_v24  ;;  %v4724_v24 = vld [vmem:[%s8688_s4 + $0x448] sm:$0xff] }
 0x2e2   : > { %v3668_v27 = vld [vmem:[#allocation3 + $0x3a] sm:$0xff] }
 0x2e4   : > { %6855 = vmatpush3.bf16.msra.mxu1 %v6852_v36  ;;  %v3511_v36 = vld [vmem:[#allocation3 + $0x21] sm:$0xff] }
 0x2e5   : > { %6857 = vmatprep.subr.bf16.mxu1 %v6856_v48 }
 0x2e8   : > { %6859 = vmatpush3.bf16.msra.mxu1 %v6856_v48  ;;  %v3512_v48 = vld [vmem:[#allocation3 + $0x29] sm:$0xff] }
 0x2e9   : > { %6861 = vmatprep.subr.bf16.mxu1 %v6860_v56 }
 0x2ec   : > { %6863 = vmatpush3.bf16.msra.mxu1 %v6860_v56  ;;  %v4707_v56 = vld [vmem:[%s8688_s4 + $0x3c0] sm:$0xff] }
 0x2ed   : > { %6865 = vmatprep.subr.bf16.mxu1 %v6864_v61 }
 0x2ef   : > { %6089 = vmatmul.mubr.f32.vlgmr.msra.gmra.mrb[0].mxu1 %v8072_v59  ;;  %v6876_v59 = vpack.c.bf16 %v4690_v17, %v4689_v31  ;;  %v4712_v31 = vld [vmem:[%s8688_s4 + $0x3e8] sm:$0xff] }
 0x2f0   : > { %6091 = vmatprep.mubr.f32.mxu1 %v8069_v55  ;;  %6867 = vmatpush3.bf16.msra.mxu1 %v6864_v61  ;;  %v4691_v55 = vld [vmem:[%s8688_s4 + $0x340] sm:$0xff]  ;;  %v6912_v61 = vpack.c.bf16 %v4708_v57, %v4707_v56  ;;  %v4729_v56 = vld [vmem:[%s8688_s4 + $0x470] sm:$0xff] }
 0x2f1   : > { %6869 = vmatprep.subr.bf16.mxu1 %v6868_v4 }
 0x2f3   : > { %6092 = vmatmul.mubr.f32.gmra.mrb[2].mxu1 %v8078_v54  ;;  %v6880_v54 = vpack.c.bf16 %v4692_v34, %v4691_v55  ;;  %v4714_v55 = vld [vmem:[%s8688_s4 + $0x3f8] sm:$0xff] }
 0x2f4   : > { %6094 = vmatprep.mubr.f32.mxu1 %v8075_v49  ;;  %6871 = vmatpush3.bf16.msra.mxu1 %v6868_v4  ;;  %v4693_v49 = vld [vmem:[%s8688_s4 + $0x350] sm:$0xff]  ;;  %v4710_v4 = vld [vmem:[%s8688_s4 + $0x3d8] sm:$0xff] }
 0x2f5   : > { %6873 = vmatprep.subr.bf16.mxu1 %v6872_v8  ;;  %v6916_v21 = vpack.c.bf16 %v4710_v4, %v4709_v0  ;;  %v4733_v0 = vld [vmem:[%s8688_s4 + $0x490] sm:$0xff]  ;;  %v4734_v4 = vld [vmem:[%s8688_s4 + $0x498] sm:$0xff] }
 0x2f7   : > { %6095 = vmatmul.mubr.f32.gmra.mrb[4].mxu1 %v8093_v29  ;;  %v6884_v29 = vpack.c.bf16 %v4694_v19, %v4693_v49  ;;  %v4716_v49 = vld [vmem:[%s8688_s4 + $0x408] sm:$0xff] }
 0x2f8   : > { %6097 = vmatprep.mubr.f32.mxu1 %v8087_v10  ;;  %6875 = vmatpush3.bf16.msra.mxu1 %v6872_v8  ;;  %v4695_v10 = vld [vmem:[%s8688_s4 + $0x360] sm:$0xff] }
 0x2f9   : > { %6877 = vmatprep.subr.bf16.mxu1 %v6876_v59  ;;  %v6888_v32 = vpack.c.bf16 %v4696_v26, %v4695_v10  ;;  %v4711_v8 = vld [vmem:[%s8688_s4 + $0x3e0] sm:$0xff] }
 0x2fa   : > { %v6920_v17 = vpack.c.bf16 %v4712_v31, %v4711_v8  ;;  %v3663_v26 = vld [vmem:[#allocation3 + $0x12] sm:$0xff] }
 0x2fb   : > { %6098 = vmatmul.mubr.f32.gmra.mrb[6].mxu1 %v8109_v41  ;;  %v4697_v41 = vld [vmem:[%s8688_s4 + $0x370] sm:$0xff]  ;;  %v4736_v8 = vld [vmem:[%s8688_s4 + $0x4a8] sm:$0xff] }
 0x2fc   : > { %6879 = vmatpush3.bf16.msra.mxu1 %v6876_v59  ;;  %6132 = vmatprep.mubr.f32.mxu1 %v3508_v23  ;;  %v6892_v60 = vpack.c.bf16 %v4698_v11, %v4697_v41  ;;  %v4713_v59 = vld [vmem:[%s8688_s4 + $0x3f0] sm:$0xff]  ;;  %v4720_v41 = vld [vmem:[%s8688_s4 + $0x428] sm:$0xff] }
 0x2fd   : > { %6881 = vmatprep.subr.bf16.mxu1 %v6880_v54  ;;  %v6924_v34 = vpack.c.bf16 %v4714_v55, %v4713_v59  ;;  %v4717_v23 = vld [vmem:[%s8688_s4 + $0x410] sm:$0xff]  ;;  %v4738_v59 = vld [vmem:[%s8688_s4 + $0x4b8] sm:$0xff]  ;;  %v4740_v55 = vld [vmem:[%s8688_s4 + $0x4c8] sm:$0xff] }
 0x2fe   : > { %v3664_v11 = vld [vmem:[#allocation3 + $0x1a] sm:$0xff] }
 0x300   : > { %6883 = vmatpush3.bf16.msra.mxu1 %v6880_v54  ;;  %v4715_v54 = vld [vmem:[%s8688_s4 + $0x400] sm:$0xff] }
 0x301   : > { %6885 = vmatprep.subr.bf16.mxu1 %v6884_v29  ;;  %v6928_v19 = vpack.c.bf16 %v4716_v49, %v4715_v54  ;;  %v4742_v54 = vld [vmem:[%s8688_s4 + $0x4d8] sm:$0xff]  ;;  %v4744_v49 = vld [vmem:[%s8688_s4 + $0x4e8] sm:$0xff] }
 0x304   : > { %6887 = vmatpush3.bf16.msra.mxu1 %v6884_v29  ;;  %v4718_v29 = vld [vmem:[%s8688_s4 + $0x418] sm:$0xff] }
 0x305   : > { %6889 = vmatprep.subr.bf16.mxu1 %v6888_v32  ;;  %v6932_v10 = vpack.c.bf16 %v4718_v29, %v4717_v23  ;;  %v4745_v23 = vld [vmem:[%s8688_s4 + $0x4f0] sm:$0xff] }
 0x308   : > { %6891 = vmatpush3.bf16.msra.mxu1 %v6888_v32  ;;  %v4719_v32 = vld [vmem:[%s8688_s4 + $0x420] sm:$0xff] }
 0x309   : > { %6893 = vmatprep.subr.bf16.mxu1 %v6892_v60 }
 0x30c   : > { %6895 = vmatpush3.bf16.msra.mxu1 %v6892_v60  ;;  %v6936_v60 = vpack.c.bf16 %v4720_v41, %v4719_v32  ;;  %v4749_v41 = vld [vmem:[%s8688_s4 + $0x510] sm:$0xff] }
 0x30d   : > { %6897 = vmatprep.subr.bf16.mxu1 %v6896_v16 }
 0x30f   : > { %6133 = vmatmul.mubr.f32.vlgmr.msra.gmra.mrb[0].mxu1 %v3509_v3  ;;  %v4723_v3 = vld [vmem:[%s8688_s4 + $0x440] sm:$0xff] }
 0x310   : > { %6135 = vmatprep.mubr.f32.mxu1 %v3510_v9  ;;  %6899 = vmatpush3.bf16.msra.mxu1 %v6896_v16  ;;  %v4722_v16 = vld [vmem:[%s8688_s4 + $0x438] sm:$0xff]  ;;  %v6944_v9 = vpack.c.bf16 %v4724_v24, %v4723_v3 }
 0x311   : > { %6901 = vmatprep.subr.bf16.mxu1 %v6900_v1  ;;  %v6940_v5 = vpack.c.bf16 %v4722_v16, %v4721_v13  ;;  %v4752_v13 = vld [vmem:[%s8688_s4 + $0x528] sm:$0xff]  ;;  %v3977_v3 = vld [vmem:[#allocation3 + $0x44] sm:$0xff] }
 0x312   : > { %v4758_v24 = vld [vmem:[%s8688_s4 + $0x558] sm:$0xff] }
 0x313   : > { %6136 = vmatmul.mubr.f32.gmra.mrb[2].mxu1 %v3511_v36  ;;  %v4725_v36 = vld [vmem:[%s8688_s4 + $0x450] sm:$0xff] }
 0x314   : > { %6138 = vmatprep.mubr.f32.mxu1 %v3512_v48  ;;  %6903 = vmatpush3.bf16.msra.mxu1 %v6900_v1  ;;  %v3667_v1 = vld [vmem:[#allocation3 + $0x32] sm:$0xff]  ;;  %v6948_v47 = vpack.c.bf16 %v4726_v45, %v4725_v36  ;;  %v4131_v45 = vld [vmem:[#allocation3 + $0x45] sm:$0xff] }
 0x315   : > { %6905 = vmatprep.subr.bf16.mxu1 %v6904_v12  ;;  %v4727_v48 = vld [vmem:[%s8688_s4 + $0x460] sm:$0xff] }
 0x317   : > { %6139 = vmatmul.mubr.f32.gmra.mrb[4].mxu1 %v3513_v30 }
 0x318   : > { %6141 = vmatprep.mubr.f32.mxu1 %v3514_v37  ;;  %6907 = vmatpush3.bf16.msra.mxu1 %v6904_v12  ;;  %v3669_v12 = vld [vmem:[#allocation3 + $0x42] sm:$0xff]  ;;  %v4731_v37 = vld [vmem:[%s8688_s4 + $0x480] sm:$0xff] }
 0x319   : > { %6909 = vmatprep.subr.bf16.mxu1 %v6908_v52 }
 0x31b   : > { %6142 = vmatmul.mubr.f32.gmra.mrb[6].mxu1 %v3515_v63 }
 0x31c   : > { %6911 = vmatpush3.bf16.msra.mxu1 %v6908_v52  ;;  %6176 = vmatprep.mubr.f32.mxu1 %v3662_v51  ;;  %v4728_v52 = vld [vmem:[%s8688_s4 + $0x468] sm:$0xff]  ;;  %v6964_v51 = vpack.c.bf16 %v4734_v4, %v4733_v0  ;;  %v7249_v4 = vld [vmem:[#allocation3 + $0x30] sm:$0xff] }
 0x31d   : > { %6913 = vmatprep.subr.bf16.mxu1 %v6912_v61  ;;  %v6952_v30 = vpack.c.bf16 %v4728_v52, %v4727_v48  ;;  %v7245_v48 = vld [vmem:[#allocation3 + $0x10] sm:$0xff] }
 0x320   : > { %6915 = vmatpush3.bf16.msra.mxu1 %v6912_v61  ;;  %v4732_v61 = vld [vmem:[%s8688_s4 + $0x488] sm:$0xff] }
 0x321   : > { %6917 = vmatprep.subr.bf16.mxu1 %v6916_v21  ;;  %v6960_v63 = vpack.c.bf16 %v4732_v61, %v4731_v37 }
 0x324   : > { %6919 = vmatpush3.bf16.msra.mxu1 %v6916_v21  ;;  %v4735_v21 = vld [vmem:[%s8688_s4 + $0x4a0] sm:$0xff] }
 0x325   : > { %6921 = vmatprep.subr.bf16.mxu1 %v6920_v17  ;;  %v6968_v31 = vpack.c.bf16 %v4736_v8, %v4735_v21  ;;  %v7250_v8 = vld [vmem:[#allocation3 + $0x28] sm:$0xff] }
 0x328   : > { %6923 = vmatpush3.bf16.msra.mxu1 %v6920_v17  ;;  %v4737_v17 = vld [vmem:[%s8688_s4 + $0x4b0] sm:$0xff] }
 0x329   : > { %6925 = vmatprep.subr.bf16.mxu1 %v6924_v34 }
 0x32c   : > { %6927 = vmatpush3.bf16.msra.mxu1 %v6924_v34  ;;  %v3823_v34 = vld [vmem:[#allocation3 + $0x43] sm:$0xff] }
 0x32d   : > { %6929 = vmatprep.subr.bf16.mxu1 %v6928_v19 }
 0x32f   : > { %6177 = vmatmul.mubr.f32.vlgmr.msra.gmra.mrb[0].mxu1 %v3663_v26  ;;  %v4748_v26 = vld [vmem:[%s8688_s4 + $0x508] sm:$0xff] }
 0x330   : > { %6179 = vmatprep.mubr.f32.mxu1 %v3664_v11  ;;  %6931 = vmatpush3.bf16.msra.mxu1 %v6928_v19  ;;  %v4750_v11 = vld [vmem:[%s8688_s4 + $0x518] sm:$0xff] }
 0x331   : > { %6933 = vmatprep.subr.bf16.mxu1 %v6932_v10 }
 0x333   : > { %6180 = vmatmul.mubr.f32.gmra.mrb[2].mxu1 %v3665_v40  ;;  %v4751_v40 = vld [vmem:[%s8688_s4 + $0x520] sm:$0xff] }
 0x334   : > { %6182 = vmatprep.mubr.f32.mxu1 %v3666_v15  ;;  %6935 = vmatpush3.bf16.msra.mxu1 %v6932_v10  ;;  %v4747_v10 = vld [vmem:[%s8688_s4 + $0x500] sm:$0xff]  ;;  %v7000_v16 = vpack.c.bf16 %v4752_v13, %v4751_v40  ;;  %v4753_v15 = vld [vmem:[%s8688_s4 + $0x530] sm:$0xff] }
 0x335   : > { %6937 = vmatprep.subr.bf16.mxu1 %v6936_v60  ;;  %v6992_v32 = vpack.c.bf16 %v4748_v26, %v4747_v10 }
 0x337   : > { %6183 = vmatmul.mubr.f32.gmra.mrb[4].mxu1 %v3667_v1  ;;  %v4756_v1 = vld [vmem:[%s8688_s4 + $0x548] sm:$0xff] }
 0x338   : > { %6185 = vmatprep.mubr.f32.mxu1 %v3668_v27  ;;  %6939 = vmatpush3.bf16.msra.mxu1 %v6936_v60  ;;  %v6996_v60 = vpack.c.bf16 %v4750_v11, %v4749_v41  ;;  %v4760_v27 = vld [vmem:[%s8688_s4 + $0x568] sm:$0xff] }
 0x339   : > { %6941 = vmatprep.subr.bf16.mxu1 %v6940_v5 }
 0x33b   : > { %6186 = vmatmul.mubr.f32.gmra.mrb[6].mxu1 %v3669_v12  ;;  %v4761_v12 = vld [vmem:[%s8688_s4 + $0x570] sm:$0xff] }
 0x33c   : > { %6943 = vmatpush3.bf16.msra.mxu1 %v6940_v5  ;;  %6220 = vmatprep.mubr.f32.mxu1 %v8095_v39  ;;  %v4730_v39 = vld [vmem:[%s8688_s4 + $0x478] sm:$0xff] }
 0x33d   : > { %6945 = vmatprep.subr.bf16.mxu1 %v6944_v9  ;;  %v6956_v57 = vpack.c.bf16 %v4730_v39, %v4729_v56  ;;  %v4754_v5 = vld [vmem:[%s8688_s4 + $0x538] sm:$0xff] }
 0x340   : > { %6947 = vmatpush3.bf16.msra.mxu1 %v6944_v9 }
 0x341   : > { %6949 = vmatprep.subr.bf16.mxu1 %v6948_v47 }
 0x344   : > { %6951 = vmatpush3.bf16.msra.mxu1 %v6948_v47  ;;  %v4602_v47 = vld [vmem:[%s8689_s5] ss:$0 sm:$0xff] }
 0x345   : > { %6953 = vmatprep.subr.bf16.mxu1 %v6952_v30  ;;  %v2562_v52 = vadd.f32 %v7245_v48, %v4602_v47 }
 0x348   : > { %6955 = vmatpush3.bf16.msra.mxu1 %v6952_v30  ;;  %v7247_v30 = vld [vmem:[#allocation3 + $0x20] sm:$0xff] }
 0x349   : > { %6957 = vmatprep.subr.bf16.mxu1 %v6956_v57  ;;  %v2564_v56 = vadd.f32 %v7247_v30, %v4602_v47 }
 0x34c   : > { %6959 = vmatpush3.bf16.msra.mxu1 %v6956_v57  ;;  %v7248_v57 = vld [vmem:[#allocation3 + $0x18] sm:$0xff] }
 0x34d   : > { %6961 = vmatprep.subr.bf16.mxu1 %v6960_v63  ;;  %v2563_v37 = vadd.f32 %v7248_v57, %v4602_v47 }
 0x34f   : > { %6221 = vmatmul.mubr.f32.vlgmr.msra.gmra.mrb[0].mxu1 %v8097_v38  ;;  %v6972_v38 = vpack.c.bf16 %v4738_v59, %v4737_v17 }
 0x350   : > { %6223 = vmatprep.mubr.f32.mxu1 %v8111_v43  ;;  %6963 = vmatpush3.bf16.msra.mxu1 %v6960_v63  ;;  %v4739_v43 = vld [vmem:[%s8688_s4 + $0x4c0] sm:$0xff] }
 0x351   : > { %6965 = vmatprep.subr.bf16.mxu1 %v6964_v51 }
 0x353   : > { %6224 = vmatmul.mubr.f32.gmra.mrb[2].mxu1 %v8113_v14  ;;  %v6976_v14 = vpack.c.bf16 %v4740_v55, %v4739_v43  ;;  %v7251_v43 = vld [vmem:[#allocation3 + $0x40] sm:$0xff] }
 0x354   : > { %6226 = vmatprep.mubr.f32.mxu1 %v8124_v18  ;;  %6967 = vmatpush3.bf16.msra.mxu1 %v6964_v51  ;;  %v4741_v18 = vld [vmem:[%s8688_s4 + $0x4d0] sm:$0xff]  ;;  %v2566_v51 = vadd.f32 %v7249_v4, %v4602_v47  ;;  %v2568_v55 = vadd.f32 %v7251_v43, %v4602_v47 }
 0x355   : > { %6969 = vmatprep.subr.bf16.mxu1 %v6968_v31 }
 0x357   : > { %6227 = vmatmul.mubr.f32.gmra.mrb[4].mxu1 %v8126_v62  ;;  %v6980_v62 = vpack.c.bf16 %v4742_v54, %v4741_v18 }
 0x358   : > { %6229 = vmatprep.mubr.f32.mxu1 %v8133_v22  ;;  %6971 = vmatpush3.bf16.msra.mxu1 %v6968_v31  ;;  %v4743_v22 = vld [vmem:[%s8688_s4 + $0x4e0] sm:$0xff]  ;;  %v2565_v31 = vadd.f32 %v7250_v8, %v4602_v47 }
 0x359   : > { %6973 = vmatprep.subr.bf16.mxu1 %v6972_v38  ;;  %v6984_v19 = vpack.c.bf16 %v4744_v49, %v4743_v22 }
 0x35b   : > { %6230 = vmatmul.mubr.f32.gmra.mrb[6].mxu1 %v3823_v34  ;;  %v7252_v34 = vld [vmem:[#allocation3 + $0x38] sm:$0xff] }
 0x35c   : > { %6975 = vmatpush3.bf16.msra.mxu1 %v6972_v38  ;;  %6264 = vmatprep.mubr.f32.mxu1 %v8166_v53  ;;  %v4746_v53 = vld [vmem:[%s8688_s4 + $0x4f8] sm:$0xff]  ;;  %v2567_v18 = vadd.f32 %v7252_v34, %v4602_v47 }
 0x35d   : > { %6977 = vmatprep.subr.bf16.mxu1 %v6976_v14  ;;  %v6988_v29 = vpack.c.bf16 %v4746_v53, %v4745_v23 }
 0x360   : > { %6979 = vmatpush3.bf16.msra.mxu1 %v6976_v14 }
 0x361   : > { %6981 = vmatprep.subr.bf16.mxu1 %v6980_v62 }
 0x364   : > { %6983 = vmatpush3.bf16.msra.mxu1 %v6980_v62 }
 0x365   : > { %6985 = vmatprep.subr.bf16.mxu1 %v6984_v19 }
 0x368   : > { %6987 = vmatpush3.bf16.msra.mxu1 %v6984_v19 }
 0x369   : > { %6989 = vmatprep.subr.bf16.mxu1 %v6988_v29 }
 0x36c   : > { %6991 = vmatpush3.bf16.msra.mxu1 %v6988_v29 }
 0x36d   : > { %6993 = vmatprep.subr.bf16.mxu1 %v6992_v32 }
 0x36f   : > { %6265 = vmatmul.mubr.f32.vlgmr.msra.gmra.mrb[0].mxu1 %v8175_v58  ;;  %v7004_v58 = vpack.c.bf16 %v4754_v5, %v4753_v15 }
 0x370   : > { %6267 = vmatprep.mubr.f32.mxu1 %v8178_v44  ;;  %6995 = vmatpush3.bf16.msra.mxu1 %v6992_v32  ;;  %v4755_v44 = vld [vmem:[%s8688_s4 + $0x540] sm:$0xff] }
 0x371   : > { %6997 = vmatprep.subr.bf16.mxu1 %v6996_v60 }
 0x373   : > { %6268 = vmatmul.mubr.f32.gmra.mrb[2].mxu1 %v8187_v46  ;;  %v7008_v46 = vpack.c.bf16 %v4756_v1, %v4755_v44 }
 0x374   : > { %6270 = vmatprep.mubr.f32.mxu1 %v8190_v2  ;;  %6999 = vmatpush3.bf16.msra.mxu1 %v6996_v60  ;;  %v4757_v2 = vld [vmem:[%s8688_s4 + $0x550] sm:$0xff] }
 0x375   : > { %7001 = vmatprep.subr.bf16.mxu1 %v7000_v16 }
 0x377   : > { %6271 = vmatmul.mubr.f32.gmra.mrb[4].mxu1 %v8199_v6  ;;  %v7012_v6 = vpack.c.bf16 %v4758_v24, %v4757_v2 }
 0x378   : > { %6273 = vmatprep.mubr.f32.mxu1 %v8202_v25  ;;  %7003 = vmatpush3.bf16.msra.mxu1 %v7000_v16  ;;  %v4759_v25 = vld [vmem:[%s8688_s4 + $0x560] sm:$0xff] }
 0x379   : > { %7005 = vmatprep.subr.bf16.mxu1 %v7004_v58  ;;  %v7016_v9 = vpack.c.bf16 %v4760_v27, %v4759_v25 }
 0x37b   : > { %6274 = vmatmul.mubr.f32.gmra.mrb[6].mxu1 %v3977_v3 }
 0x37c   : > { %7007 = vmatpush3.bf16.msra.mxu1 %v7004_v58  ;;  %6308 = vmatprep.mubr.f32.mxu1 %v8235_v20  ;;  %v4762_v20 = vld [vmem:[%s8688_s4 + $0x578] sm:$0xff] }
 0x37d   : > { %7009 = vmatprep.subr.bf16.mxu1 %v7008_v46  ;;  %v7020_v36 = vpack.c.bf16 %v4762_v20, %v4761_v12 }
 0x380   : > { %7011 = vmatpush3.bf16.msra.mxu1 %v7008_v46 }
 0x381   : > { %7013 = vmatprep.subr.bf16.mxu1 %v7012_v6 }
 0x384   : > { %7015 = vmatpush3.bf16.msra.mxu1 %v7012_v6 }
 0x385   : > { %7017 = vmatprep.subr.bf16.mxu1 %v7016_v9 }
 0x388   : > { %7019 = vmatpush3.bf16.msra.mxu1 %v7016_v9 }
 0x389   : > { %7021 = vmatprep.subr.bf16.mxu1 %v7020_v36 }
 0x38c   : > { %7023 = vmatpush3.bf16.msra.mxu1 %v7020_v36 }
 0x38f   : > { %6309 = vmatmul.mubr.f32.vlgmr.msra.gmra.mrb[0].mxu1 %v8244_v7 }
 0x390   : > { %6311 = vmatprep.mubr.f32.mxu1 %v8247_v28  ;;  %v7246_v28 = vld [vmem:[#allocation3 + $0x8] sm:$0xff] }
 0x393   : > { %6312 = vmatmul.mubr.f32.gmra.mrb[2].mxu1 %v8256_v33  ;;  %v2561_v33 = vadd.f32 %v7246_v28, %v4602_v47 }
 0x394   : > { %6314 = vmatprep.mubr.f32.mxu1 %v8259_v42 }
 0x397   : > { %6315 = vmatmul.mubr.f32.gmra.mrb[4].mxu1 %v8268_v35 }
 0x398   : > { %6317 = vmatprep.mubr.f32.mxu1 %v8271_v50 }
 0x39b   : > { %6318 = vmatmul.mubr.f32.gmra.mrb[6].mxu1 %v4131_v45 }
 0x462   : > { %v6310_v7 = vpop.f32.mrb[0].mxu1 }
 0x463   : > { %v7032_v42 = vadd.f32 %v6310_v7, %v2562_v52  ;;  %v4215_v35 = vpop.f32.mrb[1].mxu1 }
 0x464   : > { %v7033_v50 = vadd.f32 %v4215_v35, %v2561_v33 }
 0x465   : > { %4279 = vst [vmem:[%s8665_s14 + $0x8] sm:$0xff] %v7032_v42 }
 0x466   : > { %4278 = vst [vmem:[%s8665_s14] sm:$0xff] %v7033_v50  ;;  %v6313_v39 = vpop.f32.mrb[2].mxu1 }
 0x467   : > { %v7034_v61 = vadd.f32 %v6313_v39, %v2564_v56  ;;  %v4225_v63 = vpop.f32.mrb[3].mxu1 }
 0x468   : > { %v7035_v0 = vadd.f32 %v4225_v63, %v2563_v37 }
 0x469   : > { %4281 = vst [vmem:[%s8665_s14 + $0x18] sm:$0xff] %v7034_v61 }
 0x46a   : > { %4280 = vst [vmem:[%s8665_s14 + $0x10] sm:$0xff] %v7035_v0  ;;  %v6316_v21 = vpop.f32.mrb[4].mxu1 }
 0x46b   : > { %v7036_v17 = vadd.f32 %v6316_v21, %v2566_v51  ;;  %v4235_v59 = vpop.f32.mrb[5].mxu1 }
 0x46c   : > { %v7037_v38 = vadd.f32 %v4235_v59, %v2565_v31 }
 0x46d   : > { %4283 = vst [vmem:[%s8665_s14 + $0x28] sm:$0xff] %v7036_v17 }
 0x46e   : > { %4282 = vst [vmem:[%s8665_s14 + $0x20] sm:$0xff] %v7037_v38  ;;  %v6319_v14 = vpop.f32.mrb[6].mxu1 }
 0x46f   : > { %v7038_v54 = vadd.f32 %v6319_v14, %v2568_v55  ;;  %v4245_v62 = vpop.f32.mrb[7].mxu1 }
 0x470   : > { %v7039_v22 = vadd.f32 %v4245_v62, %v2567_v18 }
 0x471   : > { %4285 = vst [vmem:[%s8665_s14 + $0x38] sm:$0xff] %v7038_v54 }
 0x472   : > { %4284 = vst [vmem:[%s8665_s14 + $0x30] sm:$0xff] %v7039_v22 }
 0x473 PF: > { %s16_s1 = sadd.s32 1, %s7275_s1   ;;  %s8691_s21 = smov %s7271_s22 }
 0x474   : > { %p13_p5 = scmp.ge.s32.totalorder %s16_s1, 4   ;;  %s8692_s22 = smov %s8694_s23 }
 0x476   :  { %15 = sbr.rel (!%p13_p5) target bundleno = 2 (0x2), region = 223 }
 0x47d   :  { %4316 = vsyncmov [#allocation7] }
 0x480   :  { %s4317_s12 = vpop.sfrf %4316 }
 0x481   :  { %p4765_p6 = scmp.ne.s32.totalorder %s4317_s12, 0 }
 0x483   :  { %4321 = shalt.err (%p4765_p6)  }
 0x484   :  { %4323 = vsyncmov [#allocation7 + $0x1] }
 0x487   :  { %s4324_s15 = vpop.sfrf %4323 }
 0x488   :  { %p4766_p7 = scmp.ne.s32.totalorder %s4324_s15, 0 }
 0x48a   :  { %4328 = shalt.err (%p4766_p7)  }

// kernel: residual_block_pallas.5
= control target key start
LH: loop header
LB: loop body
LE: loop exit
PB: predicated region body
PF: predicated region fallthrough
CT: control target
= control target key end

     0   :  { %s7347_s21 = smov 0   ;;  %s7349_s22 = smov 0   ;;  %s8701_s0 = inlined_call_operand.vmem [shape: f32[2,64,128], index: 0, kind: input, shape index: {}, may-alias: {0,1}]   ;;  %s8702_s1 = inlined_call_operand.vmem [shape: f32[2,64,128], index: 1, kind: input, shape index: {}, may-alias: {0,1}]   ;;  %s8703_s2 = inlined_call_operand.vmem [shape: f32[11,128,128], index: 2, kind: input, shape index: {}]   ;;  %s8704_s3 = inlined_call_operand.vmem [shape: f32[1,128], index: 3, kind: input, shape index: {}]   ;;  %s8705_s4 = inlined_call_operand.vmem [shape: f32[11,128,128], index: 4, kind: input, shape index: {}]   ;;  %s8706_s5 = inlined_call_operand.vmem [shape: f32[1,128], index: 5, kind: input, shape index: {}]   ;;  %s8707_s6 = inlined_call_operand.vmem [shape: f32[2,64,128], index: 6, kind: output, shape index: {}]  }
   0x1   :  { %s7351_s1 = smov 0  }
   0x2 LB: > { %s28_s23 = sadd.s32 1, %s7305_s22  ;;  %p4460_p0 = scmp.ge.s32.totalorder %s7309_s1, 1  ;;  %s7309_s1 = sphi %s7351_s1, %s16_s1   ;;  %s7305_s22 = sphi %s7349_s22, %s8709_s22   ;;  %s7301_s21 = sphi %s7347_s21, %s8708_s21  }
   0x3   : > { %p30_p1 = scmp.ge.s32.totalorder %s28_s23, 2  ;;  %p209_p2 = scmp.lt.s32.totalorder %s7309_s1, 3 }
   0x5   : > { %s8711_s23 = smov (%p30_p1, %s28_s23), 0  ;;  %p210_p3 = pnand %p4460_p0, %p209_p2 }
   0x6   : > { %v582_v0 = vld [vmem:[%s8703_s2] sm:$0xff] (!%p210_p3)  ;;  %v583_v1 = vld [vmem:[%s8703_s2 + $0x8] sm:$0xff] (!%p210_p3)  ;;  %v584_v2 = vld [vmem:[%s8703_s2 + $0x10] sm:$0xff] (!%p210_p3)  ;;  %p246_p4 = scmp.lt.s32.totalorder (!%p210_p3), %s7301_s21, 1  ;;  %v7311_v5 = vmov (!%p210_p3), 0.0  }
   0x7   : > { %213 = sbr.rel (%p210_p3) target bundleno = 1139 (0x473), region = 40  ;;  %v6354_v3 = vpack.c.bf16 (!%p210_p3), %v583_v1, %v582_v0  ;;  %v585_v4 = vld [vmem:[%s8703_s2 + $0x18] sm:$0xff] (!%p210_p3)  ;;  %448 = vst [vmem:[#allocation2] sm:$0xff] (!%p210_p3), %v7311_v5  ;;  %449 = vst [vmem:[#allocation2 + $0x8] sm:$0xff] (!%p210_p3), %v7311_v5  ;;  %v586_v7 = vld [vmem:[%s8703_s2 + $0x20] sm:$0xff] (!%p210_p3) }
   0x8   : > { %450 = vst [vmem:[#allocation2 + $0x10] sm:$0xff] (!%p210_p3), %v7311_v5  ;;  %451 = vst [vmem:[#allocation2 + $0x18] sm:$0xff] (!%p210_p3), %v7311_v5  ;;  %v6358_v6 = vpack.c.bf16 (!%p210_p3), %v585_v4, %v584_v2  ;;  %v587_v8 = vld [vmem:[%s8703_s2 + $0x28] sm:$0xff] (!%p210_p3)  ;;  %v588_v10 = vld [vmem:[%s8703_s2 + $0x30] sm:$0xff] (!%p210_p3) }
   0x9   : > { %452 = vst [vmem:[#allocation2 + $0x20] sm:$0xff] (!%p210_p3), %v7311_v5  ;;  %487 = vst [vmem:[#allocation2 + $0x68] sm:$0xff] (!%p210_p3), %v7311_v5  ;;  %6355 = vmatprep.subr.bf16.mxu0 (!%p210_p3), %v6354_v3  ;;  %v6362_v9 = vpack.c.bf16 (!%p210_p3), %v587_v8, %v586_v7  ;;  %v589_v11 = vld [vmem:[%s8703_s2 + $0x38] sm:$0xff] (!%p210_p3)  ;;  %v590_v14 = vld [vmem:[%s8703_s2 + $0x40] sm:$0xff] (!%p210_p3) }
   0xa   : > { %488 = vst [vmem:[#allocation2 + $0x70] sm:$0xff] (!%p210_p3), %v7311_v5  ;;  %489 = vst [vmem:[#allocation2 + $0x78] sm:$0xff] (!%p210_p3), %v7311_v5  ;;  %6357 = vmatpush3.bf16.msra.mxu0 (!%p210_p3), %v6354_v3  ;;  %v6366_v13 = vpack.c.bf16 (!%p210_p3), %v589_v11, %v588_v10  ;;  %v591_v15 = vld [vmem:[%s8703_s2 + $0x48] sm:$0xff] (!%p210_p3)  ;;  %v592_v26 = vld [vmem:[%s8703_s2 + $0x50] sm:$0xff] (!%p210_p3) }
   0xb   : > { %490 = vst [vmem:[#allocation2 + $0x80] sm:$0xff] (!%p210_p3), %v7311_v5  ;;  %491 = vst [vmem:[#allocation2 + $0x88] sm:$0xff] (!%p210_p3), %v7311_v5  ;;  %6359 = vmatprep.subr.bf16.mxu0 (!%p210_p3), %v6358_v6  ;;  %v6370_v22 = vpack.c.bf16 (!%p210_p3), %v591_v15, %v590_v14  ;;  %v593_v27 = vld [vmem:[%s8703_s2 + $0x58] sm:$0xff] (!%p210_p3)  ;;  %v594_v37 = vld [vmem:[%s8703_s2 + $0x60] sm:$0xff] (!%p210_p3) }
   0xc   : > { %2576 = vst [vmem:[#allocation3] sm:$0xff] (!%p210_p3), %v7311_v5  ;;  %2585 = vst [vmem:[#allocation3 + $0x48] sm:$0xff] (!%p210_p3), %v7311_v5  ;;  %v6374_v34 = vpack.c.bf16 (!%p210_p3), %v593_v27, %v592_v26  ;;  %v595_v38 = vld [vmem:[%s8703_s2 + $0x68] sm:$0xff] (!%p210_p3)  ;;  %v596_v41 = vld [vmem:[%s8703_s2 + $0x70] sm:$0xff] (!%p210_p3) }
   0xd   : > { %v6378_v40 = vpack.c.bf16 (!%p210_p3), %v595_v38, %v594_v37  ;;  %v597_v42 = vld [vmem:[%s8703_s2 + $0x78] sm:$0xff] (!%p210_p3)  ;;  %v4476_v46 = vld [vmem:[%s8703_s2 + $0x80] sm:$0xff] (!%p210_p3)  ;;  %v4477_v47 = vld [vmem:[%s8703_s2 + $0x88] sm:$0xff] (!%p210_p3) }
   0xe   : > { %s8713_s21 = smov (!%p246_p4, %s7301_s21), 1  ;;  %6361 = vmatpush3.bf16.msra.mxu0 %v6358_v6  ;;  %v572_v12 = vld [vmem:[#allocation2 + $0x7] sm:$0xff]  ;;  %v6382_v44 = vpack.c.bf16 %v597_v42, %v596_v41  ;;  %v6386_v49 = vpack.c.bf16 %v4477_v47, %v4476_v46  ;;  %v4478_v50 = vld [vmem:[%s8703_s2 + $0x90] sm:$0xff]  ;;  %v4479_v51 = vld [vmem:[%s8703_s2 + $0x98] sm:$0xff] }
   0xf   : > { %s4801_s12 = sshll.u32 %s8713_s21, 6  ;;  %6363 = vmatprep.subr.bf16.mxu0 %v6362_v9  ;;  %5385 = vmatprep.mubr.f32.mxu0 %v572_v12  ;;  %v573_v52 = vld [vmem:[#allocation2 + $0xf] sm:$0xff]  ;;  %v6390_v53 = vpack.c.bf16 %v4479_v51, %v4478_v50  ;;  %v574_v54 = vld [vmem:[#allocation2 + $0x17] sm:$0xff]  ;;  %v4480_v55 = vld [vmem:[%s8703_s2 + $0xa0] sm:$0xff] }
  0x10   : > { %s7415_s19 = scalar_lea.vmem %s8701_s0, %s4801_s12  ;;  %v4481_v56 = vld [vmem:[%s8703_s2 + $0xa8] sm:$0xff]  ;;  %v575_v59 = vld [vmem:[#allocation2 + $0x1f] sm:$0xff]  ;;  %v4482_v63 = vld [vmem:[%s8703_s2 + $0xb0] sm:$0xff]  ;;  %s8682_s14 = scalar_lea.vmem %s8707_s6, %s4801_s12 }
  0x11   : > { %v404_v16 = vld [vmem:[%s7415_s19] sm:$0xff]  ;;  %v405_v18 = vld [vmem:[%s7415_s19 + $0x8] sm:$0xff]  ;;  %v406_v19 = vld [vmem:[%s7415_s19 + $0x10] sm:$0xff]  ;;  %v6394_v60 = vpack.c.bf16 %v4481_v56, %v4480_v55 }
  0x12   : > { %vm412_vm0 = vcmp.ge.f32.partialorder %v404_v16, 0.0  ;;  %v420_v17 = vmul.f32 0.1, %v404_v16  ;;  %6365 = vmatpush3.bf16.msra.mxu0 %v6362_v9  ;;  %vm413_vm1 = vcmp.ge.f32.partialorder %v405_v18, 0.0  ;;  %v421_v20 = vmul.f32 0.1, %v405_v18 }
  0x13   : > { %vm414_vm2 = vcmp.ge.f32.partialorder %v406_v19, 0.0  ;;  %v422_v21 = vmul.f32 0.1, %v406_v19  ;;  %6367 = vmatprep.subr.bf16.mxu0 %v6366_v13  ;;  %v407_v24 = vld [vmem:[%s7415_s19 + $0x18] sm:$0xff]  ;;  %v408_v25 = vld [vmem:[%s7415_s19 + $0x20] sm:$0xff]  ;;  %v409_v30 = vld [vmem:[%s7415_s19 + $0x28] sm:$0xff] }
  0x14   : > { %v7426_v23 = vsel %vm412_vm0, %v404_v16, %v420_v17  ;;  %v7437_v28 = vsel %vm413_vm1, %v405_v18, %v421_v20  ;;  %vm415_vm3 = vcmp.ge.f32.partialorder %v407_v24, 0.0  ;;  %v423_v31 = vmul.f32 0.1, %v407_v24  ;;  %v410_v43 = vld [vmem:[%s7415_s19 + $0x30] sm:$0xff]  ;;  %v411_v57 = vld [vmem:[%s7415_s19 + $0x38] sm:$0xff]  ;;  %v4484_v4 = vld [vmem:[%s8703_s2 + $0xc0] sm:$0xff] }
  0x15   : > { %436 = vst [vmem:[#allocation2 + $0x28] sm:$0xff] %v7426_v23  ;;  %v7439_v29 = vsel %vm414_vm2, %v406_v19, %v422_v21  ;;  %437 = vst [vmem:[#allocation2 + $0x30] sm:$0xff] %v7437_v28  ;;  %vm416_vm4 = vcmp.ge.f32.partialorder %v408_v25, 0.0  ;;  %v424_v32 = vmul.f32 0.1, %v408_v25  ;;  %vm417_vm5 = vcmp.ge.f32.partialorder %v409_v30, 0.0 }
  0x16   : > { %438 = vst [vmem:[#allocation2 + $0x38] sm:$0xff] %v7439_v29  ;;  %6369 = vmatpush3.bf16.msra.mxu0 %v6366_v13  ;;  %v425_v33 = vmul.f32 0.1, %v409_v30  ;;  %v7444_v35 = vsel %vm415_vm3, %v407_v24, %v423_v31  ;;  %vm418_vm6 = vcmp.ge.f32.partialorder %v410_v43, 0.0  ;;  %v426_v45 = vmul.f32 0.1, %v410_v43 }
  0x17   : > { %6371 = vmatprep.subr.bf16.mxu0 %v6370_v22  ;;  %v7446_v36 = vsel %vm416_vm4, %v408_v25, %v424_v32  ;;  %439 = vst [vmem:[#allocation2 + $0x40] sm:$0xff] %v7444_v35  ;;  %vm419_vm7 = vcmp.ge.f32.partialorder %v411_v57, 0.0  ;;  %v427_v58 = vmul.f32 0.1, %v411_v57  ;;  %v4483_v0 = vld [vmem:[%s8703_s2 + $0xb8] sm:$0xff]  ;;  %v4485_v6 = vld [vmem:[%s8703_s2 + $0xc8] sm:$0xff] }
  0x18   : > { %440 = vst [vmem:[#allocation2 + $0x48] sm:$0xff] %v7446_v36  ;;  %v7456_v39 = vsel %vm417_vm5, %v409_v30, %v425_v33  ;;  %v7472_v48 = vsel %vm418_vm6, %v410_v43, %v426_v45  ;;  %v6398_v2 = vpack.c.bf16 %v4483_v0, %v4482_v63  ;;  %v6402_v8 = vpack.c.bf16 %v4485_v6, %v4484_v4  ;;  %v4486_v10 = vld [vmem:[%s8703_s2 + $0xd0] sm:$0xff]  ;;  %v4487_v11 = vld [vmem:[%s8703_s2 + $0xd8] sm:$0xff]  ;;  %v4488_v15 = vld [vmem:[%s8703_s2 + $0xe0] sm:$0xff] }
  0x19   : > { %441 = vst [vmem:[#allocation2 + $0x50] sm:$0xff] %v7456_v39  ;;  %442 = vst [vmem:[#allocation2 + $0x58] sm:$0xff] %v7472_v48  ;;  %v7488_v62 = vsel %vm419_vm7, %v411_v57, %v427_v58  ;;  %v6406_v13 = vpack.c.bf16 %v4487_v11, %v4486_v10  ;;  %v743_v14 = vld [vmem:[#allocation2 + $0xc] sm:$0xff]  ;;  %v4491_v19 = vld [vmem:[%s8703_s2 + $0xf8] sm:$0xff] }
  0x1a   : > { %6373 = vmatpush3.bf16.msra.mxu0 %v6370_v22  ;;  %443 = vst [vmem:[#allocation2 + $0x60] sm:$0xff] %v7488_v62  ;;  %v4489_v16 = vld [vmem:[%s8703_s2 + $0xe8] sm:$0xff]  ;;  %v4490_v18 = vld [vmem:[%s8703_s2 + $0xf0] sm:$0xff]  ;;  %v4492_v21 = vld [vmem:[%s8703_s2 + $0x100] sm:$0xff] }
  0x1b   : > { %6375 = vmatprep.subr.bf16.mxu0 %v6374_v34  ;;  %v6410_v17 = vpack.c.bf16 %v4489_v16, %v4488_v15  ;;  %v6414_v20 = vpack.c.bf16 %v4491_v19, %v4490_v18  ;;  %v4493_v22 = vld [vmem:[%s8703_s2 + $0x108] sm:$0xff]  ;;  %v4494_v25 = vld [vmem:[%s8703_s2 + $0x110] sm:$0xff]  ;;  %v4495_v26 = vld [vmem:[%s8703_s2 + $0x118] sm:$0xff] }
  0x1c   : > { %v576_v61 = vld [vmem:[#allocation2 + $0x27] sm:$0xff]  ;;  %v7497_v1 = vld [vmem:[#allocation2 + $0x2f] sm:$0xff]  ;;  %v6418_v24 = vpack.c.bf16 %v4493_v22, %v4492_v21  ;;  %v6422_v30 = vpack.c.bf16 %v4495_v26, %v4494_v25  ;;  %v745_v31 = vld [vmem:[#allocation2 + $0x1c] sm:$0xff] }
  0x1d   : > { %v7499_v3 = vld [vmem:[#allocation2 + $0x37] sm:$0xff]  ;;  %v4496_v32 = vld [vmem:[%s8703_s2 + $0x120] sm:$0xff]  ;;  %v4497_v33 = vld [vmem:[%s8703_s2 + $0x128] sm:$0xff] }
  0x1e   : > { %6377 = vmatpush3.bf16.msra.mxu0 %v6374_v34  ;;  %v7509_v7 = vld [vmem:[#allocation2 + $0x3f] sm:$0xff]  ;;  %v744_v27 = vld [vmem:[#allocation2 + $0x14] sm:$0xff]  ;;  %v6426_v37 = vpack.c.bf16 %v4497_v33, %v4496_v32  ;;  %v747_v38 = vld [vmem:[#allocation2 + $0x2c] sm:$0xff] }
  0x1f   : > { %6379 = vmatprep.subr.bf16.mxu0 %v6378_v40  ;;  %v7511_v9 = vld [vmem:[#allocation2 + $0x47] sm:$0xff]  ;;  %v4499_v41 = vld [vmem:[%s8703_s2 + $0x138] sm:$0xff]  ;;  %v4502_v51 = vld [vmem:[%s8703_s2 + $0x150] sm:$0xff] }
  0x20   : > { %v7521_v12 = vld [vmem:[#allocation2 + $0x4f] sm:$0xff]  ;;  %v746_v34 = vld [vmem:[#allocation2 + $0x24] sm:$0xff]  ;;  %v4511_v6 = vld [vmem:[%s8703_s2 + $0x198] sm:$0xff] }
  0x21   : > { %v7560_v42 = vld [vmem:[#allocation2 + $0x34] sm:$0xff]  ;;  %v4500_v45 = vld [vmem:[%s8703_s2 + $0x140] sm:$0xff]  ;;  %v4501_v46 = vld [vmem:[%s8703_s2 + $0x148] sm:$0xff] }
  0x22   : > { %6381 = vmatpush3.bf16.msra.mxu0 %v6378_v40  ;;  %v4498_v40 = vld [vmem:[%s8703_s2 + $0x130] sm:$0xff]  ;;  %v7572_v47 = vld [vmem:[#allocation2 + $0x44] sm:$0xff]  ;;  %v4515_v19 = vld [vmem:[%s8703_s2 + $0x1b8] sm:$0xff] }
  0x23   : > { %6383 = vmatprep.subr.bf16.mxu0 %v6382_v44  ;;  %v6430_v43 = vpack.c.bf16 %v4499_v41, %v4498_v40  ;;  %v7574_v50 = vld [vmem:[#allocation2 + $0x4c] sm:$0xff]  ;;  %v4504_v56 = vld [vmem:[%s8703_s2 + $0x160] sm:$0xff]  ;;  %v4519_v32 = vld [vmem:[%s8703_s2 + $0x1d8] sm:$0xff] }
  0x24   : > { %v915_v55 = vld [vmem:[#allocation2 + $0x11] sm:$0xff]  ;;  %v4505_v57 = vld [vmem:[%s8703_s2 + $0x168] sm:$0xff]  ;;  %v4508_v63 = vld [vmem:[%s8703_s2 + $0x180] sm:$0xff] }
  0x25   : > { %v6442_v58 = vpack.c.bf16 %v4505_v57, %v4504_v56  ;;  %v4509_v0 = vld [vmem:[%s8703_s2 + $0x188] sm:$0xff]  ;;  %v4510_v4 = vld [vmem:[%s8703_s2 + $0x190] sm:$0xff]  ;;  %v7647_v33 = vld [vmem:[#allocation2 + $0x59] sm:$0xff] }
  0x26   : > { %6385 = vmatpush3.bf16.msra.mxu0 %v6382_v44  ;;  %v7562_v44 = vld [vmem:[#allocation2 + $0x3c] sm:$0xff]  ;;  %v6454_v10 = vpack.c.bf16 %v4511_v6, %v4510_v4  ;;  %v918_v15 = vld [vmem:[#allocation2 + $0x29] sm:$0xff] }
  0x27   : > { %6387 = vmatprep.subr.bf16.mxu0 %v6386_v49  ;;  %v917_v11 = vld [vmem:[#allocation2 + $0x21] sm:$0xff]  ;;  %v4514_v18 = vld [vmem:[%s8703_s2 + $0x1b0] sm:$0xff]  ;;  %v4531_v4 = vld [vmem:[%s8703_s2 + $0x238] sm:$0xff] }
  0x28   : > { %v6462_v21 = vpack.c.bf16 %v4515_v19, %v4514_v18  ;;  %v7625_v22 = vld [vmem:[#allocation2 + $0x41] sm:$0xff]  ;;  %v7635_v26 = vld [vmem:[#allocation2 + $0x49] sm:$0xff]  ;;  %v4535_v18 = vld [vmem:[%s8703_s2 + $0x258] sm:$0xff] }
  0x29   : > { %5386 = vmatmul.mubr.f32.vlgmr.msra.gmra.mrb[0].mxu0 %v573_v52  ;;  %v4503_v52 = vld [vmem:[%s8703_s2 + $0x158] sm:$0xff]  ;;  %v4517_v25 = vld [vmem:[%s8703_s2 + $0x1c8] sm:$0xff] }
  0x2a   : > { %6389 = vmatpush3.bf16.msra.mxu0 %v6386_v49  ;;  %5388 = vmatprep.mubr.f32.mxu0 %v574_v54  ;;  %v6434_v49 = vpack.c.bf16 %v4501_v46, %v4500_v45  ;;  %v6438_v54 = vpack.c.bf16 %v4503_v52, %v4502_v51  ;;  %v4521_v40 = vld [vmem:[%s8703_s2 + $0x1e8] sm:$0xff]  ;;  %v4523_v45 = vld [vmem:[%s8703_s2 + $0x1f8] sm:$0xff] }
  0x2b   : > { %6391 = vmatprep.subr.bf16.mxu0 %v6390_v53  ;;  %v4525_v51 = vld [vmem:[%s8703_s2 + $0x208] sm:$0xff]  ;;  %v1088_v56 = vld [vmem:[#allocation2 + $0x1e] sm:$0xff] }
  0x2c   : > { %v1092_v6 = vld [vmem:[#allocation2 + $0x3e] sm:$0xff] }
  0x2d   : > { %5389 = vmatmul.mubr.f32.gmra.mrb[2].mxu0 %v575_v59  ;;  %v4506_v59 = vld [vmem:[%s8703_s2 + $0x170] sm:$0xff]  ;;  %v1096_v19 = vld [vmem:[#allocation2 + $0x5e] sm:$0xff] }
  0x2e   : > { %6393 = vmatpush3.bf16.msra.mxu0 %v6390_v53  ;;  %5391 = vmatprep.mubr.f32.mxu0 %v576_v61  ;;  %v7584_v53 = vld [vmem:[#allocation2 + $0x54] sm:$0xff] }
  0x2f   : > { %6395 = vmatprep.subr.bf16.mxu0 %v6394_v60 }
  0x31   : > { %5392 = vmatmul.mubr.f32.gmra.mrb[4].mxu0 %v7497_v1 }
  0x32   : > { %6397 = vmatpush3.bf16.msra.mxu0 %v6394_v60  ;;  %5394 = vmatprep.mubr.f32.mxu0 %v7499_v3  ;;  %v4507_v60 = vld [vmem:[%s8703_s2 + $0x178] sm:$0xff] }
  0x33   : > { %6399 = vmatprep.subr.bf16.mxu0 %v6398_v2  ;;  %v6446_v61 = vpack.c.bf16 %v4507_v60, %v4506_v59  ;;  %v4528_v59 = vld [vmem:[%s8703_s2 + $0x220] sm:$0xff]  ;;  %v4529_v60 = vld [vmem:[%s8703_s2 + $0x228] sm:$0xff] }
  0x35   : > { %5395 = vmatmul.mubr.f32.gmra.mrb[6].mxu0 %v7509_v7 }
  0x36   : > { %6401 = vmatpush3.bf16.msra.mxu0 %v6398_v2  ;;  %5397 = vmatprep.mubr.f32.mxu0 %v7511_v9  ;;  %v6450_v2 = vpack.c.bf16 %v4509_v0, %v4508_v63  ;;  %v6490_v63 = vpack.c.bf16 %v4529_v60, %v4528_v59  ;;  %v1091_v0 = vld [vmem:[#allocation2 + $0x36] sm:$0xff]  ;;  %v1264_v60 = vld [vmem:[#allocation2 + $0x43] sm:$0xff] }
  0x37   : > { %6403 = vmatprep.subr.bf16.mxu0 %v6402_v8  ;;  %v4547_v59 = vld [vmem:[%s8703_s2 + $0x2b8] sm:$0xff] }
  0x39   : > { %5398 = vmatmul.mubr.f32.gmra.mrb[8].mxu0 %v7521_v12 }
  0x3a   : > { %6405 = vmatpush3.bf16.msra.mxu0 %v6402_v8  ;;  %5432 = vmatprep.mubr.f32.mxu0 %v743_v14  ;;  %v916_v8 = vld [vmem:[#allocation2 + $0x19] sm:$0xff]  ;;  %v4513_v14 = vld [vmem:[%s8703_s2 + $0x1a8] sm:$0xff] }
  0x3b   : > { %6407 = vmatprep.subr.bf16.mxu0 %v6406_v13 }
  0x3e   : > { %6409 = vmatpush3.bf16.msra.mxu0 %v6406_v13  ;;  %v4512_v13 = vld [vmem:[%s8703_s2 + $0x1a0] sm:$0xff] }
  0x3f   : > { %6411 = vmatprep.subr.bf16.mxu0 %v6410_v17  ;;  %v6458_v16 = vpack.c.bf16 %v4513_v14, %v4512_v13  ;;  %v4533_v13 = vld [vmem:[%s8703_s2 + $0x248] sm:$0xff] }
  0x40   : > { %v1094_v14 = vld [vmem:[#allocation2 + $0x4e] sm:$0xff] }
  0x42   : > { %6413 = vmatpush3.bf16.msra.mxu0 %v6410_v17  ;;  %v919_v17 = vld [vmem:[#allocation2 + $0x31] sm:$0xff] }
  0x43   : > { %6415 = vmatprep.subr.bf16.mxu0 %v6414_v20 }
  0x46   : > { %6417 = vmatpush3.bf16.msra.mxu0 %v6414_v20  ;;  %v7623_v20 = vld [vmem:[#allocation2 + $0x39] sm:$0xff] }
  0x47   : > { %6419 = vmatprep.subr.bf16.mxu0 %v6418_v24 }
  0x49   : > { %5433 = vmatmul.mubr.f32.vlgmr.msra.gmra.mrb[0].mxu0 %v744_v27 }
  0x4a   : > { %6421 = vmatpush3.bf16.msra.mxu0 %v6418_v24  ;;  %5435 = vmatprep.mubr.f32.mxu0 %v745_v31  ;;  %v4516_v24 = vld [vmem:[%s8703_s2 + $0x1c0] sm:$0xff]  ;;  %v4518_v31 = vld [vmem:[%s8703_s2 + $0x1d0] sm:$0xff] }
  0x4b   : > { %6423 = vmatprep.subr.bf16.mxu0 %v6422_v30  ;;  %v6466_v27 = vpack.c.bf16 %v4517_v25, %v4516_v24  ;;  %v1259_v24 = vld [vmem:[#allocation2 + $0x1b] sm:$0xff] }
  0x4c   : > { %v4536_v25 = vld [vmem:[%s8703_s2 + $0x260] sm:$0xff] }
  0x4d   : > { %5436 = vmatmul.mubr.f32.gmra.mrb[2].mxu0 %v746_v34  ;;  %v6470_v34 = vpack.c.bf16 %v4519_v32, %v4518_v31  ;;  %v4538_v32 = vld [vmem:[%s8703_s2 + $0x270] sm:$0xff] }
  0x4e   : > { %6425 = vmatpush3.bf16.msra.mxu0 %v6422_v30  ;;  %5438 = vmatprep.mubr.f32.mxu0 %v747_v38  ;;  %v7637_v30 = vld [vmem:[#allocation2 + $0x51] sm:$0xff]  ;;  %v4520_v38 = vld [vmem:[%s8703_s2 + $0x1e0] sm:$0xff] }
  0x4f   : > { %6427 = vmatprep.subr.bf16.mxu0 %v6426_v37  ;;  %v6474_v41 = vpack.c.bf16 %v4521_v40, %v4520_v38  ;;  %v4540_v38 = vld [vmem:[%s8703_s2 + $0x280] sm:$0xff]  ;;  %v4541_v40 = vld [vmem:[%s8703_s2 + $0x288] sm:$0xff] }
  0x51   : > { %5439 = vmatmul.mubr.f32.gmra.mrb[4].mxu0 %v7560_v42 }
  0x52   : > { %6429 = vmatpush3.bf16.msra.mxu0 %v6426_v37  ;;  %5441 = vmatprep.mubr.f32.mxu0 %v7562_v44  ;;  %v1087_v37 = vld [vmem:[#allocation2 + $0x16] sm:$0xff] }
  0x53   : > { %6431 = vmatprep.subr.bf16.mxu0 %v6430_v43 }
  0x55   : > { %5442 = vmatmul.mubr.f32.gmra.mrb[6].mxu0 %v7572_v47 }
  0x56   : > { %6433 = vmatpush3.bf16.msra.mxu0 %v6430_v43  ;;  %5444 = vmatprep.mubr.f32.mxu0 %v7574_v50  ;;  %v4522_v43 = vld [vmem:[%s8703_s2 + $0x1f0] sm:$0xff] }
  0x57   : > { %6435 = vmatprep.subr.bf16.mxu0 %v6434_v49  ;;  %v6478_v46 = vpack.c.bf16 %v4523_v45, %v4522_v43  ;;  %v4542_v43 = vld [vmem:[%s8703_s2 + $0x290] sm:$0xff]  ;;  %v4543_v45 = vld [vmem:[%s8703_s2 + $0x298] sm:$0xff] }
  0x59   : > { %5445 = vmatmul.mubr.f32.gmra.mrb[8].mxu0 %v7584_v53 }
  0x5a   : > { %6437 = vmatpush3.bf16.msra.mxu0 %v6434_v49  ;;  %5479 = vmatprep.mubr.f32.mxu0 %v915_v55  ;;  %v4524_v49 = vld [vmem:[%s8703_s2 + $0x200] sm:$0xff]  ;;  %v4527_v55 = vld [vmem:[%s8703_s2 + $0x218] sm:$0xff] }
  0x5b   : > { %6439 = vmatprep.subr.bf16.mxu0 %v6438_v54  ;;  %v6482_v52 = vpack.c.bf16 %v4525_v51, %v4524_v49  ;;  %v6518_v49 = vpack.c.bf16 %v4543_v45, %v4542_v43  ;;  %v1261_v51 = vld [vmem:[#allocation2 + $0x2b] sm:$0xff]  ;;  %v4563_v43 = vld [vmem:[%s8703_s2 + $0x338] sm:$0xff] }
  0x5c   : > { %v4565_v45 = vld [vmem:[%s8703_s2 + $0x348] sm:$0xff] }
  0x5e   : > { %6441 = vmatpush3.bf16.msra.mxu0 %v6438_v54  ;;  %v4526_v54 = vld [vmem:[%s8703_s2 + $0x210] sm:$0xff] }
  0x5f   : > { %6443 = vmatprep.subr.bf16.mxu0 %v6442_v58  ;;  %v6486_v57 = vpack.c.bf16 %v4527_v55, %v4526_v54  ;;  %v4545_v54 = vld [vmem:[%s8703_s2 + $0x2a8] sm:$0xff]  ;;  %v1262_v55 = vld [vmem:[#allocation2 + $0x33] sm:$0xff] }
  0x62   : > { %6445 = vmatpush3.bf16.msra.mxu0 %v6442_v58  ;;  %v1089_v58 = vld [vmem:[#allocation2 + $0x26] sm:$0xff] }
  0x63   : > { %6447 = vmatprep.subr.bf16.mxu0 %v6446_v61 }
  0x66   : > { %6449 = vmatpush3.bf16.msra.mxu0 %v6446_v61  ;;  %v1090_v61 = vld [vmem:[#allocation2 + $0x2e] sm:$0xff] }
  0x67   : > { %6451 = vmatprep.subr.bf16.mxu0 %v6450_v2 }
  0x69   : > { %5480 = vmatmul.mubr.f32.vlgmr.msra.gmra.mrb[0].mxu0 %v916_v8 }
  0x6a   : > { %6453 = vmatpush3.bf16.msra.mxu0 %v6450_v2  ;;  %5482 = vmatprep.mubr.f32.mxu0 %v917_v11  ;;  %v4530_v2 = vld [vmem:[%s8703_s2 + $0x230] sm:$0xff]  ;;  %v4532_v11 = vld [vmem:[%s8703_s2 + $0x240] sm:$0xff] }
  0x6b   : > { %6455 = vmatprep.subr.bf16.mxu0 %v6454_v10  ;;  %v6494_v8 = vpack.c.bf16 %v4531_v4, %v4530_v2  ;;  %v4549_v2 = vld [vmem:[%s8703_s2 + $0x2c8] sm:$0xff]  ;;  %v1266_v4 = vld [vmem:[#allocation2 + $0x53] sm:$0xff] }
  0x6d   : > { %5483 = vmatmul.mubr.f32.gmra.mrb[2].mxu0 %v918_v15  ;;  %v6498_v15 = vpack.c.bf16 %v4533_v13, %v4532_v11  ;;  %v4551_v11 = vld [vmem:[%s8703_s2 + $0x2d8] sm:$0xff]  ;;  %v1268_v13 = vld [vmem:[#allocation2 + $0x63] sm:$0xff] }
  0x6e   : > { %6457 = vmatpush3.bf16.msra.mxu0 %v6454_v10  ;;  %5485 = vmatprep.mubr.f32.mxu0 %v919_v17  ;;  %v1093_v10 = vld [vmem:[#allocation2 + $0x46] sm:$0xff]  ;;  %v4534_v17 = vld [vmem:[%s8703_s2 + $0x250] sm:$0xff] }
  0x6f   : > { %6459 = vmatprep.subr.bf16.mxu0 %v6458_v16 }
  0x71   : > { %5486 = vmatmul.mubr.f32.gmra.mrb[4].mxu0 %v7623_v20 }
  0x72   : > { %6461 = vmatpush3.bf16.msra.mxu0 %v6458_v16  ;;  %5488 = vmatprep.mubr.f32.mxu0 %v7625_v22  ;;  %v1095_v16 = vld [vmem:[#allocation2 + $0x56] sm:$0xff] }
  0x73   : > { %6463 = vmatprep.subr.bf16.mxu0 %v6462_v21 }
  0x75   : > { %5489 = vmatmul.mubr.f32.gmra.mrb[6].mxu0 %v7635_v26 }
  0x76   : > { %6465 = vmatpush3.bf16.msra.mxu0 %v6462_v21  ;;  %5491 = vmatprep.mubr.f32.mxu0 %v7637_v30  ;;  %v6502_v21 = vpack.c.bf16 %v4535_v18, %v4534_v17  ;;  %v4554_v18 = vld [vmem:[%s8703_s2 + $0x2f0] sm:$0xff] }
  0x77   : > { %6467 = vmatprep.subr.bf16.mxu0 %v6466_v27 }
  0x79   : > { %5492 = vmatmul.mubr.f32.gmra.mrb[8].mxu0 %v7647_v33 }
  0x7a   : > { %6469 = vmatpush3.bf16.msra.mxu0 %v6466_v27  ;;  %5526 = vmatprep.mubr.f32.mxu0 %v1087_v37  ;;  %v4537_v27 = vld [vmem:[%s8703_s2 + $0x268] sm:$0xff] }
  0x7b   : > { %6471 = vmatprep.subr.bf16.mxu0 %v6470_v34  ;;  %v6506_v31 = vpack.c.bf16 %v4537_v27, %v4536_v25  ;;  %v4557_v25 = vld [vmem:[%s8703_s2 + $0x308] sm:$0xff] }
  0x7e   : > { %6473 = vmatpush3.bf16.msra.mxu0 %v6470_v34  ;;  %v4539_v34 = vld [vmem:[%s8703_s2 + $0x278] sm:$0xff] }
  0x7f   : > { %6475 = vmatprep.subr.bf16.mxu0 %v6474_v41  ;;  %v6510_v37 = vpack.c.bf16 %v4539_v34, %v4538_v32  ;;  %v4559_v32 = vld [vmem:[%s8703_s2 + $0x318] sm:$0xff] }
  0x82   : > { %6477 = vmatpush3.bf16.msra.mxu0 %v6474_v41  ;;  %v6514_v41 = vpack.c.bf16 %v4541_v40, %v4540_v38  ;;  %v4561_v38 = vld [vmem:[%s8703_s2 + $0x328] sm:$0xff] }
  0x83   : > { %6479 = vmatprep.subr.bf16.mxu0 %v6478_v46 }
  0x86   : > { %6481 = vmatpush3.bf16.msra.mxu0 %v6478_v46  ;;  %v1260_v46 = vld [vmem:[#allocation2 + $0x23] sm:$0xff] }
  0x87   : > { %6483 = vmatprep.subr.bf16.mxu0 %v6482_v52 }
  0x89   : > { %5527 = vmatmul.mubr.f32.vlgmr.msra.gmra.mrb[0].mxu0 %v1088_v56 }
  0x8a   : > { %6485 = vmatpush3.bf16.msra.mxu0 %v6482_v52  ;;  %5529 = vmatprep.mubr.f32.mxu0 %v1089_v58  ;;  %v4544_v52 = vld [vmem:[%s8703_s2 + $0x2a0] sm:$0xff]  ;;  %v4546_v58 = vld [vmem:[%s8703_s2 + $0x2b0] sm:$0xff] }
  0x8b   : > { %6487 = vmatprep.subr.bf16.mxu0 %v6486_v57  ;;  %v6522_v56 = vpack.c.bf16 %v4545_v54, %v4544_v52  ;;  %v4571_v52 = vld [vmem:[%s8703_s2 + $0x378] sm:$0xff] }
  0x8d   : > { %5530 = vmatmul.mubr.f32.gmra.mrb[2].mxu0 %v1090_v61  ;;  %v6526_v61 = vpack.c.bf16 %v4547_v59, %v4546_v58  ;;  %v4575_v58 = vld [vmem:[%s8703_s2 + $0x398] sm:$0xff]  ;;  %v1604_v59 = vld [vmem:[#allocation2 + $0x2d] sm:$0xff] }
  0x8e   : > { %6489 = vmatpush3.bf16.msra.mxu0 %v6486_v57  ;;  %5532 = vmatprep.mubr.f32.mxu0 %v1091_v0  ;;  %v1263_v57 = vld [vmem:[#allocation2 + $0x3b] sm:$0xff] }
  0x8f   : > { %6491 = vmatprep.subr.bf16.mxu0 %v6490_v63  ;;  %v4548_v0 = vld [vmem:[%s8703_s2 + $0x2c0] sm:$0xff] }
  0x91   : > { %5533 = vmatmul.mubr.f32.gmra.mrb[4].mxu0 %v1092_v6  ;;  %v6530_v6 = vpack.c.bf16 %v4549_v2, %v4548_v0  ;;  %v4577_v0 = vld [vmem:[%s8703_s2 + $0x3a8] sm:$0xff]  ;;  %v1606_v2 = vld [vmem:[#allocation2 + $0x3d] sm:$0xff] }
  0x92   : > { %6493 = vmatpush3.bf16.msra.mxu0 %v6490_v63  ;;  %5535 = vmatprep.mubr.f32.mxu0 %v1093_v10  ;;  %v1265_v63 = vld [vmem:[#allocation2 + $0x4b] sm:$0xff] }
  0x93   : > { %6495 = vmatprep.subr.bf16.mxu0 %v6494_v8  ;;  %v4550_v10 = vld [vmem:[%s8703_s2 + $0x2d0] sm:$0xff] }
  0x95   : > { %5536 = vmatmul.mubr.f32.gmra.mrb[6].mxu0 %v1094_v14  ;;  %v6534_v14 = vpack.c.bf16 %v4551_v11, %v4550_v10  ;;  %v4579_v10 = vld [vmem:[%s8703_s2 + $0x3b8] sm:$0xff]  ;;  %v1608_v11 = vld [vmem:[#allocation2 + $0x4d] sm:$0xff] }
  0x96   : > { %6497 = vmatpush3.bf16.msra.mxu0 %v6494_v8  ;;  %5538 = vmatprep.mubr.f32.mxu0 %v1095_v16  ;;  %v1267_v8 = vld [vmem:[#allocation2 + $0x5b] sm:$0xff]  ;;  %v4553_v16 = vld [vmem:[%s8703_s2 + $0x2e8] sm:$0xff] }
  0x97   : > { %6499 = vmatprep.subr.bf16.mxu0 %v6498_v15 }
  0x99   : > { %5539 = vmatmul.mubr.f32.gmra.mrb[8].mxu0 %v1096_v19  ;;  %v4555_v19 = vld [vmem:[%s8703_s2 + $0x2f8] sm:$0xff] }
  0x9a   : > { %6501 = vmatpush3.bf16.msra.mxu0 %v6498_v15  ;;  %5573 = vmatprep.mubr.f32.mxu0 %v1259_v24  ;;  %v4552_v15 = vld [vmem:[%s8703_s2 + $0x2e0] sm:$0xff] }
  0x9b   : > { %6503 = vmatprep.subr.bf16.mxu0 %v6502_v21  ;;  %v6538_v17 = vpack.c.bf16 %v4553_v16, %v4552_v15  ;;  %v4556_v24 = vld [vmem:[%s8703_s2 + $0x300] sm:$0xff]  ;;  %v4581_v16 = vld [vmem:[%s8703_s2 + $0x3c8] sm:$0xff] }
  0x9c   : > { %v6546_v27 = vpack.c.bf16 %v4557_v25, %v4556_v24  ;;  %v4580_v15 = vld [vmem:[%s8703_s2 + $0x3c0] sm:$0xff]  ;;  %v4583_v24 = vld [vmem:[%s8703_s2 + $0x3d8] sm:$0xff]  ;;  %v1612_v25 = vld [vmem:[#allocation2 + $0x6d] sm:$0xff] }
  0x9e   : > { %6505 = vmatpush3.bf16.msra.mxu0 %v6502_v21  ;;  %v6542_v21 = vpack.c.bf16 %v4555_v19, %v4554_v18  ;;  %v6594_v18 = vpack.c.bf16 %v4581_v16, %v4580_v15  ;;  %v1611_v19 = vld [vmem:[#allocation2 + $0x65] sm:$0xff] }
  0x9f   : > { %6507 = vmatprep.subr.bf16.mxu0 %v6506_v31  ;;  %v1783_v16 = vld [vmem:[#allocation2 + $0x6a] sm:$0xff] }
  0xa2   : > { %6509 = vmatpush3.bf16.msra.mxu0 %v6506_v31  ;;  %v4558_v31 = vld [vmem:[%s8703_s2 + $0x310] sm:$0xff] }
  0xa3   : > { %6511 = vmatprep.subr.bf16.mxu0 %v6510_v37  ;;  %v6550_v34 = vpack.c.bf16 %v4559_v32, %v4558_v31  ;;  %v1775_v31 = vld [vmem:[#allocation2 + $0x2a] sm:$0xff]  ;;  %v4584_v32 = vld [vmem:[%s8703_s2 + $0x3e0] sm:$0xff] }
  0xa6   : > { %6513 = vmatpush3.bf16.msra.mxu0 %v6510_v37  ;;  %v4560_v37 = vld [vmem:[%s8703_s2 + $0x320] sm:$0xff] }
  0xa7   : > { %6515 = vmatprep.subr.bf16.mxu0 %v6514_v41  ;;  %v6554_v40 = vpack.c.bf16 %v4561_v38, %v4560_v37  ;;  %v2625_v37 = vld [vmem:[%s8705_s4] sm:$0xff]  ;;  %v2626_v38 = vld [vmem:[%s8705_s4 + $0x8] sm:$0xff] }
  0xa9   : > { %5574 = vmatmul.mubr.f32.vlgmr.msra.gmra.mrb[0].mxu0 %v1260_v46  ;;  %v4567_v46 = vld [vmem:[%s8703_s2 + $0x358] sm:$0xff] }
  0xaa   : > { %6517 = vmatpush3.bf16.msra.mxu0 %v6514_v41  ;;  %5576 = vmatprep.mubr.f32.mxu0 %v1261_v51  ;;  %v4562_v41 = vld [vmem:[%s8703_s2 + $0x330] sm:$0xff]  ;;  %v4569_v51 = vld [vmem:[%s8703_s2 + $0x368] sm:$0xff] }
  0xab   : > { %6519 = vmatprep.subr.bf16.mxu0 %v6518_v49 }
  0xad   : > { %5577 = vmatmul.mubr.f32.gmra.mrb[2].mxu0 %v1262_v55  ;;  %v4572_v55 = vld [vmem:[%s8703_s2 + $0x380] sm:$0xff] }
  0xae   : > { %6521 = vmatpush3.bf16.msra.mxu0 %v6518_v49  ;;  %5579 = vmatprep.mubr.f32.mxu0 %v1263_v57  ;;  %v1603_v49 = vld [vmem:[#allocation2 + $0x25] sm:$0xff]  ;;  %v4574_v57 = vld [vmem:[%s8703_s2 + $0x390] sm:$0xff] }
  0xaf   : > { %6523 = vmatprep.subr.bf16.mxu0 %v6522_v56 }
  0xb1   : > { %5580 = vmatmul.mubr.f32.gmra.mrb[4].mxu0 %v1264_v60  ;;  %v6582_v60 = vpack.c.bf16 %v4575_v58, %v4574_v57  ;;  %v1777_v58 = vld [vmem:[#allocation2 + $0x3a] sm:$0xff] }
  0xb2   : > { %6525 = vmatpush3.bf16.msra.mxu0 %v6522_v56  ;;  %5582 = vmatprep.mubr.f32.mxu0 %v1265_v63  ;;  %v4576_v63 = vld [vmem:[%s8703_s2 + $0x3a0] sm:$0xff] }
  0xb3   : > { %6527 = vmatprep.subr.bf16.mxu0 %v6526_v61 }
  0xb5   : > { %5583 = vmatmul.mubr.f32.gmra.mrb[6].mxu0 %v1266_v4  ;;  %v6586_v4 = vpack.c.bf16 %v4577_v0, %v4576_v63  ;;  %v1779_v0 = vld [vmem:[#allocation2 + $0x4a] sm:$0xff] }
  0xb6   : > { %6529 = vmatpush3.bf16.msra.mxu0 %v6526_v61  ;;  %5585 = vmatprep.mubr.f32.mxu0 %v1267_v8  ;;  %v1605_v61 = vld [vmem:[#allocation2 + $0x35] sm:$0xff] }
  0xb7   : > { %6531 = vmatprep.subr.bf16.mxu0 %v6530_v6  ;;  %v4578_v8 = vld [vmem:[%s8703_s2 + $0x3b0] sm:$0xff] }
  0xb9   : > { %5586 = vmatmul.mubr.f32.gmra.mrb[8].mxu0 %v1268_v13  ;;  %v6590_v13 = vpack.c.bf16 %v4579_v10, %v4578_v8  ;;  %v1781_v10 = vld [vmem:[#allocation2 + $0x5a] sm:$0xff] }
  0xba   : > { %6533 = vmatpush3.bf16.msra.mxu0 %v6530_v6  ;;  %5620 = vmatprep.mubr.f32.mxu0 %v7311_v5  ;;  %v1607_v6 = vld [vmem:[#allocation2 + $0x45] sm:$0xff] }
  0xbb   : > { %6535 = vmatprep.subr.bf16.mxu0 %v6534_v14 }
  0xbe   : > { %6537 = vmatpush3.bf16.msra.mxu0 %v6534_v14  ;;  %v1609_v14 = vld [vmem:[#allocation2 + $0x55] sm:$0xff] }
  0xbf   : > { %6539 = vmatprep.subr.bf16.mxu0 %v6538_v17 }
  0xc2   : > { %6541 = vmatpush3.bf16.msra.mxu0 %v6538_v17  ;;  %v1610_v17 = vld [vmem:[#allocation2 + $0x5d] sm:$0xff] }
  0xc3   : > { %6543 = vmatprep.subr.bf16.mxu0 %v6542_v21 }
  0xc6   : > { %6545 = vmatpush3.bf16.msra.mxu0 %v6542_v21  ;;  %v4582_v21 = vld [vmem:[%s8703_s2 + $0x3d0] sm:$0xff] }
  0xc7   : > { %6547 = vmatprep.subr.bf16.mxu0 %v6546_v27 }
  0xc9   : > { %5621 = vmatmul.mubr.f32.vlgmr.msra.gmra.mrb[0].mxu0 %v7426_v23  ;;  %v6558_v23 = vpack.c.bf16 %v4563_v43, %v4562_v41  ;;  %v6706_v41 = vpack.c.bf16 %v2626_v38, %v2625_v37  ;;  %v2628_v43 = vld [vmem:[%s8705_s4 + $0x18] sm:$0xff]  ;;  %v4604_v37 = vld [vmem:[%s8703_s2 + $0x480] sm:$0xff] }
  0xca   : > { %6549 = vmatpush3.bf16.msra.mxu0 %v6546_v27  ;;  %5623 = vmatprep.mubr.f32.mxu0 %v7437_v28  ;;  %v4564_v28 = vld [vmem:[%s8703_s2 + $0x340] sm:$0xff]  ;;  %v6598_v27 = vpack.c.bf16 %v4583_v24, %v4582_v21 }
  0xcb   : > { %6551 = vmatprep.subr.bf16.mxu0 %v6550_v34  ;;  %6707 = vmatprep.subr.bf16.mxu1 %v6706_v41  ;;  %v4600_v24 = vld [vmem:[%s8703_s2 + $0x460] sm:$0xff] }
  0xcc   : > { %6709 = vmatpush3.bf16.msra.mxu1 %v6706_v41  ;;  %v4607_v41 = vld [vmem:[%s8703_s2 + $0x498] sm:$0xff] }
  0xcd   : > { %5624 = vmatmul.mubr.f32.gmra.mrb[2].mxu0 %v7439_v29  ;;  %v6562_v29 = vpack.c.bf16 %v4565_v45, %v4564_v28  ;;  %v2629_v45 = vld [vmem:[%s8705_s4 + $0x20] sm:$0xff] }
  0xce   : > { %6553 = vmatpush3.bf16.msra.mxu0 %v6550_v34  ;;  %5626 = vmatprep.mubr.f32.mxu0 %v7444_v35  ;;  %v4566_v35 = vld [vmem:[%s8703_s2 + $0x350] sm:$0xff]  ;;  %v4585_v34 = vld [vmem:[%s8703_s2 + $0x3e8] sm:$0xff] }
  0xcf   : > { %6555 = vmatprep.subr.bf16.mxu0 %v6554_v40 }
  0xd1   : > { %5627 = vmatmul.mubr.f32.gmra.mrb[4].mxu0 %v7446_v36  ;;  %v6566_v36 = vpack.c.bf16 %v4567_v46, %v4566_v35  ;;  %v4586_v35 = vld [vmem:[%s8703_s2 + $0x3f0] sm:$0xff]  ;;  %v4587_v46 = vld [vmem:[%s8703_s2 + $0x3f8] sm:$0xff] }
  0xd2   : > { %6557 = vmatpush3.bf16.msra.mxu0 %v6554_v40  ;;  %5629 = vmatprep.mubr.f32.mxu0 %v7456_v39  ;;  %v4568_v39 = vld [vmem:[%s8703_s2 + $0x360] sm:$0xff]  ;;  %v2627_v40 = vld [vmem:[%s8705_s4 + $0x10] sm:$0xff] }
  0xd3   : > { %6559 = vmatprep.subr.bf16.mxu0 %v6558_v23  ;;  %v6710_v28 = vpack.c.bf16 %v2628_v43, %v2627_v40  ;;  %v4606_v40 = vld [vmem:[%s8703_s2 + $0x490] sm:$0xff] }
  0xd4   : > { %v6646_v43 = vpack.c.bf16 %v4607_v41, %v4606_v40  ;;  %v2636_v40 = vld [vmem:[%s8705_s4 + $0x58] sm:$0xff] }
  0xd5   : > { %5630 = vmatmul.mubr.f32.gmra.mrb[6].mxu0 %v7472_v48  ;;  %v6570_v48 = vpack.c.bf16 %v4569_v51, %v4568_v39  ;;  %6711 = vmatprep.subr.bf16.mxu1 %v6710_v28  ;;  %v2631_v39 = vld [vmem:[%s8705_s4 + $0x30] sm:$0xff]  ;;  %v2632_v51 = vld [vmem:[%s8705_s4 + $0x38] sm:$0xff] }
  0xd6   : > { %6561 = vmatpush3.bf16.msra.mxu0 %v6558_v23  ;;  %5632 = vmatprep.mubr.f32.mxu0 %v7488_v62  ;;  %v4570_v62 = vld [vmem:[%s8703_s2 + $0x370] sm:$0xff]  ;;  %v6602_v23 = vpack.c.bf16 %v4585_v34, %v4584_v32  ;;  %v4603_v32 = vld [vmem:[%s8703_s2 + $0x478] sm:$0xff] }
  0xd7   : > { %6563 = vmatprep.subr.bf16.mxu0 %v6562_v29  ;;  %v6574_v54 = vpack.c.bf16 %v4571_v52, %v4570_v62  ;;  %v4589_v62 = vld [vmem:[%s8703_s2 + $0x408] sm:$0xff]  ;;  %6713 = vmatpush3.bf16.msra.mxu1 %v6710_v28  ;;  %v6718_v52 = vpack.c.bf16 %v2632_v51, %v2631_v39 }
  0xd8   : > { %v4609_v28 = vld [vmem:[%s8703_s2 + $0x4a8] sm:$0xff] }
  0xd9   : > { %5633 = vmatmul.mubr.f32.gmra.mrb[8].mxu0 %v7311_v5  ;;  %v4573_v5 = vld [vmem:[%s8703_s2 + $0x388] sm:$0xff] }
  0xda   : > { %6565 = vmatpush3.bf16.msra.mxu0 %v6562_v29  ;;  %5667 = vmatprep.mubr.f32.mxu0 %v1603_v49  ;;  %v6578_v56 = vpack.c.bf16 %v4573_v5, %v4572_v55  ;;  %v2630_v29 = vld [vmem:[%s8705_s4 + $0x28] sm:$0xff]  ;;  %v6606_v49 = vpack.c.bf16 %v4587_v46, %v4586_v35  ;;  %v4590_v55 = vld [vmem:[%s8703_s2 + $0x410] sm:$0xff]  ;;  %v4591_v5 = vld [vmem:[%s8703_s2 + $0x418] sm:$0xff] }
  0xdb   : > { %6567 = vmatprep.subr.bf16.mxu0 %v6566_v36  ;;  %v6614_v57 = vpack.c.bf16 %v4591_v5, %v4590_v55  ;;  %v4611_v35 = vld [vmem:[%s8703_s2 + $0x4b8] sm:$0xff]  ;;  %v1954_v39 = vld [vmem:[#allocation2 + $0x67] sm:$0xff]  ;;  %v1955_v51 = vld [vmem:[#allocation2 + $0x6f] sm:$0xff] }
  0xdc   : > { %v1952_v46 = vld [vmem:[#allocation2 + $0x57] sm:$0xff]  ;;  %v4617_v55 = vld [vmem:[%s8703_s2 + $0x4e8] sm:$0xff] }
  0xde   : > { %6569 = vmatpush3.bf16.msra.mxu0 %v6566_v36  ;;  %v6714_v36 = vpack.c.bf16 %v2630_v29, %v2629_v45  ;;  %v4610_v29 = vld [vmem:[%s8703_s2 + $0x4b0] sm:$0xff] }
  0xdf   : > { %6571 = vmatprep.subr.bf16.mxu0 %v6570_v48 }
  0xe0   : > { %6715 = vmatprep.subr.bf16.mxu1 %v6714_v36 }
  0xe1   : > { %6717 = vmatpush3.bf16.msra.mxu1 %v6714_v36  ;;  %v1953_v36 = vld [vmem:[#allocation2 + $0x5f] sm:$0xff] }
  0xe2   : > { %6573 = vmatpush3.bf16.msra.mxu0 %v6570_v48  ;;  %v4588_v48 = vld [vmem:[%s8703_s2 + $0x400] sm:$0xff]  ;;  %6719 = vmatprep.subr.bf16.mxu1 %v6718_v52 }
  0xe3   : > { %6575 = vmatprep.subr.bf16.mxu0 %v6574_v54 }
  0xe5   : > { %6721 = vmatpush3.bf16.msra.mxu1 %v6718_v52 }
  0xe6   : > { %6577 = vmatpush3.bf16.msra.mxu0 %v6574_v54  ;;  %v6610_v54 = vpack.c.bf16 %v4589_v62, %v4588_v48  ;;  %v4615_v48 = vld [vmem:[%s8703_s2 + $0x4d8] sm:$0xff] }
  0xe7   : > { %6579 = vmatprep.subr.bf16.mxu0 %v6578_v56  ;;  %v1956_v62 = vld [vmem:[#allocation2 + $0x77] sm:$0xff] }
  0xe9   : > { %5668 = vmatmul.mubr.f32.vlgmr.msra.gmra.mrb[0].mxu0 %v1604_v59  ;;  %v4592_v59 = vld [vmem:[%s8703_s2 + $0x420] sm:$0xff] }
  0xea   : > { %6581 = vmatpush3.bf16.msra.mxu0 %v6578_v56  ;;  %5670 = vmatprep.mubr.f32.mxu0 %v1605_v61  ;;  %v1776_v56 = vld [vmem:[#allocation2 + $0x32] sm:$0xff]  ;;  %v1778_v61 = vld [vmem:[#allocation2 + $0x42] sm:$0xff] }
  0xeb   : > { %6583 = vmatprep.subr.bf16.mxu0 %v6582_v60 }
  0xed   : > { %5671 = vmatmul.mubr.f32.gmra.mrb[2].mxu0 %v1606_v2  ;;  %v4594_v2 = vld [vmem:[%s8703_s2 + $0x430] sm:$0xff] }
  0xee   : > { %6585 = vmatpush3.bf16.msra.mxu0 %v6582_v60  ;;  %5673 = vmatprep.mubr.f32.mxu0 %v1607_v6  ;;  %v4593_v60 = vld [vmem:[%s8703_s2 + $0x428] sm:$0xff]  ;;  %v1780_v6 = vld [vmem:[#allocation2 + $0x52] sm:$0xff] }
  0xef   : > { %6587 = vmatprep.subr.bf16.mxu0 %v6586_v4  ;;  %v6618_v63 = vpack.c.bf16 %v4593_v60, %v4592_v59  ;;  %v4620_v59 = vld [vmem:[%s8703_s2 + $0x500] sm:$0xff] }
  0xf1   : > { %5674 = vmatmul.mubr.f32.gmra.mrb[4].mxu0 %v1608_v11  ;;  %v4596_v11 = vld [vmem:[%s8703_s2 + $0x440] sm:$0xff] }
  0xf2   : > { %6589 = vmatpush3.bf16.msra.mxu0 %v6586_v4  ;;  %5676 = vmatprep.mubr.f32.mxu0 %v1609_v14  ;;  %v4595_v4 = vld [vmem:[%s8703_s2 + $0x438] sm:$0xff]  ;;  %v1782_v14 = vld [vmem:[#allocation2 + $0x62] sm:$0xff] }
  0xf3   : > { %6591 = vmatprep.subr.bf16.mxu0 %v6590_v13  ;;  %v6622_v8 = vpack.c.bf16 %v4595_v4, %v4594_v2  ;;  %v4624_v2 = vld [vmem:[%s8703_s2 + $0x520] sm:$0xff]  ;;  %v4625_v4 = vld [vmem:[%s8703_s2 + $0x528] sm:$0xff] }
  0xf5   : > { %5677 = vmatmul.mubr.f32.gmra.mrb[6].mxu0 %v1610_v17  ;;  %v4598_v17 = vld [vmem:[%s8703_s2 + $0x450] sm:$0xff] }
  0xf6   : > { %6593 = vmatpush3.bf16.msra.mxu0 %v6590_v13  ;;  %5679 = vmatprep.mubr.f32.mxu0 %v1611_v19  ;;  %v4597_v13 = vld [vmem:[%s8703_s2 + $0x448] sm:$0xff]  ;;  %v1784_v19 = vld [vmem:[#allocation2 + $0x72] sm:$0xff] }
  0xf7   : > { %6595 = vmatprep.subr.bf16.mxu0 %v6594_v18  ;;  %v6626_v15 = vpack.c.bf16 %v4597_v13, %v4596_v11  ;;  %v2124_v11 = vld [vmem:[#allocation2 + $0x5c] sm:$0xff]  ;;  %v2125_v13 = vld [vmem:[#allocation2 + $0x64] sm:$0xff] }
  0xf9   : > { %5680 = vmatmul.mubr.f32.gmra.mrb[8].mxu0 %v1612_v25  ;;  %v4601_v25 = vld [vmem:[%s8703_s2 + $0x468] sm:$0xff] }
  0xfa   : > { %6597 = vmatpush3.bf16.msra.mxu0 %v6594_v18  ;;  %5714 = vmatprep.mubr.f32.mxu0 %v1775_v31  ;;  %v4599_v18 = vld [vmem:[%s8703_s2 + $0x458] sm:$0xff]  ;;  %v4602_v31 = vld [vmem:[%s8703_s2 + $0x470] sm:$0xff] }
  0xfb   : > { %6599 = vmatprep.subr.bf16.mxu0 %v6598_v27  ;;  %v6630_v21 = vpack.c.bf16 %v4599_v18, %v4598_v17  ;;  %v6638_v34 = vpack.c.bf16 %v4603_v32, %v4602_v31  ;;  %v4631_v17 = vld [vmem:[%s8703_s2 + $0x558] sm:$0xff] }
  0xfc   : > { %v2128_v18 = vld [vmem:[#allocation2 + $0x7c] sm:$0xff] }
  0xfd   : > { %v4635_v31 = vld [vmem:[%s8703_s2 + $0x578] sm:$0xff] }
  0xfe   : > { %6601 = vmatpush3.bf16.msra.mxu0 %v6598_v27  ;;  %v6634_v27 = vpack.c.bf16 %v4601_v25, %v4600_v24  ;;  %v4633_v24 = vld [vmem:[%s8703_s2 + $0x568] sm:$0xff] }
  0xff   : > { %6603 = vmatprep.subr.bf16.mxu0 %v6602_v23 }
 0x102   : > { %6605 = vmatpush3.bf16.msra.mxu0 %v6602_v23  ;;  %v4608_v23 = vld [vmem:[%s8703_s2 + $0x4a0] sm:$0xff] }
 0x103   : > { %6607 = vmatprep.subr.bf16.mxu0 %v6606_v49  ;;  %v6650_v45 = vpack.c.bf16 %v4609_v28, %v4608_v23  ;;  %v2638_v23 = vld [vmem:[%s8705_s4 + $0x68] sm:$0xff] }
 0x106   : > { %6609 = vmatpush3.bf16.msra.mxu0 %v6606_v49  ;;  %v4613_v49 = vld [vmem:[%s8703_s2 + $0x4c8] sm:$0xff] }
 0x107   : > { %6611 = vmatprep.subr.bf16.mxu0 %v6610_v54 }
 0x109   : > { %5715 = vmatmul.mubr.f32.vlgmr.msra.gmra.mrb[0].mxu0 %v1776_v56  ;;  %v4618_v56 = vld [vmem:[%s8703_s2 + $0x4f0] sm:$0xff] }
 0x10a   : > { %6613 = vmatpush3.bf16.msra.mxu0 %v6610_v54  ;;  %5717 = vmatprep.mubr.f32.mxu0 %v1777_v58  ;;  %v4616_v54 = vld [vmem:[%s8703_s2 + $0x4e0] sm:$0xff] }
 0x10b   : > { %6615 = vmatprep.subr.bf16.mxu0 %v6614_v57  ;;  %v6666_v5 = vpack.c.bf16 %v4617_v55, %v4616_v54  ;;  %v530_v55 = vld [vmem:[#allocation2 + $0x48] sm:$0xff] }
 0x10d   : > { %5718 = vmatmul.mubr.f32.gmra.mrb[2].mxu0 %v1778_v61  ;;  %v4622_v61 = vld [vmem:[%s8703_s2 + $0x510] sm:$0xff] }
 0x10e   : > { %6617 = vmatpush3.bf16.msra.mxu0 %v6614_v57  ;;  %5720 = vmatprep.mubr.f32.mxu0 %v1779_v0  ;;  %v4619_v57 = vld [vmem:[%s8703_s2 + $0x4f8] sm:$0xff] }
 0x10f   : > { %6619 = vmatprep.subr.bf16.mxu0 %v6618_v63  ;;  %v6670_v58 = vpack.c.bf16 %v4619_v57, %v4618_v56  ;;  %v529_v56 = vld [vmem:[#allocation2 + $0x40] sm:$0xff] }
 0x111   : > { %5721 = vmatmul.mubr.f32.gmra.mrb[4].mxu0 %v1780_v6  ;;  %v6682_v6 = vpack.c.bf16 %v4625_v4, %v4624_v2  ;;  %v531_v4 = vld [vmem:[#allocation2 + $0x50] sm:$0xff] }
 0x112   : > { %6621 = vmatpush3.bf16.msra.mxu0 %v6618_v63  ;;  %5723 = vmatprep.mubr.f32.mxu0 %v1781_v10  ;;  %v4623_v63 = vld [vmem:[%s8703_s2 + $0x518] sm:$0xff] }
 0x113   : > { %6623 = vmatprep.subr.bf16.mxu0 %v6622_v8  ;;  %v6678_v0 = vpack.c.bf16 %v4623_v63, %v4622_v61  ;;  %v4627_v10 = vld [vmem:[%s8703_s2 + $0x538] sm:$0xff] }
 0x115   : > { %5724 = vmatmul.mubr.f32.gmra.mrb[6].mxu0 %v1782_v14  ;;  %v4629_v14 = vld [vmem:[%s8703_s2 + $0x548] sm:$0xff] }
 0x116   : > { %6625 = vmatpush3.bf16.msra.mxu0 %v6622_v8  ;;  %5726 = vmatprep.mubr.f32.mxu0 %v1783_v16  ;;  %v4626_v8 = vld [vmem:[%s8703_s2 + $0x530] sm:$0xff] }
 0x117   : > { %6627 = vmatprep.subr.bf16.mxu0 %v6626_v15  ;;  %v2127_v16 = vld [vmem:[#allocation2 + $0x74] sm:$0xff] }
 0x119   : > { %5727 = vmatmul.mubr.f32.gmra.mrb[8].mxu0 %v1784_v19 }
 0x11a   : > { %6629 = vmatpush3.bf16.msra.mxu0 %v6626_v15  ;;  %5761 = vmatprep.mubr.f32.mxu0 %v7497_v1  ;;  %v4605_v1 = vld [vmem:[%s8703_s2 + $0x488] sm:$0xff] }
 0x11b   : > { %6631 = vmatprep.subr.bf16.mxu0 %v6630_v21  ;;  %v6642_v38 = vpack.c.bf16 %v4605_v1, %v4604_v37  ;;  %v2126_v15 = vld [vmem:[#allocation2 + $0x6c] sm:$0xff]  ;;  %v2299_v1 = vld [vmem:[#allocation2 + $0x79] sm:$0xff] }
 0x11c   : > { %v2298_v37 = vld [vmem:[#allocation2 + $0x71] sm:$0xff] }
 0x11e   : > { %6633 = vmatpush3.bf16.msra.mxu0 %v6630_v21  ;;  %v4632_v21 = vld [vmem:[%s8703_s2 + $0x560] sm:$0xff] }
 0x11f   : > { %6635 = vmatprep.subr.bf16.mxu0 %v6634_v27  ;;  %v6698_v25 = vpack.c.bf16 %v4633_v24, %v4632_v21 }
 0x122   : > { %6637 = vmatpush3.bf16.msra.mxu0 %v6634_v27  ;;  %v4634_v27 = vld [vmem:[%s8703_s2 + $0x570] sm:$0xff] }
 0x123   : > { %6639 = vmatprep.subr.bf16.mxu0 %v6638_v34  ;;  %v6702_v32 = vpack.c.bf16 %v4635_v31, %v4634_v27 }
 0x126   : > { %6641 = vmatpush3.bf16.msra.mxu0 %v6638_v34  ;;  %v2297_v34 = vld [vmem:[#allocation2 + $0x69] sm:$0xff] }
 0x127   : > { %6643 = vmatprep.subr.bf16.mxu0 %v6642_v38 }
 0x129   : > { %5762 = vmatmul.mubr.f32.vlgmr.msra.gmra.mrb[0].mxu0 %v7499_v3  ;;  %v6654_v3 = vpack.c.bf16 %v4611_v35, %v4610_v29  ;;  %v2640_v29 = vld [vmem:[%s8705_s4 + $0x78] sm:$0xff] }
 0x12a   : > { %6645 = vmatpush3.bf16.msra.mxu0 %v6642_v38  ;;  %5764 = vmatprep.mubr.f32.mxu0 %v7509_v7  ;;  %v4612_v7 = vld [vmem:[%s8703_s2 + $0x4c0] sm:$0xff] }
 0x12b   : > { %6647 = vmatprep.subr.bf16.mxu0 %v6646_v43  ;;  %v2300_v38 = vld [vmem:[#allocation2 + $0x81] sm:$0xff] }
 0x12d   : > { %5765 = vmatmul.mubr.f32.gmra.mrb[2].mxu0 %v7511_v9  ;;  %v6658_v9 = vpack.c.bf16 %v4613_v49, %v4612_v7  ;;  %v526_v7 = vld [vmem:[#allocation2 + $0x28] sm:$0xff]  ;;  %v4475_v49 = vld [vmem:[%s8704_s3] ss:$0 sm:$0xff] }
 0x12e   : > { %6649 = vmatpush3.bf16.msra.mxu0 %v6646_v43  ;;  %5767 = vmatprep.mubr.f32.mxu0 %v7521_v12  ;;  %v4614_v12 = vld [vmem:[%s8703_s2 + $0x4d0] sm:$0xff]  ;;  %v2637_v43 = vld [vmem:[%s8705_s4 + $0x60] sm:$0xff]  ;;  %v546_v63 = vadd.f32 %v4475_v49, %v529_v56  ;;  %v4650_v56 = vld [vmem:[%s8705_s4 + $0xe8] sm:$0xff] }
 0x12f   : > { %6651 = vmatprep.subr.bf16.mxu0 %v6650_v45  ;;  %v6662_v52 = vpack.c.bf16 %v4615_v48, %v4614_v12  ;;  %v6730_v28 = vpack.c.bf16 %v2638_v23, %v2637_v43  ;;  %v4642_v23 = vld [vmem:[%s8705_s4 + $0xa8] sm:$0xff] }
 0x131   : > { %5768 = vmatmul.mubr.f32.gmra.mrb[4].mxu0 %v1952_v46  ;;  %v4637_v46 = vld [vmem:[%s8705_s4 + $0x80] sm:$0xff] }
 0x132   : > { %6653 = vmatpush3.bf16.msra.mxu0 %v6650_v45  ;;  %5770 = vmatprep.mubr.f32.mxu0 %v1953_v36  ;;  %v2639_v45 = vld [vmem:[%s8705_s4 + $0x70] sm:$0xff] }
 0x133   : > { %6655 = vmatprep.subr.bf16.mxu0 %v6654_v3  ;;  %v6734_v35 = vpack.c.bf16 %v2640_v29, %v2639_v45  ;;  %v4643_v29 = vld [vmem:[%s8705_s4 + $0xb0] sm:$0xff] }
 0x135   : > { %5771 = vmatmul.mubr.f32.gmra.mrb[6].mxu0 %v1954_v39  ;;  %v543_v39 = vadd.f32 %v4475_v49, %v526_v7  ;;  %v4644_v7 = vld [vmem:[%s8705_s4 + $0xb8] sm:$0xff] }
 0x136   : > { %6657 = vmatpush3.bf16.msra.mxu0 %v6654_v3  ;;  %5773 = vmatprep.mubr.f32.mxu0 %v1955_v51  ;;  %v4638_v3 = vld [vmem:[%s8705_s4 + $0x88] sm:$0xff]  ;;  %v527_v51 = vld [vmem:[#allocation2 + $0x30] sm:$0xff] }
 0x137   : > { %6659 = vmatprep.subr.bf16.mxu0 %v6658_v9  ;;  %v8077_v36 = vpack.c.bf16 %v4638_v3, %v4637_v46  ;;  %v544_v54 = vadd.f32 %v4475_v49, %v527_v51  ;;  %v4646_v51 = vld [vmem:[%s8705_s4 + $0xc8] sm:$0xff] }
 0x139   : > { %5774 = vmatmul.mubr.f32.gmra.mrb[8].mxu0 %v1956_v62 }
 0x13a   : > { %6661 = vmatpush3.bf16.msra.mxu0 %v6658_v9  ;;  %5808 = vmatprep.mubr.f32.mxu0 %v7560_v42  ;;  %v4621_v42 = vld [vmem:[%s8703_s2 + $0x508] sm:$0xff]  ;;  %v528_v9 = vld [vmem:[#allocation2 + $0x38] sm:$0xff] }
 0x13b   : > { %6663 = vmatprep.subr.bf16.mxu0 %v6662_v52  ;;  %v6674_v60 = vpack.c.bf16 %v4621_v42, %v4620_v59 }
 0x13e   : > { %6665 = vmatpush3.bf16.msra.mxu0 %v6662_v52  ;;  %v545_v52 = vadd.f32 %v4475_v49, %v528_v9 }
 0x13f   : > { %6667 = vmatprep.subr.bf16.mxu0 %v6666_v5 }
 0x142   : > { %6669 = vmatpush3.bf16.msra.mxu0 %v6666_v5 }
 0x143   : > { %6671 = vmatprep.subr.bf16.mxu0 %v6670_v58 }
 0x146   : > { %6673 = vmatpush3.bf16.msra.mxu0 %v6670_v58 }
 0x147   : > { %6675 = vmatprep.subr.bf16.mxu0 %v6674_v60 }
 0x149   : > { %5809 = vmatmul.mubr.f32.vlgmr.msra.gmra.mrb[0].mxu0 %v7562_v44  ;;  %v6686_v44 = vpack.c.bf16 %v4627_v10, %v4626_v8 }
 0x14a   : > { %6677 = vmatpush3.bf16.msra.mxu0 %v6674_v60  ;;  %5811 = vmatprep.mubr.f32.mxu0 %v7572_v47  ;;  %v4628_v47 = vld [vmem:[%s8703_s2 + $0x540] sm:$0xff]  ;;  %v547_v60 = vadd.f32 %v4475_v49, %v530_v55 }
 0x14b   : > { %6679 = vmatprep.subr.bf16.mxu0 %v6678_v0 }
 0x14d   : > { %5812 = vmatmul.mubr.f32.gmra.mrb[2].mxu0 %v7574_v50  ;;  %v6690_v50 = vpack.c.bf16 %v4629_v14, %v4628_v47 }
 0x14e   : > { %6681 = vmatpush3.bf16.msra.mxu0 %v6678_v0  ;;  %5814 = vmatprep.mubr.f32.mxu0 %v7584_v53  ;;  %v4630_v53 = vld [vmem:[%s8703_s2 + $0x550] sm:$0xff]  ;;  %v532_v0 = vld [vmem:[#allocation2 + $0x58] sm:$0xff] }
 0x14f   : > { %6683 = vmatprep.subr.bf16.mxu0 %v6682_v6  ;;  %v6694_v19 = vpack.c.bf16 %v4631_v17, %v4630_v53 }
 0x151   : > { %5815 = vmatmul.mubr.f32.gmra.mrb[4].mxu0 %v2124_v11 }
 0x152   : > { %6685 = vmatpush3.bf16.msra.mxu0 %v6682_v6  ;;  %5817 = vmatprep.mubr.f32.mxu0 %v2125_v13  ;;  %v549_v13 = vadd.f32 %v4475_v49, %v532_v0 }
 0x153   : > { %6687 = vmatprep.subr.bf16.mxu0 %v6686_v44 }
 0x155   : > { %5818 = vmatmul.mubr.f32.gmra.mrb[6].mxu0 %v2126_v15  ;;  %v548_v15 = vadd.f32 %v4475_v49, %v531_v4  ;;  %v4656_v4 = vld [vmem:[%s8705_s4 + $0x118] sm:$0xff] }
 0x156   : > { %6689 = vmatpush3.bf16.msra.mxu0 %v6686_v44  ;;  %5820 = vmatprep.mubr.f32.mxu0 %v2127_v16  ;;  %v533_v16 = vld [vmem:[#allocation2 + $0x60] sm:$0xff] }
 0x157   : > { %6691 = vmatprep.subr.bf16.mxu0 %v6690_v50  ;;  %v550_v31 = vadd.f32 %v4475_v49, %v533_v16  ;;  %v4645_v49 = vld [vmem:[%s8705_s4 + $0xc0] sm:$0xff]  ;;  %v4660_v16 = vld [vmem:[%s8705_s4 + $0x138] sm:$0xff] }
 0x159   : > { %5821 = vmatmul.mubr.f32.gmra.mrb[8].mxu0 %v2128_v18 }
 0x15a   : > { %6693 = vmatpush3.bf16.msra.mxu0 %v6690_v50  ;;  %5855 = vmatprep.mubr.f32.mxu0 %v7623_v20  ;;  %v2296_v20 = vld [vmem:[#allocation2 + $0x61] sm:$0xff] }
 0x15b   : > { %6695 = vmatprep.subr.bf16.mxu0 %v6694_v19 }
 0x15e   : > { %6697 = vmatpush3.bf16.msra.mxu0 %v6694_v19 }
 0x15f   : > { %6699 = vmatprep.subr.bf16.mxu0 %v6698_v25 }
 0x162   : > { %6701 = vmatpush3.bf16.msra.mxu0 %v6698_v25 }
 0x163   : > { %6703 = vmatprep.subr.bf16.mxu0 %v6702_v32 }
 0x166   : > { %6705 = vmatpush3.bf16.msra.mxu0 %v6702_v32  ;;  %v4639_v32 = vld [vmem:[%s8705_s4 + $0x90] sm:$0xff] }
 0x169   : > { %5856 = vmatmul.mubr.f32.vlgmr.msra.gmra.mrb[0].mxu0 %v7625_v22  ;;  %v2633_v22 = vld [vmem:[%s8705_s4 + $0x40] sm:$0xff] }
 0x16a   : > { %5858 = vmatprep.mubr.f32.mxu0 %v7635_v26  ;;  %v2634_v26 = vld [vmem:[%s8705_s4 + $0x48] sm:$0xff] }
 0x16d   : > { %5859 = vmatmul.mubr.f32.gmra.mrb[2].mxu0 %v7637_v30  ;;  %v6722_v30 = vpack.c.bf16 %v2634_v26, %v2633_v22 }
 0x16e   : > { %5861 = vmatprep.mubr.f32.mxu0 %v7647_v33  ;;  %v2635_v33 = vld [vmem:[%s8705_s4 + $0x50] sm:$0xff] }
 0x16f   : > { %6723 = vmatprep.subr.bf16.mxu1 %v6722_v30  ;;  %v6726_v41 = vpack.c.bf16 %v2636_v40, %v2635_v33 }
 0x170   : > { %6725 = vmatpush3.bf16.msra.mxu1 %v6722_v30  ;;  %v4641_v30 = vld [vmem:[%s8705_s4 + $0xa0] sm:$0xff] }
 0x171   : > { %5862 = vmatmul.mubr.f32.gmra.mrb[4].mxu0 %v2296_v20  ;;  %6727 = vmatprep.subr.bf16.mxu1 %v6726_v41  ;;  %v4640_v20 = vld [vmem:[%s8705_s4 + $0x98] sm:$0xff]  ;;  %v6746_v45 = vpack.c.bf16 %v4642_v23, %v4641_v30 }
 0x172   : > { %5864 = vmatprep.mubr.f32.mxu0 %v2297_v34  ;;  %v6742_v26 = vpack.c.bf16 %v4640_v20, %v4639_v32  ;;  %v4663_v20 = vld [vmem:[%s8705_s4 + $0x150] sm:$0xff]  ;;  %v4668_v23 = vld [vmem:[%s8705_s4 + $0x178] sm:$0xff] }
 0x174   : > { %6729 = vmatpush3.bf16.msra.mxu1 %v6726_v41 }
 0x175   : > { %5865 = vmatmul.mubr.f32.gmra.mrb[6].mxu0 %v2298_v37  ;;  %6731 = vmatprep.subr.bf16.mxu1 %v6730_v28 }
 0x176   : > { %5867 = vmatprep.mubr.f32.mxu0 %v2299_v1 }
 0x178   : > { %6733 = vmatpush3.bf16.msra.mxu1 %v6730_v28 }
 0x179   : > { %5868 = vmatmul.mubr.f32.gmra.mrb[8].mxu0 %v2300_v38  ;;  %6735 = vmatprep.subr.bf16.mxu1 %v6734_v35 }
 0x17c   : > { %6737 = vmatpush3.bf16.msra.mxu1 %v6734_v35 }
 0x17d   : > { %6739 = vmatprep.subr.bf16.mxu1 %v8077_v36 }
 0x23c   : > { %v5857_v12 = vpop.f32.mrb[0].mxu0 }
 0x23d   : > { %v7058_v48 = vadd.f32 %v5857_v12, %v543_v39  ;;  %v2384_v62 = vpop.f32.mrb[1].mxu0  ;;  %v6754_v12 = vpack.c.bf16 %v4646_v51, %v4645_v49  ;;  %v4672_v49 = vld [vmem:[%s8705_s4 + $0x198] sm:$0xff] }
 0x23e   : > { %v4647_v62 = vld [vmem:[%s8705_s4 + $0xd0] sm:$0xff] }
 0x23f   : > { %vm2464_vm8 = vcmp.ge.f32.partialorder %v7058_v48, 0.0  ;;  %v2474_v5 = vmul.f32 0.1, %v7058_v48 }
 0x240   : > { %v5860_v57 = vpop.f32.mrb[2].mxu0 }
 0x241   : > { %v8083_v58 = vsel %vm2464_vm8, %v7058_v48, %v2474_v5  ;;  %v7059_v59 = vadd.f32 %v5860_v57, %v545_v52  ;;  %v2394_v42 = vpop.f32.mrb[3].mxu0  ;;  %v4648_v52 = vld [vmem:[%s8705_s4 + $0xd8] sm:$0xff]  ;;  %v4649_v5 = vld [vmem:[%s8705_s4 + $0xe0] sm:$0xff] }
 0x242   : > { %2577 = vst [vmem:[#allocation3 + $0x8] sm:$0xff] %v8083_v58  ;;  %v7060_v61 = vadd.f32 %v2394_v42, %v544_v54  ;;  %v6758_v55 = vpack.c.bf16 %v4648_v52, %v4647_v62  ;;  %v6762_v57 = vpack.c.bf16 %v4650_v56, %v4649_v5  ;;  %v4652_v42 = vld [vmem:[%s8705_s4 + $0xf8] sm:$0xff]  ;;  %v4673_v62 = vld [vmem:[%s8705_s4 + $0x1a0] sm:$0xff]  ;;  %v4674_v52 = vld [vmem:[%s8705_s4 + $0x1a8] sm:$0xff] }
 0x243   : > { %vm2466_vm9 = vcmp.ge.f32.partialorder %v7059_v59, 0.0  ;;  %v2476_v2 = vmul.f32 0.1, %v7059_v59  ;;  %v4675_v56 = vld [vmem:[%s8705_s4 + $0x1b0] sm:$0xff] }
 0x244   : > { %vm2465_vm10 = vcmp.ge.f32.partialorder %v7060_v61, 0.0  ;;  %v2475_v6 = vmul.f32 0.1, %v7060_v61  ;;  %v5863_v8 = vpop.f32.mrb[4].mxu0 }
 0x245   : > { %v8086_v10 = vsel %vm2466_vm9, %v7059_v59, %v2476_v2  ;;  %v7061_v11 = vadd.f32 %v5863_v8, %v547_v60  ;;  %v2404_v44 = vpop.f32.mrb[5].mxu0  ;;  %v4651_v59 = vld [vmem:[%s8705_s4 + $0xf0] sm:$0xff] }
 0x246   : > { %2579 = vst [vmem:[#allocation3 + $0x18] sm:$0xff] %v8086_v10  ;;  %v8089_v47 = vsel %vm2465_vm10, %v7060_v61, %v2475_v6  ;;  %v7062_v14 = vadd.f32 %v2404_v44, %v546_v63  ;;  %v6766_v60 = vpack.c.bf16 %v4652_v42, %v4651_v59  ;;  %v4653_v61 = vld [vmem:[%s8705_s4 + $0x100] sm:$0xff]  ;;  %v4654_v63 = vld [vmem:[%s8705_s4 + $0x108] sm:$0xff]  ;;  %v4655_v2 = vld [vmem:[%s8705_s4 + $0x110] sm:$0xff] }
 0x247   : > { %2578 = vst [vmem:[#allocation3 + $0x10] sm:$0xff] %v8089_v47  ;;  %vm2468_vm11 = vcmp.ge.f32.partialorder %v7061_v11, 0.0  ;;  %v2478_v50 = vmul.f32 0.1, %v7061_v11  ;;  %v6770_v0 = vpack.c.bf16 %v4654_v63, %v4653_v61  ;;  %v6774_v6 = vpack.c.bf16 %v4656_v4, %v4655_v2  ;;  %v4658_v44 = vld [vmem:[%s8705_s4 + $0x128] sm:$0xff]  ;;  %v4677_v61 = vld [vmem:[%s8705_s4 + $0x1c0] sm:$0xff] }
 0x248   : > { %vm2467_vm12 = vcmp.ge.f32.partialorder %v7062_v14, 0.0  ;;  %v2477_v53 = vmul.f32 0.1, %v7062_v14  ;;  %v5866_v17 = vpop.f32.mrb[6].mxu0  ;;  %v4678_v63 = vld [vmem:[%s8705_s4 + $0x1c8] sm:$0xff] }
 0x249   : > { %v8092_v18 = vsel %vm2468_vm11, %v7061_v11, %v2478_v50  ;;  %v7063_v19 = vadd.f32 %v5866_v17, %v549_v13  ;;  %v2414_v21 = vpop.f32.mrb[7].mxu0  ;;  %v2617_v24 = vld [vmem:[#allocation3 + $0x3] sm:$0xff]  ;;  %v4657_v11 = vld [vmem:[%s8705_s4 + $0x120] sm:$0xff]  ;;  %v6818_v2 = vpack.c.bf16 %v4678_v63, %v4677_v61 }
 0x24a   : > { %2581 = vst [vmem:[#allocation3 + $0x28] sm:$0xff] %v8092_v18  ;;  %v8095_v25 = vsel %vm2467_vm12, %v7062_v14, %v2477_v53  ;;  %v7064_v27 = vadd.f32 %v2414_v21, %v548_v15  ;;  %5902 = vmatprep.mubr.f32.mxu1 %v2617_v24  ;;  %v2770_v54 = vld [vmem:[#allocation3 + $0x4] sm:$0xff]  ;;  %v6778_v14 = vpack.c.bf16 %v4658_v44, %v4657_v11  ;;  %v4661_v21 = vld [vmem:[%s8705_s4 + $0x140] sm:$0xff]  ;;  %v4662_v24 = vld [vmem:[%s8705_s4 + $0x148] sm:$0xff] }
 0x24b   : > { %2580 = vst [vmem:[#allocation3 + $0x20] sm:$0xff] %v8095_v25  ;;  %vm2470_vm13 = vcmp.ge.f32.partialorder %v7063_v19, 0.0  ;;  %v2480_v34 = vmul.f32 0.1, %v7063_v19  ;;  %v4659_v50 = vld [vmem:[%s8705_s4 + $0x130] sm:$0xff]  ;;  %v4680_v11 = vld [vmem:[%s8705_s4 + $0x1d8] sm:$0xff] }
 0x24c   : > { %vm2469_vm14 = vcmp.ge.f32.partialorder %v7064_v27, 0.0  ;;  %v2479_v37 = vmul.f32 0.1, %v7064_v27  ;;  %v5869_v1 = vpop.f32.mrb[8].mxu0  ;;  %v6782_v17 = vpack.c.bf16 %v4660_v16, %v4659_v50  ;;  %v3078_v44 = vld [vmem:[#allocation3 + $0x6] sm:$0xff]  ;;  %v4681_v50 = vld [vmem:[%s8705_s4 + $0x1e0] sm:$0xff] }
 0x24d   : > { %v8104_v38 = vsel %vm2470_vm13, %v7063_v19, %v2480_v34  ;;  %v2424_v22 = vpop.f32.mrb[9].mxu0  ;;  %v4664_v34 = vld [vmem:[%s8705_s4 + $0x158] sm:$0xff]  ;;  %v4682_v16 = vld [vmem:[%s8705_s4 + $0x1e8] sm:$0xff]  ;;  %v4695_v61 = vld [vmem:[%s8705_s4 + $0x250] sm:$0xff] }
 0x24e   : > { %2583 = vst [vmem:[#allocation3 + $0x38] sm:$0xff] %v8104_v38  ;;  %v8110_v33 = vsel %vm2469_vm14, %v7064_v27, %v2479_v37  ;;  %v7065_v40 = vadd.f32 %v2424_v22, %v550_v31  ;;  %v8112_v41 = vld [vmem:[#allocation3 + $0xb] sm:$0xff]  ;;  %v8114_v43 = vld [vmem:[#allocation3 + $0x13] sm:$0xff]  ;;  %v6786_v31 = vpack.c.bf16 %v4662_v24, %v4661_v21  ;;  %v6790_v1 = vpack.c.bf16 %v4664_v34, %v4663_v20  ;;  %v4683_v21 = vld [vmem:[%s8705_s4 + $0x1f0] sm:$0xff] }
 0x24f   : > { %2582 = vst [vmem:[#allocation3 + $0x30] sm:$0xff] %v8110_v33  ;;  %5903 = vmatmul.mubr.f32.vlgmr.msra.gmra.mrb[0].mxu1 %v8112_v41  ;;  %v8183_v8 = vld [vmem:[#allocation3 + $0xc] sm:$0xff]  ;;  %v8192_v13 = vld [vmem:[#allocation3 + $0x14] sm:$0xff] }
 0x250   : > { %vm2471_vm15 = vcmp.ge.f32.partialorder %v7065_v40, 0.0  ;;  %v2481_v28 = vmul.f32 0.1, %v7065_v40  ;;  %6741 = vmatpush3.bf16.msra.mxu1 %v8077_v36  ;;  %5905 = vmatprep.mubr.f32.mxu1 %v8114_v43  ;;  %v6750_v36 = vpack.c.bf16 %v4644_v7, %v4643_v29  ;;  %v2924_v37 = vld [vmem:[#allocation3 + $0x5] sm:$0xff]  ;;  %v4665_v22 = vld [vmem:[%s8705_s4 + $0x160] sm:$0xff]  ;;  %v4670_v29 = vld [vmem:[%s8705_s4 + $0x188] sm:$0xff] }
 0x251   : > { %6743 = vmatprep.subr.bf16.mxu1 %v6742_v26  ;;  %v4684_v24 = vld [vmem:[%s8705_s4 + $0x1f8] sm:$0xff]  ;;  %v4685_v20 = vld [vmem:[%s8705_s4 + $0x200] sm:$0xff]  ;;  %v4686_v34 = vld [vmem:[%s8705_s4 + $0x208] sm:$0xff] }
 0x252   : > { %v8126_v35 = vsel %vm2471_vm15, %v7065_v40, %v2481_v28  ;;  %v8128_v46 = vld [vmem:[#allocation3 + $0x1b] sm:$0xff]  ;;  %v8130_v3 = vld [vmem:[#allocation3 + $0x23] sm:$0xff] }
 0x253   : > { %2584 = vst [vmem:[#allocation3 + $0x40] sm:$0xff] %v8126_v35  ;;  %5906 = vmatmul.mubr.f32.gmra.mrb[2].mxu1 %v8128_v46  ;;  %v8195_v15 = vld [vmem:[#allocation3 + $0x1c] sm:$0xff]  ;;  %v8204_v53 = vld [vmem:[#allocation3 + $0x24] sm:$0xff] }
 0x254   : > { %6745 = vmatpush3.bf16.msra.mxu1 %v6742_v26  ;;  %5908 = vmatprep.mubr.f32.mxu1 %v8130_v3  ;;  %v4666_v26 = vld [vmem:[%s8705_s4 + $0x168] sm:$0xff]  ;;  %v4667_v40 = vld [vmem:[%s8705_s4 + $0x170] sm:$0xff]  ;;  %v4696_v63 = vld [vmem:[%s8705_s4 + $0x258] sm:$0xff] }
 0x255   : > { %6747 = vmatprep.subr.bf16.mxu1 %v6746_v45  ;;  %v6794_v30 = vpack.c.bf16 %v4666_v26, %v4665_v22  ;;  %v6798_v28 = vpack.c.bf16 %v4668_v23, %v4667_v40  ;;  %v8264_v5 = vld [vmem:[#allocation3 + $0x1d] sm:$0xff]  ;;  %v8273_v59 = vld [vmem:[#allocation3 + $0x25] sm:$0xff]  ;;  %v4689_v40 = vld [vmem:[%s8705_s4 + $0x220] sm:$0xff] }
 0x256   : > { %v8141_v39 = vld [vmem:[#allocation3 + $0x2b] sm:$0xff]  ;;  %v8143_v9 = vld [vmem:[#allocation3 + $0x33] sm:$0xff] }
 0x257   : > { %5909 = vmatmul.mubr.f32.gmra.mrb[4].mxu1 %v8141_v39  ;;  %v8207_v19 = vld [vmem:[#allocation3 + $0x2c] sm:$0xff]  ;;  %v8216_v27 = vld [vmem:[#allocation3 + $0x34] sm:$0xff] }
 0x258   : > { %6749 = vmatpush3.bf16.msra.mxu1 %v6746_v45  ;;  %5911 = vmatprep.mubr.f32.mxu1 %v8143_v9  ;;  %v4669_v45 = vld [vmem:[%s8705_s4 + $0x180] sm:$0xff]  ;;  %v4688_v22 = vld [vmem:[%s8705_s4 + $0x218] sm:$0xff]  ;;  %v4690_v23 = vld [vmem:[%s8705_s4 + $0x228] sm:$0xff] }
 0x259   : > { %6751 = vmatprep.subr.bf16.mxu1 %v6750_v36  ;;  %v6802_v7 = vpack.c.bf16 %v4670_v29, %v4669_v45  ;;  %v6842_v45 = vpack.c.bf16 %v4690_v23, %v4689_v40  ;;  %v3081_v29 = vld [vmem:[#allocation3 + $0x1e] sm:$0xff] }
 0x25a   : > { %v8150_v48 = vld [vmem:[#allocation3 + $0x3b] sm:$0xff] }
 0x25b   : > { %5912 = vmatmul.mubr.f32.gmra.mrb[6].mxu1 %v8150_v48  ;;  %v8219_v32 = vld [vmem:[#allocation3 + $0x3c] sm:$0xff] }
 0x25c   : > { %6753 = vmatpush3.bf16.msra.mxu1 %v6750_v36  ;;  %5946 = vmatprep.mubr.f32.mxu1 %v2770_v54  ;;  %v4671_v36 = vld [vmem:[%s8705_s4 + $0x190] sm:$0xff]  ;;  %v8261_v54 = vld [vmem:[#allocation3 + $0x15] sm:$0xff] }
 0x25d   : > { %6755 = vmatprep.subr.bf16.mxu1 %v6754_v12  ;;  %v6806_v51 = vpack.c.bf16 %v4672_v49, %v4671_v36  ;;  %v8288_v4 = vld [vmem:[#allocation3 + $0x3d] sm:$0xff]  ;;  %v4692_v36 = vld [vmem:[%s8705_s4 + $0x238] sm:$0xff] }
 0x25e   : > { %v3082_v49 = vld [vmem:[#allocation3 + $0x26] sm:$0xff] }
 0x25f   : > { %v3235_v23 = vld [vmem:[#allocation3 + $0x1f] sm:$0xff] }
 0x260   : > { %6757 = vmatpush3.bf16.msra.mxu1 %v6754_v12  ;;  %v8252_v12 = vld [vmem:[#allocation3 + $0xd] sm:$0xff] }
 0x261   : > { %6759 = vmatprep.subr.bf16.mxu1 %v6758_v55 }
 0x264   : > { %6761 = vmatpush3.bf16.msra.mxu1 %v6758_v55  ;;  %v6810_v55 = vpack.c.bf16 %v4674_v52, %v4673_v62  ;;  %v3083_v62 = vld [vmem:[#allocation3 + $0x2e] sm:$0xff] }
 0x265   : > { %6763 = vmatprep.subr.bf16.mxu1 %v6762_v57  ;;  %v4693_v52 = vld [vmem:[%s8705_s4 + $0x240] sm:$0xff] }
 0x268   : > { %6765 = vmatpush3.bf16.msra.mxu1 %v6762_v57  ;;  %v4676_v57 = vld [vmem:[%s8705_s4 + $0x1b8] sm:$0xff] }
 0x269   : > { %6767 = vmatprep.subr.bf16.mxu1 %v6766_v60  ;;  %v6814_v42 = vpack.c.bf16 %v4676_v57, %v4675_v56  ;;  %v3084_v56 = vld [vmem:[#allocation3 + $0x36] sm:$0xff] }
 0x26c   : > { %6769 = vmatpush3.bf16.msra.mxu1 %v6766_v60  ;;  %v8276_v60 = vld [vmem:[#allocation3 + $0x2d] sm:$0xff] }
 0x26d   : > { %6771 = vmatprep.subr.bf16.mxu1 %v6770_v0 }
 0x26f   : > { %5947 = vmatmul.mubr.f32.vlgmr.msra.gmra.mrb[0].mxu1 %v8183_v8 }
 0x270   : > { %5949 = vmatprep.mubr.f32.mxu1 %v8192_v13  ;;  %6773 = vmatpush3.bf16.msra.mxu1 %v6770_v0  ;;  %v8285_v0 = vld [vmem:[#allocation3 + $0x35] sm:$0xff] }
 0x271   : > { %6775 = vmatprep.subr.bf16.mxu1 %v6774_v6 }
 0x273   : > { %5950 = vmatmul.mubr.f32.gmra.mrb[2].mxu1 %v8195_v15 }
 0x274   : > { %5952 = vmatprep.mubr.f32.mxu1 %v8204_v53  ;;  %6777 = vmatpush3.bf16.msra.mxu1 %v6774_v6  ;;  %v4679_v6 = vld [vmem:[%s8705_s4 + $0x1d0] sm:$0xff] }
 0x275   : > { %6779 = vmatprep.subr.bf16.mxu1 %v6778_v14 }
 0x277   : > { %5953 = vmatmul.mubr.f32.gmra.mrb[4].mxu1 %v8207_v19 }
 0x278   : > { %5955 = vmatprep.mubr.f32.mxu1 %v8216_v27  ;;  %6781 = vmatpush3.bf16.msra.mxu1 %v6778_v14  ;;  %v6822_v14 = vpack.c.bf16 %v4680_v11, %v4679_v6  ;;  %v6854_v6 = vpack.c.bf16 %v4696_v63, %v4695_v61  ;;  %v4697_v11 = vld [vmem:[%s8705_s4 + $0x260] sm:$0xff]  ;;  %v4714_v63 = vld [vmem:[%s8705_s4 + $0x2e8] sm:$0xff] }
 0x279   : > { %6783 = vmatprep.subr.bf16.mxu1 %v6782_v17  ;;  %v4713_v61 = vld [vmem:[%s8705_s4 + $0x2e0] sm:$0xff] }
 0x27b   : > { %5956 = vmatmul.mubr.f32.gmra.mrb[6].mxu1 %v8219_v32 }
 0x27c   : > { %6785 = vmatpush3.bf16.msra.mxu1 %v6782_v17  ;;  %5990 = vmatprep.mubr.f32.mxu1 %v2924_v37  ;;  %v6826_v17 = vpack.c.bf16 %v4682_v16, %v4681_v50  ;;  %v6834_v37 = vpack.c.bf16 %v4686_v34, %v4685_v20  ;;  %v4699_v50 = vld [vmem:[%s8705_s4 + $0x270] sm:$0xff]  ;;  %v4700_v16 = vld [vmem:[%s8705_s4 + $0x278] sm:$0xff] }
 0x27d   : > { %6787 = vmatprep.subr.bf16.mxu1 %v6786_v31  ;;  %v4703_v20 = vld [vmem:[%s8705_s4 + $0x290] sm:$0xff]  ;;  %v4704_v34 = vld [vmem:[%s8705_s4 + $0x298] sm:$0xff] }
 0x280   : > { %6789 = vmatpush3.bf16.msra.mxu1 %v6786_v31  ;;  %v6830_v31 = vpack.c.bf16 %v4684_v24, %v4683_v21  ;;  %v4701_v21 = vld [vmem:[%s8705_s4 + $0x280] sm:$0xff]  ;;  %v4702_v24 = vld [vmem:[%s8705_s4 + $0x288] sm:$0xff] }
 0x281   : > { %6791 = vmatprep.subr.bf16.mxu1 %v6790_v1 }
 0x284   : > { %6793 = vmatpush3.bf16.msra.mxu1 %v6790_v1  ;;  %v4687_v1 = vld [vmem:[%s8705_s4 + $0x210] sm:$0xff] }
 0x285   : > { %6795 = vmatprep.subr.bf16.mxu1 %v6794_v30  ;;  %v6838_v26 = vpack.c.bf16 %v4688_v22, %v4687_v1  ;;  %v3233_v1 = vld [vmem:[#allocation3 + $0xf] sm:$0xff] }
 0x286   : > { %v4705_v22 = vld [vmem:[%s8705_s4 + $0x2a0] sm:$0xff] }
 0x288   : > { %6797 = vmatpush3.bf16.msra.mxu1 %v6794_v30  ;;  %v3079_v30 = vld [vmem:[#allocation3 + $0xe] sm:$0xff] }
 0x289   : > { %6799 = vmatprep.subr.bf16.mxu1 %v6798_v28 }
 0x28c   : > { %6801 = vmatpush3.bf16.msra.mxu1 %v6798_v28  ;;  %v3080_v28 = vld [vmem:[#allocation3 + $0x16] sm:$0xff] }
 0x28d   : > { %6803 = vmatprep.subr.bf16.mxu1 %v6802_v7 }
 0x28f   : > { %5991 = vmatmul.mubr.f32.vlgmr.msra.gmra.mrb[0].mxu1 %v8252_v12 }
 0x290   : > { %5993 = vmatprep.mubr.f32.mxu1 %v8261_v54  ;;  %6805 = vmatpush3.bf16.msra.mxu1 %v6802_v7  ;;  %v4691_v7 = vld [vmem:[%s8705_s4 + $0x230] sm:$0xff] }
 0x291   : > { %6807 = vmatprep.subr.bf16.mxu1 %v6806_v51 }
 0x293   : > { %5994 = vmatmul.mubr.f32.gmra.mrb[2].mxu1 %v8264_v5 }
 0x294   : > { %5996 = vmatprep.mubr.f32.mxu1 %v8273_v59  ;;  %6809 = vmatpush3.bf16.msra.mxu1 %v6806_v51  ;;  %v6846_v51 = vpack.c.bf16 %v4692_v36, %v4691_v7  ;;  %v3237_v36 = vld [vmem:[#allocation3 + $0x2f] sm:$0xff] }
 0x295   : > { %6811 = vmatprep.subr.bf16.mxu1 %v6810_v55 }
 0x297   : > { %5997 = vmatmul.mubr.f32.gmra.mrb[4].mxu1 %v8276_v60 }
 0x298   : > { %5999 = vmatprep.mubr.f32.mxu1 %v8285_v0  ;;  %6813 = vmatpush3.bf16.msra.mxu1 %v6810_v55  ;;  %v4694_v55 = vld [vmem:[%s8705_s4 + $0x248] sm:$0xff] }
 0x299   : > { %6815 = vmatprep.subr.bf16.mxu1 %v6814_v42  ;;  %v6850_v57 = vpack.c.bf16 %v4694_v55, %v4693_v52  ;;  %v3239_v55 = vld [vmem:[#allocation3 + $0x3f] sm:$0xff] }
 0x29b   : > { %6000 = vmatmul.mubr.f32.gmra.mrb[6].mxu1 %v8288_v4 }
 0x29c   : > { %6817 = vmatpush3.bf16.msra.mxu1 %v6814_v42  ;;  %6034 = vmatprep.mubr.f32.mxu1 %v3078_v44  ;;  %v3085_v42 = vld [vmem:[#allocation3 + $0x3e] sm:$0xff] }
 0x29d   : > { %6819 = vmatprep.subr.bf16.mxu1 %v6818_v2  ;;  %v4698_v44 = vld [vmem:[%s8705_s4 + $0x268] sm:$0xff] }
 0x2a0   : > { %6821 = vmatpush3.bf16.msra.mxu1 %v6818_v2  ;;  %v3232_v2 = vld [vmem:[#allocation3 + $0x7] sm:$0xff] }
 0x2a1   : > { %6823 = vmatprep.subr.bf16.mxu1 %v6822_v14 }
 0x2a4   : > { %6825 = vmatpush3.bf16.msra.mxu1 %v6822_v14  ;;  %v6858_v14 = vpack.c.bf16 %v4698_v44, %v4697_v11  ;;  %v4717_v44 = vld [vmem:[%s8705_s4 + $0x300] sm:$0xff] }
 0x2a5   : > { %6827 = vmatprep.subr.bf16.mxu1 %v6826_v17 }
 0x2a8   : > { %6829 = vmatpush3.bf16.msra.mxu1 %v6826_v17  ;;  %v6862_v17 = vpack.c.bf16 %v4700_v16, %v4699_v50  ;;  %v4719_v16 = vld [vmem:[%s8705_s4 + $0x310] sm:$0xff] }
 0x2a9   : > { %6831 = vmatprep.subr.bf16.mxu1 %v6830_v31 }
 0x2ac   : > { %6833 = vmatpush3.bf16.msra.mxu1 %v6830_v31  ;;  %v6866_v31 = vpack.c.bf16 %v4702_v24, %v4701_v21  ;;  %v4721_v24 = vld [vmem:[%s8705_s4 + $0x320] sm:$0xff] }
 0x2ad   : > { %6835 = vmatprep.subr.bf16.mxu1 %v6834_v37 }
 0x2af   : > { %6035 = vmatmul.mubr.f32.vlgmr.msra.gmra.mrb[0].mxu1 %v3079_v30  ;;  %v3234_v30 = vld [vmem:[#allocation3 + $0x17] sm:$0xff] }
 0x2b0   : > { %6037 = vmatprep.mubr.f32.mxu1 %v3080_v28  ;;  %6837 = vmatpush3.bf16.msra.mxu1 %v6834_v37  ;;  %v6870_v37 = vpack.c.bf16 %v4704_v34, %v4703_v20  ;;  %v4707_v28 = vld [vmem:[%s8705_s4 + $0x2b0] sm:$0xff] }
 0x2b1   : > { %6839 = vmatprep.subr.bf16.mxu1 %v6838_v26  ;;  %v4723_v34 = vld [vmem:[%s8705_s4 + $0x330] sm:$0xff] }
 0x2b3   : > { %6038 = vmatmul.mubr.f32.gmra.mrb[2].mxu1 %v3081_v29  ;;  %v3236_v29 = vld [vmem:[#allocation3 + $0x27] sm:$0xff] }
 0x2b4   : > { %6040 = vmatprep.mubr.f32.mxu1 %v3082_v49  ;;  %6841 = vmatpush3.bf16.msra.mxu1 %v6838_v26  ;;  %v4706_v26 = vld [vmem:[%s8705_s4 + $0x2a8] sm:$0xff]  ;;  %v4709_v49 = vld [vmem:[%s8705_s4 + $0x2c0] sm:$0xff] }
 0x2b5   : > { %6843 = vmatprep.subr.bf16.mxu1 %v6842_v45  ;;  %v6874_v40 = vpack.c.bf16 %v4706_v26, %v4705_v22  ;;  %v4728_v22 = vld [vmem:[%s8705_s4 + $0x358] sm:$0xff] }
 0x2b6   : > { %v3540_v26 = vld [vmem:[#allocation3 + $0x9] sm:$0xff] }
 0x2b7   : > { %6041 = vmatmul.mubr.f32.gmra.mrb[4].mxu1 %v3083_v62  ;;  %v3238_v62 = vld [vmem:[#allocation3 + $0x37] sm:$0xff] }
 0x2b8   : > { %6043 = vmatprep.mubr.f32.mxu1 %v3084_v56  ;;  %6845 = vmatpush3.bf16.msra.mxu1 %v6842_v45  ;;  %v4708_v45 = vld [vmem:[%s8705_s4 + $0x2b8] sm:$0xff]  ;;  %v4711_v56 = vld [vmem:[%s8705_s4 + $0x2d0] sm:$0xff] }
 0x2b9   : > { %6847 = vmatprep.subr.bf16.mxu1 %v6846_v51  ;;  %v6878_v7 = vpack.c.bf16 %v4708_v45, %v4707_v28  ;;  %v4733_v45 = vld [vmem:[%s8705_s4 + $0x380] sm:$0xff] }
 0x2bb   : > { %6044 = vmatmul.mubr.f32.gmra.mrb[6].mxu1 %v3085_v42 }
 0x2bc   : > { %6849 = vmatpush3.bf16.msra.mxu1 %v6846_v51  ;;  %6078 = vmatprep.mubr.f32.mxu1 %v3232_v2  ;;  %v4710_v51 = vld [vmem:[%s8705_s4 + $0x2c8] sm:$0xff]  ;;  %v6890_v2 = vpack.c.bf16 %v4714_v63, %v4713_v61  ;;  %v4739_v61 = vld [vmem:[%s8705_s4 + $0x3b0] sm:$0xff]  ;;  %v4740_v63 = vld [vmem:[%s8705_s4 + $0x3b8] sm:$0xff] }
 0x2bd   : > { %6851 = vmatprep.subr.bf16.mxu1 %v6850_v57  ;;  %v6882_v52 = vpack.c.bf16 %v4710_v51, %v4709_v49  ;;  %v4736_v49 = vld [vmem:[%s8705_s4 + $0x398] sm:$0xff] }
 0x2c0   : > { %6853 = vmatpush3.bf16.msra.mxu1 %v6850_v57  ;;  %v4712_v57 = vld [vmem:[%s8705_s4 + $0x2d8] sm:$0xff] }
 0x2c1   : > { %6855 = vmatprep.subr.bf16.mxu1 %v6854_v6  ;;  %v6886_v42 = vpack.c.bf16 %v4712_v57, %v4711_v56  ;;  %v3542_v56 = vld [vmem:[#allocation3 + $0x19] sm:$0xff] }
 0x2c4   : > { %6857 = vmatpush3.bf16.msra.mxu1 %v6854_v6  ;;  %v4715_v6 = vld [vmem:[%s8705_s4 + $0x2f0] sm:$0xff] }
 0x2c5   : > { %6859 = vmatprep.subr.bf16.mxu1 %v6858_v14 }
 0x2c8   : > { %6861 = vmatpush3.bf16.msra.mxu1 %v6858_v14  ;;  %v4718_v14 = vld [vmem:[%s8705_s4 + $0x308] sm:$0xff] }
 0x2c9   : > { %6863 = vmatprep.subr.bf16.mxu1 %v6862_v17  ;;  %v6898_v50 = vpack.c.bf16 %v4718_v14, %v4717_v44  ;;  %v4742_v44 = vld [vmem:[%s8705_s4 + $0x3c8] sm:$0xff] }
 0x2ca   : > { %v3546_v14 = vld [vmem:[#allocation3 + $0x39] sm:$0xff] }
 0x2cc   : > { %6865 = vmatpush3.bf16.msra.mxu1 %v6862_v17  ;;  %v4720_v17 = vld [vmem:[%s8705_s4 + $0x318] sm:$0xff] }
 0x2cd   : > { %6867 = vmatprep.subr.bf16.mxu1 %v6866_v31  ;;  %v6902_v21 = vpack.c.bf16 %v4720_v17, %v4719_v16  ;;  %v3547_v16 = vld [vmem:[#allocation3 + $0x41] sm:$0xff] }
 0x2ce   : > { %v4743_v17 = vld [vmem:[%s8705_s4 + $0x3d0] sm:$0xff] }
 0x2cf   : > { %6079 = vmatmul.mubr.f32.vlgmr.msra.gmra.mrb[0].mxu1 %v3233_v1  ;;  %v4726_v1 = vld [vmem:[%s8705_s4 + $0x348] sm:$0xff] }
 0x2d0   : > { %6081 = vmatprep.mubr.f32.mxu1 %v3234_v30  ;;  %6869 = vmatpush3.bf16.msra.mxu1 %v6866_v31  ;;  %v4722_v31 = vld [vmem:[%s8705_s4 + $0x328] sm:$0xff] }
 0x2d1   : > { %6871 = vmatprep.subr.bf16.mxu1 %v6870_v37  ;;  %v6906_v20 = vpack.c.bf16 %v4722_v31, %v4721_v24  ;;  %v4730_v30 = vld [vmem:[%s8705_s4 + $0x368] sm:$0xff]  ;;  %v3694_v24 = vld [vmem:[#allocation3 + $0xa] sm:$0xff] }
 0x2d3   : > { %6082 = vmatmul.mubr.f32.gmra.mrb[2].mxu1 %v3235_v23  ;;  %v4732_v23 = vld [vmem:[%s8705_s4 + $0x378] sm:$0xff] }
 0x2d4   : > { %6084 = vmatprep.mubr.f32.mxu1 %v3236_v29  ;;  %6873 = vmatpush3.bf16.msra.mxu1 %v6870_v37  ;;  %v4724_v37 = vld [vmem:[%s8705_s4 + $0x338] sm:$0xff]  ;;  %v4734_v29 = vld [vmem:[%s8705_s4 + $0x388] sm:$0xff] }
 0x2d5   : > { %6875 = vmatprep.subr.bf16.mxu1 %v6874_v40 }
 0x2d7   : > { %6085 = vmatmul.mubr.f32.gmra.mrb[4].mxu1 %v3237_v36  ;;  %v4735_v36 = vld [vmem:[%s8705_s4 + $0x390] sm:$0xff] }
 0x2d8   : > { %6087 = vmatprep.mubr.f32.mxu1 %v3238_v62  ;;  %6877 = vmatpush3.bf16.msra.mxu1 %v6874_v40  ;;  %v6934_v51 = vpack.c.bf16 %v4736_v49, %v4735_v36  ;;  %v3541_v62 = vld [vmem:[#allocation3 + $0x11] sm:$0xff] }
 0x2d9   : > { %6879 = vmatprep.subr.bf16.mxu1 %v6878_v7  ;;  %v3698_v36 = vld [vmem:[#allocation3 + $0x2a] sm:$0xff] }
 0x2db   : > { %6088 = vmatmul.mubr.f32.gmra.mrb[6].mxu1 %v3239_v55  ;;  %v4738_v55 = vld [vmem:[%s8705_s4 + $0x3a8] sm:$0xff] }
 0x2dc   : > { %6881 = vmatpush3.bf16.msra.mxu1 %v6878_v7  ;;  %6122 = vmatprep.mubr.f32.mxu1 %v8083_v58  ;;  %v4716_v58 = vld [vmem:[%s8705_s4 + $0x2f8] sm:$0xff]  ;;  %v6930_v7 = vpack.c.bf16 %v4734_v29, %v4733_v45  ;;  %v4755_v29 = vld [vmem:[%s8705_s4 + $0x430] sm:$0xff] }
 0x2dd   : > { %6883 = vmatprep.subr.bf16.mxu1 %v6882_v52  ;;  %v6894_v11 = vpack.c.bf16 %v4716_v58, %v4715_v6  ;;  %v6942_v6 = vpack.c.bf16 %v4740_v63, %v4739_v61  ;;  %v3545_v58 = vld [vmem:[#allocation3 + $0x31] sm:$0xff]  ;;  %v3697_v45 = vld [vmem:[#allocation3 + $0x22] sm:$0xff] }
 0x2de   : > { %v4760_v61 = vld [vmem:[%s8705_s4 + $0x458] sm:$0xff] }
 0x2e0   : > { %6885 = vmatpush3.bf16.msra.mxu1 %v6882_v52  ;;  %v4737_v52 = vld [vmem:[%s8705_s4 + $0x3a0] sm:$0xff] }
 0x2e1   : > { %6887 = vmatprep.subr.bf16.mxu1 %v6886_v42  ;;  %v6938_v57 = vpack.c.bf16 %v4738_v55, %v4737_v52  ;;  %v4758_v52 = vld [vmem:[%s8705_s4 + $0x448] sm:$0xff] }
 0x2e2   : > { %v3700_v55 = vld [vmem:[#allocation3 + $0x3a] sm:$0xff] }
 0x2e4   : > { %6889 = vmatpush3.bf16.msra.mxu1 %v6886_v42  ;;  %v3543_v42 = vld [vmem:[#allocation3 + $0x21] sm:$0xff] }
 0x2e5   : > { %6891 = vmatprep.subr.bf16.mxu1 %v6890_v2 }
 0x2e8   : > { %6893 = vmatpush3.bf16.msra.mxu1 %v6890_v2  ;;  %v3544_v2 = vld [vmem:[#allocation3 + $0x29] sm:$0xff] }
 0x2e9   : > { %6895 = vmatprep.subr.bf16.mxu1 %v6894_v11 }
 0x2ec   : > { %6897 = vmatpush3.bf16.msra.mxu1 %v6894_v11  ;;  %v4741_v11 = vld [vmem:[%s8705_s4 + $0x3c0] sm:$0xff] }
 0x2ed   : > { %6899 = vmatprep.subr.bf16.mxu1 %v6898_v50 }
 0x2ef   : > { %6123 = vmatmul.mubr.f32.vlgmr.msra.gmra.mrb[0].mxu1 %v8089_v47  ;;  %v6910_v47 = vpack.c.bf16 %v4724_v37, %v4723_v34  ;;  %v4746_v34 = vld [vmem:[%s8705_s4 + $0x3e8] sm:$0xff] }
 0x2f0   : > { %6125 = vmatprep.mubr.f32.mxu1 %v8086_v10  ;;  %6901 = vmatpush3.bf16.msra.mxu1 %v6898_v50  ;;  %v4725_v10 = vld [vmem:[%s8705_s4 + $0x340] sm:$0xff]  ;;  %v6946_v50 = vpack.c.bf16 %v4742_v44, %v4741_v11  ;;  %v4763_v11 = vld [vmem:[%s8705_s4 + $0x470] sm:$0xff] }
 0x2f1   : > { %6903 = vmatprep.subr.bf16.mxu1 %v6902_v21 }
 0x2f3   : > { %6126 = vmatmul.mubr.f32.gmra.mrb[2].mxu1 %v8095_v25  ;;  %v6914_v25 = vpack.c.bf16 %v4726_v1, %v4725_v10  ;;  %v4748_v10 = vld [vmem:[%s8705_s4 + $0x3f8] sm:$0xff] }
 0x2f4   : > { %6128 = vmatprep.mubr.f32.mxu1 %v8092_v18  ;;  %6905 = vmatpush3.bf16.msra.mxu1 %v6902_v21  ;;  %v4727_v18 = vld [vmem:[%s8705_s4 + $0x350] sm:$0xff]  ;;  %v4744_v21 = vld [vmem:[%s8705_s4 + $0x3d8] sm:$0xff] }
 0x2f5   : > { %6907 = vmatprep.subr.bf16.mxu1 %v6906_v20  ;;  %v6950_v31 = vpack.c.bf16 %v4744_v21, %v4743_v17  ;;  %v4767_v17 = vld [vmem:[%s8705_s4 + $0x490] sm:$0xff]  ;;  %v4768_v21 = vld [vmem:[%s8705_s4 + $0x498] sm:$0xff] }
 0x2f7   : > { %6129 = vmatmul.mubr.f32.gmra.mrb[4].mxu1 %v8110_v33  ;;  %v6918_v33 = vpack.c.bf16 %v4728_v22, %v4727_v18  ;;  %v4750_v18 = vld [vmem:[%s8705_s4 + $0x408] sm:$0xff] }
 0x2f8   : > { %6131 = vmatprep.mubr.f32.mxu1 %v8104_v38  ;;  %6909 = vmatpush3.bf16.msra.mxu1 %v6906_v20  ;;  %v4729_v38 = vld [vmem:[%s8705_s4 + $0x360] sm:$0xff] }
 0x2f9   : > { %6911 = vmatprep.subr.bf16.mxu1 %v6910_v47  ;;  %v6922_v40 = vpack.c.bf16 %v4730_v30, %v4729_v38  ;;  %v4745_v20 = vld [vmem:[%s8705_s4 + $0x3e0] sm:$0xff] }
 0x2fa   : > { %v6954_v37 = vpack.c.bf16 %v4746_v34, %v4745_v20  ;;  %v3695_v30 = vld [vmem:[#allocation3 + $0x12] sm:$0xff] }
 0x2fb   : > { %6132 = vmatmul.mubr.f32.gmra.mrb[6].mxu1 %v8126_v35  ;;  %v4731_v35 = vld [vmem:[%s8705_s4 + $0x370] sm:$0xff]  ;;  %v4770_v20 = vld [vmem:[%s8705_s4 + $0x4a8] sm:$0xff] }
 0x2fc   : > { %6913 = vmatpush3.bf16.msra.mxu1 %v6910_v47  ;;  %6166 = vmatprep.mubr.f32.mxu1 %v3540_v26  ;;  %v6926_v28 = vpack.c.bf16 %v4732_v23, %v4731_v35  ;;  %v4747_v47 = vld [vmem:[%s8705_s4 + $0x3f0] sm:$0xff]  ;;  %v4754_v35 = vld [vmem:[%s8705_s4 + $0x428] sm:$0xff] }
 0x2fd   : > { %6915 = vmatprep.subr.bf16.mxu1 %v6914_v25  ;;  %v6958_v1 = vpack.c.bf16 %v4748_v10, %v4747_v47  ;;  %v4751_v26 = vld [vmem:[%s8705_s4 + $0x410] sm:$0xff]  ;;  %v4772_v47 = vld [vmem:[%s8705_s4 + $0x4b8] sm:$0xff]  ;;  %v4774_v10 = vld [vmem:[%s8705_s4 + $0x4c8] sm:$0xff] }
 0x2fe   : > { %v3696_v23 = vld [vmem:[#allocation3 + $0x1a] sm:$0xff] }
 0x300   : > { %6917 = vmatpush3.bf16.msra.mxu1 %v6914_v25  ;;  %v4749_v25 = vld [vmem:[%s8705_s4 + $0x400] sm:$0xff] }
 0x301   : > { %6919 = vmatprep.subr.bf16.mxu1 %v6918_v33  ;;  %v6962_v22 = vpack.c.bf16 %v4750_v18, %v4749_v25  ;;  %v4776_v25 = vld [vmem:[%s8705_s4 + $0x4d8] sm:$0xff]  ;;  %v4778_v18 = vld [vmem:[%s8705_s4 + $0x4e8] sm:$0xff] }
 0x304   : > { %6921 = vmatpush3.bf16.msra.mxu1 %v6918_v33  ;;  %v4752_v33 = vld [vmem:[%s8705_s4 + $0x418] sm:$0xff] }
 0x305   : > { %6923 = vmatprep.subr.bf16.mxu1 %v6922_v40  ;;  %v6966_v38 = vpack.c.bf16 %v4752_v33, %v4751_v26  ;;  %v4779_v26 = vld [vmem:[%s8705_s4 + $0x4f0] sm:$0xff] }
 0x308   : > { %6925 = vmatpush3.bf16.msra.mxu1 %v6922_v40  ;;  %v4753_v40 = vld [vmem:[%s8705_s4 + $0x420] sm:$0xff] }
 0x309   : > { %6927 = vmatprep.subr.bf16.mxu1 %v6926_v28 }
 0x30c   : > { %6929 = vmatpush3.bf16.msra.mxu1 %v6926_v28  ;;  %v6970_v28 = vpack.c.bf16 %v4754_v35, %v4753_v40  ;;  %v4783_v35 = vld [vmem:[%s8705_s4 + $0x510] sm:$0xff] }
 0x30d   : > { %6931 = vmatprep.subr.bf16.mxu1 %v6930_v7 }
 0x30f   : > { %6167 = vmatmul.mubr.f32.vlgmr.msra.gmra.mrb[0].mxu1 %v3541_v62  ;;  %v4757_v62 = vld [vmem:[%s8705_s4 + $0x440] sm:$0xff] }
 0x310   : > { %6169 = vmatprep.mubr.f32.mxu1 %v3542_v56  ;;  %6933 = vmatpush3.bf16.msra.mxu1 %v6930_v7  ;;  %v4756_v7 = vld [vmem:[%s8705_s4 + $0x438] sm:$0xff]  ;;  %v6978_v56 = vpack.c.bf16 %v4758_v52, %v4757_v62 }
 0x311   : > { %6935 = vmatprep.subr.bf16.mxu1 %v6934_v51  ;;  %v6974_v49 = vpack.c.bf16 %v4756_v7, %v4755_v29  ;;  %v4786_v29 = vld [vmem:[%s8705_s4 + $0x528] sm:$0xff]  ;;  %v4009_v62 = vld [vmem:[#allocation3 + $0x44] sm:$0xff] }
 0x312   : > { %v4792_v52 = vld [vmem:[%s8705_s4 + $0x558] sm:$0xff] }
 0x313   : > { %6170 = vmatmul.mubr.f32.gmra.mrb[2].mxu1 %v3543_v42  ;;  %v4759_v42 = vld [vmem:[%s8705_s4 + $0x450] sm:$0xff] }
 0x314   : > { %6172 = vmatprep.mubr.f32.mxu1 %v3544_v2  ;;  %6937 = vmatpush3.bf16.msra.mxu1 %v6934_v51  ;;  %v3699_v51 = vld [vmem:[#allocation3 + $0x32] sm:$0xff]  ;;  %v6982_v63 = vpack.c.bf16 %v4760_v61, %v4759_v42  ;;  %v4163_v61 = vld [vmem:[#allocation3 + $0x45] sm:$0xff] }
 0x315   : > { %6939 = vmatprep.subr.bf16.mxu1 %v6938_v57  ;;  %v4761_v2 = vld [vmem:[%s8705_s4 + $0x460] sm:$0xff] }
 0x317   : > { %6173 = vmatmul.mubr.f32.gmra.mrb[4].mxu1 %v3545_v58 }
 0x318   : > { %6175 = vmatprep.mubr.f32.mxu1 %v3546_v14  ;;  %6941 = vmatpush3.bf16.msra.mxu1 %v6938_v57  ;;  %v3701_v57 = vld [vmem:[#allocation3 + $0x42] sm:$0xff]  ;;  %v4765_v14 = vld [vmem:[%s8705_s4 + $0x480] sm:$0xff] }
 0x319   : > { %6943 = vmatprep.subr.bf16.mxu1 %v6942_v6 }
 0x31b   : > { %6176 = vmatmul.mubr.f32.gmra.mrb[6].mxu1 %v3547_v16 }
 0x31c   : > { %6945 = vmatpush3.bf16.msra.mxu1 %v6942_v6  ;;  %6210 = vmatprep.mubr.f32.mxu1 %v3694_v24  ;;  %v4762_v6 = vld [vmem:[%s8705_s4 + $0x468] sm:$0xff]  ;;  %v6998_v24 = vpack.c.bf16 %v4768_v21, %v4767_v17  ;;  %v7283_v21 = vld [vmem:[#allocation3 + $0x30] sm:$0xff] }
 0x31d   : > { %6947 = vmatprep.subr.bf16.mxu1 %v6946_v50  ;;  %v6986_v58 = vpack.c.bf16 %v4762_v6, %v4761_v2  ;;  %v7279_v2 = vld [vmem:[#allocation3 + $0x10] sm:$0xff] }
 0x320   : > { %6949 = vmatpush3.bf16.msra.mxu1 %v6946_v50  ;;  %v4766_v50 = vld [vmem:[%s8705_s4 + $0x488] sm:$0xff] }
 0x321   : > { %6951 = vmatprep.subr.bf16.mxu1 %v6950_v31  ;;  %v6994_v16 = vpack.c.bf16 %v4766_v50, %v4765_v14 }
 0x324   : > { %6953 = vmatpush3.bf16.msra.mxu1 %v6950_v31  ;;  %v4769_v31 = vld [vmem:[%s8705_s4 + $0x4a0] sm:$0xff] }
 0x325   : > { %6955 = vmatprep.subr.bf16.mxu1 %v6954_v37  ;;  %v7002_v34 = vpack.c.bf16 %v4770_v20, %v4769_v31  ;;  %v7284_v20 = vld [vmem:[#allocation3 + $0x28] sm:$0xff] }
 0x328   : > { %6957 = vmatpush3.bf16.msra.mxu1 %v6954_v37  ;;  %v4771_v37 = vld [vmem:[%s8705_s4 + $0x4b0] sm:$0xff] }
 0x329   : > { %6959 = vmatprep.subr.bf16.mxu1 %v6958_v1 }
 0x32c   : > { %6961 = vmatpush3.bf16.msra.mxu1 %v6958_v1  ;;  %v3855_v1 = vld [vmem:[#allocation3 + $0x43] sm:$0xff] }
 0x32d   : > { %6963 = vmatprep.subr.bf16.mxu1 %v6962_v22 }
 0x32f   : > { %6211 = vmatmul.mubr.f32.vlgmr.msra.gmra.mrb[0].mxu1 %v3695_v30  ;;  %v4782_v30 = vld [vmem:[%s8705_s4 + $0x508] sm:$0xff] }
 0x330   : > { %6213 = vmatprep.mubr.f32.mxu1 %v3696_v23  ;;  %6965 = vmatpush3.bf16.msra.mxu1 %v6962_v22  ;;  %v4784_v23 = vld [vmem:[%s8705_s4 + $0x518] sm:$0xff] }
 0x331   : > { %6967 = vmatprep.subr.bf16.mxu1 %v6966_v38 }
 0x333   : > { %6214 = vmatmul.mubr.f32.gmra.mrb[2].mxu1 %v3697_v45  ;;  %v4785_v45 = vld [vmem:[%s8705_s4 + $0x520] sm:$0xff] }
 0x334   : > { %6216 = vmatprep.mubr.f32.mxu1 %v3698_v36  ;;  %6969 = vmatpush3.bf16.msra.mxu1 %v6966_v38  ;;  %v4781_v38 = vld [vmem:[%s8705_s4 + $0x500] sm:$0xff]  ;;  %v7034_v7 = vpack.c.bf16 %v4786_v29, %v4785_v45  ;;  %v4787_v36 = vld [vmem:[%s8705_s4 + $0x530] sm:$0xff] }
 0x335   : > { %6971 = vmatprep.subr.bf16.mxu1 %v6970_v28  ;;  %v7026_v40 = vpack.c.bf16 %v4782_v30, %v4781_v38 }
 0x337   : > { %6217 = vmatmul.mubr.f32.gmra.mrb[4].mxu1 %v3699_v51  ;;  %v4790_v51 = vld [vmem:[%s8705_s4 + $0x548] sm:$0xff] }
 0x338   : > { %6219 = vmatprep.mubr.f32.mxu1 %v3700_v55  ;;  %6973 = vmatpush3.bf16.msra.mxu1 %v6970_v28  ;;  %v7030_v28 = vpack.c.bf16 %v4784_v23, %v4783_v35  ;;  %v4794_v55 = vld [vmem:[%s8705_s4 + $0x568] sm:$0xff] }
 0x339   : > { %6975 = vmatprep.subr.bf16.mxu1 %v6974_v49 }
 0x33b   : > { %6220 = vmatmul.mubr.f32.gmra.mrb[6].mxu1 %v3701_v57  ;;  %v4795_v57 = vld [vmem:[%s8705_s4 + $0x570] sm:$0xff] }
 0x33c   : > { %6977 = vmatpush3.bf16.msra.mxu1 %v6974_v49  ;;  %6254 = vmatprep.mubr.f32.mxu1 %v8112_v41  ;;  %v4764_v41 = vld [vmem:[%s8705_s4 + $0x478] sm:$0xff] }
 0x33d   : > { %6979 = vmatprep.subr.bf16.mxu1 %v6978_v56  ;;  %v6990_v44 = vpack.c.bf16 %v4764_v41, %v4763_v11  ;;  %v4788_v49 = vld [vmem:[%s8705_s4 + $0x538] sm:$0xff] }
 0x340   : > { %6981 = vmatpush3.bf16.msra.mxu1 %v6978_v56 }
 0x341   : > { %6983 = vmatprep.subr.bf16.mxu1 %v6982_v63 }
 0x344   : > { %6985 = vmatpush3.bf16.msra.mxu1 %v6982_v63  ;;  %v4636_v63 = vld [vmem:[%s8706_s5] ss:$0 sm:$0xff] }
 0x345   : > { %6987 = vmatprep.subr.bf16.mxu1 %v6986_v58  ;;  %v2594_v6 = vadd.f32 %v7279_v2, %v4636_v63 }
 0x348   : > { %6989 = vmatpush3.bf16.msra.mxu1 %v6986_v58  ;;  %v7281_v58 = vld [vmem:[#allocation3 + $0x20] sm:$0xff] }
 0x349   : > { %6991 = vmatprep.subr.bf16.mxu1 %v6990_v44  ;;  %v2596_v11 = vadd.f32 %v7281_v58, %v4636_v63 }
 0x34c   : > { %6993 = vmatpush3.bf16.msra.mxu1 %v6990_v44  ;;  %v7282_v44 = vld [vmem:[#allocation3 + $0x18] sm:$0xff] }
 0x34d   : > { %6995 = vmatprep.subr.bf16.mxu1 %v6994_v16  ;;  %v2595_v14 = vadd.f32 %v7282_v44, %v4636_v63 }
 0x34f   : > { %6255 = vmatmul.mubr.f32.vlgmr.msra.gmra.mrb[0].mxu1 %v8114_v43  ;;  %v7006_v43 = vpack.c.bf16 %v4772_v47, %v4771_v37 }
 0x350   : > { %6257 = vmatprep.mubr.f32.mxu1 %v8128_v46  ;;  %6997 = vmatpush3.bf16.msra.mxu1 %v6994_v16  ;;  %v4773_v46 = vld [vmem:[%s8705_s4 + $0x4c0] sm:$0xff] }
 0x351   : > { %6999 = vmatprep.subr.bf16.mxu1 %v6998_v24 }
 0x353   : > { %6258 = vmatmul.mubr.f32.gmra.mrb[2].mxu1 %v8130_v3  ;;  %v7010_v3 = vpack.c.bf16 %v4774_v10, %v4773_v46  ;;  %v7285_v46 = vld [vmem:[#allocation3 + $0x40] sm:$0xff] }
 0x354   : > { %6260 = vmatprep.mubr.f32.mxu1 %v8141_v39  ;;  %7001 = vmatpush3.bf16.msra.mxu1 %v6998_v24  ;;  %v4775_v39 = vld [vmem:[%s8705_s4 + $0x4d0] sm:$0xff]  ;;  %v2598_v24 = vadd.f32 %v7283_v21, %v4636_v63  ;;  %v2600_v10 = vadd.f32 %v7285_v46, %v4636_v63 }
 0x355   : > { %7003 = vmatprep.subr.bf16.mxu1 %v7002_v34 }
 0x357   : > { %6261 = vmatmul.mubr.f32.gmra.mrb[4].mxu1 %v8143_v9  ;;  %v7014_v9 = vpack.c.bf16 %v4776_v25, %v4775_v39 }
 0x358   : > { %6263 = vmatprep.mubr.f32.mxu1 %v8150_v48  ;;  %7005 = vmatpush3.bf16.msra.mxu1 %v7002_v34  ;;  %v4777_v48 = vld [vmem:[%s8705_s4 + $0x4e0] sm:$0xff]  ;;  %v2597_v34 = vadd.f32 %v7284_v20, %v4636_v63 }
 0x359   : > { %7007 = vmatprep.subr.bf16.mxu1 %v7006_v43  ;;  %v7018_v22 = vpack.c.bf16 %v4778_v18, %v4777_v48 }
 0x35b   : > { %6264 = vmatmul.mubr.f32.gmra.mrb[6].mxu1 %v3855_v1  ;;  %v7286_v1 = vld [vmem:[#allocation3 + $0x38] sm:$0xff] }
 0x35c   : > { %7009 = vmatpush3.bf16.msra.mxu1 %v7006_v43  ;;  %6298 = vmatprep.mubr.f32.mxu1 %v8183_v8  ;;  %v4780_v8 = vld [vmem:[%s8705_s4 + $0x4f8] sm:$0xff]  ;;  %v2599_v39 = vadd.f32 %v7286_v1, %v4636_v63 }
 0x35d   : > { %7011 = vmatprep.subr.bf16.mxu1 %v7010_v3  ;;  %v7022_v33 = vpack.c.bf16 %v4780_v8, %v4779_v26 }
 0x360   : > { %7013 = vmatpush3.bf16.msra.mxu1 %v7010_v3 }
 0x361   : > { %7015 = vmatprep.subr.bf16.mxu1 %v7014_v9 }
 0x364   : > { %7017 = vmatpush3.bf16.msra.mxu1 %v7014_v9 }
 0x365   : > { %7019 = vmatprep.subr.bf16.mxu1 %v7018_v22 }
 0x368   : > { %7021 = vmatpush3.bf16.msra.mxu1 %v7018_v22 }
 0x369   : > { %7023 = vmatprep.subr.bf16.mxu1 %v7022_v33 }
 0x36c   : > { %7025 = vmatpush3.bf16.msra.mxu1 %v7022_v33 }
 0x36d   : > { %7027 = vmatprep.subr.bf16.mxu1 %v7026_v40 }
 0x36f   : > { %6299 = vmatmul.mubr.f32.vlgmr.msra.gmra.mrb[0].mxu1 %v8192_v13  ;;  %v7038_v13 = vpack.c.bf16 %v4788_v49, %v4787_v36 }
 0x370   : > { %6301 = vmatprep.mubr.f32.mxu1 %v8195_v15  ;;  %7029 = vmatpush3.bf16.msra.mxu1 %v7026_v40  ;;  %v4789_v15 = vld [vmem:[%s8705_s4 + $0x540] sm:$0xff] }
 0x371   : > { %7031 = vmatprep.subr.bf16.mxu1 %v7030_v28 }
 0x373   : > { %6302 = vmatmul.mubr.f32.gmra.mrb[2].mxu1 %v8204_v53  ;;  %v7042_v53 = vpack.c.bf16 %v4790_v51, %v4789_v15 }
 0x374   : > { %6304 = vmatprep.mubr.f32.mxu1 %v8207_v19  ;;  %7033 = vmatpush3.bf16.msra.mxu1 %v7030_v28  ;;  %v4791_v19 = vld [vmem:[%s8705_s4 + $0x550] sm:$0xff] }
 0x375   : > { %7035 = vmatprep.subr.bf16.mxu1 %v7034_v7 }
 0x377   : > { %6305 = vmatmul.mubr.f32.gmra.mrb[4].mxu1 %v8216_v27  ;;  %v7046_v27 = vpack.c.bf16 %v4792_v52, %v4791_v19 }
 0x378   : > { %6307 = vmatprep.mubr.f32.mxu1 %v8219_v32  ;;  %7037 = vmatpush3.bf16.msra.mxu1 %v7034_v7  ;;  %v4793_v32 = vld [vmem:[%s8705_s4 + $0x560] sm:$0xff] }
 0x379   : > { %7039 = vmatprep.subr.bf16.mxu1 %v7038_v13  ;;  %v7050_v56 = vpack.c.bf16 %v4794_v55, %v4793_v32 }
 0x37b   : > { %6308 = vmatmul.mubr.f32.gmra.mrb[6].mxu1 %v4009_v62 }
 0x37c   : > { %7041 = vmatpush3.bf16.msra.mxu1 %v7038_v13  ;;  %6342 = vmatprep.mubr.f32.mxu1 %v8252_v12  ;;  %v4796_v12 = vld [vmem:[%s8705_s4 + $0x578] sm:$0xff] }
 0x37d   : > { %7043 = vmatprep.subr.bf16.mxu1 %v7042_v53  ;;  %v7054_v42 = vpack.c.bf16 %v4796_v12, %v4795_v57 }
 0x380   : > { %7045 = vmatpush3.bf16.msra.mxu1 %v7042_v53 }
 0x381   : > { %7047 = vmatprep.subr.bf16.mxu1 %v7046_v27 }
 0x384   : > { %7049 = vmatpush3.bf16.msra.mxu1 %v7046_v27 }
 0x385   : > { %7051 = vmatprep.subr.bf16.mxu1 %v7050_v56 }
 0x388   : > { %7053 = vmatpush3.bf16.msra.mxu1 %v7050_v56 }
 0x389   : > { %7055 = vmatprep.subr.bf16.mxu1 %v7054_v42 }
 0x38c   : > { %7057 = vmatpush3.bf16.msra.mxu1 %v7054_v42 }
 0x38f   : > { %6343 = vmatmul.mubr.f32.vlgmr.msra.gmra.mrb[0].mxu1 %v8261_v54 }
 0x390   : > { %6345 = vmatprep.mubr.f32.mxu1 %v8264_v5  ;;  %v7280_v5 = vld [vmem:[#allocation3 + $0x8] sm:$0xff] }
 0x393   : > { %6346 = vmatmul.mubr.f32.gmra.mrb[2].mxu1 %v8273_v59  ;;  %v2593_v59 = vadd.f32 %v7280_v5, %v4636_v63 }
 0x394   : > { %6348 = vmatprep.mubr.f32.mxu1 %v8276_v60 }
 0x397   : > { %6349 = vmatmul.mubr.f32.gmra.mrb[4].mxu1 %v8285_v0 }
 0x398   : > { %6351 = vmatprep.mubr.f32.mxu1 %v8288_v4 }
 0x39b   : > { %6352 = vmatmul.mubr.f32.gmra.mrb[6].mxu1 %v4163_v61 }
 0x462   : > { %v6344_v54 = vpop.f32.mrb[0].mxu1 }
 0x463   : > { %v7066_v60 = vadd.f32 %v6344_v54, %v2594_v6  ;;  %v4247_v0 = vpop.f32.mrb[1].mxu1 }
 0x464   : > { %v7067_v4 = vadd.f32 %v4247_v0, %v2593_v59 }
 0x465   : > { %4311 = vst [vmem:[%s8682_s14 + $0x8] sm:$0xff] %v7066_v60 }
 0x466   : > { %4310 = vst [vmem:[%s8682_s14] sm:$0xff] %v7067_v4  ;;  %v6347_v41 = vpop.f32.mrb[2].mxu1 }
 0x467   : > { %v7068_v50 = vadd.f32 %v6347_v41, %v2596_v11  ;;  %v4257_v16 = vpop.f32.mrb[3].mxu1 }
 0x468   : > { %v7069_v17 = vadd.f32 %v4257_v16, %v2595_v14 }
 0x469   : > { %4313 = vst [vmem:[%s8682_s14 + $0x18] sm:$0xff] %v7068_v50 }
 0x46a   : > { %4312 = vst [vmem:[%s8682_s14 + $0x10] sm:$0xff] %v7069_v17  ;;  %v6350_v31 = vpop.f32.mrb[4].mxu1 }
 0x46b   : > { %v7070_v37 = vadd.f32 %v6350_v31, %v2598_v24  ;;  %v4267_v47 = vpop.f32.mrb[5].mxu1 }
 0x46c   : > { %v7071_v43 = vadd.f32 %v4267_v47, %v2597_v34 }
 0x46d   : > { %4315 = vst [vmem:[%s8682_s14 + $0x28] sm:$0xff] %v7070_v37 }
 0x46e   : > { %4314 = vst [vmem:[%s8682_s14 + $0x20] sm:$0xff] %v7071_v43  ;;  %v6353_v3 = vpop.f32.mrb[6].mxu1 }
 0x46f   : > { %v7072_v25 = vadd.f32 %v6353_v3, %v2600_v10  ;;  %v4277_v9 = vpop.f32.mrb[7].mxu1 }
 0x470   : > { %v7073_v48 = vadd.f32 %v4277_v9, %v2599_v39 }
 0x471   : > { %4317 = vst [vmem:[%s8682_s14 + $0x38] sm:$0xff] %v7072_v25 }
 0x472   : > { %4316 = vst [vmem:[%s8682_s14 + $0x30] sm:$0xff] %v7073_v48 }
 0x473 PF: > { %s16_s1 = sadd.s32 1, %s7309_s1   ;;  %s8708_s21 = smov %s7305_s22 }
 0x474   : > { %p13_p5 = scmp.ge.s32.totalorder %s16_s1, 4   ;;  %s8709_s22 = smov %s8711_s23 }
 0x476   :  { %15 = sbr.rel (!%p13_p5) target bundleno = 2 (0x2), region = 223 }
 0x47d   :  { %4348 = vsyncmov [#allocation7] }
 0x480   :  { %s4349_s12 = vpop.sfrf %4348 }
 0x481   :  { %p4799_p6 = scmp.ne.s32.totalorder %s4349_s12, 0 }
 0x483   :  { %4353 = shalt.err (%p4799_p6)  }
 0x484   :  { %4355 = vsyncmov [#allocation7 + $0x1] }
 0x487   :  { %s4356_s15 = vpop.sfrf %4355 }
 0x488   :  { %p4800_p7 = scmp.ne.s32.totalorder %s4356_s15, 0 }
 0x48a   :  { %4360 = shalt.err (%p4800_p7)  }

</bundles_post_ra>
